<compile_context>
chip_gen: v5e
topology: v5e:2x2
jax: 0.10.0
libtpu: 0.0.40
codegen_flags: <defaults>
</compile_context>

<pallas_src>
import math
from functools import partial

import jax
import jax.numpy as jnp
from jax import lax
from jax.experimental import pallas as pl
from jax.experimental.pallas import tpu as pltpu

LN_EPS = 1e-5            # nn.LayerNorm default eps
TABLE_STEPS = 2048       # quantum lookup-table resolution (module buffer)
TWO_PI = 2.0 * math.pi
_IDX_SCALE = TABLE_STEPS / TWO_PI           # phase diff -> table coordinate
_ANGLE_SCALE = TWO_PI / (TABLE_STEPS - 1)   # table index -> angle (linspace step)


# ---------------------------------------------------------------------------
# Math helpers shared by the kernel and the plain-JAX reference so both sides
# agree on the table discretization.
# ---------------------------------------------------------------------------
def _layernorm_f32(h, gamma, beta):
    mu = jnp.mean(h, axis=-1, keepdims=True)
    var = jnp.mean((h - mu) ** 2, axis=-1, keepdims=True)
    return (h - mu) * lax.rsqrt(var + LN_EPS) * gamma + beta


def _softmax_ref(s):
    m = jnp.max(s, axis=-1, keepdims=True)
    e = jnp.exp(s - m)
    return e / jnp.sum(e, axis=-1, keepdims=True)


def _quantum_interference(phase_diff):
    """cos_table[floor(phase_diff / 2pi * 2048) mod 2048] with
    cos_table = cos(linspace(0, 2pi, 2048)), evaluated in closed form.

    floor-then-mod keeps the index exactly in [0, 2047] (the module's
    mod-then-floor order can produce 2048 for tiny negative inputs).
    cos() itself uses a half-turn range reduction + even Taylor polynomial
    (+, *, floor, select only -- guaranteed to lower in Mosaic); abs error
    < 3e-5, far below the ~3e-3 table-bin step.
    """
    f = jnp.floor(phase_diff * _IDX_SCALE)
    idx = f - jnp.floor(f * (1.0 / TABLE_STEPS)) * TABLE_STEPS     # f mod 2048
    angle = idx * _ANGLE_SCALE                                     # in [0, 2pi]
    h = jnp.floor(angle * (1.0 / math.pi) + 0.5)                   # half turns
    r = angle - h * math.pi                                        # |r| <= pi/2
    r2 = r * r
    cos_r = 1.0 + r2 * (-0.5 + r2 * (1.0 / 24.0 + r2 * (-1.0 / 720.0
                                                        + r2 * (1.0 / 40320.0))))
    sign = 1.0 - 2.0 * (h - 2.0 * jnp.floor(h * 0.5))              # (-1)^h
    return cos_r * sign


# ---------------------------------------------------------------------------
# Pallas kernel: one full batch element per grid step.
# ---------------------------------------------------------------------------
def _hqa_kernel(num_heads, quantum_heads,
                qparams_ref,      # SMEM (2, QH): row0 = frequencies, row1 = phase shifts
                x_ref,            # VMEM (S, D)   one batch element, f32
                w_qs_ref,         # VMEM (hd, 2hd)  to_quantum_state weight (in, out), f32
                qs_affine_ref,    # VMEM (3, 2hd)   [bias; LN gamma; LN beta], f32
                w_qkv_ref,        # VMEM (D, 3*td)  fused q|k|v projection, bf16
                w_out_ref,        # VMEM (D, D)     to_out weight (in, out), bf16
                b_out_ref,        # VMEM (1, D)     to_out bias, f32
                o_ref,            # VMEM (S, D)
                comb_ref):        # VMEM scratch (S, D) f32 -- streamed head outputs
    S, D = x_ref.shape
    hd = D // num_heads
    th = num_heads - quantum_heads
    td = th * hd
    inv_sqrt_hd = 1.0 / math.sqrt(hd)

    def softmax(s):
        m = jnp.max(s, axis=-1, keepdims=True)
        e = jnp.exp(s - m)
        return e * pl.reciprocal(jnp.sum(e, axis=-1, keepdims=True), approx=True)

    x = x_ref[...].astype(jnp.float32)
    x_bf = x.astype(jnp.bfloat16)

    # ------------------------- quantum heads ------------------------------
    # to_quantum_state feeds LayerNorm -> tanh -> phase -> floor bin index,
    # so this one matmul stays f32.  Heads are stacked along rows so the
    # projection + bias/LN/tanh run exactly once.
    xq = jnp.concatenate(
        [x[:, h * hd:(h + 1) * hd] for h in range(quantum_heads)], axis=0)  # (QH*S, hd)
    qs = jnp.dot(xq, w_qs_ref[...],
                 preferred_element_type=jnp.float32) + qs_affine_ref[0:1, :]
    qs = jnp.tanh(_layernorm_f32(qs, qs_affine_ref[1:2, :],
                                 qs_affine_ref[2:3, :]))                    # (QH*S, 2hd)

    for h in range(quantum_heads):
        amp = qs[h * S:(h + 1) * S, :hd]                          # (S, hd); S == hd
        phase = qs[h * S:(h + 1) * S, hd:]
        freq = qparams_ref[0, h]
        shift = qparams_ref[1, h]
        # q_chunk == k == x_head (single chunk), so q_phase == k_phase == phase.
        phase_diff = (phase - phase.T) * freq + shift             # (S, S)
        inter = _quantum_interference(phase_diff)                 # (S, S) f32
        # 1/sqrt(hd) folded into the LHS; bf16 inputs, f32 accumulation.
        lhs = (amp * inv_sqrt_hd).astype(jnp.bfloat16)
        rhs = (amp.T * inter).astype(jnp.bfloat16)
        attn = softmax(jnp.dot(lhs, rhs, preferred_element_type=jnp.float32))
        head_out = jnp.dot(attn.astype(jnp.bfloat16),
                           x_bf[:, h * hd:(h + 1) * hd],
                           preferred_element_type=jnp.float32)
        comb_ref[:, h * hd:(h + 1) * hd] = head_out

    # --------------- traditional heads (fused QKV matmul) -----------------
    # NOTE: the PyTorch module's baddbmm accumulates an uninitialized
    # torch.empty with beta=1; we implement the evident intent (beta=0).
    qkv = jnp.dot(x_bf, w_qkv_ref[...], preferred_element_type=jnp.float32)  # (S, 3*td)
    for t in range(th):
        q_h = (qkv[:, t * hd:(t + 1) * hd] * inv_sqrt_hd).astype(jnp.bfloat16)
        k_h = qkv[:, td + t * hd: td + (t + 1) * hd].astype(jnp.bfloat16)
        v_h = qkv[:, 2 * td + t * hd: 2 * td + (t + 1) * hd].astype(jnp.bfloat16)
        scores = lax.dot_general(q_h, k_h, (((1,), (1,)), ((), ())),
                                 preferred_element_type=jnp.float32)
        attn = softmax(scores)
        comb_ref[:, (quantum_heads + t) * hd:(quantum_heads + t + 1) * hd] = (
            jnp.dot(attn.astype(jnp.bfloat16), v_h,
                    preferred_element_type=jnp.float32))

    # ------------------------- combine + to_out ---------------------------
    combined = comb_ref[...].astype(jnp.bfloat16)                 # (S, D)
    y = jnp.dot(combined, w_out_ref[...],
                preferred_element_type=jnp.float32) + b_out_ref[...]
    o_ref[...] = y.astype(o_ref.dtype)


# ---------------------------------------------------------------------------
# Wrapper
# ---------------------------------------------------------------------------
def fast_hybrid_quantum_attention(x, params, *, chunk_size=256):
    """x: (B, S, dim) float32; params: see init_params."""
    B, S, D = x.shape
    num_heads = params["num_heads"]
    quantum_heads = params["quantum_heads"]
    assert D % num_heads == 0
    hd = D // num_heads
    th = num_heads - quantum_heads
    td = th * hd
    assert quantum_heads >= 1 and th >= 1
    # The reference module's quantum-interference broadcast
    # (q_phase - k_phase.transpose(-2, -1)) is only defined when the query
    # chunk, seq_len and head_dim coincide.
    assert S == hd and S <= chunk_size, "module requires seq_len == head_dim (single chunk)"

    kernel = partial(_hqa_kernel, num_heads, quantum_heads)

    # Constant-index weight blocks: block index never changes across the grid,
    # so single-buffer them (double-buffering would just waste VMEM -- matters
    # on v7x's 64 MiB VMEM once dim grows).
    def const_spec(shape):
        return pl.BlockSpec(shape, lambda b, _n=len(shape): (0,) * _n,
                            pipeline_mode=pl.Buffered(1))

    # bf16 copies of the weights that only feed bf16-in / f32-acc matmuls.
    w_qkv_bf = params["w_qkv"].astype(jnp.bfloat16)
    w_out_bf = params["w_out"].astype(jnp.bfloat16)

    # Advisory cost estimate so XLA schedules the call sensibly inside a model.
    flops = B * (
        2 * quantum_heads * S * hd * 2 * hd          # fused quantum projection
        + quantum_heads * 4 * S * S * hd             # quantum scores + attn@V
        + 2 * S * D * 3 * td                         # fused QKV projection
        + th * 4 * S * S * hd                        # traditional scores + attn@V
        + 2 * S * D * D)                             # out projection
    transcendentals = B * (quantum_heads * S * 2 * hd     # tanh
                           + num_heads * S * S            # softmax exp
                           + num_heads * S)               # approx reciprocal
    bytes_accessed = (4 * 2 * B * S * D                              # x in + out
                      + 4 * (hd * 2 * hd + 3 * 2 * hd + D + 2 * quantum_heads)
                      + 2 * (D * 3 * td + D * D))                    # bf16 weights

    return pl.pallas_call(
        kernel,
        out_shape=jax.ShapeDtypeStruct((B, S, D), x.dtype),
        grid_spec=pltpu.PrefetchScalarGridSpec(
            num_scalar_prefetch=0,
            grid=(B,),                                               # one batch element / step
            in_specs=[
                pl.BlockSpec(memory_space=pltpu.MemorySpace.SMEM),   # qparams (2, QH)
                pl.BlockSpec((None, S, D), lambda b: (b, 0, 0)),     # x (lane-dense slab)
                const_spec((hd, 2 * hd)),                            # w_qs (f32)
                const_spec((3, 2 * hd)),                             # qs_affine (f32)
                const_spec((D, 3 * td)),                             # w_qkv (bf16, fused)
                const_spec((D, D)),                                  # w_out (bf16)
                const_spec((1, D)),                                  # b_out (f32)
            ],
            out_specs=pl.BlockSpec((None, S, D), lambda b: (b, 0, 0)),
            scratch_shapes=[pltpu.VMEM((S, D), jnp.float32)],        # streamed head outputs
        ),
        compiler_params=pltpu.CompilerParams(
            dimension_semantics=("parallel",)),       # megacore: batches split across TCs
        cost_estimate=pl.CostEstimate(
            flops=flops, transcendentals=transcendentals,
            bytes_accessed=bytes_accessed),
    )(params["qparams"], x, params["w_qs"], params["qs_affine"],
      w_qkv_bf, w_out_bf, params["b_out"])


# ---------------------------------------------------------------------------
# Parameters (PyTorch-style init, weights pre-transposed to (in, out), small
# tensors pre-packed).
# ---------------------------------------------------------------------------
def init_params(key, dim, num_heads=4, quantum_heads=2):
    hd = dim // num_heads
    th = num_heads - quantum_heads
    td = th * hd
    ks = jax.random.split(key, 8)

    def linear(k, fan_in, fan_out, bias=True):
        bound = 1.0 / math.sqrt(fan_in)
        kw, kb = jax.random.split(k)
        w = jax.random.uniform(kw, (fan_in, fan_out), jnp.float32, -bound, bound)
        b = (jax.random.uniform(kb, (1, fan_out), jnp.float32, -bound, bound)
             if bias else None)
        return w, b

    w_qs, b_qs = linear(ks[0], hd, 2 * hd)
    qs_affine = jnp.concatenate(
        [b_qs, jnp.ones((1, 2 * hd), jnp.float32),
         jnp.zeros((1, 2 * hd), jnp.float32)], axis=0)            # (3, 2hd)

    w_q, _ = linear(ks[1], dim, td, bias=False)
    w_k, _ = linear(ks[2], dim, td, bias=False)
    w_v, _ = linear(ks[3], dim, td, bias=False)
    w_qkv = jnp.concatenate([w_q, w_k, w_v], axis=1)              # (D, 3*td)

    w_out, b_out = linear(ks[4], dim, dim)

    freqs = 0.02 * jax.random.normal(ks[5], (quantum_heads,), jnp.float32)
    shifts = 0.02 * jax.random.normal(ks[6], (quantum_heads,), jnp.float32)
    qparams = jnp.stack([freqs, shifts], axis=0)                  # (2, QH)

    return dict(num_heads=num_heads, quantum_heads=quantum_heads,
                w_qs=w_qs, qs_affine=qs_affine, qparams=qparams,
                w_qkv=w_qkv, w_out=w_out, b_out=b_out)


# ---------------------------------------------------------------------------
# Plain-JAX reference mirroring the PyTorch forward (mask=None, single chunk),
# f32 / highest precision throughout.
# ---------------------------------------------------------------------------
def reference_attention(x, params):
    B, S, D = x.shape
    num_heads = params["num_heads"]
    quantum_heads = params["quantum_heads"]
    hd = D // num_heads
    th = num_heads - quantum_heads
    td = th * hd
    hp = lax.Precision.HIGHEST
    inv_sqrt_hd = 1.0 / math.sqrt(hd)

    w_qs = params["w_qs"]
    b_qs, g_qs, beta_qs = (params["qs_affine"][0:1], params["qs_affine"][1:2],
                           params["qs_affine"][2:3])
    freqs, shifts = params["qparams"][0], params["qparams"][1]
    w_qkv, w_out, b_out = params["w_qkv"], params["w_out"], params["b_out"]

    out = jnp.zeros_like(x)
    for h in range(quantum_heads):
        xh = x[..., h * hd:(h + 1) * hd]                          # (B, S, hd)
        qs = jnp.einsum("bsd,de->bse", xh, w_qs, precision=hp) + b_qs
        qs = jnp.tanh(_layernorm_f32(qs, g_qs, beta_qs))
        amp, phase = qs[..., :hd], qs[..., hd:]
        pd = (phase - jnp.swapaxes(phase, -2, -1)) * freqs[h] + shifts[h]
        inter = _quantum_interference(pd)
        scores = jnp.einsum("bik,bkj->bij", amp,
                            jnp.swapaxes(amp, -2, -1) * inter,
                            precision=hp) * inv_sqrt_hd
        attn = _softmax_ref(scores)
        head_out = jnp.einsum("bij,bjd->bid", attn, xh, precision=hp)
        out = out.at[..., h * hd:(h + 1) * hd].set(head_out)

    qkv = jnp.einsum("bsd,de->bse", x, w_qkv, precision=hp)
    q = qkv[..., :td].reshape(B, S, th, hd)
    k = qkv[..., td:2 * td].reshape(B, S, th, hd)
    v = qkv[..., 2 * td:].reshape(B, S, th, hd)
    scores = jnp.einsum("bqtd,bktd->btqk", q, k, precision=hp) * inv_sqrt_hd
    attn = _softmax_ref(scores)
    t_out = jnp.einsum("btqk,bktd->bqtd", attn, v, precision=hp).reshape(B, S, td)
    out = out.at[..., quantum_heads * hd:].set(t_out)

    return jnp.einsum("bsd,de->bse", out, w_out, precision=hp) + b_out


if __name__ == "__main__":
    # seq_len must equal head_dim for the module's quantum-interference
    # broadcast to be defined; dim=512 with 4 heads gives head_dim = seq = 128,
    # the TPU lane width, so every slice/transpose/store is (8,128)-aligned.
    # batch=2 is a multiple of the v7x TensorCore count (megacore sharding).
    dim, num_heads, quantum_heads = 512, 4, 2
    batch = 2
    seq = dim // num_heads

    key = jax.random.PRNGKey(0)
    kx, kp = jax.random.split(key)
    x = jax.random.normal(kx, (batch, seq, dim), jnp.float32)
    params = init_params(kp, dim, num_heads=num_heads, quantum_heads=quantum_heads)

    out = fast_hybrid_quantum_attention(x, params)
    out = jax.block_until_ready(out)

    ref = reference_attention(x, params)
    assert out.shape == (batch, seq, dim)
    # Tolerance note: the kernel runs the non-phase matmuls with bf16 inputs
    # (f32 accumulation) and an approximate EUP reciprocal in softmax, and the
    # 2048-bin phase->cos lookup can flip an index by one bin under f32
    # round-off; against the f32/HIGHEST reference the max abs error is ~1e-2.
    max_err = float(jnp.max(jnp.abs(out - ref)))
    assert jnp.allclose(out, ref, atol=3e-2, rtol=3e-2), \
        f"mismatch vs reference (max err {max_err})"
    print("KERNEL_OK")
</pallas_src>

<mosaic_0001>
module attributes {stable_mosaic.version = 11 : i64} {
  func.func @_hqa_kernel(%arg0: i32, %arg1: memref<2x2xf32, #tpu.memory_space<smem>>, %arg2: memref<1x128x512xf32, #tpu.memory_space<vmem>>, %arg3: memref<128x256xf32, #tpu.memory_space<vmem>>, %arg4: memref<3x256xf32, #tpu.memory_space<vmem>>, %arg5: memref<512x768xbf16, #tpu.memory_space<vmem>>, %arg6: memref<512x512xbf16, #tpu.memory_space<vmem>>, %arg7: memref<1x512xf32, #tpu.memory_space<vmem>>, %arg8: memref<1x128x512xf32, #tpu.memory_space<vmem>>, %arg9: memref<128x512xf32, #tpu.memory_space<vmem>>) attributes {dimension_semantics = [#tpu.dimension_semantics<parallel>], iteration_bounds = array<i64: 2>, scalar_prefetch = 0 : i64, scratch_operands = 1 : i64, tpu.core_type = #tpu.core_type<tc>, window_params = [{transform_indices = @transform_0, window_bounds = array<i64: 2, 2>}, {transform_indices = @transform_1, window_bounds = array<i64: 1, 128, 512>}, {pipeline_mode = #tpu.pipeline_mode<synchronous>, transform_indices = @transform_2, window_bounds = array<i64: 128, 256>}, {pipeline_mode = #tpu.pipeline_mode<synchronous>, transform_indices = @transform_3, window_bounds = array<i64: 3, 256>}, {pipeline_mode = #tpu.pipeline_mode<synchronous>, transform_indices = @transform_4, window_bounds = array<i64: 512, 768>}, {pipeline_mode = #tpu.pipeline_mode<synchronous>, transform_indices = @transform_5, window_bounds = array<i64: 512, 512>}, {pipeline_mode = #tpu.pipeline_mode<synchronous>, transform_indices = @transform_6, window_bounds = array<i64: 1, 512>}, {transform_indices = @transform_7, window_bounds = array<i64: 1, 128, 512>}]} {
    %c0 = arith.constant 0 : index
    %c0_0 = arith.constant 0 : index
    %c0_1 = arith.constant 0 : index
    %0 = vector.load %arg2[%c0, %c0_0, %c0_1] : memref<1x128x512xf32, #tpu.memory_space<vmem>>, vector<1x128x512xf32>
    %1 = vector.shape_cast %0 : vector<1x128x512xf32> to vector<128x512xf32>
    %2 = arith.truncf %1 : vector<128x512xf32> to vector<128x512xbf16>
    %3 = vector.extract_strided_slice %1 {offsets = [0, 0], sizes = [128, 128], strides = [1, 1]} : vector<128x512xf32> to vector<128x128xf32>
    %4 = vector.extract_strided_slice %1 {offsets = [0, 128], sizes = [128, 128], strides = [1, 1]} : vector<128x512xf32> to vector<128x128xf32>
    %5 = tpu.concatenate %3, %4 in 0 : vector<128x128xf32>, vector<128x128xf32> -> vector<256x128xf32>
    %c0_2 = arith.constant 0 : index
    %c0_3 = arith.constant 0 : index
    %6 = vector.load %arg3[%c0_2, %c0_3] : memref<128x256xf32, #tpu.memory_space<vmem>>, vector<128x256xf32>
    %cst = arith.constant dense<0.000000e+00> : vector<256x256xf32>
    %7 = tpu.matmul %5, %6, %cst {dimension_numbers = #tpu.dot_dimension_numbers<[1], [0], [0], [1], [0, 0, 1, 1], [], []>} : vector<256x128xf32>, vector<128x256xf32>, vector<256x256xf32> -> vector<256x256xf32>
    %c0_4 = arith.constant 0 : index
    %c0_5 = arith.constant 0 : index
    %8 = vector.load %arg4[%c0_4, %c0_5] : memref<3x256xf32, #tpu.memory_space<vmem>>, vector<1x256xf32>
    %9 = vector.broadcast %8 : vector<1x256xf32> to vector<256x256xf32>
    %10 = arith.addf %7, %9 : vector<256x256xf32>
    %c1 = arith.constant 1 : index
    %c0_6 = arith.constant 0 : index
    %11 = vector.load %arg4[%c1, %c0_6] : memref<3x256xf32, #tpu.memory_space<vmem>>, vector<1x256xf32>
    %c2 = arith.constant 2 : index
    %c0_7 = arith.constant 0 : index
    %12 = vector.load %arg4[%c2, %c0_7] : memref<3x256xf32, #tpu.memory_space<vmem>>, vector<1x256xf32>
    %cst_8 = arith.constant dense<0.000000e+00> : vector<256xf32>
    %13 = vector.multi_reduction <add>, %10, %cst_8 [1] : vector<256x256xf32> to vector<256xf32>
    %14 = vector.shape_cast %13 : vector<256xf32> to vector<256x1xf32>
    %cst_9 = arith.constant 2.560000e+02 : f32
    %15 = vector.broadcast %cst_9 : f32 to vector<256x1xf32>
    %16 = arith.divf %14, %15 : vector<256x1xf32>
    %17 = vector.broadcast %16 : vector<256x1xf32> to vector<256x256xf32>
    %18 = arith.subf %10, %17 : vector<256x256xf32>
    %19 = arith.mulf %18, %18 : vector<256x256xf32>
    %cst_10 = arith.constant dense<0.000000e+00> : vector<256xf32>
    %20 = vector.multi_reduction <add>, %19, %cst_10 [1] : vector<256x256xf32> to vector<256xf32>
    %21 = vector.shape_cast %20 : vector<256xf32> to vector<256x1xf32>
    %cst_11 = arith.constant 2.560000e+02 : f32
    %22 = vector.broadcast %cst_11 : f32 to vector<256x1xf32>
    %23 = arith.divf %21, %22 : vector<256x1xf32>
    %24 = vector.broadcast %16 : vector<256x1xf32> to vector<256x256xf32>
    %25 = arith.subf %10, %24 : vector<256x256xf32>
    %cst_12 = arith.constant 9.99999974E-6 : f32
    %26 = vector.broadcast %cst_12 : f32 to vector<256x1xf32>
    %27 = arith.addf %23, %26 : vector<256x1xf32>
    %28 = math.rsqrt %27 : vector<256x1xf32>
    %29 = vector.broadcast %28 : vector<256x1xf32> to vector<256x256xf32>
    %30 = arith.mulf %25, %29 : vector<256x256xf32>
    %31 = vector.broadcast %11 : vector<1x256xf32> to vector<256x256xf32>
    %32 = arith.mulf %30, %31 : vector<256x256xf32>
    %33 = vector.broadcast %12 : vector<1x256xf32> to vector<256x256xf32>
    %34 = arith.addf %32, %33 : vector<256x256xf32>
    %35 = math.tanh %34 : vector<256x256xf32>
    %36 = vector.extract_strided_slice %35 {offsets = [0, 0], sizes = [128, 128], strides = [1, 1]} : vector<256x256xf32> to vector<128x128xf32>
    %37 = vector.extract_strided_slice %35 {offsets = [0, 128], sizes = [128, 128], strides = [1, 1]} : vector<256x256xf32> to vector<128x128xf32>
    %c0_13 = arith.constant 0 : index
    %c0_14 = arith.constant 0 : index
    %38 = memref.load %arg1[%c0_13, %c0_14] : memref<2x2xf32, #tpu.memory_space<smem>>
    %c1_15 = arith.constant 1 : index
    %c0_16 = arith.constant 0 : index
    %39 = memref.load %arg1[%c1_15, %c0_16] : memref<2x2xf32, #tpu.memory_space<smem>>
    %40 = tpu.transpose %37, [1, 0] : vector<128x128xf32> -> vector<128x128xf32>
    %41 = arith.subf %37, %40 : vector<128x128xf32>
    %42 = vector.broadcast %38 : f32 to vector<128x128xf32>
    %43 = arith.mulf %41, %42 : vector<128x128xf32>
    %44 = vector.broadcast %39 : f32 to vector<128x128xf32>
    %45 = arith.addf %43, %44 : vector<128x128xf32>
    %cst_17 = arith.constant 325.94931 : f32
    %46 = vector.broadcast %cst_17 : f32 to vector<128x128xf32>
    %47 = arith.mulf %45, %46 : vector<128x128xf32>
    %48 = math.floor %47 : vector<128x128xf32>
    %cst_18 = arith.constant 4.8828125E-4 : f32
    %49 = vector.broadcast %cst_18 : f32 to vector<128x128xf32>
    %50 = arith.mulf %48, %49 : vector<128x128xf32>
    %51 = math.floor %50 : vector<128x128xf32>
    %cst_19 = arith.constant 2.048000e+03 : f32
    %52 = vector.broadcast %cst_19 : f32 to vector<128x128xf32>
    %53 = arith.mulf %51, %52 : vector<128x128xf32>
    %54 = arith.subf %48, %53 : vector<128x128xf32>
    %cst_20 = arith.constant 0.00306946039 : f32
    %55 = vector.broadcast %cst_20 : f32 to vector<128x128xf32>
    %56 = arith.mulf %54, %55 : vector<128x128xf32>
    %cst_21 = arith.constant 0.318309873 : f32
    %57 = vector.broadcast %cst_21 : f32 to vector<128x128xf32>
    %58 = arith.mulf %56, %57 : vector<128x128xf32>
    %cst_22 = arith.constant 5.000000e-01 : f32
    %59 = vector.broadcast %cst_22 : f32 to vector<128x128xf32>
    %60 = arith.addf %58, %59 : vector<128x128xf32>
    %61 = math.floor %60 : vector<128x128xf32>
    %cst_23 = arith.constant 3.14159274 : f32
    %62 = vector.broadcast %cst_23 : f32 to vector<128x128xf32>
    %63 = arith.mulf %61, %62 : vector<128x128xf32>
    %64 = arith.subf %56, %63 : vector<128x128xf32>
    %65 = arith.mulf %64, %64 : vector<128x128xf32>
    %cst_24 = arith.constant 2.48015876E-5 : f32
    %66 = vector.broadcast %cst_24 : f32 to vector<128x128xf32>
    %67 = arith.mulf %65, %66 : vector<128x128xf32>
    %cst_25 = arith.constant -0.00138888892 : f32
    %68 = vector.broadcast %cst_25 : f32 to vector<128x128xf32>
    %69 = arith.addf %68, %67 : vector<128x128xf32>
    %70 = arith.mulf %65, %69 : vector<128x128xf32>
    %cst_26 = arith.constant 0.0416666679 : f32
    %71 = vector.broadcast %cst_26 : f32 to vector<128x128xf32>
    %72 = arith.addf %71, %70 : vector<128x128xf32>
    %73 = arith.mulf %65, %72 : vector<128x128xf32>
    %cst_27 = arith.constant -5.000000e-01 : f32
    %74 = vector.broadcast %cst_27 : f32 to vector<128x128xf32>
    %75 = arith.addf %74, %73 : vector<128x128xf32>
    %76 = arith.mulf %65, %75 : vector<128x128xf32>
    %cst_28 = arith.constant 1.000000e+00 : f32
    %77 = vector.broadcast %cst_28 : f32 to vector<128x128xf32>
    %78 = arith.addf %77, %76 : vector<128x128xf32>
    %cst_29 = arith.constant 5.000000e-01 : f32
    %79 = vector.broadcast %cst_29 : f32 to vector<128x128xf32>
    %80 = arith.mulf %61, %79 : vector<128x128xf32>
    %81 = math.floor %80 : vector<128x128xf32>
    %cst_30 = arith.constant 2.000000e+00 : f32
    %82 = vector.broadcast %cst_30 : f32 to vector<128x128xf32>
    %83 = arith.mulf %82, %81 : vector<128x128xf32>
    %84 = arith.subf %61, %83 : vector<128x128xf32>
    %cst_31 = arith.constant 2.000000e+00 : f32
    %85 = vector.broadcast %cst_31 : f32 to vector<128x128xf32>
    %86 = arith.mulf %85, %84 : vector<128x128xf32>
    %cst_32 = arith.constant 1.000000e+00 : f32
    %87 = vector.broadcast %cst_32 : f32 to vector<128x128xf32>
    %88 = arith.subf %87, %86 : vector<128x128xf32>
    %89 = arith.mulf %78, %88 : vector<128x128xf32>
    %cst_33 = arith.constant 0.0883883461 : f32
    %90 = vector.broadcast %cst_33 : f32 to vector<128x128xf32>
    %91 = arith.mulf %36, %90 : vector<128x128xf32>
    %92 = arith.truncf %91 : vector<128x128xf32> to vector<128x128xbf16>
    %93 = tpu.transpose %36, [1, 0] : vector<128x128xf32> -> vector<128x128xf32>
    %94 = arith.mulf %93, %89 : vector<128x128xf32>
    %95 = arith.truncf %94 : vector<128x128xf32> to vector<128x128xbf16>
    %cst_34 = arith.constant dense<0.000000e+00> : vector<128x128xf32>
    %96 = tpu.matmul %92, %95, %cst_34 {dimension_numbers = #tpu.dot_dimension_numbers<[1], [0], [0], [1], [0, 0, 1, 1], [], []>} : vector<128x128xbf16>, vector<128x128xbf16>, vector<128x128xf32> -> vector<128x128xf32>
    %cst_35 = arith.constant dense<0xFF800000> : vector<128xf32>
    %97 = vector.multi_reduction <maximumf>, %96, %cst_35 [1] : vector<128x128xf32> to vector<128xf32>
    %98 = vector.shape_cast %97 : vector<128xf32> to vector<128x1xf32>
    %99 = vector.broadcast %98 : vector<128x1xf32> to vector<128x128xf32>
    %100 = arith.subf %96, %99 : vector<128x128xf32>
    %101 = math.exp %100 : vector<128x128xf32>
    %cst_36 = arith.constant dense<0.000000e+00> : vector<128xf32>
    %102 = vector.multi_reduction <add>, %101, %cst_36 [1] : vector<128x128xf32> to vector<128xf32>
    %103 = vector.shape_cast %102 : vector<128xf32> to vector<128x1xf32>
    %104 = tpu.reciprocal %103 {approx = true} : vector<128x1xf32> -> vector<128x1xf32>
    %105 = vector.broadcast %104 : vector<128x1xf32> to vector<128x128xf32>
    %106 = arith.mulf %101, %105 : vector<128x128xf32>
    %107 = arith.truncf %106 : vector<128x128xf32> to vector<128x128xbf16>
    %108 = vector.extract_strided_slice %2 {offsets = [0, 0], sizes = [128, 128], strides = [1, 1]} : vector<128x512xbf16> to vector<128x128xbf16>
    %cst_37 = arith.constant dense<0.000000e+00> : vector<128x128xf32>
    %109 = tpu.matmul %107, %108, %cst_37 {dimension_numbers = #tpu.dot_dimension_numbers<[1], [0], [0], [1], [0, 0, 1, 1], [], []>} : vector<128x128xbf16>, vector<128x128xbf16>, vector<128x128xf32> -> vector<128x128xf32>
    %c0_38 = arith.constant 0 : index
    %c0_39 = arith.constant 0 : index
    %110 = vector.load %arg9[%c0_38, %c0_39] : memref<128x512xf32, #tpu.memory_space<vmem>>, vector<128x128xf32>
    tpu.vector_store %arg9[%c0_38, %c0_39], %109 {strides = array<i32>} : memref<128x512xf32, #tpu.memory_space<vmem>>, vector<128x128xf32>,
    %111 = vector.extract_strided_slice %35 {offsets = [128, 0], sizes = [128, 128], strides = [1, 1]} : vector<256x256xf32> to vector<128x128xf32>
    %112 = vector.extract_strided_slice %35 {offsets = [128, 128], sizes = [128, 128], strides = [1, 1]} : vector<256x256xf32> to vector<128x128xf32>
    %c0_40 = arith.constant 0 : index
    %c1_41 = arith.constant 1 : index
    %113 = memref.load %arg1[%c0_40, %c1_41] : memref<2x2xf32, #tpu.memory_space<smem>>
    %c1_42 = arith.constant 1 : index
    %c1_43 = arith.constant 1 : index
    %114 = memref.load %arg1[%c1_42, %c1_43] : memref<2x2xf32, #tpu.memory_space<smem>>
    %115 = tpu.transpose %112, [1, 0] : vector<128x128xf32> -> vector<128x128xf32>
    %116 = arith.subf %112, %115 : vector<128x128xf32>
    %117 = vector.broadcast %113 : f32 to vector<128x128xf32>
    %118 = arith.mulf %116, %117 : vector<128x128xf32>
    %119 = vector.broadcast %114 : f32 to vector<128x128xf32>
    %120 = arith.addf %118, %119 : vector<128x128xf32>
    %cst_44 = arith.constant 325.94931 : f32
    %121 = vector.broadcast %cst_44 : f32 to vector<128x128xf32>
    %122 = arith.mulf %120, %121 : vector<128x128xf32>
    %123 = math.floor %122 : vector<128x128xf32>
    %cst_45 = arith.constant 4.8828125E-4 : f32
    %124 = vector.broadcast %cst_45 : f32 to vector<128x128xf32>
    %125 = arith.mulf %123, %124 : vector<128x128xf32>
    %126 = math.floor %125 : vector<128x128xf32>
    %cst_46 = arith.constant 2.048000e+03 : f32
    %127 = vector.broadcast %cst_46 : f32 to vector<128x128xf32>
    %128 = arith.mulf %126, %127 : vector<128x128xf32>
    %129 = arith.subf %123, %128 : vector<128x128xf32>
    %cst_47 = arith.constant 0.00306946039 : f32
    %130 = vector.broadcast %cst_47 : f32 to vector<128x128xf32>
    %131 = arith.mulf %129, %130 : vector<128x128xf32>
    %cst_48 = arith.constant 0.318309873 : f32
    %132 = vector.broadcast %cst_48 : f32 to vector<128x128xf32>
    %133 = arith.mulf %131, %132 : vector<128x128xf32>
    %cst_49 = arith.constant 5.000000e-01 : f32
    %134 = vector.broadcast %cst_49 : f32 to vector<128x128xf32>
    %135 = arith.addf %133, %134 : vector<128x128xf32>
    %136 = math.floor %135 : vector<128x128xf32>
    %cst_50 = arith.constant 3.14159274 : f32
    %137 = vector.broadcast %cst_50 : f32 to vector<128x128xf32>
    %138 = arith.mulf %136, %137 : vector<128x128xf32>
    %139 = arith.subf %131, %138 : vector<128x128xf32>
    %140 = arith.mulf %139, %139 : vector<128x128xf32>
    %cst_51 = arith.constant 2.48015876E-5 : f32
    %141 = vector.broadcast %cst_51 : f32 to vector<128x128xf32>
    %142 = arith.mulf %140, %141 : vector<128x128xf32>
    %cst_52 = arith.constant -0.00138888892 : f32
    %143 = vector.broadcast %cst_52 : f32 to vector<128x128xf32>
    %144 = arith.addf %143, %142 : vector<128x128xf32>
    %145 = arith.mulf %140, %144 : vector<128x128xf32>
    %cst_53 = arith.constant 0.0416666679 : f32
    %146 = vector.broadcast %cst_53 : f32 to vector<128x128xf32>
    %147 = arith.addf %146, %145 : vector<128x128xf32>
    %148 = arith.mulf %140, %147 : vector<128x128xf32>
    %cst_54 = arith.constant -5.000000e-01 : f32
    %149 = vector.broadcast %cst_54 : f32 to vector<128x128xf32>
    %150 = arith.addf %149, %148 : vector<128x128xf32>
    %151 = arith.mulf %140, %150 : vector<128x128xf32>
    %cst_55 = arith.constant 1.000000e+00 : f32
    %152 = vector.broadcast %cst_55 : f32 to vector<128x128xf32>
    %153 = arith.addf %152, %151 : vector<128x128xf32>
    %cst_56 = arith.constant 5.000000e-01 : f32
    %154 = vector.broadcast %cst_56 : f32 to vector<128x128xf32>
    %155 = arith.mulf %136, %154 : vector<128x128xf32>
    %156 = math.floor %155 : vector<128x128xf32>
    %cst_57 = arith.constant 2.000000e+00 : f32
    %157 = vector.broadcast %cst_57 : f32 to vector<128x128xf32>
    %158 = arith.mulf %157, %156 : vector<128x128xf32>
    %159 = arith.subf %136, %158 : vector<128x128xf32>
    %cst_58 = arith.constant 2.000000e+00 : f32
    %160 = vector.broadcast %cst_58 : f32 to vector<128x128xf32>
    %161 = arith.mulf %160, %159 : vector<128x128xf32>
    %cst_59 = arith.constant 1.000000e+00 : f32
    %162 = vector.broadcast %cst_59 : f32 to vector<128x128xf32>
    %163 = arith.subf %162, %161 : vector<128x128xf32>
    %164 = arith.mulf %153, %163 : vector<128x128xf32>
    %cst_60 = arith.constant 0.0883883461 : f32
    %165 = vector.broadcast %cst_60 : f32 to vector<128x128xf32>
    %166 = arith.mulf %111, %165 : vector<128x128xf32>
    %167 = arith.truncf %166 : vector<128x128xf32> to vector<128x128xbf16>
    %168 = tpu.transpose %111, [1, 0] : vector<128x128xf32> -> vector<128x128xf32>
    %169 = arith.mulf %168, %164 : vector<128x128xf32>
    %170 = arith.truncf %169 : vector<128x128xf32> to vector<128x128xbf16>
    %cst_61 = arith.constant dense<0.000000e+00> : vector<128x128xf32>
    %171 = tpu.matmul %167, %170, %cst_61 {dimension_numbers = #tpu.dot_dimension_numbers<[1], [0], [0], [1], [0, 0, 1, 1], [], []>} : vector<128x128xbf16>, vector<128x128xbf16>, vector<128x128xf32> -> vector<128x128xf32>
    %cst_62 = arith.constant dense<0xFF800000> : vector<128xf32>
    %172 = vector.multi_reduction <maximumf>, %171, %cst_62 [1] : vector<128x128xf32> to vector<128xf32>
    %173 = vector.shape_cast %172 : vector<128xf32> to vector<128x1xf32>
    %174 = vector.broadcast %173 : vector<128x1xf32> to vector<128x128xf32>
    %175 = arith.subf %171, %174 : vector<128x128xf32>
    %176 = math.exp %175 : vector<128x128xf32>
    %cst_63 = arith.constant dense<0.000000e+00> : vector<128xf32>
    %177 = vector.multi_reduction <add>, %176, %cst_63 [1] : vector<128x128xf32> to vector<128xf32>
    %178 = vector.shape_cast %177 : vector<128xf32> to vector<128x1xf32>
    %179 = tpu.reciprocal %178 {approx = true} : vector<128x1xf32> -> vector<128x1xf32>
    %180 = vector.broadcast %179 : vector<128x1xf32> to vector<128x128xf32>
    %181 = arith.mulf %176, %180 : vector<128x128xf32>
    %182 = arith.truncf %181 : vector<128x128xf32> to vector<128x128xbf16>
    %183 = vector.extract_strided_slice %2 {offsets = [0, 128], sizes = [128, 128], strides = [1, 1]} : vector<128x512xbf16> to vector<128x128xbf16>
    %cst_64 = arith.constant dense<0.000000e+00> : vector<128x128xf32>
    %184 = tpu.matmul %182, %183, %cst_64 {dimension_numbers = #tpu.dot_dimension_numbers<[1], [0], [0], [1], [0, 0, 1, 1], [], []>} : vector<128x128xbf16>, vector<128x128xbf16>, vector<128x128xf32> -> vector<128x128xf32>
    %c0_65 = arith.constant 0 : index
    %c128 = arith.constant 128 : index
    %185 = vector.load %arg9[%c0_65, %c128] : memref<128x512xf32, #tpu.memory_space<vmem>>, vector<128x128xf32>
    tpu.vector_store %arg9[%c0_65, %c128], %184 {strides = array<i32>} : memref<128x512xf32, #tpu.memory_space<vmem>>, vector<128x128xf32>,
    %c0_66 = arith.constant 0 : index
    %c0_67 = arith.constant 0 : index
    %186 = vector.load %arg5[%c0_66, %c0_67] : memref<512x768xbf16, #tpu.memory_space<vmem>>, vector<512x768xbf16>
    %cst_68 = arith.constant dense<0.000000e+00> : vector<128x768xf32>
    %187 = tpu.matmul %2, %186, %cst_68 {dimension_numbers = #tpu.dot_dimension_numbers<[1], [0], [0], [1], [0, 0, 1, 1], [], []>} : vector<128x512xbf16>, vector<512x768xbf16>, vector<128x768xf32> -> vector<128x768xf32>
    %188 = vector.extract_strided_slice %187 {offsets = [0, 0], sizes = [128, 128], strides = [1, 1]} : vector<128x768xf32> to vector<128x128xf32>
    %cst_69 = arith.constant 0.0883883461 : f32
    %189 = vector.broadcast %cst_69 : f32 to vector<128x128xf32>
    %190 = arith.mulf %188, %189 : vector<128x128xf32>
    %191 = arith.truncf %190 : vector<128x128xf32> to vector<128x128xbf16>
    %192 = vector.extract_strided_slice %187 {offsets = [0, 256], sizes = [128, 128], strides = [1, 1]} : vector<128x768xf32> to vector<128x128xf32>
    %193 = arith.truncf %192 : vector<128x128xf32> to vector<128x128xbf16>
    %194 = vector.extract_strided_slice %187 {offsets = [0, 512], sizes = [128, 128], strides = [1, 1]} : vector<128x768xf32> to vector<128x128xf32>
    %195 = arith.truncf %194 : vector<128x128xf32> to vector<128x128xbf16>
    %cst_70 = arith.constant dense<0.000000e+00> : vector<128x128xf32>
    %196 = tpu.matmul %191, %193, %cst_70 {dimension_numbers = #tpu.dot_dimension_numbers<[1], [1], [0], [0], [0, 0, 1, 0], [], []>} : vector<128x128xbf16>, vector<128x128xbf16>, vector<128x128xf32> -> vector<128x128xf32>
    %cst_71 = arith.constant dense<0xFF800000> : vector<128xf32>
    %197 = vector.multi_reduction <maximumf>, %196, %cst_71 [1] : vector<128x128xf32> to vector<128xf32>
    %198 = vector.shape_cast %197 : vector<128xf32> to vector<128x1xf32>
    %199 = vector.broadcast %198 : vector<128x1xf32> to vector<128x128xf32>
    %200 = arith.subf %196, %199 : vector<128x128xf32>
    %201 = math.exp %200 : vector<128x128xf32>
    %cst_72 = arith.constant dense<0.000000e+00> : vector<128xf32>
    %202 = vector.multi_reduction <add>, %201, %cst_72 [1] : vector<128x128xf32> to vector<128xf32>
    %203 = vector.shape_cast %202 : vector<128xf32> to vector<128x1xf32>
    %204 = tpu.reciprocal %203 {approx = true} : vector<128x1xf32> -> vector<128x1xf32>
    %205 = vector.broadcast %204 : vector<128x1xf32> to vector<128x128xf32>
    %206 = arith.mulf %201, %205 : vector<128x128xf32>
    %207 = arith.truncf %206 : vector<128x128xf32> to vector<128x128xbf16>
    %cst_73 = arith.constant dense<0.000000e+00> : vector<128x128xf32>
    %208 = tpu.matmul %207, %195, %cst_73 {dimension_numbers = #tpu.dot_dimension_numbers<[1], [0], [0], [1], [0, 0, 1, 1], [], []>} : vector<128x128xbf16>, vector<128x128xbf16>, vector<128x128xf32> -> vector<128x128xf32>
    %c0_74 = arith.constant 0 : index
    %c256 = arith.constant 256 : index
    %209 = vector.load %arg9[%c0_74, %c256] : memref<128x512xf32, #tpu.memory_space<vmem>>, vector<128x128xf32>
    tpu.vector_store %arg9[%c0_74, %c256], %208 {strides = array<i32>} : memref<128x512xf32, #tpu.memory_space<vmem>>, vector<128x128xf32>,
    %210 = vector.extract_strided_slice %187 {offsets = [0, 128], sizes = [128, 128], strides = [1, 1]} : vector<128x768xf32> to vector<128x128xf32>
    %cst_75 = arith.constant 0.0883883461 : f32
    %211 = vector.broadcast %cst_75 : f32 to vector<128x128xf32>
    %212 = arith.mulf %210, %211 : vector<128x128xf32>
    %213 = arith.truncf %212 : vector<128x128xf32> to vector<128x128xbf16>
    %214 = vector.extract_strided_slice %187 {offsets = [0, 384], sizes = [128, 128], strides = [1, 1]} : vector<128x768xf32> to vector<128x128xf32>
    %215 = arith.truncf %214 : vector<128x128xf32> to vector<128x128xbf16>
    %216 = vector.extract_strided_slice %187 {offsets = [0, 640], sizes = [128, 128], strides = [1, 1]} : vector<128x768xf32> to vector<128x128xf32>
    %217 = arith.truncf %216 : vector<128x128xf32> to vector<128x128xbf16>
    %cst_76 = arith.constant dense<0.000000e+00> : vector<128x128xf32>
    %218 = tpu.matmul %213, %215, %cst_76 {dimension_numbers = #tpu.dot_dimension_numbers<[1], [1], [0], [0], [0, 0, 1, 0], [], []>} : vector<128x128xbf16>, vector<128x128xbf16>, vector<128x128xf32> -> vector<128x128xf32>
    %cst_77 = arith.constant dense<0xFF800000> : vector<128xf32>
    %219 = vector.multi_reduction <maximumf>, %218, %cst_77 [1] : vector<128x128xf32> to vector<128xf32>
    %220 = vector.shape_cast %219 : vector<128xf32> to vector<128x1xf32>
    %221 = vector.broadcast %220 : vector<128x1xf32> to vector<128x128xf32>
    %222 = arith.subf %218, %221 : vector<128x128xf32>
    %223 = math.exp %222 : vector<128x128xf32>
    %cst_78 = arith.constant dense<0.000000e+00> : vector<128xf32>
    %224 = vector.multi_reduction <add>, %223, %cst_78 [1] : vector<128x128xf32> to vector<128xf32>
    %225 = vector.shape_cast %224 : vector<128xf32> to vector<128x1xf32>
    %226 = tpu.reciprocal %225 {approx = true} : vector<128x1xf32> -> vector<128x1xf32>
    %227 = vector.broadcast %226 : vector<128x1xf32> to vector<128x128xf32>
    %228 = arith.mulf %223, %227 : vector<128x128xf32>
    %229 = arith.truncf %228 : vector<128x128xf32> to vector<128x128xbf16>
    %cst_79 = arith.constant dense<0.000000e+00> : vector<128x128xf32>
    %230 = tpu.matmul %229, %217, %cst_79 {dimension_numbers = #tpu.dot_dimension_numbers<[1], [0], [0], [1], [0, 0, 1, 1], [], []>} : vector<128x128xbf16>, vector<128x128xbf16>, vector<128x128xf32> -> vector<128x128xf32>
    %c0_80 = arith.constant 0 : index
    %c384 = arith.constant 384 : index
    %231 = vector.load %arg9[%c0_80, %c384] : memref<128x512xf32, #tpu.memory_space<vmem>>, vector<128x128xf32>
    tpu.vector_store %arg9[%c0_80, %c384], %230 {strides = array<i32>} : memref<128x512xf32, #tpu.memory_space<vmem>>, vector<128x128xf32>,
    %c0_81 = arith.constant 0 : index
    %c0_82 = arith.constant 0 : index
    %232 = vector.load %arg9[%c0_81, %c0_82] : memref<128x512xf32, #tpu.memory_space<vmem>>, vector<128x512xf32>
    %233 = arith.truncf %232 : vector<128x512xf32> to vector<128x512xbf16>
    %c0_83 = arith.constant 0 : index
    %c0_84 = arith.constant 0 : index
    %234 = vector.load %arg6[%c0_83, %c0_84] : memref<512x512xbf16, #tpu.memory_space<vmem>>, vector<512x512xbf16>
    %cst_85 = arith.constant dense<0.000000e+00> : vector<128x512xf32>
    %235 = tpu.matmul %233, %234, %cst_85 {dimension_numbers = #tpu.dot_dimension_numbers<[1], [0], [0], [1], [0, 0, 1, 1], [], []>} : vector<128x512xbf16>, vector<512x512xbf16>, vector<128x512xf32> -> vector<128x512xf32>
    %c0_86 = arith.constant 0 : index
    %c0_87 = arith.constant 0 : index
    %236 = vector.load %arg7[%c0_86, %c0_87] : memref<1x512xf32, #tpu.memory_space<vmem>>, vector<1x512xf32>
    %237 = vector.broadcast %236 : vector<1x512xf32> to vector<128x512xf32>
    %238 = arith.addf %235, %237 : vector<128x512xf32>
    %c0_88 = arith.constant 0 : index
    %c0_89 = arith.constant 0 : index
    %c0_90 = arith.constant 0 : index
    %239 = vector.load %arg8[%c0_88, %c0_89, %c0_90] : memref<1x128x512xf32, #tpu.memory_space<vmem>>, vector<1x128x512xf32>
    %240 = vector.shape_cast %239 : vector<1x128x512xf32> to vector<128x512xf32>
    %241 = vector.shape_cast %238 : vector<128x512xf32> to vector<1x128x512xf32>
    tpu.vector_store %arg8[%c0_88, %c0_89, %c0_90], %241 {strides = array<i32>} : memref<1x128x512xf32, #tpu.memory_space<vmem>>, vector<1x128x512xf32>,
    return
  }
  func.func @transform_0(%arg0: i32) -> (i32, i32) {
    %c0_i32 = arith.constant 0 : i32
    %c0_i32_0 = arith.constant 0 : i32
    %c0_i32_1 = arith.constant 0 : i32
    return %c0_i32, %c0_i32_0 : i32, i32
  }
  func.func @transform_1(%arg0: i32) -> (i32, i32, i32) {
    %c0_i32 = arith.constant 0 : i32
    %c0_i32_0 = arith.constant 0 : i32
    %c0_i32_1 = arith.constant 0 : i32
    return %arg0, %c0_i32, %c0_i32_0 : i32, i32, i32
  }
  func.func @transform_2(%arg0: i32) -> (i32, i32) {
    %c0_i32 = arith.constant 0 : i32
    %c0_i32_0 = arith.constant 0 : i32
    %c0_i32_1 = arith.constant 0 : i32
    return %c0_i32, %c0_i32_0 : i32, i32
  }
  func.func @transform_3(%arg0: i32) -> (i32, i32) {
    %c0_i32 = arith.constant 0 : i32
    %c0_i32_0 = arith.constant 0 : i32
    %c0_i32_1 = arith.constant 0 : i32
    return %c0_i32, %c0_i32_0 : i32, i32
  }
  func.func @transform_4(%arg0: i32) -> (i32, i32) {
    %c0_i32 = arith.constant 0 : i32
    %c0_i32_0 = arith.constant 0 : i32
    %c0_i32_1 = arith.constant 0 : i32
    return %c0_i32, %c0_i32_0 : i32, i32
  }
  func.func @transform_5(%arg0: i32) -> (i32, i32) {
    %c0_i32 = arith.constant 0 : i32
    %c0_i32_0 = arith.constant 0 : i32
    %c0_i32_1 = arith.constant 0 : i32
    return %c0_i32, %c0_i32_0 : i32, i32
  }
  func.func @transform_6(%arg0: i32) -> (i32, i32) {
    %c0_i32 = arith.constant 0 : i32
    %c0_i32_0 = arith.constant 0 : i32
    %c0_i32_1 = arith.constant 0 : i32
    return %c0_i32, %c0_i32_0 : i32, i32
  }
  func.func @transform_7(%arg0: i32) -> (i32, i32, i32) {
    %c0_i32 = arith.constant 0 : i32
    %c0_i32_0 = arith.constant 0 : i32
    %c0_i32_1 = arith.constant 0 : i32
    return %arg0, %c0_i32, %c0_i32_0 : i32, i32, i32
  }
}

</mosaic_0001>

<bundles_post_ra>
// kernel: tpu_custom_call.1
= control target key start
LH: loop header
LB: loop body
LE: loop exit
PB: predicated region body
PF: predicated region fallthrough
CT: control target
= control target key end

     0   :  { %s16295_s0 = inlined_call_operand.hbm [shape: f32[2,2], index: 0, kind: input, shape index: {}]   ;;  %s16296_s1 = inlined_call_operand.hbm [shape: f32[2,128,512], index: 1, kind: input, shape index: {}]   ;;  %s16297_s2 = inlined_call_operand.hbm [shape: f32[128,256], index: 2, kind: input, shape index: {}]   ;;  %s16298_s3 = inlined_call_operand.hbm [shape: f32[3,256], index: 3, kind: input, shape index: {}]   ;;  %s16299_s4 = inlined_call_operand.hbm [shape: bf16[512,768], index: 4, kind: input, shape index: {}]   ;;  %s16300_s5 = inlined_call_operand.hbm [shape: bf16[512,512], index: 5, kind: input, shape index: {}]   ;;  %s16301_s6 = inlined_call_operand.vmem [shape: f32[1,512], index: 6, kind: input, shape index: {}]   ;;  %s16302_s7 = inlined_call_operand.hbm [shape: f32[2,128,512], index: 7, kind: output, shape index: {}]  }
   0x1   :  { %16504 = sst [smem:[#allocation106_spill]] %s16295_s0 }
   0x2   :  { %16505 = sst [smem:[#allocation107_spill]] %s16297_s2 }
   0x3   :  { %12 = vsyncpa [#allocation6], 0 }
   0x4   :  { %13 = vsyncpa [#allocation4], 0 }
   0x5   :  { %15 = vsyncpa [#allocation4 + $0x1], 0 }
   0x6   :  { %16 = vsyncpa [#allocation9], 0 }
   0x7   :  { %17 = vsyncpa [#allocation12], 0 }
   0x8   :  { %18 = vsyncpa [#allocation5], 0 }
   0x9   :  { %20 = vsyncpa [#allocation5 + $0x1], 0  ;;  %s10952_s24 = smov 0   ;;  %s10954_s25 = smov 0  }
   0xa   :  { %s10956_s26 = smov 0   ;;  %s10958_s27 = smov 0  }
   0xb LB: > { %s16506_s2 = sld [smem:[#allocation107_spill]]  ;;  %s10976_s8 = sadd.s32 4294967295, %s10896_s27   ;;  %s10896_s27 = sphi %s10958_s27, %s17234_s27   ;;  %s10892_s26 = sphi %s10956_s26, %s17233_s26   ;;  %s10888_s25 = sphi %s10954_s25, %s17232_s25   ;;  %s10884_s24 = sphi %s10952_s24, %s17231_s24  }
   0xc   : > { %p8468_p0 = scmp.ge.s32.totalorder %s10896_s27, 1  ;;  %p68_p1 = scmp.eq.s32.totalorder %s10976_s8, 0 }
   0xd   : > { %p209_p2 = scmp.lt.s32.totalorder %s10896_s27, 3  ;;  %s10898_s10 = smov [#allocation8]  }
   0xe   : > { %s232_s11 = sshll.u32 %s10898_s10, 4  ;;  %s256_s14 = sshll.u32 %s16299_s4, 4  ;;  %s233_s11 = int_to_ptr.vmem [resolvable:$true] %s232_s11  ;;  %s257_s14 = int_to_ptr.hbm [resolvable:$true] %s256_s14 }
   0xf   : > { %p10981_p3 = pnand %p8468_p0, %p209_p2  ;;  %s10899_s16 = smov [#allocation11]  }
  0x10   : > { %s258_s17 = sshll.u32 %s10899_s16, 4  ;;  %s10900_s18 = smov 256   ;;  %s259_s17 = int_to_ptr.vmem [resolvable:$true] %s258_s17 }
  0x11   : > { %s230_s30 = sshll.u32 %s16506_s2, 4  ;;  %p10120_p4 = pneg %p10981_p3  ;;  %s231_s30 = int_to_ptr.hbm [resolvable:$true] %s230_s30 }
  0x12   : > { %s10901_s19 = smov 16   ;;  %s10902_s20 = smov 384  }
  0x13   : > { %p10993_p6 = pnand %p10120_p4, %p68_p1  ;;  %s10903_s21 = smov 24  }
  0x14   : > { %s16509_s0 = sld [smem:[#allocation106_spill]]  ;;  %s245_s12 = sshll.u32 %s16298_s3, 4  ;;  %s246_s12 = int_to_ptr.hbm [resolvable:$true] %s245_s12 }
  0x15   : > { %10126 = dma.hbm_to_vmem [thread:$0]  (!%p10993_p6), %s231_s30, 4096, %s233_s11, [#allocation9], %s10900_s18, %s10900_s18, %s10901_s19  }
  0x16   : > { %10132 = dma.hbm_to_vmem [thread:$0]  (!%p10993_p6), %s257_s14, 24576, %s259_s17, [#allocation12], %s10902_s20, %s10902_s20, %s10903_s21  }
  0x17   : > { %s10904_s30 = smov [#allocation3]   ;;  %s10905_s11 = smov [#allocation10]  }
  0x18   : > { %s247_s13 = sshll.u32 %s10905_s11, 4  ;;  %s270_s17 = sshll.u32 %s16300_s5, 4  ;;  %s248_s13 = int_to_ptr.vmem [resolvable:$true] %s247_s13  ;;  %s271_s17 = int_to_ptr.hbm [resolvable:$true] %s270_s17 }
  0x19   : > { %10129 = dma.hbm_to_vmem [thread:$0]  (!%p10993_p6), %s246_s12, 128, %s248_s13, [#allocation9]  }
  0x1a   : > { %s221_s28 = sshll.u32 %s16509_s0, 4  ;;  %s10906_s20 = smov [#allocation13]   ;;  %s222_s28 = int_to_ptr.hbm [resolvable:$true] %s221_s28 }
  0x1b   : > { %10123 = dma.hbm_to_smem (!%p10993_p6), %s222_s28, 32, %s10904_s30, [#allocation6]  }
  0x1c   : > { %s272_s21 = sshll.u32 %s10906_s20, 4  ;;  %s8467_s22 = sadd.s32 4294967294, %s10896_s27   ;;  %s273_s21 = int_to_ptr.vmem [resolvable:$true] %s272_s21 }
  0x1d   : > { %10135 = dma.hbm_to_vmem [thread:$0]  (!%p10993_p6), %s271_s17, 16384, %s273_s21, [#allocation12], %s10900_s18, %s10900_s18, %s10901_s19  }
  0x1e   : > { %s11018_s23 = sadd.s32 1, %s10896_s27   ;;  %s54_s28 = sadd.s32 1, %s10892_s26 }
  0x1f   : > { %s51_s29 = ssub.s32 %s10896_s27, %s11018_s23  ;;  %p61_p7 = scmp.ne.s32.totalorder %s10892_s26, %s10888_s25 }
  0x20   : > { %p52_p8 = scmp.eq.s32.totalorder %s51_s29, 0  ;;  %p62_p9 = scmp.eq.s32.totalorder %s10896_s27, 0 }
  0x21   : > { %p67_p10 = scmp.ne.s32.totalorder %s10888_s25, %s10884_s24  ;;  %p196_p11 = scmp.eq.s32.totalorder %s10976_s8, 1 }
  0x22   : > { %s11030_s10 = scalar_select %p52_p8, %s10892_s26, %s54_s28  }
  0x23   : > { %p11032_p12 = por %p62_p9, %p61_p7  ;;  %p11038_p13 = por %p68_p1, %p67_p10 }
  0x24   : > { %p11042_p0 = por %p196_p11, %p61_p7  ;;  %p202_p2 = scmp.eq.s32.totalorder %s8467_s22, 1 }
  0x25   : > { %p10149_p4 = scmp.lt.s32.totalorder %s10896_s27, 2  ;;  %s289_s19 = sand.u32 1, %s10892_s26  }
  0x26   : > { %p11048_p6 = por %p202_p2, %p67_p10  ;;  %s8475_s11 = sshll.u32 %s289_s19, 9 }
  0x27   : > { %s9774_s13 = sshll.u32 %s10896_s27, 9  ;;  %s293_s21 = scalar_lea.vmem [#allocation7], %s8475_s11 }
  0x28   : > { %s298_s17 = scalar_lea.hbm %s16296_s1, %s9774_s13  ;;  %s301_s28 = sshll.u32 %s293_s21, 4  ;;  %s302_s28 = int_to_ptr.vmem [resolvable:$true] %s301_s28 }
  0x29   : > { %s299_s20 = sshll.u32 %s298_s17, 4  ;;  %p11058_p7 = pnand %p10149_p4, %p11032_p12  ;;  %s300_s20 = int_to_ptr.hbm [resolvable:$true] %s299_s20 }
  0x2a   : > { %s290_s29 = scalar_lea.sflag [#allocation4], %s289_s19  ;;  %s10788_s0 = sshra.s32 %s300_s20, 4  ;;  %s10789_s0 = int_to_ptr.hbm [resolvable:$true] %s10788_s0 }
  0x2b   : > { %s10790_s2 = scalar_lea.hbm %s10789_s0, 512  ;;  %p10792_p9 = pneg %p11058_p7 }
  0x2c   : > { %p10791_p8 = scmp.ne.s32.totalorder %s10789_s0, %s10790_s2  ;;  %s10795_s14 = scalar_lea.hbm %s16296_s1, 1024 }
  0x2d   : > { %p10796_p12 = scmp.lt.s32.totalorder %s10789_s0, %s16296_s1  ;;  %p10797_p2 = scmp.lt.s32.totalorder %s10795_s14, %s10790_s2 }
  0x2e   : > { %p10793_p10 = pnand %p10792_p9, %p10791_p8 }
  0x2f   : > { %p10798_p4 = por %p10797_p2, %p10796_p12 }
  0x30   : > { %p10794_p11 = pneg %p10793_p10 }
  0x32   : > { %p10799_p5 = pnand %p10798_p4, %p10794_p11 }
  0x34   : > { %10802 = shalt.err (!%p10799_p5)
}
  0x35   : > { %s10907_s19 = smov 512   ;;  %s10908_s17 = smov 32  }
  0x36   : > { %10139 = dma.hbm_to_vmem [thread:$0]  (!%p11058_p7), %s300_s20, 8192, %s302_s28, %s290_s29, %s10907_s19, %s10907_s19, %s10908_s17  }
  0x37   : > { %313 = sbr.rel (%p10981_p3) target bundleno = 3812 (0xee4), region = 48 }
  0x3c   : > { %10863 = dma.done.wait (%p68_p1), [#allocation6], 32  }
  0x3d   : > { %10865 = vsyncadd (%p68_p1), [#allocation6], 4294967264  ;;  %s11079_s0 = sand.u32 1, %s10888_s25  }
  0x3e   : > { %s8480_s2 = sshll.u32 %s11079_s0, 9  ;;  %s321_s21 = scalar_lea.sflag [#allocation4], %s11079_s0 }
  0x3f   : > { %s11085_s20 = scalar_lea.vmem [#allocation7], %s8480_s2 }
  0x40   : > { %10867 = dma.done.wait (%p11038_p13), %s321_s21, 8192  }
  0x41   : > { %10869 = vsyncadd (%p11038_p13), %s321_s21, 4294959104 }
  0x42   : > { %10871 = dma.done.wait (%p68_p1), [#allocation9], 4224  }
  0x43   : > { %10873 = vsyncadd (%p68_p1), [#allocation9], 4294963072 }
  0x44   : > { %10875 = dma.done.wait (%p68_p1), [#allocation12], 40960  }
  0x45   : > { %10877 = vsyncadd (%p68_p1), [#allocation12], 4294926336 }
  0x46   : > { %350 = sfence }
  0x47   : > { %v503_v0 = vld [vmem:[#allocation8 + $0xf0] sm:$0xff]  ;;  %v504_v1 = vld [vmem:[#allocation8 + $0xf8] sm:$0xff]  ;;  %v501_v2 = vld [vmem:[#allocation8 + $0xe0] sm:$0xff]  ;;  %s12604_s9 = sld [smem:[#allocation3]]  ;;  %s16014_s11 = scalar_lea.vmem [#allocation14], %s8480_s2 }
  0x48   : > { %511 = vmatpush.msra.mxu0 %v503_v0  ;;  %624 = vmatpush.msra.mxu1 %v504_v1  ;;  %v502_v3 = vld [vmem:[#allocation8 + $0xe8] sm:$0xff]  ;;  %v499_v4 = vld [vmem:[#allocation8 + $0xd0] sm:$0xff]  ;;  %v500_v5 = vld [vmem:[#allocation8 + $0xd8] sm:$0xff]  ;;  %s12627_s15 = sld [smem:[#allocation3 + $0x80]]  ;;  %s10095_s12 = sshll.u32 %s10976_s8, 9 }
  0x49   : > { %v497_v6 = vld [vmem:[#allocation8 + $0xc0] sm:$0xff]  ;;  %v498_v7 = vld [vmem:[#allocation8 + $0xc8] sm:$0xff]  ;;  %v495_v8 = vld [vmem:[#allocation8 + $0xb0] sm:$0xff]  ;;  %s12982_s28 = sld [smem:[#allocation3 + $0x1]]  ;;  %s8340_s2 = scalar_lea.hbm %s16302_s7, %s10095_s12 }
  0x4a   : > { %512 = vmatpush.msra.mxu0 %v501_v2  ;;  %625 = vmatpush.msra.mxu1 %v502_v3  ;;  %v496_v9 = vld [vmem:[#allocation8 + $0xb8] sm:$0xff]  ;;  %v493_v10 = vld [vmem:[#allocation8 + $0xa0] sm:$0xff]  ;;  %v494_v11 = vld [vmem:[#allocation8 + $0xa8] sm:$0xff]  ;;  %s12995_s22 = sld [smem:[#allocation3 + $0x81]]  ;;  %s8341_s21 = sshll.u32 %s16014_s11, 4  ;;  %s8342_s21 = int_to_ptr.vmem [resolvable:$true] %s8341_s21 }
  0x4b   : > { %v491_v12 = vld [vmem:[#allocation8 + $0x90] sm:$0xff]  ;;  %v492_v13 = vld [vmem:[#allocation8 + $0x98] sm:$0xff]  ;;  %v489_v14 = vld [vmem:[#allocation8 + $0x80] sm:$0xff]  ;;  %s8329_s8 = scalar_lea.sflag [#allocation5], %s11079_s0  ;;  %s10838_s29 = scalar_lea.hbm %s16302_s7, 1024 }
  0x4c   : > { %513 = vmatpush.msra.mxu0 %v499_v4  ;;  %626 = vmatpush.msra.mxu1 %v500_v5  ;;  %v490_v15 = vld [vmem:[#allocation8 + $0x88] sm:$0xff]  ;;  %v487_v16 = vld [vmem:[#allocation8 + $0x70] sm:$0xff]  ;;  %v488_v17 = vld [vmem:[#allocation8 + $0x78] sm:$0xff] }
  0x4d   : > { %v485_v18 = vld [vmem:[#allocation8 + $0x60] sm:$0xff]  ;;  %v486_v19 = vld [vmem:[#allocation8 + $0x68] sm:$0xff]  ;;  %v483_v20 = vld [vmem:[#allocation8 + $0x50] sm:$0xff] }
  0x4e   : > { %514 = vmatpush.msra.mxu0 %v497_v6  ;;  %627 = vmatpush.msra.mxu1 %v498_v7  ;;  %v484_v21 = vld [vmem:[#allocation8 + $0x58] sm:$0xff]  ;;  %v481_v22 = vld [vmem:[#allocation8 + $0x40] sm:$0xff]  ;;  %v482_v23 = vld [vmem:[#allocation8 + $0x48] sm:$0xff] }
  0x4f   : > { %v479_v24 = vld [vmem:[#allocation8 + $0x30] sm:$0xff]  ;;  %v480_v25 = vld [vmem:[#allocation8 + $0x38] sm:$0xff]  ;;  %v477_v26 = vld [vmem:[#allocation8 + $0x20] sm:$0xff] }
  0x50   : > { %515 = vmatpush.msra.mxu0 %v495_v8  ;;  %628 = vmatpush.msra.mxu1 %v496_v9  ;;  %v478_v27 = vld [vmem:[#allocation8 + $0x28] sm:$0xff]  ;;  %v475_v28 = vld [vmem:[#allocation8 + $0x10] sm:$0xff]  ;;  %v476_v29 = vld [vmem:[#allocation8 + $0x18] sm:$0xff] }
  0x51   : > { %v473_v30 = vld [vmem:[#allocation8] sm:$0xff]  ;;  %v474_v31 = vld [vmem:[#allocation8 + $0x8] sm:$0xff] }
  0x52   : > { %516 = vmatpush.msra.mxu0 %v493_v10  ;;  %629 = vmatpush.msra.mxu1 %v494_v11  ;;  %v377_v32 = vld [vmem:[%s11085_s20] sm:$0xff]  ;;  %v378_v45 = vld [vmem:[%s11085_s20 + $0x8] sm:$0xff] }
  0x53   : > { %v381_v33 = vld [vmem:[%s11085_s20 + $0x20] sm:$0xff]  ;;  %v441_v46 = vpack.c.bf16 %v378_v45, %v377_v32  ;;  %v382_v48 = vld [vmem:[%s11085_s20 + $0x28] sm:$0xff] }
  0x54   : > { %517 = vmatpush.msra.mxu0 %v491_v12  ;;  %630 = vmatpush.msra.mxu1 %v492_v13  ;;  %v385_v34 = vld [vmem:[%s11085_s20 + $0x40] sm:$0xff]  ;;  %v443_v51 = vpack.c.bf16 %v382_v48, %v381_v33  ;;  %v386_v57 = vld [vmem:[%s11085_s20 + $0x48] sm:$0xff] }
  0x55   : > { %v389_v35 = vld [vmem:[%s11085_s20 + $0x60] sm:$0xff]  ;;  %v2579_v49 = vunpack.c.l.b16 %v441_v46  ;;  %v3489_v50 = vunpack.c.h.b16 %v441_v46  ;;  %v445_v58 = vpack.c.bf16 %v386_v57, %v385_v34  ;;  %v390_v60 = vld [vmem:[%s11085_s20 + $0x68] sm:$0xff] }
  0x56   : > { %518 = vmatpush.msra.mxu0 %v489_v14  ;;  %631 = vmatpush.msra.mxu1 %v490_v15  ;;  %v11104_v36 = vld [vmem:[%s11085_s20 + $0x80] sm:$0xff]  ;;  %v2580_v52 = vunpack.c.l.b16 %v443_v51  ;;  %v3490_v53 = vunpack.c.h.b16 %v443_v51  ;;  %v447_v0 = vpack.c.bf16 %v390_v60, %v389_v35  ;;  %v394_v12 = vld [vmem:[%s11085_s20 + $0x88] sm:$0xff] }
  0x57   : > { %v11109_v37 = vld [vmem:[%s11085_s20 + $0xa0] sm:$0xff]  ;;  %v2581_v62 = vunpack.c.l.b16 %v445_v58  ;;  %v3491_v63 = vunpack.c.h.b16 %v445_v58  ;;  %v449_v13 = vpack.c.bf16 %v394_v12, %v11104_v36 }
  0x58   : > { %519 = vmatpush.msra.mxu0 %v487_v16  ;;  %632 = vmatpush.msra.mxu1 %v488_v17  ;;  %v11114_v38 = vld [vmem:[%s11085_s20 + $0xc0] sm:$0xff]  ;;  %v11155_v54 = vpack.c.b16 %v2580_v52, %v2579_v49  ;;  %v11157_v55 = vpack.c.b16 %v3490_v53, %v3489_v50  ;;  %v2582_v1 = vunpack.c.l.b16 %v447_v0  ;;  %v3492_v2 = vunpack.c.h.b16 %v447_v0 }
  0x59   : > { %v11119_v39 = vld [vmem:[%s11085_s20 + $0xe0] sm:$0xff] }
  0x5a   : > { %520 = vmatpush.msra.mxu0 %v485_v18  ;;  %633 = vmatpush.msra.mxu1 %v486_v19  ;;  %v11124_v40 = vld [vmem:[%s11085_s20 + $0x100] sm:$0xff]  ;;  %16515 = vst [vmem:[#allocation20_spill] sm:$0xff] %v11155_v54  ;;  %v11175_v5 = vpack.c.b16 %v2582_v1, %v2581_v62  ;;  %v11177_v6 = vpack.c.b16 %v3492_v2, %v3491_v63  ;;  %v398_v18 = vld [vmem:[%s11085_s20 + $0xa8] sm:$0xff]  ;;  %v2583_v19 = vunpack.c.l.b16 %v449_v13 }
  0x5b   : > { %v11129_v41 = vld [vmem:[%s11085_s20 + $0x120] sm:$0xff]  ;;  %16516 = vst [vmem:[#allocation21_spill] sm:$0xff] %v11157_v55 }
  0x5c   : > { %521 = vmatpush.msra.mxu0 %v483_v20  ;;  %634 = vmatpush.msra.mxu1 %v484_v21  ;;  %v11134_v42 = vld [vmem:[%s11085_s20 + $0x140] sm:$0xff]  ;;  %16517 = vst [vmem:[#allocation22_spill] sm:$0xff] %v11175_v5  ;;  %v3493_v20 = vunpack.c.h.b16 %v449_v13  ;;  %v451_v21 = vpack.c.bf16 %v398_v18, %v11109_v37 }
  0x5d   : > { %v11139_v43 = vld [vmem:[%s11085_s20 + $0x160] sm:$0xff]  ;;  %16518 = vst [vmem:[#allocation23_spill] sm:$0xff] %v11177_v6 }
  0x5e   : > { %522 = vmatpush.msra.mxu0 %v481_v22  ;;  %635 = vmatpush.msra.mxu1 %v482_v23  ;;  %v11144_v44 = vld [vmem:[%s11085_s20 + $0x180] sm:$0xff]  ;;  %v2584_v23 = vunpack.c.l.b16 %v451_v21 }
  0x5f   : > { %v11150_v47 = vld [vmem:[%s11085_s20 + $0x1a0] sm:$0xff] }
  0x60   : > { %523 = vmatpush.msra.mxu0 %v479_v24  ;;  %636 = vmatpush.msra.mxu1 %v480_v25  ;;  %v11160_v56 = vld [vmem:[%s11085_s20 + $0x1c0] sm:$0xff]  ;;  %v3494_v24 = vunpack.c.h.b16 %v451_v21  ;;  %v11199_v25 = vpack.c.b16 %v2584_v23, %v2583_v19  ;;  %v414_v23 = vld [vmem:[%s11085_s20 + $0x128] sm:$0xff] }
  0x61   : > { %v11166_v59 = vld [vmem:[%s11085_s20 + $0x1e0] sm:$0xff] }
  0x62   : > { %524 = vmatpush.msra.mxu0 %v477_v26  ;;  %637 = vmatpush.msra.mxu1 %v478_v27  ;;  %v505_v61 = vld [vmem:[#allocation10] ss:$4 sm:$0x3]  ;;  %16519 = vst [vmem:[#allocation24_spill] sm:$0xff] %v11199_v25  ;;  %v11201_v26 = vpack.c.b16 %v3494_v24, %v3493_v20 }
  0x63   : > { %v11171_v3 = vperm.slane %v505_v61, 0  ;;  %v11173_v4 = vperm.slane %v505_v61, 1  ;;  %v11236_v61 = vld [vmem:[%s11085_s20 + $0xc8] sm:$0xff] }
  0x64   : > { %525 = vmatpush.msra.mxu0 %v475_v28  ;;  %638 = vmatpush.msra.mxu1 %v476_v29  ;;  %16520 = vst [vmem:[#allocation25_spill] sm:$0xff] %v11201_v26 }
  0x66   : > { %526 = vmatpush.msra.mxu0 %v473_v30  ;;  %639 = vmatpush.msra.mxu1 %v474_v31 }
  0x67   : > { %527 = vmatmul.f32.vlgmr.msra.gmra.mxu0 %v377_v32  ;;  %640 = vmatmul.f32.vlgmr.msra.gmra.mxu1 %v377_v32 }
  0x6f   : > { %530 = vmatmul.f32.gmra.mxu0 %v381_v33  ;;  %643 = vmatmul.f32.gmra.mxu1 %v381_v33 }
  0x77   : > { %533 = vmatmul.f32.gmra.mxu0 %v385_v34  ;;  %646 = vmatmul.f32.gmra.mxu1 %v385_v34 }
  0x7f   : > { %536 = vmatmul.f32.gmra.mxu0 %v389_v35  ;;  %649 = vmatmul.f32.gmra.mxu1 %v389_v35 }
  0x87   : > { %539 = vmatmul.f32.gmra.mxu0 %v11104_v36  ;;  %652 = vmatmul.f32.gmra.mxu1 %v11104_v36 }
  0x8f   : > { %542 = vmatmul.f32.gmra.mxu0 %v11109_v37  ;;  %655 = vmatmul.f32.gmra.mxu1 %v11109_v37 }
  0x97   : > { %545 = vmatmul.f32.gmra.mxu0 %v11114_v38  ;;  %658 = vmatmul.f32.gmra.mxu1 %v11114_v38 }
  0x9f   : > { %548 = vmatmul.f32.gmra.mxu0 %v11119_v39  ;;  %661 = vmatmul.f32.gmra.mxu1 %v11119_v39 }
  0xa7   : > { %551 = vmatmul.f32.gmra.mxu0 %v11124_v40  ;;  %664 = vmatmul.f32.gmra.mxu1 %v11124_v40 }
  0xaf   : > { %554 = vmatmul.f32.gmra.mxu0 %v11129_v41  ;;  %667 = vmatmul.f32.gmra.mxu1 %v11129_v41 }
  0xb7   : > { %557 = vmatmul.f32.gmra.mxu0 %v11134_v42  ;;  %670 = vmatmul.f32.gmra.mxu1 %v11134_v42 }
  0xbf   : > { %560 = vmatmul.f32.gmra.mxu0 %v11139_v43  ;;  %673 = vmatmul.f32.gmra.mxu1 %v11139_v43 }
  0xc7   : > { %563 = vmatmul.f32.gmra.mxu0 %v11144_v44  ;;  %676 = vmatmul.f32.gmra.mxu1 %v11144_v44 }
  0xcf   : > { %566 = vmatmul.f32.gmra.mxu0 %v11150_v47  ;;  %679 = vmatmul.f32.gmra.mxu1 %v11150_v47 }
  0xd7   : > { %569 = vmatmul.f32.gmra.mxu0 %v11160_v56  ;;  %682 = vmatmul.f32.gmra.mxu1 %v11160_v56 }
  0xdf   : > { %572 = vmatmul.f32.gmra.mxu0 %v11166_v59  ;;  %685 = vmatmul.f32.gmra.mxu1 %v11166_v59 }
  0xe4   : > { %v528_v7 = vpop.f32.mrf.mxu0  ;;  %v641_v8 = vpop.f32.mrf.mxu1 }
  0xe5   : > { %v11180_v9 = vadd.f32 %v528_v7, %v11171_v3  ;;  %v11183_v10 = vadd.f32 %v641_v8, %v11173_v4  ;;  %v11249_v7 = vld [vmem:[%s11085_s20 + $0xe8] sm:$0xff] }
  0xe7   : > { %575 = vmatmul.f32.gmra.mxu0 %v378_v45  ;;  %688 = vmatmul.f32.gmra.mxu1 %v378_v45  ;;  %v741_v11 = vadd.f32 %v11183_v10, %v11180_v9 }
  0xe9   : > { %742 = vadd.xlane.f32.xlu0 %v741_v11 }
  0xec   : > { %v531_v14 = vpop.f32.mrf.mxu0  ;;  %v644_v15 = vpop.f32.mrf.mxu1 }
  0xed   : > { %v11190_v16 = vadd.f32 %v531_v14, %v11171_v3  ;;  %v11193_v17 = vadd.f32 %v644_v15, %v11173_v4  ;;  %v410_v15 = vld [vmem:[%s11085_s20 + $0x108] sm:$0xff] }
  0xef   : > { %578 = vmatmul.f32.gmra.mxu0 %v382_v48  ;;  %691 = vmatmul.f32.gmra.mxu1 %v382_v48  ;;  %v744_v22 = vadd.f32 %v11193_v17, %v11190_v16 }
  0xf1   : > { %745 = vadd.xlane.f32.xlu0 %v744_v22 }
  0xf4   : > { %v534_v27 = vpop.f32.mrf.mxu0  ;;  %v647_v28 = vpop.f32.mrf.mxu1 }
  0xf5   : > { %v11204_v29 = vadd.f32 %v534_v27, %v11171_v3  ;;  %v11207_v30 = vadd.f32 %v647_v28, %v11173_v4 }
  0xf7   : > { %581 = vmatmul.f32.gmra.mxu0 %v386_v57  ;;  %694 = vmatmul.f32.gmra.mxu1 %v386_v57  ;;  %v747_v31 = vadd.f32 %v11207_v30, %v11204_v29 }
  0xf9   : > { %748 = vadd.xlane.f32.xlu1 %v747_v31 }
  0xfc   : > { %v537_v32 = vpop.f32.mrf.mxu0  ;;  %v650_v33 = vpop.f32.mrf.mxu1 }
  0xfd   : > { %v11212_v34 = vadd.f32 %v537_v32, %v11171_v3  ;;  %v11215_v35 = vadd.f32 %v650_v33, %v11173_v4  ;;  %v418_v33 = vld [vmem:[%s11085_s20 + $0x148] sm:$0xff] }
  0xff   : > { %584 = vmatmul.f32.gmra.mxu0 %v390_v60  ;;  %697 = vmatmul.f32.gmra.mxu1 %v390_v60  ;;  %v750_v36 = vadd.f32 %v11215_v35, %v11212_v34 }
 0x101   : > { %751 = vadd.xlane.f32.xlu1 %v750_v36 }
 0x104   : > { %v540_v37 = vpop.f32.mrf.mxu0  ;;  %v653_v45 = vpop.f32.mrf.mxu1 }
 0x105   : > { %v11220_v46 = vadd.f32 %v540_v37, %v11171_v3  ;;  %v11223_v48 = vadd.f32 %v653_v45, %v11173_v4 }
 0x107   : > { %587 = vmatmul.f32.gmra.mxu0 %v394_v12  ;;  %700 = vmatmul.f32.gmra.mxu1 %v394_v12  ;;  %v753_v49 = vadd.f32 %v11223_v48, %v11220_v46 }
 0x109   : > { %754 = vadd.xlane.f32.xlu2 %v753_v49  ;;  %v11289_v49 = vld [vmem:[%s11085_s20 + $0x1c8] sm:$0xff] }
 0x10c   : > { %v543_v50 = vpop.f32.mrf.mxu0  ;;  %v656_v51 = vpop.f32.mrf.mxu1 }
 0x10d   : > { %v11228_v52 = vadd.f32 %v543_v50, %v11171_v3  ;;  %v11231_v53 = vadd.f32 %v656_v51, %v11173_v4 }
 0x10f   : > { %590 = vmatmul.f32.gmra.mxu0 %v398_v18  ;;  %703 = vmatmul.f32.gmra.mxu1 %v398_v18  ;;  %v756_v57 = vadd.f32 %v11231_v53, %v11228_v52 }
 0x111   : > { %757 = vadd.xlane.f32.xlu2 %v756_v57  ;;  %v422_v57 = vld [vmem:[%s11085_s20 + $0x168] sm:$0xff] }
 0x114   : > { %v546_v58 = vpop.f32.mrf.mxu0  ;;  %v659_v60 = vpop.f32.mrf.mxu1 }
 0x115   : > { %v11239_v62 = vadd.f32 %v546_v58, %v11171_v3  ;;  %v11242_v63 = vadd.f32 %v659_v60, %v11173_v4  ;;  %v11294_v58 = vpack.c.bf16 %v11289_v49, %v11160_v56 }
 0x117   : > { %593 = vmatmul.f32.gmra.mxu0 %v11236_v61  ;;  %706 = vmatmul.f32.gmra.mxu1 %v11236_v61  ;;  %v759_v0 = vadd.f32 %v11242_v63, %v11239_v62 }
 0x119   : > { %760 = vadd.xlane.f32.xlu0 %v759_v0 }
 0x11c   : > { %v549_v1 = vpop.f32.mrf.mxu0  ;;  %v662_v2 = vpop.f32.mrf.mxu1 }
 0x11d   : > { %v11252_v8 = vadd.f32 %v549_v1, %v11171_v3  ;;  %v11255_v11 = vadd.f32 %v662_v2, %v11173_v4  ;;  %v426_v1 = vld [vmem:[%s11085_s20 + $0x188] sm:$0xff] }
 0x11e   : > { %v430_v2 = vld [vmem:[%s11085_s20 + $0x1a8] sm:$0xff] }
 0x11f   : > { %596 = vmatmul.f32.gmra.mxu0 %v11249_v7  ;;  %709 = vmatmul.f32.gmra.mxu1 %v11249_v7  ;;  %v762_v12 = vadd.f32 %v11255_v11, %v11252_v8 }
 0x121   : > { %763 = vadd.xlane.f32.xlu1 %v762_v12  ;;  %v11305_v12 = vpack.c.bf16 %v426_v1, %v11144_v44  ;;  %v11324_v44 = vpack.c.bf16 %v422_v57, %v11139_v43 }
 0x124   : > { %v552_v13 = vpop.f32.mrf.mxu0  ;;  %v665_v14 = vpop.f32.mrf.mxu1 }
 0x125   : > { %v11263_v18 = vadd.f32 %v552_v13, %v11171_v3  ;;  %v11266_v19 = vadd.f32 %v665_v14, %v11173_v4  ;;  %v11308_v13 = vpack.c.bf16 %v430_v2, %v11150_v47  ;;  %v11313_v14 = vld [vmem:[%s11085_s20 + $0x1e8] sm:$0xff]  ;;  %v2591_v47 = vunpack.c.l.b16 %v11305_v12 }
 0x127   : > { %599 = vmatmul.f32.gmra.mxu0 %v410_v15  ;;  %712 = vmatmul.f32.gmra.mxu1 %v410_v15  ;;  %v765_v20 = vadd.f32 %v11266_v19, %v11263_v18 }
 0x129   : > { %766 = vadd.xlane.f32.xlu2 %v765_v20  ;;  %v2593_v20 = vunpack.c.l.b16 %v11294_v58 }
 0x12c   : > { %v555_v21 = vpop.f32.mrf.mxu0  ;;  %v668_v22 = vpop.f32.mrf.mxu1 }
 0x12d   : > { %v11272_v24 = vadd.f32 %v555_v21, %v11171_v3  ;;  %v11275_v27 = vadd.f32 %v668_v22, %v11173_v4  ;;  %v11318_v21 = vpack.c.bf16 %v11313_v14, %v11166_v59  ;;  %v11321_v22 = vpack.c.bf16 %v418_v33, %v11134_v42 }
 0x12e   : > { %v11332_v59 = vpack.c.bf16 %v410_v15, %v11124_v40 }
 0x12f   : > { %602 = vmatmul.f32.gmra.mxu0 %v414_v23  ;;  %715 = vmatmul.f32.gmra.mxu1 %v414_v23  ;;  %v768_v28 = vadd.f32 %v11275_v27, %v11272_v24 }
 0x131   : > { %769 = vadd.xlane.f32.xlu0 %v768_v28  ;;  %v2592_v28 = vunpack.c.l.b16 %v11308_v13 }
 0x134   : > { %v558_v31 = vpop.f32.mrf.mxu0  ;;  %v671_v32 = vpop.f32.mrf.mxu1 }
 0x135   : > { %v11281_v36 = vadd.f32 %v558_v31, %v11171_v3  ;;  %v11284_v37 = vadd.f32 %v671_v32, %v11173_v4  ;;  %v10909_v31 = vmov 256.0   ;;  %v2594_v32 = vunpack.c.l.b16 %v11318_v21 }
 0x136   : > { %10202 = vrcp.f32 %v10909_v31  ;;  %v11345_v31 = vpack.c.b16 %v2592_v28, %v2591_v47 }
 0x137   : > { %605 = vmatmul.f32.gmra.mxu0 %v418_v33  ;;  %718 = vmatmul.f32.gmra.mxu1 %v418_v33  ;;  %v771_v45 = vadd.f32 %v11284_v37, %v11281_v36  ;;  %v11341_v33 = vpack.c.bf16 %v414_v23, %v11129_v41  ;;  %v11356_v41 = vpack.c.bf16 %v11249_v7, %v11119_v39  ;;  %v2587_v23 = vunpack.c.l.b16 %v11332_v59 }
 0x138   : > { %16522 = vst [vmem:[#allocation27_spill] sm:$0xff] %v11345_v31 }
 0x139   : > { %772 = vadd.xlane.f32.xlu1 %v771_v45  ;;  %v2588_v47 = vunpack.c.l.b16 %v11341_v33 }
 0x13b   : > { %v11371_v7 = vpack.c.b16 %v2588_v47, %v2587_v23 }
 0x13c   : > { %v561_v50 = vpop.f32.mrf.mxu0  ;;  %v674_v51 = vpop.f32.mrf.mxu1 }
 0x13d   : > { %v11297_v60 = vadd.f32 %v561_v50, %v11171_v3  ;;  %v11300_v0 = vadd.f32 %v674_v51, %v11173_v4  ;;  %v11329_v51 = vpack.c.b16 %v2594_v32, %v2593_v20  ;;  %v10203_v15 = vpop.eup %10202  ;;  %v11352_v20 = vpack.c.bf16 %v11236_v61, %v11114_v38  ;;  %16524 = vst [vmem:[#allocation29_spill] sm:$0xff] %v11371_v7 }
 0x13e   : > { %v2586_v61 = vunpack.c.l.b16 %v11356_v41  ;;  %vm842_vm0 = vweird.f32 %v10203_v15 }
 0x13f   : > { %608 = vmatmul.f32.gmra.mxu0 %v422_v57  ;;  %721 = vmatmul.f32.gmra.mxu1 %v422_v57  ;;  %v774_v56 = vadd.f32 %v11300_v0, %v11297_v60  ;;  %16521 = vst [vmem:[#allocation26_spill] sm:$0xff] %v11329_v51  ;;  %v2589_v57 = vunpack.c.l.b16 %v11321_v22  ;;  %v2585_v39 = vunpack.c.l.b16 %v11352_v20 }
 0x140   : > { %2611 = vmatpush.bf16.msra.mxu3 %v11329_v51 }
 0x141   : > { %775 = vadd.xlane.f32.xlu2 %v774_v56  ;;  %v2590_v56 = vunpack.c.l.b16 %v11324_v44 }
 0x143   : > { %v11360_v28 = vpack.c.b16 %v2590_v56, %v2589_v57 }
 0x144   : > { %v564_v45 = vpop.f32.mrf.mxu0  ;;  %v677_v50 = vpop.f32.mrf.mxu1  ;;  %2612 = vmatpush.bf16.msra.mxu3 %v11345_v31 }
 0x145   : > { %v11335_v42 = vadd.f32 %v564_v45, %v11171_v3  ;;  %v11338_v43 = vadd.f32 %v677_v50, %v11173_v4  ;;  %16523 = vst [vmem:[#allocation28_spill] sm:$0xff] %v11360_v28 }
 0x147   : > { %611 = vmatmul.f32.gmra.mxu0 %v426_v1  ;;  %724 = vmatmul.f32.gmra.mxu1 %v426_v1  ;;  %v777_v40 = vadd.f32 %v11338_v43, %v11335_v42  ;;  %v838_v1 = vmul.f32 256.0, %v10203_v15 }
 0x148   : > { %2613 = vmatpush.bf16.msra.mxu3 %v11360_v28 }
 0x149   : > { %778 = vadd.xlane.f32.xlu0 %v777_v40  ;;  %v839_v56 = vsub.f32 1.0, %v838_v1  ;;  %v11376_v40 = vpack.c.b16 %v2586_v61, %v2585_v39  ;;  %v3503_v1 = vunpack.c.h.b16 %v11294_v58  ;;  %v3502_v58 = vunpack.c.h.b16 %v11308_v13 }
 0x14b   : > { %16525 = vst [vmem:[#allocation30_spill] sm:$0xff] %v11376_v40 }
 0x14c   : > { %v567_v32 = vpop.f32.mrf.mxu0  ;;  %v680_v45 = vpop.f32.mrf.mxu1  ;;  %2614 = vmatpush.bf16.msra.mxu3 %v11371_v7 }
 0x14d   : > { %v11364_v50 = vadd.f32 %v567_v32, %v11171_v3  ;;  %v11367_v38 = vadd.f32 %v680_v45, %v11173_v4  ;;  %v840_v32 = vmul.f32 %v10203_v15, %v839_v56 }
 0x14f   : > { %614 = vmatmul.f32.gmra.mxu0 %v430_v2  ;;  %727 = vmatmul.f32.gmra.mxu1 %v430_v2  ;;  %v780_v57 = vadd.f32 %v11367_v38, %v11364_v50  ;;  %v841_v47 = vadd.f32 %v10203_v15, %v840_v32 }
 0x150   : > { %2615 = vmatpush.bf16.msra.mxu3 %v11376_v40 }
 0x151   : > { %781 = vadd.xlane.f32.xlu1 %v780_v57  ;;  %v11392_v39 = vsel %vm842_vm0, %v10203_v15, %v841_v47 }
 0x154   : > { %v570_v45 = vpop.f32.mrf.mxu0  ;;  %v683_v51 = vpop.f32.mrf.mxu1  ;;  %2616 = vmatpush.bf16.msra.mxu3 %v11199_v25 }
 0x155   : > { %v11380_v31 = vadd.f32 %v570_v45, %v11171_v3  ;;  %v11383_v23 = vadd.f32 %v683_v51, %v11173_v4  ;;  %v3504_v51 = vunpack.c.h.b16 %v11318_v21 }
 0x157   : > { %617 = vmatmul.f32.gmra.mxu0 %v11289_v49  ;;  %730 = vmatmul.f32.gmra.mxu1 %v11289_v49  ;;  %v783_v2 = vadd.f32 %v11383_v23, %v11380_v31  ;;  %v11406_v21 = vpack.c.b16 %v3504_v51, %v3503_v1  ;;  %v3500_v1 = vunpack.c.h.b16 %v11324_v44  ;;  %v3498_v44 = vunpack.c.h.b16 %v11341_v33 }
 0x158   : > { %2617 = vmatpush.bf16.msra.mxu3 %v11175_v5 }
 0x159   : > { %784 = vadd.xlane.f32.xlu2 %v783_v2  ;;  %v3501_v2 = vunpack.c.h.b16 %v11305_v12  ;;  %16526 = vst [vmem:[#allocation31_spill] sm:$0xff] %v11406_v21 }
 0x15b   : > { %v11424_v51 = vpack.c.b16 %v3502_v58, %v3501_v2 }
 0x15c   : > { %v573_v61 = vpop.f32.mrf.mxu0  ;;  %v686_v57 = vpop.f32.mrf.mxu1  ;;  %2618 = vmatpush.bf16.msra.mxu3 %v11155_v54 }
 0x15d   : > { %v11396_v56 = vadd.f32 %v573_v61, %v11171_v3  ;;  %v11399_v49 = vadd.f32 %v686_v57, %v11173_v4  ;;  %v743_v45 = vpop.xlane.xlu0 %742  ;;  %16527 = vst [vmem:[#allocation32_spill] sm:$0xff] %v11424_v51 }
 0x15e   : > { %v844_v32 = vmul.f32 %v11392_v39, %v743_v45 }
 0x15f   : > { %620 = vmatmul.f32.gmra.mxu0 %v11313_v14  ;;  %733 = vmatmul.f32.gmra.mxu1 %v11313_v14  ;;  %v786_v15 = vadd.f32 %v11399_v49, %v11396_v56  ;;  %v3499_v14 = vunpack.c.h.b16 %v11321_v22  ;;  %v3497_v22 = vunpack.c.h.b16 %v11332_v59  ;;  %v3496_v59 = vunpack.c.h.b16 %v11356_v41 }
 0x160   : > { %v11412_v47 = vsub.f32 %v11180_v9, %v844_v32  ;;  %v11415_v61 = vsub.f32 %v11183_v10, %v844_v32  ;;  %3521 = vmatpush.bf16.msrb.mxu3 %v11406_v21 }
 0x161   : > { %787 = vadd.xlane.f32.xlu0 %v786_v15  ;;  %v11436_v2 = vpack.c.b16 %v3500_v1, %v3499_v14 }
 0x162   : > { %v940_v12 = vmul.f32 %v11412_v47, %v11412_v47  ;;  %v941_v13 = vmul.f32 %v11415_v61, %v11415_v61 }
 0x163   : > { %16528 = vst [vmem:[#allocation33_spill] sm:$0xff] %v11436_v2 }
 0x164   : > { %v576_v9 = vpop.f32.mrf.mxu0  ;;  %v689_v10 = vpop.f32.mrf.mxu1  ;;  %v1004_v57 = vadd.f32 %v941_v13, %v940_v12  ;;  %3522 = vmatpush.bf16.msrb.mxu3 %v11424_v51 }
 0x165   : > { %v11428_v45 = vadd.f32 %v576_v9, %v11171_v3  ;;  %v11431_v32 = vadd.f32 %v689_v10, %v11173_v4  ;;  %v746_v15 = vpop.xlane.xlu0 %745  ;;  %v3495_v9 = vunpack.c.h.b16 %v11352_v20  ;;  %v11449_v10 = vpack.c.b16 %v3498_v44, %v3497_v22 }
 0x166   : > { %v845_v28 = vmul.f32 %v11392_v39, %v746_v15  ;;  %1005 = vadd.xlane.f32.xlu1 %v1004_v57 }
 0x167   : > { %v789_v58 = vadd.f32 %v11431_v32, %v11428_v45  ;;  %16529 = vst [vmem:[#allocation34_spill] sm:$0xff] %v11449_v10  ;;  %v11463_v57 = vpack.c.b16 %v3496_v59, %v3495_v9 }
 0x168   : > { %v11442_v12 = vsub.f32 %v11190_v16, %v845_v28  ;;  %v11445_v13 = vsub.f32 %v11193_v17, %v845_v28  ;;  %3523 = vmatpush.bf16.msrb.mxu3 %v11436_v2 }
 0x169   : > { %790 = vadd.xlane.f32.xlu2 %v789_v58  ;;  %16530 = vst [vmem:[#allocation35_spill] sm:$0xff] %v11463_v57 }
 0x16a   : > { %v942_v33 = vmul.f32 %v11442_v12, %v11442_v12  ;;  %v943_v14 = vmul.f32 %v11445_v13, %v11445_v13 }
 0x16c   : > { %v579_v16 = vpop.f32.mrf.mxu0  ;;  %v692_v1 = vpop.f32.mrf.mxu1  ;;  %v1007_v22 = vadd.f32 %v943_v14, %v942_v33  ;;  %3524 = vmatpush.bf16.msrb.mxu3 %v11449_v10 }
 0x16d   : > { %v11457_v17 = vadd.f32 %v579_v16, %v11171_v3  ;;  %v11460_v28 = vadd.f32 %v692_v1, %v11173_v4  ;;  %v749_v20 = vpop.xlane.xlu1 %748 }
 0x16e   : > { %v846_v41 = vmul.f32 %v11392_v39, %v749_v20 }
 0x16f   : > { %v792_v15 = vadd.f32 %v11460_v28, %v11457_v17 }
 0x170   : > { %v11469_v44 = vsub.f32 %v11204_v29, %v846_v41  ;;  %v11472_v58 = vsub.f32 %v11207_v30, %v846_v41  ;;  %3525 = vmatpush.bf16.msrb.mxu3 %v11463_v57 }
 0x171   : > { %793 = vadd.xlane.f32.xlu0 %v792_v15  ;;  %1008 = vadd.xlane.f32.xlu2 %v1007_v22 }
 0x172   : > { %16531 = vst [vmem:[#allocation36_spill] sm:$0xff] %v11469_v44  ;;  %v944_v16 = vmul.f32 %v11469_v44, %v11469_v44  ;;  %v945_v9 = vmul.f32 %v11472_v58, %v11472_v58 }
 0x174   : > { %v582_v59 = vpop.f32.mrf.mxu0  ;;  %v695_v33 = vpop.f32.mrf.mxu1  ;;  %v1010_v20 = vadd.f32 %v945_v9, %v944_v16  ;;  %3526 = vmatpush.bf16.msrb.mxu3 %v11201_v26 }
 0x175   : > { %v11480_v14 = vadd.f32 %v582_v59, %v11171_v3  ;;  %v11483_v29 = vadd.f32 %v695_v33, %v11173_v4  ;;  %v752_v30 = vpop.xlane.xlu1 %751 }
 0x176   : > { %v847_v1 = vmul.f32 %v11392_v39, %v752_v30 }
 0x177   : > { %v795_v41 = vadd.f32 %v11483_v29, %v11480_v14 }
 0x178   : > { %v11490_v15 = vsub.f32 %v11212_v34, %v847_v1  ;;  %v11493_v22 = vsub.f32 %v11215_v35, %v847_v1  ;;  %3527 = vmatpush.bf16.msrb.mxu3 %v11177_v6 }
 0x179   : > { %1011 = vadd.xlane.f32.xlu0 %v1010_v20  ;;  %796 = vadd.xlane.f32.xlu1 %v795_v41 }
 0x17a   : > { %16532 = vst [vmem:[#allocation37_spill] sm:$0xff] %v11490_v15  ;;  %v946_v59 = vmul.f32 %v11490_v15, %v11490_v15  ;;  %v947_v33 = vmul.f32 %v11493_v22, %v11493_v22 }
 0x17c   : > { %v585_v16 = vpop.f32.mrf.mxu0  ;;  %v698_v9 = vpop.f32.mrf.mxu1  ;;  %v1013_v20 = vadd.f32 %v947_v33, %v946_v59  ;;  %3528 = vmatpush.bf16.msrb.mxu3 %v11157_v55 }
 0x17d   : > { %v11501_v30 = vadd.f32 %v585_v16, %v11171_v3  ;;  %v11504_v34 = vadd.f32 %v698_v9, %v11173_v4  ;;  %v755_v35 = vpop.xlane.xlu2 %754 }
 0x17e   : > { %v848_v1 = vmul.f32 %v11392_v39, %v755_v35 }
 0x17f   : > { %v798_v41 = vadd.f32 %v11504_v34, %v11501_v30 }
 0x180   : > { %v11511_v21 = vsub.f32 %v11220_v46, %v848_v1  ;;  %v11514_v51 = vsub.f32 %v11223_v48, %v848_v1 }
 0x181   : > { %1014 = vadd.xlane.f32.xlu1 %v1013_v20  ;;  %799 = vadd.xlane.f32.xlu2 %v798_v41 }
 0x182   : > { %16533 = vst [vmem:[#allocation38_spill] sm:$0xff] %v11511_v21  ;;  %v948_v16 = vmul.f32 %v11511_v21, %v11511_v21  ;;  %v949_v9 = vmul.f32 %v11514_v51, %v11514_v51 }
 0x184   : > { %v588_v59 = vpop.f32.mrf.mxu0  ;;  %v701_v33 = vpop.f32.mrf.mxu1  ;;  %v1016_v20 = vadd.f32 %v949_v9, %v948_v16 }
 0x185   : > { %v11521_v35 = vadd.f32 %v588_v59, %v11171_v3  ;;  %v11524_v2 = vadd.f32 %v701_v33, %v11173_v4  ;;  %v758_v46 = vpop.xlane.xlu2 %757 }
 0x186   : > { %v849_v48 = vmul.f32 %v11392_v39, %v758_v46 }
 0x187   : > { %v801_v1 = vadd.f32 %v11524_v2, %v11521_v35 }
 0x188   : > { %v11530_v41 = vsub.f32 %v11228_v52, %v849_v48  ;;  %v11533_v10 = vsub.f32 %v11231_v53, %v849_v48 }
 0x189   : > { %802 = vadd.xlane.f32.xlu0 %v801_v1  ;;  %1017 = vadd.xlane.f32.xlu2 %v1016_v20 }
 0x18a   : > { %16534 = vst [vmem:[#allocation39_spill] sm:$0xff] %v11530_v41  ;;  %v950_v59 = vmul.f32 %v11530_v41, %v11530_v41  ;;  %v951_v33 = vmul.f32 %v11533_v10, %v11533_v10 }
 0x18c   : > { %v591_v57 = vpop.f32.mrf.mxu0  ;;  %v704_v46 = vpop.f32.mrf.mxu1  ;;  %v1019_v9 = vadd.f32 %v951_v33, %v950_v59 }
 0x18d   : > { %v11540_v26 = vadd.f32 %v591_v57, %v11171_v3  ;;  %v11543_v16 = vadd.f32 %v704_v46, %v11173_v4  ;;  %v761_v52 = vpop.xlane.xlu0 %760 }
 0x18e   : > { %v850_v53 = vmul.f32 %v11392_v39, %v761_v52 }
 0x18f   : > { %v804_v48 = vadd.f32 %v11543_v16, %v11540_v26 }
 0x190   : > { %v11549_v1 = vsub.f32 %v11239_v62, %v850_v53  ;;  %v11552_v20 = vsub.f32 %v11242_v63, %v850_v53 }
 0x191   : > { %1020 = vadd.xlane.f32.xlu0 %v1019_v9  ;;  %805 = vadd.xlane.f32.xlu1 %v804_v48 }
 0x192   : > { %16535 = vst [vmem:[#allocation40_spill] sm:$0xff] %v11549_v1  ;;  %v952_v57 = vmul.f32 %v11549_v1, %v11549_v1  ;;  %v953_v46 = vmul.f32 %v11552_v20, %v11552_v20 }
 0x194   : > { %v594_v6 = vpop.f32.mrf.mxu0  ;;  %v707_v52 = vpop.f32.mrf.mxu1  ;;  %v1022_v9 = vadd.f32 %v953_v46, %v952_v57 }
 0x195   : > { %v11559_v59 = vadd.f32 %v594_v6, %v11171_v3  ;;  %v11562_v33 = vadd.f32 %v707_v52, %v11173_v4  ;;  %v764_v62 = vpop.xlane.xlu1 %763 }
 0x196   : > { %v851_v63 = vmul.f32 %v11392_v39, %v764_v62 }
 0x197   : > { %v807_v53 = vadd.f32 %v11562_v33, %v11559_v59 }
 0x198   : > { %v11568_v48 = vsub.f32 %v11252_v8, %v851_v63  ;;  %v11571_v55 = vsub.f32 %v11255_v11, %v851_v63 }
 0x199   : > { %808 = vadd.xlane.f32.xlu2 %v807_v53  ;;  %1023 = vadd.xlane.f32.xlu1 %v1022_v9 }
 0x19a   : > { %16536 = vst [vmem:[#allocation41_spill] sm:$0xff] %v11568_v48  ;;  %v954_v6 = vmul.f32 %v11568_v48, %v11568_v48  ;;  %v955_v52 = vmul.f32 %v11571_v55, %v11571_v55 }
 0x19c   : > { %v597_v7 = vpop.f32.mrf.mxu0  ;;  %v710_v62 = vpop.f32.mrf.mxu1  ;;  %v1025_v63 = vadd.f32 %v955_v52, %v954_v6 }
 0x19d   : > { %v11578_v40 = vadd.f32 %v597_v7, %v11171_v3  ;;  %v11581_v57 = vadd.f32 %v710_v62, %v11173_v4  ;;  %v767_v8 = vpop.xlane.xlu2 %766 }
 0x19e   : > { %v852_v11 = vmul.f32 %v11392_v39, %v767_v8 }
 0x19f   : > { %v810_v46 = vadd.f32 %v11581_v57, %v11578_v40 }
 0x1a0   : > { %v11587_v53 = vsub.f32 %v11263_v18, %v852_v11  ;;  %v11590_v9 = vsub.f32 %v11266_v19, %v852_v11 }
 0x1a1   : > { %811 = vadd.xlane.f32.xlu0 %v810_v46  ;;  %1026 = vadd.xlane.f32.xlu2 %v1025_v63 }
 0x1a2   : > { %16537 = vst [vmem:[#allocation42_spill] sm:$0xff] %v11587_v53  ;;  %v956_v7 = vmul.f32 %v11587_v53, %v11587_v53  ;;  %v957_v62 = vmul.f32 %v11590_v9, %v11590_v9 }
 0x1a4   : > { %v600_v25 = vpop.f32.mrf.mxu0  ;;  %v713_v8 = vpop.f32.mrf.mxu1  ;;  %v1028_v52 = vadd.f32 %v957_v62, %v956_v7 }
 0x1a5   : > { %v11597_v5 = vadd.f32 %v600_v25, %v11171_v3  ;;  %v11600_v6 = vadd.f32 %v713_v8, %v11173_v4  ;;  %v770_v18 = vpop.xlane.xlu0 %769 }
 0x1a6   : > { %v853_v19 = vmul.f32 %v11392_v39, %v770_v18 }
 0x1a7   : > { %v813_v11 = vadd.f32 %v11600_v6, %v11597_v5 }
 0x1a8   : > { %v11606_v46 = vsub.f32 %v11272_v24, %v853_v19  ;;  %v11609_v63 = vsub.f32 %v11275_v27, %v853_v19 }
 0x1a9   : > { %1029 = vadd.xlane.f32.xlu0 %v1028_v52  ;;  %814 = vadd.xlane.f32.xlu1 %v813_v11 }
 0x1aa   : > { %16538 = vst [vmem:[#allocation43_spill] sm:$0xff] %v11606_v46  ;;  %v958_v25 = vmul.f32 %v11606_v46, %v11606_v46  ;;  %v959_v8 = vmul.f32 %v11609_v63, %v11609_v63 }
 0x1ac   : > { %v603_v54 = vpop.f32.mrf.mxu0  ;;  %v716_v18 = vpop.f32.mrf.mxu1  ;;  %v1031_v52 = vadd.f32 %v959_v8, %v958_v25 }
 0x1ad   : > { %v11616_v7 = vadd.f32 %v603_v54, %v11171_v3  ;;  %v11619_v62 = vadd.f32 %v716_v18, %v11173_v4  ;;  %v773_v24 = vpop.xlane.xlu1 %772 }
 0x1ae   : > { %v854_v27 = vmul.f32 %v11392_v39, %v773_v24 }
 0x1af   : > { %v816_v19 = vadd.f32 %v11619_v62, %v11616_v7 }
 0x1b0   : > { %v11625_v11 = vsub.f32 %v11281_v36, %v854_v27  ;;  %v11628_v46 = vsub.f32 %v11284_v37, %v854_v27 }
 0x1b1   : > { %817 = vadd.xlane.f32.xlu2 %v816_v19  ;;  %1032 = vadd.xlane.f32.xlu1 %v1031_v52 }
 0x1b2   : > { %16539 = vst [vmem:[#allocation44_spill] sm:$0xff] %v11625_v11  ;;  %v960_v54 = vmul.f32 %v11625_v11, %v11625_v11  ;;  %v961_v18 = vmul.f32 %v11628_v46, %v11628_v46 }
 0x1b4   : > { %v606_v53 = vpop.f32.mrf.mxu0  ;;  %v719_v24 = vpop.f32.mrf.mxu1  ;;  %v1034_v27 = vadd.f32 %v961_v18, %v960_v54 }
 0x1b5   : > { %v11635_v48 = vadd.f32 %v606_v53, %v11171_v3  ;;  %v11638_v25 = vadd.f32 %v719_v24, %v11173_v4  ;;  %v776_v36 = vpop.xlane.xlu2 %775 }
 0x1b6   : > { %v855_v37 = vmul.f32 %v11392_v39, %v776_v36 }
 0x1b7   : > { %v819_v8 = vadd.f32 %v11638_v25, %v11635_v48 }
 0x1b8   : > { %v11644_v19 = vsub.f32 %v11297_v60, %v855_v37  ;;  %v11647_v52 = vsub.f32 %v11300_v0, %v855_v37 }
 0x1b9   : > { %820 = vadd.xlane.f32.xlu0 %v819_v8  ;;  %1035 = vadd.xlane.f32.xlu2 %v1034_v27 }
 0x1ba   : > { %16540 = vst [vmem:[#allocation45_spill] sm:$0xff] %v11644_v19  ;;  %v962_v53 = vmul.f32 %v11644_v19, %v11644_v19  ;;  %v963_v24 = vmul.f32 %v11647_v52, %v11647_v52 }
 0x1bc   : > { %v609_v11 = vpop.f32.mrf.mxu0  ;;  %v722_v36 = vpop.f32.mrf.mxu1  ;;  %v1037_v18 = vadd.f32 %v963_v24, %v962_v53 }
 0x1bd   : > { %v11654_v1 = vadd.f32 %v609_v11, %v11171_v3  ;;  %v11657_v54 = vadd.f32 %v722_v36, %v11173_v4  ;;  %v779_v60 = vpop.xlane.xlu0 %778 }
 0x1be   : > { %v856_v0 = vmul.f32 %v11392_v39, %v779_v60 }
 0x1bf   : > { %v822_v37 = vadd.f32 %v11657_v54, %v11654_v1 }
 0x1c0   : > { %v11663_v8 = vsub.f32 %v11335_v42, %v856_v0  ;;  %v11666_v27 = vsub.f32 %v11338_v43, %v856_v0 }
 0x1c1   : > { %1038 = vadd.xlane.f32.xlu0 %v1037_v18  ;;  %823 = vadd.xlane.f32.xlu1 %v822_v37 }
 0x1c2   : > { %16541 = vst [vmem:[#allocation46_spill] sm:$0xff] %v11663_v8  ;;  %v964_v11 = vmul.f32 %v11663_v8, %v11663_v8  ;;  %v965_v36 = vmul.f32 %v11666_v27, %v11666_v27 }
 0x1c4   : > { %v612_v19 = vpop.f32.mrf.mxu0  ;;  %v725_v60 = vpop.f32.mrf.mxu1  ;;  %v1040_v18 = vadd.f32 %v965_v36, %v964_v11 }
 0x1c5   : > { %v11673_v53 = vadd.f32 %v612_v19, %v11171_v3  ;;  %v11676_v24 = vadd.f32 %v725_v60, %v11173_v4  ;;  %v782_v42 = vpop.xlane.xlu1 %781 }
 0x1c6   : > { %v857_v43 = vmul.f32 %v11392_v39, %v782_v42 }
 0x1c7   : > { %v825_v0 = vadd.f32 %v11676_v24, %v11673_v53 }
 0x1c8   : > { %v11682_v37 = vsub.f32 %v11364_v50, %v857_v43  ;;  %v11685_v8 = vsub.f32 %v11367_v38, %v857_v43 }
 0x1c9   : > { %826 = vadd.xlane.f32.xlu2 %v825_v0  ;;  %1041 = vadd.xlane.f32.xlu1 %v1040_v18 }
 0x1ca   : > { %16542 = vst [vmem:[#allocation47_spill] sm:$0xff] %v11682_v37  ;;  %v966_v19 = vmul.f32 %v11682_v37, %v11682_v37  ;;  %v967_v60 = vmul.f32 %v11685_v8, %v11685_v8 }
 0x1cc   : > { %v615_v41 = vpop.f32.mrf.mxu0  ;;  %v728_v42 = vpop.f32.mrf.mxu1  ;;  %v1043_v43 = vadd.f32 %v967_v60, %v966_v19 }
 0x1cd   : > { %v11692_v21 = vadd.f32 %v615_v41, %v11171_v3  ;;  %v11695_v11 = vadd.f32 %v728_v42, %v11173_v4  ;;  %v785_v50 = vpop.xlane.xlu2 %784 }
 0x1ce   : > { %v858_v38 = vmul.f32 %v11392_v39, %v785_v50 }
 0x1cf   : > { %v828_v36 = vadd.f32 %v11695_v11, %v11692_v21 }
 0x1d0   : > { %v11701_v0 = vsub.f32 %v11380_v31, %v858_v38  ;;  %v11704_v18 = vsub.f32 %v11383_v23, %v858_v38 }
 0x1d1   : > { %829 = vadd.xlane.f32.xlu0 %v828_v36  ;;  %1044 = vadd.xlane.f32.xlu2 %v1043_v43 }
 0x1d2   : > { %16543 = vst [vmem:[#allocation48_spill] sm:$0xff] %v11701_v0  ;;  %v968_v41 = vmul.f32 %v11701_v0, %v11701_v0  ;;  %v969_v42 = vmul.f32 %v11704_v18, %v11704_v18 }
 0x1d3   : > { %16544 = vst [vmem:[#allocation49_spill] sm:$0xff] %v11704_v18 }
 0x1d4   : > { %v618_v37 = vpop.f32.mrf.mxu0  ;;  %v731_v50 = vpop.f32.mrf.mxu1  ;;  %v1046_v60 = vadd.f32 %v969_v42, %v968_v41 }
 0x1d5   : > { %v11711_v15 = vadd.f32 %v618_v37, %v11171_v3  ;;  %v11714_v19 = vadd.f32 %v731_v50, %v11173_v4  ;;  %v788_v31 = vpop.xlane.xlu0 %787 }
 0x1d6   : > { %v859_v23 = vmul.f32 %v11392_v39, %v788_v31 }
 0x1d7   : > { %v831_v38 = vadd.f32 %v11714_v19, %v11711_v15 }
 0x1d8   : > { %v11720_v36 = vsub.f32 %v11396_v56, %v859_v23  ;;  %v11723_v43 = vsub.f32 %v11399_v49, %v859_v23 }
 0x1d9   : > { %1047 = vadd.xlane.f32.xlu0 %v1046_v60  ;;  %832 = vadd.xlane.f32.xlu2 %v831_v38  ;;  %v1006_v37 = vpop.xlane.xlu1 %1005 }
 0x1da   : > { %16545 = vst [vmem:[#allocation50_spill] sm:$0xff] %v11720_v36  ;;  %v970_v50 = vmul.f32 %v11720_v36, %v11720_v36  ;;  %v971_v0 = vmul.f32 %v11723_v43, %v11723_v43  ;;  %v1100_v18 = vmul.f32 %v1006_v37, %v11392_v39 }
 0x1db   : > { %16546 = vst [vmem:[#allocation51_spill] sm:$0xff] %v11723_v43 }
 0x1dc   : > { %v621_v31 = vpop.f32.mrf.mxu0  ;;  %v734_v41 = vpop.f32.mrf.mxu1  ;;  %v1049_v42 = vadd.f32 %v971_v0, %v970_v50  ;;  %v11745_v37 = vadd.f32 1e-05, %v1100_v18 }
 0x1dd   : > { %v11731_v56 = vadd.f32 %v621_v31, %v11171_v3  ;;  %v11734_v49 = vadd.f32 %v734_v41, %v11173_v4  ;;  %v791_v23 = vpop.xlane.xlu2 %790 }
 0x1de   : > { %v860_v60 = vmul.f32 %v11392_v39, %v791_v23  ;;  %1050 = vadd.xlane.f32.xlu1 %v1049_v42  ;;  %10204 = vrsqrt.f32 %v11745_v37  ;;  %vm1170_vm2 = vweird.f32 %v11745_v37 }
 0x1df   : > { %v834_v38 = vadd.f32 %v11734_v49, %v11731_v56 }
 0x1e0   : > { %v11740_v36 = vsub.f32 %v11428_v45, %v860_v60  ;;  %v11743_v0 = vsub.f32 %v11431_v32, %v860_v60 }
 0x1e1   : > { %835 = vadd.xlane.f32.xlu0 %v834_v38 }
 0x1e2   : > { %16547 = vst [vmem:[#allocation52_spill] sm:$0xff] %v11740_v36  ;;  %v972_v3 = vmul.f32 %v11740_v36, %v11740_v36  ;;  %v973_v4 = vmul.f32 %v11743_v0, %v11743_v0 }
 0x1e3   : > { %16548 = vst [vmem:[#allocation53_spill] sm:$0xff] %v11743_v0 }
 0x1e4   : > { %v794_v50 = vpop.xlane.xlu0 %793  ;;  %v1052_v31 = vadd.f32 %v973_v4, %v972_v3  ;;  %v10205_v3 = vpop.eup %10204 }
 0x1e5   : > { %v1009_v41 = vpop.xlane.xlu2 %1008  ;;  %v861_v45 = vmul.f32 %v11392_v39, %v794_v50  ;;  %vm1171_vm1 = vweird.f32 %v10205_v3 }
 0x1e6   : > { %v1101_v42 = vmul.f32 %v1009_v41, %v11392_v39  ;;  %1053 = vadd.xlane.f32.xlu2 %v1052_v31  ;;  %vm1172_vm3 = vmor %vm1170_vm2, %vm1171_vm1 }
 0x1e7   : > { %v11755_v32 = vsub.f32 %v11457_v17, %v861_v45  ;;  %v11758_v18 = vsub.f32 %v11460_v28, %v861_v45  ;;  %v1165_v28 = vmul.f32 %v10205_v3, %v11745_v37 }
 0x1e8   : > { %v11760_v23 = vadd.f32 1e-05, %v1101_v42 }
 0x1e9   : > { %16549 = vst [vmem:[#allocation54_spill] sm:$0xff] %v11755_v32  ;;  %v974_v60 = vmul.f32 %v11755_v32, %v11755_v32  ;;  %v975_v38 = vmul.f32 %v11758_v18, %v11758_v18 }
 0x1ea   : > { %16550 = vst [vmem:[#allocation55_spill] sm:$0xff] %v11758_v18  ;;  %10206 = vrsqrt.f32 %v11760_v23  ;;  %vm1180_vm5 = vweird.f32 %v11760_v23 }
 0x1eb   : > { %v1055_v4 = vadd.f32 %v975_v38, %v974_v60  ;;  %v1166_v60 = vmul.f32 %v10205_v3, %v1165_v28 }
 0x1ec   : > { %v797_v50 = vpop.xlane.xlu1 %796  ;;  %v1012_v36 = vpop.xlane.xlu0 %1011 }
 0x1ed   : > { %v862_v17 = vmul.f32 %v11392_v39, %v797_v50  ;;  %v1102_v31 = vmul.f32 %v1012_v36, %v11392_v39  ;;  %1056 = vadd.xlane.f32.xlu0 %v1055_v4 }
 0x1ef   : > { %v11771_v41 = vsub.f32 %v11480_v14, %v862_v17  ;;  %v11774_v45 = vsub.f32 %v11483_v29, %v862_v17  ;;  %v11776_v42 = vadd.f32 1e-05, %v1102_v31  ;;  %v1167_v17 = vmul.f32 0.5, %v1166_v60 }
 0x1f0   : > { %v11782_v32 = vpop.eup %10206 }
 0x1f1   : > { %16551 = vst [vmem:[#allocation56_spill] sm:$0xff] %v11771_v41  ;;  %v976_v38 = vmul.f32 %v11771_v41, %v11771_v41  ;;  %v977_v50 = vmul.f32 %v11774_v45, %v11774_v45  ;;  %10208 = vrsqrt.f32 %v11776_v42  ;;  %v1175_v31 = vmul.f32 %v11782_v32, %v11760_v23 }
 0x1f2   : > { %16552 = vst [vmem:[#allocation57_spill] sm:$0xff] %v11774_v45  ;;  %vm1181_vm4 = vweird.f32 %v11782_v32  ;;  %vm1190_vm8 = vweird.f32 %v11776_v42 }
 0x1f3   : > { %v1058_v18 = vadd.f32 %v977_v50, %v976_v38  ;;  %v1168_v50 = vsub.f32 1.5, %v1167_v17  ;;  %vm1182_vm6 = vmor %vm1180_vm5, %vm1181_vm4 }
 0x1f4   : > { %v1015_v36 = vpop.xlane.xlu1 %1014  ;;  %v800_v4 = vpop.xlane.xlu2 %799 }
 0x1f5   : > { %v1103_v14 = vmul.f32 %v1015_v36, %v11392_v39  ;;  %v863_v29 = vmul.f32 %v11392_v39, %v800_v4  ;;  %1059 = vadd.xlane.f32.xlu2 %v1058_v18  ;;  %v1176_v36 = vmul.f32 %v11782_v32, %v1175_v31 }
 0x1f7   : > { %v11790_v28 = vsub.f32 %v11501_v30, %v863_v29  ;;  %v11793_v41 = vsub.f32 %v11504_v34, %v863_v29  ;;  %v11795_v45 = vadd.f32 1e-05, %v1103_v14  ;;  %v11802_v4 = vpop.eup %10208  ;;  %v1169_v29 = vmul.f32 %v10205_v3, %v1168_v50 }
 0x1f8   : > { %v1185_v17 = vmul.f32 %v11802_v4, %v11776_v42  ;;  %vm1191_vm7 = vweird.f32 %v11802_v4 }
 0x1f9   : > { %16553 = vst [vmem:[#allocation58_spill] sm:$0xff] %v11790_v28  ;;  %v978_v38 = vmul.f32 %v11790_v28, %v11790_v28  ;;  %v979_v60 = vmul.f32 %v11793_v41, %v11793_v41  ;;  %10210 = vrsqrt.f32 %v11795_v45  ;;  %v1177_v28 = vmul.f32 0.5, %v1176_v36  ;;  %vm1192_vm9 = vmor %vm1190_vm8, %vm1191_vm7 }
 0x1fa   : > { %16554 = vst [vmem:[#allocation59_spill] sm:$0xff] %v11793_v41  ;;  %v11822_v50 = vsel %vm1172_vm3, %v10205_v3, %v1169_v29  ;;  %v11837_v29 = vld [vmem:[#allocation10 + $0x2] ss:$4 sm:$0x3]  ;;  %vm1200_vm11 = vweird.f32 %v11795_v45 }
 0x1fb   : > { %v1061_v30 = vadd.f32 %v979_v60, %v978_v38  ;;  %v11816_v38 = vld [vmem:[#allocation10 + $0x1] ss:$4 sm:$0x3]  ;;  %v1178_v36 = vsub.f32 1.5, %v1177_v28  ;;  %v1485_v28 = vmul.f32 %v11822_v50, %v11415_v61 }
 0x1fc   : > { %v1018_v18 = vpop.xlane.xlu2 %1017  ;;  %v803_v43 = vpop.xlane.xlu0 %802  ;;  %v11830_v37 = vperm.slane %v11816_v38, 1 }
 0x1fd   : > { %v1104_v34 = vmul.f32 %v1018_v18, %v11392_v39  ;;  %v864_v14 = vmul.f32 %v11392_v39, %v803_v43  ;;  %1062 = vadd.xlane.f32.xlu0 %v1061_v30  ;;  %v1186_v18 = vmul.f32 %v11802_v4, %v1185_v17  ;;  %v1179_v17 = vmul.f32 %v11782_v32, %v1178_v36 }
 0x1ff   : > { %v11810_v31 = vsub.f32 %v11521_v35, %v864_v14  ;;  %v11813_v41 = vsub.f32 %v11524_v2, %v864_v14  ;;  %v11818_v60 = vadd.f32 1e-05, %v1104_v34  ;;  %v11827_v2 = vpop.eup %10210 }
 0x200   : > { %v1195_v0 = vmul.f32 %v11827_v2, %v11795_v45  ;;  %vm1201_vm10 = vweird.f32 %v11827_v2 }
 0x201   : > { %16555 = vst [vmem:[#allocation60_spill] sm:$0xff] %v11810_v31  ;;  %v980_v43 = vmul.f32 %v11810_v31, %v11810_v31  ;;  %v981_v35 = vmul.f32 %v11813_v41, %v11813_v41  ;;  %10212 = vrsqrt.f32 %v11818_v60  ;;  %vm1202_vm12 = vmor %vm1200_vm11, %vm1201_vm10  ;;  %vm1210_vm14 = vweird.f32 %v11818_v60 }
 0x202   : > { %16556 = vst [vmem:[#allocation61_spill] sm:$0xff] %v11813_v41  ;;  %v1187_v41 = vmul.f32 0.5, %v1186_v18  ;;  %v1196_v23 = vmul.f32 %v11827_v2, %v1195_v0 }
 0x203   : > { %v1064_v34 = vadd.f32 %v981_v35, %v980_v43 }
 0x204   : > { %v806_v30 = vpop.xlane.xlu1 %805  ;;  %v1021_v14 = vpop.xlane.xlu0 %1020  ;;  %v1197_v0 = vmul.f32 0.5, %v1196_v23 }
 0x205   : > { %v865_v31 = vmul.f32 %v11392_v39, %v806_v30  ;;  %v1105_v3 = vmul.f32 %v1021_v14, %v11392_v39  ;;  %1065 = vadd.xlane.f32.xlu2 %v1064_v34  ;;  %v11853_v30 = vperm.slane %v11837_v29, 1  ;;  %v11861_v14 = vsel %vm1182_vm6, %v11782_v32, %v1179_v17 }
 0x207   : > { %v11844_v43 = vsub.f32 %v11540_v26, %v865_v31  ;;  %v11847_v35 = vsub.f32 %v11543_v16, %v865_v31  ;;  %v11850_v61 = vadd.f32 1e-05, %v1105_v3  ;;  %v1554_v26 = vmul.f32 %v11830_v37, %v1485_v28  ;;  %v11864_v31 = vpop.eup %10212 }
 0x208   : > { %v1188_v16 = vsub.f32 1.5, %v1187_v41  ;;  %v1205_v17 = vmul.f32 %v11864_v31, %v11818_v60  ;;  %vm1211_vm13 = vweird.f32 %v11864_v31 }
 0x209   : > { %16557 = vst [vmem:[#allocation62_spill] sm:$0xff] %v11844_v43  ;;  %v982_v36 = vmul.f32 %v11844_v43, %v11844_v43  ;;  %v983_v18 = vmul.f32 %v11847_v35, %v11847_v35  ;;  %10214 = vrsqrt.f32 %v11850_v61  ;;  %v1487_v43 = vmul.f32 %v11861_v14, %v11445_v13  ;;  %vm1212_vm15 = vmor %vm1210_vm14, %vm1211_vm13 }
 0x20a   : > { %16558 = vst [vmem:[#allocation63_spill] sm:$0xff] %v11847_v35  ;;  %v1623_v32 = vadd.f32 %v11853_v30, %v1554_v26  ;;  %v1189_v41 = vmul.f32 %v11802_v4, %v1188_v16  ;;  %v1206_v42 = vmul.f32 %v11864_v31, %v1205_v17  ;;  %vm1220_vm1 = vweird.f32 %v11850_v61 }
 0x20b   : > { %v1067_v34 = vadd.f32 %v983_v18, %v982_v36  ;;  %v1556_v26 = vmul.f32 %v11830_v37, %v1487_v43 }
 0x20c   : > { %v809_v3 = vpop.xlane.xlu2 %808  ;;  %v1024_v44 = vpop.xlane.xlu1 %1023  ;;  %10216 = vtanh.f32 %v1623_v32 }
 0x20d   : > { %v866_v35 = vmul.f32 %v11392_v39, %v809_v3  ;;  %v1106_v28 = vmul.f32 %v1024_v44, %v11392_v39  ;;  %1068 = vadd.xlane.f32.xlu0 %v1067_v34 }
 0x20f   : > { %v11877_v36 = vsub.f32 %v11559_v59, %v866_v35  ;;  %v11880_v13 = vsub.f32 %v11562_v33, %v866_v35  ;;  %v11883_v44 = vadd.f32 1e-05, %v1106_v28  ;;  %v11885_v18 = vpop.eup %10214  ;;  %v11893_v59 = vsel %vm1192_vm9, %v11802_v4, %v1189_v41 }
 0x210   : > { %v1198_v33 = vsub.f32 1.5, %v1197_v0  ;;  %v1215_v43 = vmul.f32 %v11885_v18, %v11850_v61  ;;  %v1625_v28 = vadd.f32 %v11853_v30, %v1556_v26  ;;  %v1207_v41 = vmul.f32 0.5, %v1206_v42 }
 0x211   : > { %16559 = vst [vmem:[#allocation64_spill] sm:$0xff] %v11877_v36  ;;  %v984_v16 = vmul.f32 %v11877_v36, %v11877_v36  ;;  %v985_v23 = vmul.f32 %v11880_v13, %v11880_v13  ;;  %10218 = vrsqrt.f32 %v11883_v44  ;;  %v1489_v36 = vmul.f32 %v11893_v59, %v11472_v58 }
 0x212   : > { %v1199_v4 = vmul.f32 %v11827_v2, %v1198_v33  ;;  %v11906_v17 = vpop.eup %10216  ;;  %v1216_v58 = vmul.f32 %v11885_v18, %v1215_v43  ;;  %10220 = vtanh.f32 %v1625_v28  ;;  %vm1221_vm0 = vweird.f32 %v11885_v18 }
 0x213   : > { %v1070_v35 = vadd.f32 %v985_v23, %v984_v16  ;;  %16560 = vst [vmem:[#allocation65_spill] sm:$0xff] %v11906_v17  ;;  %v1558_v42 = vmul.f32 %v11830_v37, %v1489_v36  ;;  %vm1222_vm2 = vmor %vm1220_vm1, %vm1221_vm0  ;;  %vm1230_vm4 = vweird.f32 %v11883_v44 }
 0x214   : > { %v1027_v34 = vpop.xlane.xlu2 %1026  ;;  %v812_v3 = vpop.xlane.xlu0 %811  ;;  %v1217_v43 = vmul.f32 0.5, %v1216_v58 }
 0x215   : > { %v1107_v32 = vmul.f32 %v1027_v34, %v11392_v39  ;;  %1071 = vadd.xlane.f32.xlu2 %v1070_v35  ;;  %v867_v0 = vmul.f32 %v11392_v39, %v812_v3  ;;  %v11923_v35 = vsel %vm1202_vm12, %v11827_v2, %v1199_v4  ;;  %v1208_v34 = vsub.f32 1.5, %v1207_v41 }
 0x216   : > { %v1627_v28 = vadd.f32 %v11853_v30, %v1558_v42  ;;  %v1491_v2 = vmul.f32 %v11923_v35, %v11493_v22 }
 0x217   : > { %v11908_v16 = vadd.f32 1e-05, %v1107_v32  ;;  %v11910_v23 = vpop.eup %10218  ;;  %v11915_v26 = vsub.f32 %v11578_v40, %v867_v0  ;;  %v11918_v33 = vsub.f32 %v11581_v57, %v867_v0  ;;  %v1209_v0 = vmul.f32 %v11864_v31, %v1208_v34 }
 0x218   : > { %1752 = vxpose.xlu1.b32.start [1/16] %v11906_v17, 128  ;;  %v1225_v57 = vmul.f32 %v11910_v23, %v11883_v44  ;;  %v11939_v17 = vpop.eup %10220  ;;  %vm1231_vm3 = vweird.f32 %v11910_v23 }
 0x219   : > { %v986_v45 = vmul.f32 %v11915_v26, %v11915_v26  ;;  %v987_v40 = vmul.f32 %v11918_v33, %v11918_v33  ;;  %10222 = vrsqrt.f32 %v11908_v16  ;;  %16561 = vst [vmem:[#allocation66_spill] sm:$0xff] %v11939_v17  ;;  %vm1232_vm5 = vmor %vm1230_vm4, %vm1231_vm3  ;;  %vm1240_vm7 = vweird.f32 %v11908_v16 }
 0x21a   : > { %v1226_v58 = vmul.f32 %v11910_v23, %v1225_v57  ;;  %10224 = vtanh.f32 %v1627_v28 }
 0x21b   : > { %v1073_v32 = vadd.f32 %v987_v40, %v986_v45  ;;  %v1218_v40 = vsub.f32 1.5, %v1217_v43 }
 0x21c   : > { %v815_v3 = vpop.xlane.xlu1 %814  ;;  %v1030_v36 = vpop.xlane.xlu0 %1029 }
 0x21d   : > { %v868_v4 = vmul.f32 %v11392_v39, %v815_v3  ;;  %v1108_v41 = vmul.f32 %v1030_v36, %v11392_v39  ;;  %1074 = vadd.xlane.f32.xlu0 %v1073_v32  ;;  %v1560_v3 = vmul.f32 %v11830_v37, %v1491_v2  ;;  %v1227_v36 = vmul.f32 0.5, %v1226_v58 }
 0x21e   : > { %v1219_v60 = vmul.f32 %v11885_v18, %v1218_v40 }
 0x21f   : > { %v11943_v45 = vsub.f32 %v11597_v5, %v868_v4  ;;  %v11946_v42 = vsub.f32 %v11600_v6, %v868_v4  ;;  %v11948_v22 = vadd.f32 1e-05, %v1108_v41  ;;  %v11952_v34 = vpop.eup %10222  ;;  %v11958_v5 = vsel %vm1212_vm15, %v11864_v31, %v1209_v0 }
 0x220   : > { %1753 = vxpose.xlu1.b32.cont [2/16] %v11939_v17, 128  ;;  %v1235_v43 = vmul.f32 %v11952_v34, %v11908_v16  ;;  %v1629_v28 = vadd.f32 %v11853_v30, %v1560_v3  ;;  %v1493_v31 = vmul.f32 %v11958_v5, %v11514_v51  ;;  %v11973_v58 = vpop.eup %10224  ;;  %v1228_v40 = vsub.f32 1.5, %v1227_v36 }
 0x221   : > { %v988_v57 = vmul.f32 %v11943_v45, %v11943_v45  ;;  %v989_v6 = vmul.f32 %v11946_v42, %v11946_v42  ;;  %10226 = vrsqrt.f32 %v11948_v22  ;;  %16562 = vst [vmem:[#allocation67_spill] sm:$0xff] %v11973_v58  ;;  %v11982_v3 = vsel %vm1222_vm2, %v11885_v18, %v1219_v60 }
 0x222   : > { %v1236_v51 = vmul.f32 %v11952_v34, %v1235_v43  ;;  %10228 = vtanh.f32 %v1629_v28  ;;  %v1495_v18 = vmul.f32 %v11982_v3, %v11533_v10  ;;  %v1229_v36 = vmul.f32 %v11910_v23, %v1228_v40 }
 0x223   : > { %v1076_v4 = vadd.f32 %v989_v6, %v988_v57  ;;  %vm1241_vm6 = vweird.f32 %v11952_v34  ;;  %vm1250_vm10 = vweird.f32 %v11948_v22 }
 0x224   : > { %v818_v32 = vpop.xlane.xlu2 %817  ;;  %v1033_v2 = vpop.xlane.xlu1 %1032  ;;  %v1237_v60 = vmul.f32 0.5, %v1236_v51  ;;  %v1564_v40 = vmul.f32 %v11830_v37, %v1495_v18  ;;  %vm1242_vm8 = vmor %vm1240_vm7, %vm1241_vm6 }
 0x225   : > { %v869_v41 = vmul.f32 %v11392_v39, %v818_v32  ;;  %v1109_v0 = vmul.f32 %v1033_v2, %v11392_v39  ;;  %1077 = vadd.xlane.f32.xlu2 %v1076_v4  ;;  %v1562_v32 = vmul.f32 %v11830_v37, %v1493_v31 }
 0x227   : > { %v11976_v17 = vsub.f32 %v11616_v7, %v869_v41  ;;  %v11979_v57 = vsub.f32 %v11619_v62, %v869_v41  ;;  %v11985_v6 = vadd.f32 1e-05, %v1109_v0  ;;  %v11988_v61 = vpop.eup %10226  ;;  %v1631_v28 = vadd.f32 %v11853_v30, %v1562_v32 }
 0x228   : > { %1754 = vxpose.xlu1.b32.cont [3/16] %v11973_v58, 128  ;;  %v1245_v43 = vmul.f32 %v11988_v61, %v11948_v22  ;;  %v12006_v10 = vpop.eup %10228  ;;  %v1238_v32 = vsub.f32 1.5, %v1237_v60  ;;  %vm1251_vm9 = vweird.f32 %v11988_v61 }
 0x229   : > { %v990_v7 = vmul.f32 %v11976_v17, %v11976_v17  ;;  %v991_v62 = vmul.f32 %v11979_v57, %v11979_v57  ;;  %10230 = vrsqrt.f32 %v11985_v6  ;;  %vm1252_vm11 = vmor %vm1250_vm10, %vm1251_vm9  ;;  %vm1260_vm13 = vweird.f32 %v11985_v6 }
 0x22a   : > { %10232 = vtanh.f32 %v1631_v28 }
 0x22b   : > { %v1079_v31 = vadd.f32 %v991_v62, %v990_v7  ;;  %v12015_v7 = vsel %vm1232_vm5, %v11910_v23, %v1229_v36  ;;  %v1246_v62 = vmul.f32 %v11988_v61, %v1245_v43  ;;  %v1633_v23 = vadd.f32 %v11853_v30, %v1564_v40 }
 0x22c   : > { %v1036_v2 = vpop.xlane.xlu2 %1035  ;;  %v821_v4 = vpop.xlane.xlu0 %820  ;;  %v1497_v36 = vmul.f32 %v12015_v7, %v11552_v20 }
 0x22d   : > { %v1110_v41 = vmul.f32 %v1036_v2, %v11392_v39  ;;  %v870_v0 = vmul.f32 %v11392_v39, %v821_v4  ;;  %1080 = vadd.xlane.f32.xlu0 %v1079_v31  ;;  %v1247_v60 = vmul.f32 0.5, %v1246_v62 }
 0x22e   : > { %v1566_v40 = vmul.f32 %v11830_v37, %v1497_v36 }
 0x22f   : > { %v12009_v51 = vadd.f32 1e-05, %v1110_v41  ;;  %v12012_v58 = vsub.f32 %v11635_v48, %v870_v0  ;;  %v12019_v2 = vsub.f32 %v11638_v25, %v870_v0  ;;  %v12024_v18 = vpop.eup %10230  ;;  %v1239_v25 = vmul.f32 %v11952_v34, %v1238_v32 }
 0x230   : > { %1755 = vxpose.xlu1.b32.cont [4/16] %v12006_v10, 128  ;;  %v1255_v28 = vmul.f32 %v12024_v18, %v11985_v6  ;;  %v12039_v20 = vpop.eup %10232  ;;  %v1635_v36 = vadd.f32 %v11853_v30, %v1566_v40  ;;  %vm1261_vm12 = vweird.f32 %v12024_v18 }
 0x231   : > { %v992_v44 = vmul.f32 %v12012_v58, %v12012_v58  ;;  %v993_v48 = vmul.f32 %v12019_v2, %v12019_v2  ;;  %10234 = vrsqrt.f32 %v12009_v51  ;;  %vm1262_vm14 = vmor %vm1260_vm13, %vm1261_vm12  ;;  %vm1270_vm0 = vweird.f32 %v12009_v51 }
 0x232   : > { %10236 = vtanh.f32 %v1633_v23 }
 0x233   : > { %v1082_v31 = vadd.f32 %v993_v48, %v992_v44  ;;  %v12049_v44 = vsel %vm1242_vm8, %v11952_v34, %v1239_v25  ;;  %v1248_v48 = vsub.f32 1.5, %v1247_v60 }
 0x234   : > { %v824_v43 = vpop.xlane.xlu1 %823  ;;  %v1039_v4 = vpop.xlane.xlu0 %1038  ;;  %v1499_v25 = vmul.f32 %v12049_v44, %v11571_v55 }
 0x235   : > { %v871_v41 = vmul.f32 %v11392_v39, %v824_v43  ;;  %v1111_v0 = vmul.f32 %v1039_v4, %v11392_v39  ;;  %1083 = vadd.xlane.f32.xlu2 %v1082_v31  ;;  %v1256_v43 = vmul.f32 %v12024_v18, %v1255_v28  ;;  %v1249_v23 = vmul.f32 %v11988_v61, %v1248_v48 }
 0x237   : > { %v12043_v32 = vsub.f32 %v11654_v1, %v871_v41  ;;  %v12046_v62 = vsub.f32 %v11657_v54, %v871_v41  ;;  %v12052_v16 = vpop.eup %10234  ;;  %v12055_v4 = vadd.f32 1e-05, %v1111_v0  ;;  %v1257_v41 = vmul.f32 0.5, %v1256_v43 }
 0x238   : > { %1756 = vxpose.xlu1.b32.cont [5/16] %v12039_v20, 128  ;;  %v1265_v60 = vmul.f32 %v12052_v16, %v12009_v51  ;;  %v12081_v43 = vsel %vm1252_vm11, %v11988_v61, %v1249_v23  ;;  %vm1271_vm15 = vweird.f32 %v12052_v16 }
 0x239   : > { %v994_v1 = vmul.f32 %v12043_v32, %v12043_v32  ;;  %v995_v54 = vmul.f32 %v12046_v62, %v12046_v62  ;;  %10238 = vrsqrt.f32 %v12055_v4  ;;  %v1258_v22 = vsub.f32 1.5, %v1257_v41  ;;  %vm1272_vm1 = vmor %vm1270_vm0, %vm1271_vm15 }
 0x23a   : > { %10240 = vtanh.f32 %v1635_v36  ;;  %v1501_v61 = vmul.f32 %v12081_v43, %v11590_v9  ;;  %vm1280_vm3 = vweird.f32 %v12055_v4 }
 0x23b   : > { %v1085_v34 = vadd.f32 %v995_v54, %v994_v1  ;;  %v12071_v1 = vpop.eup %10236  ;;  %v1266_v54 = vmul.f32 %v12052_v16, %v1265_v60  ;;  %v1259_v41 = vmul.f32 %v12024_v18, %v1258_v22 }
 0x23c   : > { %v827_v31 = vpop.xlane.xlu2 %826  ;;  %v1042_v28 = vpop.xlane.xlu1 %1041  ;;  %16563 = vst [vmem:[#allocation68_spill] sm:$0xff] %v12071_v1 }
 0x23d   : > { %v872_v0 = vmul.f32 %v11392_v39, %v827_v31  ;;  %v1112_v40 = vmul.f32 %v1042_v28, %v11392_v39  ;;  %1086 = vadd.xlane.f32.xlu0 %v1085_v34  ;;  %v1568_v34 = vmul.f32 %v11830_v37, %v1499_v25  ;;  %v1267_v60 = vmul.f32 0.5, %v1266_v54 }
 0x23f   : > { %v12075_v55 = vsub.f32 %v11673_v53, %v872_v0  ;;  %v12078_v48 = vsub.f32 %v11676_v24, %v872_v0  ;;  %v12084_v31 = vadd.f32 1e-05, %v1112_v40  ;;  %v12092_v28 = vpop.eup %10238  ;;  %v1637_v25 = vadd.f32 %v11853_v30, %v1568_v34 }
 0x240   : > { %1757 = vxpose.xlu1.b32.cont [6/16] %v12071_v1, 128  ;;  %v12101_v1 = vpop.eup %10240  ;;  %v1275_v9 = vmul.f32 %v12092_v28, %v12055_v4  ;;  %v1268_v34 = vsub.f32 1.5, %v1267_v60  ;;  %vm1281_vm2 = vweird.f32 %v12092_v28 }
 0x241   : > { %v996_v53 = vmul.f32 %v12075_v55, %v12075_v55  ;;  %v997_v24 = vmul.f32 %v12078_v48, %v12078_v48  ;;  %10242 = vrsqrt.f32 %v12084_v31  ;;  %16564 = vst [vmem:[#allocation69_spill] sm:$0xff] %v12101_v1  ;;  %vm1282_vm4 = vmor %vm1280_vm3, %vm1281_vm2  ;;  %vm1290_vm6 = vweird.f32 %v12084_v31 }
 0x242   : > { %10244 = vtanh.f32 %v1637_v25  ;;  %v1276_v6 = vmul.f32 %v12092_v28, %v1275_v9 }
 0x243   : > { %v1088_v23 = vadd.f32 %v997_v24, %v996_v53  ;;  %v1570_v53 = vmul.f32 %v11830_v37, %v1501_v61 }
 0x244   : > { %v1045_v0 = vpop.xlane.xlu2 %1044  ;;  %v830_v36 = vpop.xlane.xlu0 %829 }
 0x245   : > { %v1113_v40 = vmul.f32 %v1045_v0, %v11392_v39  ;;  %1089 = vadd.xlane.f32.xlu2 %v1088_v23  ;;  %v873_v54 = vmul.f32 %v11392_v39, %v830_v36  ;;  %v12116_v23 = vsel %vm1262_vm14, %v12024_v18, %v1259_v41  ;;  %v1269_v18 = vmul.f32 %v12052_v16, %v1268_v34 }
 0x246   : > { %v1503_v60 = vmul.f32 %v12116_v23, %v11609_v63 }
 0x247   : > { %v12109_v22 = vsub.f32 %v11692_v21, %v873_v54  ;;  %v12112_v24 = vsub.f32 %v11695_v11, %v873_v54  ;;  %v12118_v0 = vadd.f32 1e-05, %v1113_v40  ;;  %v12120_v36 = vpop.eup %10242  ;;  %v1639_v11 = vadd.f32 %v11853_v30, %v1570_v53 }
 0x248   : > { %1758 = vxpose.xlu1.b32.cont [7/16] %v12101_v1, 128  ;;  %v1285_v9 = vmul.f32 %v12120_v36, %v12084_v31  ;;  %v1277_v53 = vmul.f32 0.5, %v1276_v6  ;;  %v12151_v6 = vsel %vm1272_vm1, %v12052_v16, %v1269_v18  ;;  %vm1291_vm5 = vweird.f32 %v12120_v36 }
 0x249   : > { %16565 = vst [vmem:[#allocation70_spill] sm:$0xff] %v12109_v22  ;;  %v998_v61 = vmul.f32 %v12109_v22, %v12109_v22  ;;  %v999_v21 = vmul.f32 %v12112_v24, %v12112_v24  ;;  %10246 = vrsqrt.f32 %v12118_v0  ;;  %v12137_v22 = vpop.eup %10244  ;;  %vm1292_vm7 = vmor %vm1290_vm6, %vm1291_vm5  ;;  %v12218_v31 = vperm.slane %v11816_v38, 0 }
 0x24a   : > { %16566 = vst [vmem:[#allocation71_spill] sm:$0xff] %v12137_v22  ;;  %10248 = vtanh.f32 %v1639_v11  ;;  %v1505_v11 = vmul.f32 %v12151_v6, %v11628_v46  ;;  %vm1300_vm9 = vweird.f32 %v12118_v0 }
 0x24b   : > { %v1091_v40 = vadd.f32 %v999_v21, %v998_v61  ;;  %v1572_v21 = vmul.f32 %v11830_v37, %v1503_v60 }
 0x24c   : > { %v833_v25 = vpop.xlane.xlu2 %832  ;;  %v1048_v41 = vpop.xlane.xlu0 %1047 }
 0x24d   : > { %v874_v54 = vmul.f32 %v11392_v39, %v833_v25  ;;  %v1114_v1 = vmul.f32 %v1048_v41, %v11392_v39  ;;  %1092 = vadd.xlane.f32.xlu0 %v1091_v40  ;;  %v1286_v25 = vmul.f32 %v12120_v36, %v1285_v9  ;;  %v1278_v41 = vsub.f32 1.5, %v1277_v53 }
 0x24e   : > { %v1641_v18 = vadd.f32 %v11853_v30, %v1572_v21  ;;  %v1574_v21 = vmul.f32 %v11830_v37, %v1505_v11 }
 0x24f   : > { %v12141_v63 = vsub.f32 %v11711_v15, %v874_v54  ;;  %v12144_v34 = vsub.f32 %v11714_v19, %v874_v54  ;;  %v12146_v61 = vadd.f32 1e-05, %v1114_v1  ;;  %v12158_v1 = vpop.eup %10246  ;;  %v1287_v40 = vmul.f32 0.5, %v1286_v25 }
 0x250   : > { %1759 = vxpose.xlu1.b32.cont [8/16] %v12137_v22, 128  ;;  %v12166_v53 = vpop.eup %10248  ;;  %v1279_v22 = vmul.f32 %v12092_v28, %v1278_v41  ;;  %v1295_v46 = vmul.f32 %v12158_v1, %v12118_v0  ;;  %vm1301_vm8 = vweird.f32 %v12158_v1  ;;  %v1486_v0 = vmul.f32 %v11861_v14, %v11442_v12 }
 0x251   : > { %16567 = vst [vmem:[#allocation72_spill] sm:$0xff] %v12141_v63  ;;  %v1051_v51 = vpop.xlane.xlu1 %1050  ;;  %v1000_v15 = vmul.f32 %v12141_v63, %v12141_v63  ;;  %v1001_v19 = vmul.f32 %v12144_v34, %v12144_v34  ;;  %10250 = vrsqrt.f32 %v12146_v61  ;;  %vm1302_vm10 = vmor %vm1300_vm9, %vm1301_vm8  ;;  %vm1310_vm13 = vweird.f32 %v12146_v61 }
 0x252   : > { %v1115_v16 = vmul.f32 %v1051_v51, %v11392_v39  ;;  %16568 = vst [vmem:[#allocation73_spill] sm:$0xff] %v12166_v53  ;;  %10252 = vtanh.f32 %v1641_v18  ;;  %v12190_v11 = vsel %vm1282_vm4, %v12092_v28, %v1279_v22  ;;  %v1296_v4 = vmul.f32 %v12158_v1, %v1295_v46 }
 0x253   : > { %v1094_v54 = vadd.f32 %v1001_v19, %v1000_v15  ;;  %v1288_v15 = vsub.f32 1.5, %v1287_v40  ;;  %v1643_v40 = vadd.f32 %v11853_v30, %v1574_v21  ;;  %v1555_v14 = vmul.f32 %v12218_v31, %v1486_v0  ;;  %v16572_v0 = vld [vmem:[#allocation49_spill] sm:$0xff] }
 0x254   : > { %v836_v60 = vpop.xlane.xlu0 %835  ;;  %v12180_v25 = vadd.f32 1e-05, %v1115_v16  ;;  %v1297_v22 = vmul.f32 0.5, %v1296_v4 }
 0x255   : > { %v875_v9 = vmul.f32 %v11392_v39, %v836_v60  ;;  %1095 = vadd.xlane.f32.xlu2 %v1094_v54  ;;  %v1507_v54 = vmul.f32 %v12190_v11, %v11647_v52  ;;  %v1289_v18 = vmul.f32 %v12120_v36, %v1288_v15 }
 0x256   : > { %10254 = vrsqrt.f32 %v12180_v25  ;;  %v1298_v4 = vsub.f32 1.5, %v1297_v22  ;;  %vm1320_vm3 = vweird.f32 %v12180_v25 }
 0x257   : > { %v12173_v63 = vsub.f32 %v11731_v56, %v875_v9  ;;  %v12176_v51 = vsub.f32 %v11734_v49, %v875_v9  ;;  %v12187_v49 = vpop.eup %10250  ;;  %v1576_v52 = vmul.f32 %v11830_v37, %v1507_v54  ;;  %v12211_v15 = vsel %vm1292_vm7, %v12120_v36, %v1289_v18 }
 0x258   : > { %1760 = vxpose.xlu1.b32.cont [9/16] %v12166_v53, 128  ;;  %v1305_v28 = vmul.f32 %v12187_v49, %v12146_v61  ;;  %v12205_v46 = vpop.eup %10252  ;;  %v1509_v36 = vmul.f32 %v12211_v15, %v11666_v27  ;;  %v1299_v38 = vmul.f32 %v12158_v1, %v1298_v4  ;;  %vm1311_vm11 = vweird.f32 %v12187_v49 }
 0x259   : > { %v1054_v41 = vpop.xlane.xlu2 %1053  ;;  %v1002_v19 = vmul.f32 %v12173_v63, %v12173_v63  ;;  %v1003_v56 = vmul.f32 %v12176_v51, %v12176_v51  ;;  %16569 = vst [vmem:[#allocation74_spill] sm:$0xff] %v12205_v46  ;;  %v1645_v54 = vadd.f32 %v11853_v30, %v1576_v52  ;;  %vm1312_vm14 = vmor %vm1310_vm13, %vm1311_vm11 }
 0x25a   : > { %v1116_v16 = vmul.f32 %v1054_v41, %v11392_v39  ;;  %v1306_v41 = vmul.f32 %v12187_v49, %v1305_v28  ;;  %v1578_v52 = vmul.f32 %v11830_v37, %v1509_v36  ;;  %v12244_v53 = vsel %vm1302_vm10, %v12158_v1, %v1299_v38 }
 0x25b   : > { %v1097_v60 = vadd.f32 %v1003_v56, %v1002_v19 }
 0x25c   : > { %v12196_v9 = vadd.f32 1e-05, %v1116_v16  ;;  %v12215_v56 = vpop.eup %10254  ;;  %v1307_v18 = vmul.f32 0.5, %v1306_v41 }
 0x25d   : > { %1098 = vadd.xlane.f32.xlu2 %v1097_v60  ;;  %v1484_v60 = vmul.f32 %v11822_v50, %v11412_v47  ;;  %v1315_v28 = vmul.f32 %v12215_v56, %v12180_v25  ;;  %v12236_v47 = vperm.slane %v11837_v29, 0  ;;  %vm1321_vm1 = vweird.f32 %v12215_v56 }
 0x25e   : > { %10256 = vrsqrt.f32 %v12196_v9  ;;  %v1308_v41 = vsub.f32 1.5, %v1307_v18  ;;  %vm1330_vm15 = vweird.f32 %v12196_v9  ;;  %vm1322_vm4 = vmor %vm1320_vm3, %vm1321_vm1 }
 0x25f   : > { %10258 = vtanh.f32 %v1643_v40  ;;  %v1553_v50 = vmul.f32 %v12218_v31, %v1484_v60 }
 0x260   : > { %1761 = vxpose.xlu1.b32.cont [10/16] %v12205_v46, 128  ;;  %v1057_v21 = vpop.xlane.xlu0 %1056  ;;  %v1309_v1 = vmul.f32 %v12187_v49, %v1308_v41 }
 0x261   : > { %v1117_v19 = vmul.f32 %v1057_v21, %v11392_v39  ;;  %v1622_v60 = vadd.f32 %v12236_v47, %v1553_v50 }
 0x262   : > { %v12267_v50 = vsel %vm1312_vm14, %v12187_v49, %v1309_v1 }
 0x263   : > { %v12220_v16 = vadd.f32 1e-05, %v1117_v19  ;;  %v1316_v19 = vmul.f32 %v12215_v56, %v1315_v28 }
 0x264   : > { %v10257_v40 = vpop.eup %10256 }
 0x265   : > { %v1325_v22 = vmul.f32 %v10257_v40, %v12196_v9  ;;  %v12230_v21 = vpop.eup %10258  ;;  %10260 = vrsqrt.f32 %v12220_v16  ;;  %v1317_v28 = vmul.f32 0.5, %v1316_v19  ;;  %vm1331_vm12 = vweird.f32 %v10257_v40 }
 0x266   : > { %16570 = vst [vmem:[#allocation75_spill] sm:$0xff] %v12230_v21  ;;  %10262 = vtanh.f32 %v1645_v54  ;;  %v1511_v54 = vmul.f32 %v12244_v53, %v11685_v8  ;;  %vm1332_vm0 = vmor %vm1330_vm15, %vm1331_vm12  ;;  %vm1340_vm5 = vweird.f32 %v12220_v16 }
 0x267   : > { %v1326_v27 = vmul.f32 %v10257_v40, %v1325_v22 }
 0x268   : > { %1762 = vxpose.xlu1.b32.cont [11/16] %v12230_v21, 128  ;;  %v1060_v46 = vpop.xlane.xlu2 %1059  ;;  %v1647_v21 = vadd.f32 %v11853_v30, %v1578_v52  ;;  %v1580_v8 = vmul.f32 %v11830_v37, %v1511_v54  ;;  %v1318_v52 = vsub.f32 1.5, %v1317_v28  ;;  %v1513_v54 = vmul.f32 %v12267_v50, %v16572_v0 }
 0x269   : > { %v1327_v4 = vmul.f32 0.5, %v1326_v27  ;;  %v1118_v29 = vmul.f32 %v1060_v46, %v11392_v39 }
 0x26a   : > { %v1319_v28 = vmul.f32 %v12215_v56, %v1318_v52 }
 0x26b   : > { %v1328_v22 = vsub.f32 1.5, %v1327_v4  ;;  %v10261_v36 = vpop.eup %10260  ;;  %v12252_v18 = vadd.f32 1e-05, %v1118_v29  ;;  %v16571_v29 = vld [vmem:[#allocation36_spill] sm:$0xff] }
 0x26c   : > { %v1335_v46 = vmul.f32 %v10261_v36, %v12220_v16  ;;  %v12259_v27 = vpop.eup %10262  ;;  %vm1341_vm2 = vweird.f32 %v10261_v36  ;;  %v12299_v52 = vsel %vm1322_vm4, %v12215_v56, %v1319_v28  ;;  %v16576_v28 = vld [vmem:[#allocation51_spill] sm:$0xff] }
 0x26d   : > { %v1329_v38 = vmul.f32 %v10257_v40, %v1328_v22  ;;  %10264 = vrsqrt.f32 %v12252_v18  ;;  %v1488_v22 = vmul.f32 %v11893_v59, %v16571_v29  ;;  %v16573_v59 = vld [vmem:[#allocation53_spill] sm:$0xff]  ;;  %vm1342_vm6 = vmor %vm1340_vm5, %vm1341_vm2  ;;  %vm1350_vm8 = vweird.f32 %v12252_v18 }
 0x26e   : > { %v1336_v12 = vmul.f32 %v10261_v36, %v1335_v46  ;;  %10266 = vtanh.f32 %v1622_v60 }
 0x26f   : > { %10268 = vtanh.f32 %v1647_v21  ;;  %v12269_v61 = vsel %vm1332_vm0, %v10257_v40, %v1329_v38  ;;  %v1624_v21 = vadd.f32 %v12236_v47, %v1555_v14  ;;  %v1649_v40 = vadd.f32 %v11853_v30, %v1580_v8 }
 0x270   : > { %1763 = vxpose.xlu1.b32.cont [12/16] %v12259_v27, 128  ;;  %v1337_v41 = vmul.f32 0.5, %v1336_v12  ;;  %v1063_v19 = vpop.xlane.xlu0 %1062  ;;  %v1517_v38 = vmul.f32 %v12269_v61, %v16573_v59  ;;  %v1582_v8 = vmul.f32 %v11830_v37, %v1513_v54  ;;  %v16575_v54 = vld [vmem:[#allocation37_spill] sm:$0xff]  ;;  %v1515_v59 = vmul.f32 %v12299_v52, %v16576_v28 }
 0x271   : > { %v1119_v4 = vmul.f32 %v1063_v19, %v11392_v39  ;;  %v1490_v16 = vmul.f32 %v11923_v35, %v16575_v54 }
 0x272   : > { %v1338_v9 = vsub.f32 1.5, %v1337_v41  ;;  %v1557_v41 = vmul.f32 %v12218_v31, %v1488_v22  ;;  %v1586_v25 = vmul.f32 %v11830_v37, %v1517_v38  ;;  %v1651_v56 = vadd.f32 %v11853_v30, %v1582_v8 }
 0x273   : > { %v10265_v60 = vpop.eup %10264  ;;  %v12278_v49 = vadd.f32 1e-05, %v1119_v4  ;;  %v1559_v8 = vmul.f32 %v12218_v31, %v1490_v16 }
 0x274   : > { %v12280_v1 = vpop.eup %10266  ;;  %v1345_v46 = vmul.f32 %v10265_v60, %v12252_v18  ;;  %v1339_v14 = vmul.f32 %v10261_v36, %v1338_v9  ;;  %v1626_v0 = vadd.f32 %v12236_v47, %v1557_v41  ;;  %vm1351_vm7 = vweird.f32 %v10265_v60 }
 0x275   : > { %v12287_v12 = vpop.eup %10268  ;;  %10270 = vrsqrt.f32 %v12278_v49  ;;  %vm1352_vm9 = vmor %vm1350_vm8, %vm1351_vm7  ;;  %v1628_v16 = vadd.f32 %v12236_v47, %v1559_v8  ;;  %vm1360_vm11 = vweird.f32 %v12278_v49 }
 0x276   : > { %16574 = vst [vmem:[#allocation36_spill] sm:$0xff] %v12287_v12  ;;  %v1346_v19 = vmul.f32 %v10265_v60, %v1345_v46  ;;  %2306 = vxpose.xlu0.b32.start [1/16] %v12280_v1, 128  ;;  %10272 = vtanh.f32 %v1624_v21  ;;  %v12302_v22 = vsel %vm1342_vm6, %v10261_v36, %v1339_v14  ;;  %v1655_v14 = vadd.f32 %v11853_v30, %v1586_v25 }
 0x277   : > { %10274 = vtanh.f32 %v1649_v40  ;;  %v16577_v40 = vld [vmem:[#allocation55_spill] sm:$0xff] }
 0x278   : > { %1764 = vxpose.xlu1.b32.cont [13/16] %v12287_v12, 128  ;;  %v1347_v4 = vmul.f32 0.5, %v1346_v19  ;;  %v1066_v29 = vpop.xlane.xlu2 %1065  ;;  %v1519_v36 = vmul.f32 %v12302_v22, %v16577_v40 }
 0x279   : > { %v1120_v9 = vmul.f32 %v1066_v29, %v11392_v39 }
 0x27a   : > { %v1348_v46 = vsub.f32 1.5, %v1347_v4  ;;  %v1588_v25 = vmul.f32 %v11830_v37, %v1519_v36  ;;  %v16580_v36 = vld [vmem:[#allocation52_spill] sm:$0xff] }
 0x27b   : > { %v10271_v21 = vpop.eup %10270  ;;  %v12311_v19 = vadd.f32 1e-05, %v1120_v9  ;;  %v1584_v9 = vmul.f32 %v11830_v37, %v1515_v59 }
 0x27c   : > { %v1355_v38 = vmul.f32 %v10271_v21, %v12278_v49  ;;  %v10273_v41 = vpop.eup %10272  ;;  %v1349_v29 = vmul.f32 %v10265_v60, %v1348_v46  ;;  %vm1361_vm10 = vweird.f32 %v10271_v21  ;;  %v12364_v49 = vmul.f32 0.088388346, %v12280_v1 }
 0x27d   : > { %10276 = vrsqrt.f32 %v12311_v19  ;;  %v12318_v35 = vpop.eup %10274  ;;  %vm1362_vm12 = vmor %vm1360_vm11, %vm1361_vm10  ;;  %vm1370_vm14 = vweird.f32 %v12311_v19 }
 0x27e   : > { %16578 = vst [vmem:[#allocation49_spill] sm:$0xff] %v12318_v35  ;;  %v1356_v4 = vmul.f32 %v10271_v21, %v1355_v38  ;;  %2307 = vxpose.xlu0.b32.cont [2/16] %v10273_v41, 128  ;;  %10278 = vtanh.f32 %v1626_v0  ;;  %v12326_v40 = vsel %vm1352_vm9, %v10265_v60, %v1349_v29  ;;  %v16579_v0 = vld [vmem:[#allocation38_spill] sm:$0xff]  ;;  %v1657_v60 = vadd.f32 %v11853_v30, %v1588_v25 }
 0x27f   : > { %10280 = vtanh.f32 %v1651_v56  ;;  %v1492_v59 = vmul.f32 %v11958_v5, %v16579_v0  ;;  %v1653_v56 = vadd.f32 %v11853_v30, %v1584_v9  ;;  %16584 = vst [vmem:[#allocation37_spill] sm:$0xff] %v12364_v49  ;;  %v16589_v49 = vld [vmem:[#allocation56_spill] sm:$0xff] }
 0x280   : > { %1765 = vxpose.xlu1.b32.cont [14/16] %v12318_v35, 128  ;;  %v1069_v54 = vpop.xlane.xlu0 %1068  ;;  %v1357_v46 = vmul.f32 0.5, %v1356_v4  ;;  %10282 = vtanh.f32 %v1655_v14  ;;  %v1516_v4 = vmul.f32 %v12269_v61, %v16580_v36  ;;  %v16581_v14 = vld [vmem:[#allocation57_spill] sm:$0xff]  ;;  %v16583_v36 = vld [vmem:[#allocation39_spill] sm:$0xff] }
 0x281   : > { %v1121_v28 = vmul.f32 %v1069_v54, %v11392_v39  ;;  %v1521_v29 = vmul.f32 %v12326_v40, %v16581_v14  ;;  %v1561_v61 = vmul.f32 %v12218_v31, %v1492_v59 }
 0x282   : > { %v1358_v38 = vsub.f32 1.5, %v1357_v46 }
 0x283   : > { %v12331_v18 = vadd.f32 1e-05, %v1121_v28  ;;  %v12333_v35 = vpop.eup %10276  ;;  %v1585_v28 = vmul.f32 %v12218_v31, %v1516_v4  ;;  %v1590_v0 = vmul.f32 %v11830_v37, %v1521_v29  ;;  %v12371_v29 = vmul.f32 0.088388346, %v10273_v41 }
 0x284   : > { %v12338_v12 = vpop.eup %10278  ;;  %v1365_v5 = vmul.f32 %v12333_v35, %v12311_v19  ;;  %v1359_v54 = vmul.f32 %v10271_v21, %v1358_v38  ;;  %vm1371_vm13 = vweird.f32 %v12333_v35 }
 0x285   : > { %10284 = vrsqrt.f32 %v12331_v18  ;;  %v12346_v8 = vpop.eup %10280  ;;  %16585 = vst [vmem:[#allocation51_spill] sm:$0xff] %v12371_v29  ;;  %v1659_v1 = vadd.f32 %v11853_v30, %v1590_v0  ;;  %vm1372_vm15 = vmor %vm1370_vm14, %vm1371_vm13  ;;  %vm1380_vm1 = vweird.f32 %v12331_v18 }
 0x286   : > { %16582 = vst [vmem:[#allocation53_spill] sm:$0xff] %v12346_v8  ;;  %v12348_v9 = vpop.eup %10282  ;;  %v1366_v46 = vmul.f32 %v12333_v35, %v1365_v5  ;;  %2308 = vxpose.xlu0.b32.cont [3/16] %v12338_v12, 128  ;;  %10286 = vtanh.f32 %v1628_v16  ;;  %v1494_v16 = vmul.f32 %v11982_v3, %v16583_v36  ;;  %v12361_v14 = vsel %vm1362_vm12, %v10271_v21, %v1359_v54 }
 0x287   : > { %2678 = vxpose.xlu2.b32.start [1/16] %v12348_v9, 128  ;;  %10288 = vtanh.f32 %v1653_v56  ;;  %v1630_v56 = vadd.f32 %v12236_v47, %v1561_v61  ;;  %v1654_v21 = vadd.f32 %v12236_v47, %v1585_v28 }
 0x288   : > { %1766 = vxpose.xlu1.b32.cont [15/16] %v12346_v8, 128  ;;  %v1072_v25 = vpop.xlane.xlu2 %1071  ;;  %v1367_v38 = vmul.f32 0.5, %v1366_v46  ;;  %10290 = vtanh.f32 %v1657_v60  ;;  %v16586_v46 = vld [vmem:[#allocation54_spill] sm:$0xff] }
 0x289   : > { %v1122_v59 = vmul.f32 %v1072_v25, %v11392_v39  ;;  %v1518_v60 = vmul.f32 %v12302_v22, %v16586_v46  ;;  %v16587_v25 = vld [vmem:[#allocation59_spill] sm:$0xff]  ;;  %v1563_v22 = vmul.f32 %v12218_v31, %v1494_v16 }
 0x28a   : > { %v1368_v4 = vsub.f32 1.5, %v1367_v38  ;;  %v1523_v36 = vmul.f32 %v12361_v14, %v16587_v25 }
 0x28b   : > { %v12366_v5 = vpop.eup %10284  ;;  %v12369_v8 = vadd.f32 1e-05, %v1122_v59  ;;  %v1587_v0 = vmul.f32 %v12218_v31, %v1518_v60 }
 0x28c   : > { %v1375_v3 = vmul.f32 %v12366_v5, %v12331_v18  ;;  %v10287_v54 = vpop.eup %10286  ;;  %v1369_v38 = vmul.f32 %v12333_v35, %v1368_v4  ;;  %v1592_v16 = vmul.f32 %v11830_v37, %v1523_v36  ;;  %v1520_v36 = vmul.f32 %v12326_v40, %v16589_v49  ;;  %v16592_v18 = vld [vmem:[#allocation41_spill] sm:$0xff] }
 0x28d   : > { %10292 = vrsqrt.f32 %v12369_v8  ;;  %v12384_v61 = vpop.eup %10288  ;;  %vm1381_vm0 = vweird.f32 %v12366_v5  ;;  %vm1390_vm4 = vweird.f32 %v12369_v8 }
 0x28e   : > { %v1376_v28 = vmul.f32 %v12366_v5, %v1375_v3  ;;  %v12390_v59 = vpop.eup %10290  ;;  %2309 = vxpose.xlu0.b32.cont [4/16] %v10287_v54, 128  ;;  %10294 = vtanh.f32 %v1630_v56  ;;  %v1632_v3 = vadd.f32 %v12236_v47, %v1563_v22  ;;  %v12399_v25 = vsel %vm1372_vm15, %v12333_v35, %v1369_v38  ;;  %v16590_v38 = vld [vmem:[#allocation61_spill] sm:$0xff]  ;;  %vm1382_vm2 = vmor %vm1380_vm1, %vm1381_vm0 }
 0x28f   : > { %2679 = vxpose.xlu2.b32.cont [2/16] %v12390_v59, 128  ;;  %10296 = vtanh.f32 %v1654_v21  ;;  %v1656_v21 = vadd.f32 %v12236_v47, %v1587_v0  ;;  %v1661_v35 = vadd.f32 %v11853_v30, %v1592_v16  ;;  %v1589_v16 = vmul.f32 %v12218_v31, %v1520_v36 }
 0x290   : > { %v1377_v46 = vmul.f32 0.5, %v1376_v28  ;;  %1767 = vxpose.xlu1.b32.end [16/16] %v12384_v61, 128  ;;  %v1075_v4 = vpop.xlane.xlu0 %1074  ;;  %10298 = vtanh.f32 %v1659_v1  ;;  %v16588_v28 = vld [vmem:[#allocation40_spill] sm:$0xff] }
 0x291   : > { %v1123_v60 = vmul.f32 %v1075_v4, %v11392_v39  ;;  %v1496_v41 = vmul.f32 %v12015_v7, %v16588_v28  ;;  %10300 = vtanh.f32 %v1632_v3 }
 0x292   : > { %v1378_v56 = vsub.f32 1.5, %v1377_v46  ;;  %v1525_v46 = vmul.f32 %v12399_v25, %v16590_v38  ;;  %v1498_v38 = vmul.f32 %v12049_v44, %v16592_v18 }
 0x293   : > { %v12402_v19 = vpop.eup %10292  ;;  %v12416_v4 = vadd.f32 1e-05, %v1123_v60  ;;  %v1565_v0 = vmul.f32 %v12218_v31, %v1496_v41 }
 0x294   : > { %v1385_v1 = vmul.f32 %v12402_v19, %v12369_v8  ;;  %v12411_v22 = vpop.eup %10294  ;;  %v1379_v7 = vmul.f32 %v12366_v5, %v1378_v56  ;;  %v1594_v3 = vmul.f32 %v11830_v37, %v1525_v46  ;;  %vm1391_vm3 = vweird.f32 %v12402_v19  ;;  %v16598_v8 = vld [vmem:[#allocation42_spill] sm:$0xff] }
 0x295   : > { %v12418_v29 = vpop.eup %10296  ;;  %10302 = vrsqrt.f32 %v12416_v4  ;;  %v1634_v36 = vadd.f32 %v12236_v47, %v1565_v0  ;;  %vm1392_vm5 = vmor %vm1390_vm4, %vm1391_vm3  ;;  %vm1400_vm7 = vweird.f32 %v12416_v4 }
 0x296   : > { %16591 = vst [vmem:[#allocation55_spill] sm:$0xff] %v12418_v29  ;;  %v1386_v40 = vmul.f32 %v12402_v19, %v1385_v1  ;;  %v12423_v49 = vpop.eup %10298  ;;  %2310 = vxpose.xlu0.b32.cont [5/16] %v12411_v22, 128  ;;  %10304 = vtanh.f32 %v1656_v21  ;;  %v12434_v41 = vsel %vm1382_vm2, %v12366_v5, %v1379_v7  ;;  %v12443_v21 = vmul.f32 0.088388346, %v10287_v54 }
 0x297   : > { %2680 = vxpose.xlu2.b32.cont [3/16] %v12423_v49, 128  ;;  %10306 = vtanh.f32 %v1661_v35  ;;  %v12445_v46 = vpop.eup %10300  ;;  %v1658_v35 = vadd.f32 %v12236_v47, %v1589_v16  ;;  %v1663_v0 = vadd.f32 %v11853_v30, %v1594_v3 }
 0x298   : > { %v1387_v60 = vmul.f32 0.5, %v1386_v40  ;;  %3232 = vxpose.xlu1.b32.start [1/16] %v12418_v29, 128  ;;  %v1078_v56 = vpop.xlane.xlu2 %1077  ;;  %v12441_v40 = vmul.f32 0.088388346, %v12338_v12  ;;  %16594 = vst [vmem:[#allocation52_spill] sm:$0xff] %v12443_v21  ;;  %v16595_v29 = vld [vmem:[#allocation58_spill] sm:$0xff] }
 0x299   : > { %v1124_v1 = vmul.f32 %v1078_v56, %v11392_v39  ;;  %v1522_v5 = vmul.f32 %v12361_v14, %v16595_v29  ;;  %v16596_v56 = vld [vmem:[#allocation63_spill] sm:$0xff]  ;;  %v1567_v29 = vmul.f32 %v12218_v31, %v1498_v38 }
 0x29a   : > { %v1388_v28 = vsub.f32 1.5, %v1387_v60  ;;  %16593 = vst [vmem:[#allocation38_spill] sm:$0xff] %v12441_v40  ;;  %v1527_v44 = vmul.f32 %v12434_v41, %v16596_v56 }
 0x29b   : > { %v12450_v7 = vadd.f32 1e-05, %v1124_v1  ;;  %v10303_v60 = vpop.eup %10302  ;;  %v1591_v3 = vmul.f32 %v12218_v31, %v1522_v5  ;;  %v1636_v5 = vadd.f32 %v12236_v47, %v1567_v29 }
 0x29c   : > { %v12457_v54 = vpop.eup %10304  ;;  %v1389_v18 = vmul.f32 %v12402_v19, %v1388_v28  ;;  %v1395_v16 = vmul.f32 %v10303_v60, %v12416_v4  ;;  %v1596_v28 = vmul.f32 %v11830_v37, %v1527_v44  ;;  %vm1401_vm6 = vweird.f32 %v10303_v60 }
 0x29d   : > { %16597 = vst [vmem:[#allocation57_spill] sm:$0xff] %v12457_v54  ;;  %10308 = vrsqrt.f32 %v12450_v7  ;;  %v12463_v14 = vpop.eup %10306  ;;  %vm1402_vm8 = vmor %vm1400_vm7, %vm1401_vm6  ;;  %vm1410_vm10 = vweird.f32 %v12450_v7 }
 0x29e   : > { %2311 = vxpose.xlu0.b32.cont [6/16] %v12445_v46, 128  ;;  %10310 = vtanh.f32 %v1634_v36  ;;  %v1396_v1 = vmul.f32 %v10303_v60, %v1395_v16  ;;  %v12473_v38 = vsel %vm1392_vm5, %v12402_v19, %v1389_v18  ;;  %v1500_v16 = vmul.f32 %v12081_v43, %v16598_v8 }
 0x29f   : > { %2681 = vxpose.xlu2.b32.cont [4/16] %v12463_v14, 128  ;;  %10312 = vtanh.f32 %v1658_v35  ;;  %v1660_v35 = vadd.f32 %v12236_v47, %v1591_v3  ;;  %v1665_v18 = vadd.f32 %v11853_v30, %v1596_v28  ;;  %v1529_v29 = vmul.f32 %v12473_v38, %v11880_v13 }
 0x2a0   : > { %3233 = vxpose.xlu1.b32.cont [2/16] %v12457_v54, 128  ;;  %v1081_v56 = vpop.xlane.xlu0 %1080  ;;  %10314 = vtanh.f32 %v1663_v0  ;;  %v1397_v12 = vmul.f32 0.5, %v1396_v1  ;;  %v16599_v54 = vld [vmem:[#allocation60_spill] sm:$0xff] }
 0x2a1   : > { %v1125_v36 = vmul.f32 %v1081_v56, %v11392_v39  ;;  %v1524_v44 = vmul.f32 %v12399_v25, %v16599_v54 }
 0x2a2   : > { %v1398_v21 = vsub.f32 1.5, %v1397_v12  ;;  %v1569_v12 = vmul.f32 %v12218_v31, %v1500_v16  ;;  %v16601_v16 = vld [vmem:[#allocation43_spill] sm:$0xff] }
 0x2a3   : > { %v12479_v40 = vpop.eup %10308  ;;  %v12484_v0 = vadd.f32 1e-05, %v1125_v36  ;;  %v1593_v13 = vmul.f32 %v12218_v31, %v1524_v44  ;;  %v1502_v4 = vmul.f32 %v12116_v23, %v16601_v16 }
 0x2a4   : > { %v12486_v19 = vpop.eup %10310  ;;  %v1405_v43 = vmul.f32 %v12479_v40, %v12450_v7  ;;  %v1399_v56 = vmul.f32 %v10303_v60, %v1398_v21  ;;  %v1598_v21 = vmul.f32 %v11830_v37, %v1529_v29  ;;  %vm1411_vm9 = vweird.f32 %v12479_v40  ;;  %v16607_v7 = vld [vmem:[#allocation64_spill] sm:$0xff] }
 0x2a5   : > { %v12493_v1 = vpop.eup %10312  ;;  %10316 = vrsqrt.f32 %v12484_v0  ;;  %v1662_v29 = vadd.f32 %v12236_v47, %v1593_v13  ;;  %vm1412_vm11 = vmor %vm1410_vm10, %vm1411_vm9  ;;  %vm1420_vm13 = vweird.f32 %v12484_v0 }
 0x2a6   : > { %16600 = vst [vmem:[#allocation39_spill] sm:$0xff] %v12493_v1  ;;  %v12496_v25 = vpop.eup %10314  ;;  %v1406_v54 = vmul.f32 %v12479_v40, %v1405_v43  ;;  %2312 = vxpose.xlu0.b32.cont [7/16] %v12486_v19, 128  ;;  %10318 = vtanh.f32 %v1636_v5  ;;  %v12506_v36 = vsel %vm1402_vm8, %v10303_v60, %v1399_v56  ;;  %v1638_v5 = vadd.f32 %v12236_v47, %v1569_v12 }
 0x2a7   : > { %2682 = vxpose.xlu2.b32.cont [5/16] %v12496_v25, 128  ;;  %10320 = vtanh.f32 %v1660_v35  ;;  %v12513_v43 = vmul.f32 0.088388346, %v12445_v46  ;;  %v12523_v56 = vmul.f32 0.088388346, %v12411_v22  ;;  %v1667_v23 = vadd.f32 %v11853_v30, %v1598_v21 }
 0x2a8   : > { %3234 = vxpose.xlu1.b32.cont [3/16] %v12493_v1, 128  ;;  %v1407_v3 = vmul.f32 0.5, %v1406_v54  ;;  %v1084_v28 = vpop.xlane.xlu2 %1083  ;;  %10322 = vtanh.f32 %v1665_v18  ;;  %v16603_v54 = vld [vmem:[#allocation62_spill] sm:$0xff]  ;;  %v1531_v46 = vmul.f32 %v12506_v36, %v11918_v33  ;;  %v1571_v21 = vmul.f32 %v12218_v31, %v1502_v4 }
 0x2a9   : > { %v1126_v8 = vmul.f32 %v1084_v28, %v11392_v39  ;;  %16602 = vst [vmem:[#allocation54_spill] sm:$0xff] %v12513_v43  ;;  %v1526_v18 = vmul.f32 %v12434_v41, %v16603_v54 }
 0x2aa   : > { %v1408_v44 = vsub.f32 1.5, %v1407_v3  ;;  %16604 = vst [vmem:[#allocation59_spill] sm:$0xff] %v12523_v56  ;;  %v1600_v4 = vmul.f32 %v11830_v37, %v1531_v46 }
 0x2ab   : > { %v12515_v35 = vpop.eup %10316  ;;  %v12520_v60 = vadd.f32 1e-05, %v1126_v8  ;;  %v16606_v8 = vld [vmem:[#allocation44_spill] sm:$0xff] }
 0x2ac   : > { %v12525_v12 = vpop.eup %10318  ;;  %v1415_v3 = vmul.f32 %v12515_v35, %v12484_v0  ;;  %v1409_v13 = vmul.f32 %v12479_v40, %v1408_v44  ;;  %v1504_v16 = vmul.f32 %v12151_v6, %v16606_v8  ;;  %v1595_v44 = vmul.f32 %v12218_v31, %v1526_v18 }
 0x2ad   : > { %v12532_v28 = vpop.eup %10320  ;;  %10324 = vrsqrt.f32 %v12520_v60  ;;  %v1640_v18 = vadd.f32 %v12236_v47, %v1571_v21  ;;  %v1528_v8 = vmul.f32 %v12473_v38, %v16607_v7  ;;  %v16609_v21 = vld [vmem:[#allocation45_spill] sm:$0xff]  ;;  %vm1421_vm12 = vweird.f32 %v12515_v35 }
 0x2ae   : > { %16605 = vst [vmem:[#allocation40_spill] sm:$0xff] %v12532_v28  ;;  %v12539_v41 = vpop.eup %10322  ;;  %v1416_v33 = vmul.f32 %v12515_v35, %v1415_v3  ;;  %2313 = vxpose.xlu0.b32.cont [8/16] %v12525_v12, 128  ;;  %10326 = vtanh.f32 %v1638_v5  ;;  %v1413_v6 = vsel %vm1412_vm11, %v12479_v40, %v1409_v13  ;;  %v1573_v46 = vmul.f32 %v12218_v31, %v1504_v16  ;;  %vm1422_vm14 = vmor %vm1420_vm13, %vm1421_vm12 }
 0x2af   : > { %2683 = vxpose.xlu2.b32.cont [6/16] %v12539_v41, 128  ;;  %10328 = vtanh.f32 %v1662_v29  ;;  %v1533_v40 = vmul.f32 %v1413_v6, %v11946_v42  ;;  %vm1430_vm0 = vweird.f32 %v12520_v60 }
 0x2b0   : > { %3235 = vxpose.xlu1.b32.cont [4/16] %v12532_v28, 128  ;;  %v1087_v54 = vpop.xlane.xlu0 %1086  ;;  %v1417_v3 = vmul.f32 0.5, %v1416_v33  ;;  %10330 = vtanh.f32 %v1667_v23  ;;  %v1664_v28 = vadd.f32 %v12236_v47, %v1595_v44  ;;  %v1669_v23 = vadd.f32 %v11853_v30, %v1600_v4 }
 0x2b1   : > { %v1127_v5 = vmul.f32 %v1087_v54, %v11392_v39  ;;  %v1506_v54 = vmul.f32 %v12190_v11, %v16609_v21  ;;  %v1597_v4 = vmul.f32 %v12218_v31, %v1528_v8 }
 0x2b2   : > { %v1418_v22 = vsub.f32 1.5, %v1417_v3  ;;  %v1642_v3 = vadd.f32 %v12236_v47, %v1573_v46 }
 0x2b3   : > { %v12558_v1 = vadd.f32 1e-05, %v1127_v5  ;;  %v12560_v29 = vpop.eup %10324  ;;  %v1575_v8 = vmul.f32 %v12218_v31, %v1506_v54  ;;  %v1666_v0 = vadd.f32 %v12236_v47, %v1597_v4  ;;  %v12607_v54 = vmul.f32 0.088388346, %v12486_v19  ;;  %v16612_v4 = vld [vmem:[#allocation46_spill] sm:$0xff] }
 0x2b4   : > { %v12564_v33 = vpop.eup %10326  ;;  %v1425_v13 = vmul.f32 %v12560_v29, %v12520_v60  ;;  %v1419_v16 = vmul.f32 %v12515_v35, %v1418_v22  ;;  %v1602_v22 = vmul.f32 %v11830_v37, %v1533_v40  ;;  %v1530_v40 = vmul.f32 %v12506_v36, %v11915_v26 }
 0x2b5   : > { %10332 = vrsqrt.f32 %v12558_v1  ;;  %v12571_v38 = vpop.eup %10328  ;;  %16611 = vst [vmem:[#allocation41_spill] sm:$0xff] %v12607_v54  ;;  %vm1431_vm15 = vweird.f32 %v12560_v29  ;;  %v16618_v54 = vld [vmem:[#allocation47_spill] sm:$0xff]  ;;  %vm1440_vm3 = vweird.f32 %v12558_v1 }
 0x2b6   : > { %16608 = vst [vmem:[#allocation56_spill] sm:$0xff] %v12571_v38  ;;  %v12577_v44 = vpop.eup %10330  ;;  %v1426_v42 = vmul.f32 %v12560_v29, %v1425_v13  ;;  %2314 = vxpose.xlu0.b32.cont [9/16] %v12564_v33, 128  ;;  %10334 = vtanh.f32 %v1640_v18  ;;  %v12590_v18 = vsel %vm1422_vm14, %v12515_v35, %v1419_v16  ;;  %vm1432_vm1 = vmor %vm1430_vm0, %vm1431_vm15 }
 0x2b7   : > { %2684 = vxpose.xlu2.b32.cont [7/16] %v12577_v44, 128  ;;  %10336 = vtanh.f32 %v1664_v28  ;;  %v12598_v28 = vmul.f32 0.088388346, %v12525_v12  ;;  %v1671_v12 = vadd.f32 %v11853_v30, %v1602_v22  ;;  %v1535_v26 = vmul.f32 %v12590_v18, %v11979_v57 }
 0x2b8   : > { %3236 = vxpose.xlu1.b32.cont [5/16] %v12571_v38, 128  ;;  %v1090_v11 = vpop.xlane.xlu2 %1089  ;;  %v1427_v5 = vmul.f32 0.5, %v1426_v42  ;;  %10338 = vtanh.f32 %v1669_v23  ;;  %v1508_v42 = vmul.f32 %v12211_v15, %v16612_v4  ;;  %v1644_v15 = vadd.f32 %v12236_v47, %v1575_v8  ;;  %v16615_v4 = vld [vmem:[#allocation65_spill] sm:$0xff] }
 0x2b9   : > { %v1128_v7 = vmul.f32 %v1090_v11, %v11392_v39  ;;  %16610 = vst [vmem:[#allocation61_spill] sm:$0xff] %v12598_v28  ;;  %10340 = vtanh.f32 %v1642_v3  ;;  %v1599_v57 = vmul.f32 %v12218_v31, %v1530_v40  ;;  %v1532_v22 = vmul.f32 %v1413_v6, %v11943_v45 }
 0x2ba   : > { %v1428_v13 = vsub.f32 1.5, %v1427_v5  ;;  %v1577_v40 = vmul.f32 %v12218_v31, %v1508_v42  ;;  %v12653_v42 = vstv %s12604_s9  ;;  %v12672_v28 = vstv %s12627_s15 }
 0x2bb   : > { %v12592_v46 = vpop.eup %10332  ;;  %v12595_v21 = vadd.f32 1e-05, %v1128_v7 }
 0x2bc   : > { %v1435_v23 = vmul.f32 %v12592_v46, %v12558_v1  ;;  %v1768_v35 = vpop.trf.xlu1  ;;  %v12609_v16 = vpop.eup %10334  ;;  %v1429_v11 = vmul.f32 %v12560_v29, %v1428_v13  ;;  %v1604_v13 = vmul.f32 %v11830_v37, %v1535_v26  ;;  %v1668_v26 = vadd.f32 %v12236_v47, %v1599_v57 }
 0x2bd   : > { %10342 = vrsqrt.f32 %v12595_v21  ;;  %v12617_v36 = vpop.eup %10336  ;;  %vm1441_vm2 = vweird.f32 %v12592_v46  ;;  %vm1450_vm6 = vweird.f32 %v12595_v21 }
 0x2be   : > { %16613 = vst [vmem:[#allocation58_spill] sm:$0xff] %v12617_v36  ;;  %v1436_v19 = vmul.f32 %v12592_v46, %v1435_v23  ;;  %v12624_v5 = vpop.eup %10338  ;;  %2315 = vxpose.xlu0.b32.cont [10/16] %v12609_v16, 128  ;;  %10344 = vtanh.f32 %v1666_v0  ;;  %v12642_v45 = vsel %vm1432_vm1, %v12560_v29, %v1429_v11  ;;  %vm1442_vm4 = vmor %vm1440_vm3, %vm1441_vm2 }
 0x2bf   : > { %2685 = vxpose.xlu2.b32.cont [8/16] %v12624_v5, 128  ;;  %10346 = vtanh.f32 %v1671_v12  ;;  %v12638_v0 = vpop.eup %10340  ;;  %v1601_v12 = vmul.f32 %v12218_v31, %v1532_v22 }
 0x2c0   : > { %v1437_v7 = vmul.f32 0.5, %v1436_v19  ;;  %3237 = vxpose.xlu1.b32.cont [6/16] %v12617_v36, 128  ;;  %v1093_v8 = vpop.xlane.xlu0 %1092  ;;  %16614 = vst [vmem:[#allocation63_spill] sm:$0xff] %v12638_v0  ;;  %v1784_v19 = vsub.f32 %v16615_v4, %v1768_v35  ;;  %10348 = vtanh.f32 %v1644_v15  ;;  %v16617_v15 = vld [vmem:[#allocation66_spill] sm:$0xff]  ;;  %v1646_v4 = vadd.f32 %v12236_v47, %v1577_v40 }
 0x2c1   : > { %v1129_v6 = vmul.f32 %v1093_v8, %v11392_v39  ;;  %v1537_v8 = vmul.f32 %v12642_v45, %v12019_v2 }
 0x2c2   : > { %v1438_v60 = vsub.f32 1.5, %v1437_v7  ;;  %v1673_v7 = vadd.f32 %v11853_v30, %v1604_v13  ;;  %v1510_v13 = vmul.f32 %v12244_v53, %v16618_v54  ;;  %v1801_v2 = vmul.f32 %v12653_v42, %v1784_v19 }
 0x2c3   : > { %v12645_v23 = vpop.eup %10342  ;;  %v12660_v35 = vadd.f32 1e-05, %v1129_v6  ;;  %v1670_v53 = vadd.f32 %v12236_v47, %v1601_v12  ;;  %v1606_v54 = vmul.f32 %v11830_v37, %v1537_v8  ;;  %v1534_v19 = vmul.f32 %v12590_v18, %v11976_v17 }
 0x2c4   : > { %v1445_v3 = vmul.f32 %v12645_v23, %v12595_v21  ;;  %v1769_v29 = vpop.trf.xlu1  ;;  %v12655_v11 = vpop.eup %10344  ;;  %v1439_v22 = vmul.f32 %v12592_v46, %v1438_v60  ;;  %v1579_v12 = vmul.f32 %v12218_v31, %v1510_v13  ;;  %vm1451_vm5 = vweird.f32 %v12645_v23 }
 0x2c5   : > { %16616 = vst [vmem:[#allocation42_spill] sm:$0xff] %v12655_v11  ;;  %v1785_v57 = vsub.f32 %v16617_v15, %v1769_v29  ;;  %v12667_v36 = vpop.eup %10346  ;;  %10350 = vrsqrt.f32 %v12660_v35  ;;  %vm1452_vm7 = vmor %vm1450_vm6, %vm1451_vm5  ;;  %vm1460_vm9 = vweird.f32 %v12660_v35 }
 0x2c6   : > { %v1446_v38 = vmul.f32 %v12645_v23, %v1445_v3  ;;  %2316 = vxpose.xlu0.b32.cont [11/16] %v12638_v0, 128  ;;  %10352 = vtanh.f32 %v1668_v26  ;;  %v12681_v3 = vpop.eup %10348  ;;  %v12688_v1 = vsel %vm1442_vm4, %v12592_v46, %v1439_v22  ;;  %v1818_v26 = vadd.f32 %v12672_v28, %v1801_v2 }
 0x2c7   : > { %v1802_v60 = vmul.f32 %v12653_v42, %v1785_v57  ;;  %2686 = vxpose.xlu2.b32.cont [9/16] %v12667_v36, 128  ;;  %16619 = vst [vmem:[#allocation60_spill] sm:$0xff] %v12681_v3  ;;  %10354 = vtanh.f32 %v1673_v7  ;;  %v1675_v46 = vadd.f32 %v11853_v30, %v1606_v54  ;;  %v1539_v7 = vmul.f32 %v12688_v1, %v12046_v62 }
 0x2c8   : > { %v1447_v40 = vmul.f32 0.5, %v1446_v38  ;;  %3238 = vxpose.xlu1.b32.cont [7/16] %v12655_v11, 128  ;;  %v1096_v6 = vpop.xlane.xlu2 %1095  ;;  %10356 = vtanh.f32 %v1646_v4  ;;  %v12710_v4 = vmul.f32 0.088388346, %v12609_v16 }
 0x2c9   : > { %v1130_v29 = vmul.f32 %v1096_v6, %v11392_v39  ;;  %v1819_v8 = vadd.f32 %v12672_v28, %v1802_v60  ;;  %10358 = vtanh.f32 %v1670_v53  ;;  %v1603_v60 = vmul.f32 %v12218_v31, %v1534_v19  ;;  %v16624_v6 = vld [vmem:[#allocation67_spill] sm:$0xff] }
 0x2ca   : > { %v1448_v38 = vsub.f32 1.5, %v1447_v40  ;;  %16621 = vst [vmem:[#allocation62_spill] sm:$0xff] %v12710_v4  ;;  %v16622_v40 = vld [vmem:[#allocation48_spill] sm:$0xff]  ;;  %v12717_v53 = vmul.f32 325.9493, %v1818_v26  ;;  %v1608_v16 = vmul.f32 %v11830_v37, %v1539_v7  ;;  %v1648_v26 = vadd.f32 %v12236_v47, %v1579_v12 }
 0x2cb   : > { %v12696_v57 = vpop.eup %10350  ;;  %v12701_v22 = vadd.f32 1e-05, %v1130_v29  ;;  %v1512_v62 = vmul.f32 %v12267_v50, %v16622_v40  ;;  %v12728_v50 = vmul.f32 0.088388346, %v12564_v33  ;;  %v1672_v12 = vadd.f32 %v12236_v47, %v1603_v60 }
 0x2cc   : > { %v1770_v15 = vpop.trf.xlu1  ;;  %v12703_v17 = vpop.eup %10352  ;;  %v1449_v18 = vmul.f32 %v12645_v23, %v1448_v38  ;;  %v1455_v13 = vmul.f32 %v12696_v57, %v12660_v35  ;;  %v12723_v38 = vmul.f32 325.9493, %v1819_v8  ;;  %v1677_v33 = vadd.f32 %v11853_v30, %v1608_v16 }
 0x2cd   : > { %16620 = vst [vmem:[#allocation43_spill] sm:$0xff] %v12703_v17  ;;  %v12712_v2 = vpop.eup %10354  ;;  %10360 = vrsqrt.f32 %v12701_v22  ;;  %v1786_v19 = vsub.f32 %v16624_v6, %v1770_v15  ;;  %v1581_v7 = vmul.f32 %v12218_v31, %v1512_v62  ;;  %v1536_v15 = vmul.f32 %v12642_v45, %v12012_v58 }
 0x2ce   : > { %2317 = vxpose.xlu0.b32.cont [12/16] %v12681_v3, 128  ;;  %v1456_v54 = vmul.f32 %v12696_v57, %v1455_v13  ;;  %16623 = vst [vmem:[#allocation44_spill] sm:$0xff] %v12728_v50  ;;  %10362 = vtanh.f32 %v1675_v46  ;;  %v12734_v21 = vpop.eup %10356  ;;  %v12738_v29 = vsel %vm1452_vm7, %v12645_v23, %v1449_v18  ;;  %v16393_v46 = vfloor.f32 %v12717_v53 }
 0x2cf   : > { %2687 = vxpose.xlu2.b32.cont [10/16] %v12712_v2, 128  ;;  %16625 = vst [vmem:[#allocation64_spill] sm:$0xff] %v12734_v21  ;;  %v12742_v40 = vpop.eup %10358  ;;  %v16392_v18 = vfloor.f32 %v12723_v38  ;;  %v1541_v62 = vmul.f32 %v12738_v29, %v12078_v48  ;;  %vm1461_vm8 = vweird.f32 %v12696_v57  ;;  %10364 = vtanh.f32 %v1648_v26 }
 0x2d0   : > { %3239 = vxpose.xlu1.b32.cont [8/16] %v12703_v17, 128  ;;  %v1457_v8 = vmul.f32 0.5, %v1456_v54  ;;  %v1099_v13 = vpop.xlane.xlu2 %1098  ;;  %16626 = vst [vmem:[#allocation45_spill] sm:$0xff] %v12742_v40  ;;  %v1803_v17 = vmul.f32 %v12653_v42, %v1786_v19  ;;  %v1605_v16 = vmul.f32 %v12218_v31, %v1536_v15  ;;  %v1866_v48 = vmul.f32 0.00048828125, %v16393_v46  ;;  %vm1462_vm10 = vmor %vm1460_vm9, %vm1461_vm8 }
 0x2d1   : > { %v1131_v6 = vmul.f32 %v1099_v13, %v11392_v39  ;;  %v1867_v19 = vmul.f32 0.00048828125, %v16392_v18  ;;  %v1610_v13 = vmul.f32 %v11830_v37, %v1541_v62  ;;  %v1538_v62 = vmul.f32 %v12688_v1, %v12043_v32 }
 0x2d2   : > { %v1458_v23 = vsub.f32 1.5, %v1457_v8  ;;  %v1650_v8 = vadd.f32 %v12236_v47, %v1581_v7  ;;  %v1820_v7 = vadd.f32 %v12672_v28, %v1803_v17  ;;  %v1674_v18 = vadd.f32 %v12236_v47, %v1605_v16 }
 0x2d3   : > { %v12751_v11 = vpop.eup %10360  ;;  %v12757_v58 = vadd.f32 1e-05, %v1131_v6  ;;  %vm1470_vm12 = vweird.f32 %v12701_v22 }
 0x2d4   : > { %v1771_v54 = vpop.trf.xlu1  ;;  %v1459_v45 = vmul.f32 %v12696_v57, %v1458_v23  ;;  %v1465_v39 = vmul.f32 %v12751_v11, %v12701_v22  ;;  %v12763_v60 = vpop.eup %10362  ;;  %v16627_v23 = vld [vmem:[#allocation50_spill] sm:$0xff]  ;;  %vm1471_vm11 = vweird.f32 %v12751_v11 }
 0x2d5   : > { %10366 = vrsqrt.f32 %v12757_v58  ;;  %v1787_v6 = vsub.f32 %v12006_v10, %v1771_v54  ;;  %v12788_v46 = vpop.eup %10364  ;;  %vm1472_vm13 = vmor %vm1470_vm12, %vm1471_vm11  ;;  %vm1480_vm15 = vweird.f32 %v12757_v58 }
 0x2d6   : > { %2318 = vxpose.xlu0.b32.cont [13/16] %v12734_v21, 128  ;;  %v1466_v26 = vmul.f32 %v12751_v11, %v1465_v39  ;;  %10368 = vtanh.f32 %v1672_v12  ;;  %v12782_v35 = vsel %vm1462_vm10, %v12696_v57, %v1459_v45  ;;  %v1514_v39 = vmul.f32 %v12299_v52, %v16627_v23  ;;  %16628 = vst [vmem:[#allocation46_spill] sm:$0xff] %v12788_v46 }
 0x2d7   : > { %2688 = vxpose.xlu2.b32.cont [11/16] %v12763_v60, 128  ;;  %10370 = vtanh.f32 %v1677_v33  ;;  %v1882_v12 = vfloor.f32 %v1866_v48  ;;  %v1679_v45 = vadd.f32 %v11853_v30, %v1610_v13  ;;  %v1543_v10 = vmul.f32 %v12782_v35, %v12112_v24 }
 0x2d8   : > { %3240 = vxpose.xlu1.b32.cont [9/16] %v12742_v40, 128  ;;  %v1467_v15 = vmul.f32 0.5, %v1466_v26  ;;  %v1883_v40 = vfloor.f32 %v1867_v19  ;;  %10372 = vtanh.f32 %v1650_v8  ;;  %v12797_v52 = vmul.f32 325.9493, %v1820_v7 }
 0x2d9   : > { %v1804_v1 = vmul.f32 %v12653_v42, %v1787_v6  ;;  %v1583_v19 = vmul.f32 %v12218_v31, %v1514_v39  ;;  %v1898_v24 = vmul.f32 2048.0, %v1882_v12  ;;  %10374 = vtanh.f32 %v1674_v18 }
 0x2da   : > { %v1468_v17 = vsub.f32 1.5, %v1467_v15  ;;  %v1612_v7 = vmul.f32 %v11830_v37, %v1543_v10  ;;  %v1899_v15 = vmul.f32 2048.0, %v1883_v40  ;;  %v1852_v18 = vfloor.f32 %v12797_v52 }
 0x2db   : > { %v12792_v57 = vpop.eup %10366  ;;  %10376 = vtanh.f32 %v1679_v45  ;;  %v1821_v39 = vadd.f32 %v12672_v28, %v1804_v1  ;;  %v1652_v12 = vadd.f32 %v12236_v47, %v1583_v19 }
 0x2dc   : > { %v1772_v33 = vpop.trf.xlu1  ;;  %v12800_v16 = vpop.eup %10368  ;;  %v1469_v48 = vmul.f32 %v12751_v11, %v1468_v17  ;;  %v1475_v32 = vmul.f32 %v12792_v57, %v12757_v58  ;;  %v1868_v1 = vmul.f32 0.00048828125, %v1852_v18  ;;  %vm1481_vm14 = vweird.f32 %v12792_v57 }
 0x2dd   : > { %v1788_v54 = vsub.f32 %v12039_v20, %v1772_v33  ;;  %16629 = vst [vmem:[#allocation65_spill] sm:$0xff] %v12800_v16  ;;  %v12807_v8 = vpop.eup %10370  ;;  %v1607_v20 = vmul.f32 %v12218_v31, %v1538_v62  ;;  %v16631_v62 = vfloor.f32 %v12717_v53  ;;  %v1540_v33 = vmul.f32 %v12738_v29, %v12075_v55  ;;  %v16634_v29 = vld [vmem:[#allocation68_spill] sm:$0xff]  ;;  %vm1482_vm0 = vmor %vm1480_vm15, %vm1481_vm14 }
 0x2de   : > { %2319 = vxpose.xlu0.b32.cont [14/16] %v12788_v46, 128  ;;  %v1476_v26 = vmul.f32 %v12792_v57, %v1475_v32  ;;  %v12821_v6 = vpop.eup %10372  ;;  %v12824_v22 = vsel %vm1472_vm13, %v12751_v11, %v1469_v48  ;;  %v1681_v11 = vadd.f32 %v11853_v30, %v1612_v7  ;;  %v16633_v48 = vfloor.f32 %v12723_v38 }
 0x2df   : > { %v1805_v13 = vmul.f32 %v12653_v42, %v1788_v54  ;;  %2689 = vxpose.xlu2.b32.cont [12/16] %v12807_v8, 128  ;;  %16630 = vst [vmem:[#allocation66_spill] sm:$0xff] %v12821_v6  ;;  %v1914_v17 = vsub.f32 %v16631_v62, %v1898_v24  ;;  %v1676_v40 = vadd.f32 %v12236_v47, %v1607_v20  ;;  %v12834_v54 = vpop.eup %10374  ;;  %v12843_v55 = vmul.f32 325.9493, %v1821_v39 }
 0x2e0   : > { %3241 = vxpose.xlu1.b32.cont [10/16] %v12800_v16, 128  ;;  %v1477_v23 = vmul.f32 0.5, %v1476_v26  ;;  %16632 = vst [vmem:[#allocation47_spill] sm:$0xff] %v12834_v54  ;;  %v1915_v32 = vsub.f32 %v16633_v48, %v1899_v15  ;;  %v1545_v53 = vmul.f32 %v12824_v22, %v12144_v34  ;;  %10378 = vtanh.f32 %v1652_v12 }
 0x2e1   : > { %v1822_v45 = vadd.f32 %v12672_v28, %v1805_v13  ;;  %v12846_v20 = vpop.eup %10376  ;;  %v12848_v26 = vmul.f32 0.0030694604, %v1914_v17  ;;  %v1609_v38 = vmul.f32 %v12218_v31, %v1540_v33  ;;  %10380 = vtanh.f32 %v1676_v40  ;;  %v16635_v17 = vld [vmem:[#allocation70_spill] sm:$0xff] }
 0x2e2   : > { %v1478_v10 = vsub.f32 1.5, %v1477_v23  ;;  %v1614_v13 = vmul.f32 %v11830_v37, %v1545_v53  ;;  %v1884_v7 = vfloor.f32 %v1868_v1  ;;  %10382 = vtanh.f32 %v1681_v11 }
 0x2e3   : > { %v12853_v34 = vmul.f32 325.9493, %v1822_v45  ;;  %v1931_v23 = vmul.f32 0.0030694604, %v1915_v32  ;;  %v1853_v58 = vfloor.f32 %v12843_v55  ;;  %v1678_v12 = vadd.f32 %v12236_v47, %v1609_v38 }
 0x2e4   : > { %v1773_v52 = vpop.trf.xlu1  ;;  %v1479_v19 = vmul.f32 %v12792_v57, %v1478_v10  ;;  %v1946_v62 = vmul.f32 0.31830987, %v12848_v26  ;;  %v1542_v40 = vmul.f32 %v12782_v35, %v16635_v17  ;;  %v1683_v45 = vadd.f32 %v11853_v30, %v1614_v13  ;;  %v16639_v17 = vld [vmem:[#allocation72_spill] sm:$0xff] }
 0x2e5   : > { %v1789_v24 = vsub.f32 %v16634_v29, %v1773_v52  ;;  %v1854_v33 = vfloor.f32 %v12853_v34  ;;  %v1900_v52 = vmul.f32 2048.0, %v1884_v7  ;;  %v1947_v53 = vmul.f32 0.31830987, %v1931_v23 }
 0x2e6   : > { %2320 = vxpose.xlu0.b32.cont [15/16] %v12821_v6, 128  ;;  %v1483_v39 = vsel %vm1482_vm0, %v12792_v57, %v1479_v19  ;;  %v12868_v10 = vpop.eup %10378  ;;  %v1869_v1 = vmul.f32 0.00048828125, %v1853_v58  ;;  %v1962_v35 = vadd.f32 0.5, %v1946_v62  ;;  %v1611_v55 = vmul.f32 %v12218_v31, %v1542_v40 }
 0x2e7   : > { %2690 = vxpose.xlu2.b32.cont [13/16] %v12846_v20, 128  ;;  %v1806_v15 = vmul.f32 %v12653_v42, %v1789_v24  ;;  %16636 = vst [vmem:[#allocation48_spill] sm:$0xff] %v12868_v10  ;;  %v1547_v11 = vmul.f32 %v1483_v39, %v12176_v51  ;;  %v12873_v32 = vpop.eup %10380  ;;  %v1870_v29 = vmul.f32 0.00048828125, %v1854_v33  ;;  %10384 = vtanh.f32 %v1678_v12 }
 0x2e8   : > { %3242 = vxpose.xlu1.b32.cont [11/16] %v12834_v54, 128  ;;  %16637 = vst [vmem:[#allocation67_spill] sm:$0xff] %v12873_v32  ;;  %v12875_v19 = vpop.eup %10382  ;;  %v1916_v51 = vsub.f32 %v1852_v18, %v1900_v52  ;;  %10386 = vtanh.f32 %v1683_v45  ;;  %v1963_v34 = vadd.f32 0.5, %v1947_v53  ;;  %v1885_v13 = vfloor.f32 %v1869_v1  ;;  %v16642_v53 = vld [vmem:[#allocation69_spill] sm:$0xff] }
 0x2e9   : > { %v1823_v57 = vadd.f32 %v12672_v28, %v1806_v15  ;;  %16638 = vst [vmem:[#allocation50_spill] sm:$0xff] %v12875_v19  ;;  %v1616_v24 = vmul.f32 %v11830_v37, %v1547_v11  ;;  %v12882_v7 = vfloor.f32 %v1962_v35  ;;  %v1680_v15 = vadd.f32 %v12236_v47, %v1611_v55 }
 0x2ea   : > { %v1886_v62 = vfloor.f32 %v1870_v29  ;;  %v1544_v40 = vmul.f32 %v12824_v22, %v16639_v17  ;;  %v1932_v54 = vmul.f32 0.0030694604, %v1916_v51  ;;  %v12890_v18 = vfloor.f32 %v1963_v34 }
 0x2eb   : > { %v1839_v38 = vmul.f32 325.9493, %v1823_v57  ;;  %v1685_v16 = vadd.f32 %v11853_v30, %v1616_v24  ;;  %v1901_v37 = vmul.f32 2048.0, %v1885_v13  ;;  %v1994_v11 = vmul.f32 3.1415927, %v12882_v7 }
 0x2ec   : > { %v1774_v48 = vpop.trf.xlu1  ;;  %v1902_v57 = vmul.f32 2048.0, %v1886_v62  ;;  %10388 = vtanh.f32 %v1680_v15  ;;  %v1613_v30 = vmul.f32 %v12218_v31, %v1544_v40  ;;  %v1948_v22 = vmul.f32 0.31830987, %v1932_v54 }
 0x2ed   : > { %v12888_v12 = vpop.eup %10384  ;;  %v1790_v1 = vsub.f32 %v16642_v53, %v1774_v48  ;;  %10390 = vtanh.f32 %v1685_v16  ;;  %v1995_v55 = vmul.f32 3.1415927, %v12890_v18  ;;  %v1917_v29 = vsub.f32 %v1853_v58, %v1901_v37  ;;  %v16645_v16 = vld [vmem:[#allocation71_spill] sm:$0xff] }
 0x2ee   : > { %2321 = vxpose.xlu0.b32.end [16/16] %v12868_v10, 128  ;;  %16640 = vst [vmem:[#allocation68_spill] sm:$0xff] %v12888_v12  ;;  %v12892_v45 = vpop.eup %10386  ;;  %v2010_v51 = vsub.f32 %v12848_v26, %v1994_v11  ;;  %v1918_v24 = vsub.f32 %v1854_v33, %v1902_v57  ;;  %v1682_v48 = vadd.f32 %v12236_v47, %v1613_v30  ;;  %v1964_v34 = vadd.f32 0.5, %v1948_v22 }
 0x2ef   : > { %2691 = vxpose.xlu2.b32.cont [14/16] %v12875_v19, 128  ;;  %16641 = vst [vmem:[#allocation70_spill] sm:$0xff] %v12892_v45  ;;  %v1546_v13 = vmul.f32 %v1483_v39, %v12173_v63  ;;  %v2011_v17 = vsub.f32 %v1931_v23, %v1995_v55  ;;  %v1933_v40 = vmul.f32 0.0030694604, %v1917_v29 }
 0x2f0   : > { %3243 = vxpose.xlu1.b32.cont [12/16] %v12873_v32, 128  ;;  %v1855_v32 = vfloor.f32 %v1839_v38  ;;  %v1807_v38 = vmul.f32 %v12653_v42, %v1790_v1  ;;  %v12909_v58 = vmul.f32 %v2010_v51, %v2010_v51  ;;  %v1934_v26 = vmul.f32 0.0030694604, %v1918_v24 }
 0x2f1   : > { %v12914_v37 = vfloor.f32 %v1964_v34  ;;  %v1615_v63 = vmul.f32 %v12218_v31, %v1546_v13  ;;  %10392 = vtanh.f32 %v1682_v48  ;;  %v12917_v11 = vmul.f32 %v2011_v17, %v2011_v17  ;;  %v16647_v17 = vld [vmem:[#allocation73_spill] sm:$0xff] }
 0x2f2   : > { %v1871_v35 = vmul.f32 0.00048828125, %v1855_v32  ;;  %v12904_v15 = vpop.eup %10388  ;;  %v1824_v33 = vadd.f32 %v12672_v28, %v1807_v38  ;;  %v1949_v57 = vmul.f32 0.31830987, %v1933_v40  ;;  %v1950_v1 = vmul.f32 0.31830987, %v1934_v26 }
 0x2f3   : > { %16643 = vst [vmem:[#allocation72_spill] sm:$0xff] %v12904_v15  ;;  %v12906_v53 = vpop.eup %10390  ;;  %v2042_v22 = vmul.f32 2.4801588e-05, %v12909_v58  ;;  %v1684_v55 = vadd.f32 %v12236_v47, %v1615_v63  ;;  %v2043_v31 = vmul.f32 2.4801588e-05, %v12917_v11 }
 0x2f4   : > { %v1775_v52 = vpop.trf.xlu1  ;;  %v1887_v62 = vfloor.f32 %v1871_v35  ;;  %16644 = vst [vmem:[#allocation69_spill] sm:$0xff] %v12906_v53  ;;  %v1840_v30 = vmul.f32 325.9493, %v1824_v33  ;;  %v1996_v35 = vmul.f32 3.1415927, %v12914_v37  ;;  %v1965_v51 = vadd.f32 0.5, %v1949_v57 }
 0x2f5   : > { %v1966_v48 = vadd.f32 0.5, %v1950_v1  ;;  %10394 = vtanh.f32 %v1684_v55  ;;  %v2059_v47 = vadd.f32 -0.0013888889, %v2043_v31 }
 0x2f6   : > { %v1903_v39 = vmul.f32 2048.0, %v1887_v62  ;;  %v1856_v34 = vfloor.f32 %v1840_v30  ;;  %v2012_v13 = vsub.f32 %v1932_v54, %v1996_v35  ;;  %v12929_v33 = vfloor.f32 %v1965_v51 }
 0x2f7   : > { %2692 = vxpose.xlu2.b32.cont [15/16] %v12892_v45, 128  ;;  %v12924_v24 = vpop.eup %10392 }
 0x2f8   : > { %3244 = vxpose.xlu1.b32.cont [13/16] %v12888_v12, 128  ;;  %v1791_v12 = vsub.f32 %v16645_v16, %v1775_v52  ;;  %v1919_v29 = vsub.f32 %v1855_v32, %v1903_v39  ;;  %16646 = vst [vmem:[#allocation71_spill] sm:$0xff] %v12924_v24  ;;  %v12933_v39 = vfloor.f32 %v1966_v48  ;;  %v1872_v57 = vmul.f32 0.00048828125, %v1856_v34 }
 0x2fa   : > { %v1808_v52 = vmul.f32 %v12653_v42, %v1791_v12  ;;  %v2058_v12 = vadd.f32 -0.0013888889, %v2042_v22  ;;  %v1935_v62 = vmul.f32 0.0030694604, %v1919_v29  ;;  %v1997_v22 = vmul.f32 3.1415927, %v12929_v33 }
 0x2fb   : > { %v12941_v35 = vpop.eup %10394  ;;  %v2170_v29 = vmul.f32 0.5, %v12882_v7  ;;  %v1998_v51 = vmul.f32 3.1415927, %v12933_v39  ;;  %v1888_v31 = vfloor.f32 %v1872_v57 }
 0x2fc   : > { %v1776_v23 = vpop.trf.xlu1  ;;  %v1825_v38 = vadd.f32 %v12672_v28, %v1808_v52  ;;  %v12935_v52 = vmul.f32 %v2012_v13, %v2012_v13  ;;  %v1951_v1 = vmul.f32 0.31830987, %v1935_v62  ;;  %v2074_v54 = vmul.f32 %v2058_v12, %v12909_v58  ;;  %16648 = vst [vmem:[#allocation73_spill] sm:$0xff] %v12941_v35 }
 0x2fd   : > { %v1792_v16 = vsub.f32 %v16647_v17, %v1776_v23  ;;  %v2075_v23 = vmul.f32 %v2059_v47, %v12917_v11  ;;  %v1904_v6 = vmul.f32 2048.0, %v1888_v31  ;;  %v2172_v31 = vmul.f32 0.5, %v12914_v37 }
 0x2fe   : > { %v12931_v32 = vmul.f32 325.9493, %v1825_v38  ;;  %v2171_v38 = vmul.f32 0.5, %v12890_v18  ;;  %v1967_v48 = vadd.f32 0.5, %v1951_v1  ;;  %v2090_v13 = vadd.f32 0.041666668, %v2074_v54 }
 0x2ff   : > { %2693 = vxpose.xlu2.b32.end [16/16] %v12906_v53, 128  ;;  %v1809_v30 = vmul.f32 %v12653_v42, %v1792_v16  ;;  %v2044_v17 = vmul.f32 2.4801588e-05, %v12935_v52  ;;  %v2013_v16 = vsub.f32 %v1933_v40, %v1997_v22  ;;  %v2091_v47 = vadd.f32 0.041666668, %v2075_v23 }
 0x300   : > { %3245 = vxpose.xlu1.b32.cont [14/16] %v12904_v15, 128  ;;  %v1857_v55 = vfloor.f32 %v12931_v32  ;;  %v2186_v15 = vfloor.f32 %v2170_v29  ;;  %v2014_v32 = vsub.f32 %v1934_v26, %v1998_v51  ;;  %v2187_v10 = vfloor.f32 %v2171_v38 }
 0x301   : > { %v1826_v12 = vadd.f32 %v12672_v28, %v1809_v30  ;;  %v12950_v21 = vfloor.f32 %v1967_v48  ;;  %v2106_v46 = vmul.f32 %v2090_v13, %v12909_v58  ;;  %v2060_v1 = vadd.f32 -0.0013888889, %v2044_v17  ;;  %v16649_v30 = vld [vmem:[#allocation74_spill] sm:$0xff] }
 0x302   : > { %v12955_v0 = vmul.f32 %v2013_v16, %v2013_v16  ;;  %v2107_v40 = vmul.f32 %v2091_v47, %v12917_v11  ;;  %v2202_v23 = vmul.f32 2.0, %v2186_v15  ;;  %v12959_v29 = vmul.f32 %v2014_v32, %v2014_v32 }
 0x303   : > { %v12952_v57 = vmul.f32 325.9493, %v1826_v12  ;;  %v1920_v26 = vsub.f32 %v1856_v34, %v1904_v6  ;;  %v2203_v51 = vmul.f32 2.0, %v2187_v10  ;;  %v1999_v38 = vmul.f32 3.1415927, %v12950_v21 }
 0x304   : > { %v1777_v63 = vpop.trf.xlu1  ;;  %v2122_v12 = vadd.f32 -0.5, %v2106_v46  ;;  %v2076_v13 = vmul.f32 %v2060_v1, %v12935_v52  ;;  %v2045_v16 = vmul.f32 2.4801588e-05, %v12955_v0  ;;  %v2218_v15 = vsub.f32 %v12882_v7, %v2202_v23 }
 0x305   : > { %v1793_v54 = vsub.f32 %v16649_v30, %v1777_v63  ;;  %v16408_v48 = vfloor.f32 %v12952_v57  ;;  %v2123_v63 = vadd.f32 -0.5, %v2107_v40  ;;  %v12968_v47 = vmul.f32 0.0030694604, %v1920_v26  ;;  %v16650_v40 = vld [vmem:[#allocation75_spill] sm:$0xff] }
 0x306   : > { %v2219_v6 = vsub.f32 %v12890_v18, %v2203_v51  ;;  %v2188_v10 = vfloor.f32 %v2172_v31  ;;  %v2046_v34 = vmul.f32 2.4801588e-05, %v12959_v29  ;;  %v2015_v32 = vsub.f32 %v1935_v62, %v1999_v38 }
 0x307   : > { %v1810_v17 = vmul.f32 %v12653_v42, %v1793_v54  ;;  %v1874_v46 = vmul.f32 0.00048828125, %v16408_v48  ;;  %v2138_v1 = vmul.f32 %v2122_v12, %v12909_v58  ;;  %v2092_v30 = vadd.f32 0.041666668, %v2076_v13 }
 0x308   : > { %3246 = vxpose.xlu1.b32.cont [15/16] %v12924_v24, 128  ;;  %v1873_v24 = vmul.f32 0.00048828125, %v1857_v55  ;;  %v2139_v7 = vmul.f32 %v2123_v63, %v12917_v11  ;;  %v2061_v23 = vadd.f32 -0.0013888889, %v2045_v16  ;;  %v2234_v18 = vmul.f32 2.0, %v2218_v15 }
 0x309   : > { %v1827_v54 = vadd.f32 %v12672_v28, %v1810_v17  ;;  %v2173_v51 = vmul.f32 0.5, %v12929_v33  ;;  %v1952_v62 = vmul.f32 0.31830987, %v12968_v47  ;;  %v2235_v31 = vmul.f32 2.0, %v2219_v6 }
 0x30a   : > { %v1889_v22 = vfloor.f32 %v1873_v24  ;;  %v2204_v38 = vmul.f32 2.0, %v2188_v10  ;;  %v2062_v48 = vadd.f32 -0.0013888889, %v2046_v34  ;;  %v12980_v50 = vmul.f32 %v2015_v32, %v2015_v32 }
 0x30b   : > { %v1890_v58 = vfloor.f32 %v1874_v46  ;;  %v2154_v12 = vadd.f32 1.0, %v2138_v1  ;;  %v2108_v11 = vmul.f32 %v2092_v30, %v12935_v52  ;;  %v12985_v13 = vmul.f32 325.9493, %v1827_v54 }
 0x30c   : > { %v1905_v24 = vmul.f32 2048.0, %v1889_v22  ;;  %v2155_v17 = vadd.f32 1.0, %v2139_v7  ;;  %v2077_v63 = vmul.f32 %v2061_v23, %v12955_v0  ;;  %v2189_v15 = vfloor.f32 %v2173_v51 }
 0x30d   : > { %v1968_v6 = vadd.f32 0.5, %v1952_v62  ;;  %v2251_v10 = vsub.f32 1.0, %v2235_v31  ;;  %v2220_v34 = vsub.f32 %v12914_v37, %v2204_v38  ;;  %v2078_v32 = vmul.f32 %v2062_v48, %v12959_v29 }
 0x30e   : > { %v1921_v26 = vsub.f32 %v1857_v55, %v1905_v24  ;;  %v2250_v24 = vsub.f32 1.0, %v2234_v18  ;;  %v1906_v46 = vmul.f32 2048.0, %v1890_v58  ;;  %v2124_v30 = vadd.f32 -0.5, %v2108_v11 }
 0x30f   : > { %v2047_v54 = vmul.f32 2.4801588e-05, %v12980_v50  ;;  %v13000_v7 = vmul.f32 %v2251_v10, %v2155_v17  ;;  %v2093_v23 = vadd.f32 0.041666668, %v2077_v63  ;;  %v2174_v18 = vmul.f32 0.5, %v12933_v39 }
 0x310   : > { %3247 = vxpose.xlu1.b32.end [16/16] %v12941_v35, 128  ;;  %v1778_v35 = vpop.trf.xlu1  ;;  %v12989_v16 = vmul.f32 0.0030694604, %v1921_v26  ;;  %v12993_v1 = vmul.f32 %v2250_v24, %v2154_v12  ;;  %v2205_v26 = vmul.f32 2.0, %v2189_v15  ;;  %v13005_v51 = vfloor.f32 %v1968_v6 }
 0x311   : > { %v1794_v22 = vsub.f32 %v16650_v40, %v1778_v35  ;;  %v16410_v40 = vfloor.f32 %v12985_v13  ;;  %v2236_v38 = vmul.f32 2.0, %v2220_v34  ;;  %v2094_v58 = vadd.f32 0.041666668, %v2078_v32 }
 0x312   : > { %v1953_v37 = vmul.f32 0.31830987, %v12989_v16  ;;  %v16651_v12 = vfloor.f32 %v12952_v57  ;;  %v13013_v17 = vstv %s12982_s28  ;;  %v2221_v10 = vsub.f32 %v12929_v33, %v2205_v26 }
 0x313   : > { %v1811_v55 = vmul.f32 %v12653_v42, %v1794_v22  ;;  %v1875_v24 = vmul.f32 0.00048828125, %v16410_v40  ;;  %v2190_v34 = vfloor.f32 %v2174_v18  ;;  %v2000_v32 = vmul.f32 3.1415927, %v13005_v51 }
 0x314   : > { %v1922_v11 = vsub.f32 %v16651_v12, %v1906_v46  ;;  %v1969_v6 = vadd.f32 0.5, %v1953_v37  ;;  %v16652_v46 = vld [vmem:[#allocation36_spill] sm:$0xff]  ;;  %v13031_v12 = vstv %s12995_s22 }
 0x315   : > { %v1828_v22 = vadd.f32 %v12672_v28, %v1811_v55  ;;  %v1891_v37 = vfloor.f32 %v1875_v24 }
 0x316   : > { %v13036_v18 = vfloor.f32 %v1969_v6 }
 0x317   : > { %v13018_v15 = vmul.f32 325.9493, %v1828_v22  ;;  %v13028_v22 = vmul.f32 0.0030694604, %v1922_v11  ;;  %v1907_v6 = vmul.f32 2048.0, %v1891_v37 }
 0x318   : > { %v1779_v3 = vpop.trf.xlu1 }
 0x319   : > { %v1795_v48 = vsub.f32 %v12259_v27, %v1779_v3  ;;  %v2140_v27 = vmul.f32 %v2124_v30, %v12935_v52  ;;  %v2063_v3 = vadd.f32 -0.0013888889, %v2047_v54  ;;  %v2110_v54 = vmul.f32 %v2094_v58, %v12959_v29 }
 0x31a   : > { %v13007_v62 = vpop.trf.xlu0  ;;  %v16411_v33 = vfloor.f32 %v13018_v15  ;;  %v2016_v58 = vsub.f32 %v12968_v47, %v2000_v32 }
 0x31b   : > { %v1812_v57 = vmul.f32 %v12653_v42, %v1795_v48  ;;  %v2252_v48 = vsub.f32 1.0, %v2236_v38  ;;  %v2237_v38 = vmul.f32 2.0, %v2221_v10 }
 0x31c   : > { %v13056_v10 = vmul.f32 %v2016_v58, %v2016_v58 }
 0x320   : > { %v2694_v35 = vpop.trf.xlu2  ;;  %v1780_v55 = vpop.trf.xlu1 }
 0x321   : > { %v2710_v31 = vsub.f32 %v12348_v9, %v2694_v35  ;;  %v2109_v35 = vmul.f32 %v2093_v23, %v12955_v0  ;;  %v1796_v52 = vsub.f32 %v16652_v46, %v1780_v55  ;;  %v2079_v23 = vmul.f32 %v2063_v3, %v12980_v50 }
 0x322   : > { %v1829_v55 = vadd.f32 %v12672_v28, %v1812_v57  ;;  %v1954_v3 = vmul.f32 0.31830987, %v13028_v22  ;;  %v1876_v57 = vmul.f32 0.00048828125, %v16411_v33 }
 0x323   : > { %v2727_v30 = vmul.f32 %v13013_v17, %v2710_v31  ;;  %v2125_v26 = vadd.f32 -0.5, %v2109_v35  ;;  %v2156_v31 = vadd.f32 1.0, %v2140_v27  ;;  %v1813_v11 = vmul.f32 %v12653_v42, %v1796_v52  ;;  %v13051_v52 = vpop.trf.xlu0 }
 0x324   : > { %v2095_v35 = vadd.f32 0.041666668, %v2079_v23  ;;  %v13049_v32 = vmul.f32 325.9493, %v1829_v55 }
 0x325   : > { %v2744_v46 = vadd.f32 %v13031_v12, %v2727_v30  ;;  %v2141_v47 = vmul.f32 %v2125_v26, %v12955_v0  ;;  %v13053_v30 = vmul.f32 %v2252_v48, %v2156_v31  ;;  %v16653_v48 = vfloor.f32 %v12985_v13 }
 0x326   : > { %v2111_v26 = vmul.f32 %v2095_v35, %v12980_v50  ;;  %v1892_v31 = vfloor.f32 %v1876_v57  ;;  %v2048_v13 = vmul.f32 2.4801588e-05, %v13056_v10 }
 0x327   : > { %v13059_v23 = vmul.f32 325.9493, %v2744_v46  ;;  %v1923_v55 = vsub.f32 %v16653_v48, %v1907_v6 }
 0x328   : > { %v2695_v63 = vpop.trf.xlu2 }
 0x329   : > { %v2711_v9 = vsub.f32 %v12390_v59, %v2695_v63  ;;  %v2206_v63 = vmul.f32 2.0, %v2190_v34  ;;  %v2001_v34 = vmul.f32 3.1415927, %v13036_v18 }
 0x32b   : > { %v2728_v59 = vmul.f32 %v13013_v17, %v2711_v9  ;;  %v2126_v9 = vadd.f32 -0.5, %v2110_v54  ;;  %v2222_v54 = vsub.f32 %v12933_v39, %v2206_v63  ;;  %v2157_v39 = vadd.f32 1.0, %v2141_v47 }
 0x32c   : > { %v2253_v63 = vsub.f32 1.0, %v2237_v38  ;;  %v2017_v58 = vsub.f32 %v12989_v16, %v2001_v34  ;;  %v13081_v47 = vmul.f32 0.0030694604, %v1923_v55  ;;  %v1908_v34 = vmul.f32 2048.0, %v1892_v31 }
 0x32d   : > { %v2745_v24 = vadd.f32 %v13031_v12, %v2728_v59  ;;  %v1830_v59 = vadd.f32 %v12672_v28, %v1813_v11  ;;  %v16413_v11 = vfloor.f32 %v13049_v32  ;;  %v2238_v46 = vmul.f32 2.0, %v2222_v54 }
 0x32e   : > { %v13085_v48 = vmul.f32 %v2017_v58, %v2017_v58  ;;  %v2064_v55 = vadd.f32 -0.0013888889, %v2048_v13  ;;  %v13096_v58 = vpop.trf.xlu0  ;;  %v13105_v56 = vmul.f32 %v2253_v63, %v2157_v39 }
 0x32f   : > { %v13062_v0 = vmul.f32 325.9493, %v2745_v24  ;;  %v13074_v24 = vpop.trf.xlu1 }
 0x330   : > { %v2696_v40 = vpop.trf.xlu2 }
 0x331   : > { %v2712_v27 = vsub.f32 %v12423_v49, %v2696_v40  ;;  %v2142_v49 = vmul.f32 %v2126_v9, %v12959_v29  ;;  %v1970_v40 = vadd.f32 0.5, %v1954_v3  ;;  %v2175_v29 = vmul.f32 0.5, %v12950_v21 }
 0x332   : > { %v13071_v9 = vmul.f32 325.9493, %v1830_v59  ;;  %v16414_v3 = vfloor.f32 %v13059_v23  ;;  %v2176_v59 = vmul.f32 0.5, %v13005_v51 }
 0x333   : > { %v2729_v37 = vmul.f32 %v13013_v17, %v2712_v27  ;;  %v2158_v35 = vadd.f32 1.0, %v2142_v49  ;;  %v13077_v6 = vfloor.f32 %v1970_v40  ;;  %v2127_v27 = vadd.f32 -0.5, %v2111_v26 }
 0x334   : > { %v1877_v49 = vmul.f32 0.00048828125, %v16413_v11  ;;  %v2254_v40 = vsub.f32 1.0, %v2238_v46  ;;  %v2191_v33 = vfloor.f32 %v2175_v29  ;;  %v1955_v29 = vmul.f32 0.31830987, %v13081_v47 }
 0x335   : > { %v2746_v16 = vadd.f32 %v13031_v12, %v2729_v37  ;;  %v2792_v37 = vmul.f32 0.00048828125, %v16414_v3  ;;  %v2002_v31 = vmul.f32 3.1415927, %v13077_v6  ;;  %v2143_v46 = vmul.f32 %v2127_v27, %v12980_v50 }
 0x336   : > { %v16655_v11 = vfloor.f32 %v13018_v15  ;;  %v1893_v13 = vfloor.f32 %v1877_v49  ;;  %v2207_v43 = vmul.f32 2.0, %v2191_v33  ;;  %v16656_v53 = vfloor.f32 %v13071_v9 }
 0x337   : > { %v13098_v4 = vmul.f32 325.9493, %v2746_v16  ;;  %v2808_v45 = vfloor.f32 %v2792_v37  ;;  %v13110_v19 = vmul.f32 %v2254_v40, %v2158_v35  ;;  %v2080_v50 = vmul.f32 %v2064_v55, %v13056_v10  ;;  %v1782_v63 = vpop.trf.xlu1 }
 0x338   : > { %v2697_v57 = vpop.trf.xlu2  ;;  %v1924_v38 = vsub.f32 %v16655_v11, %v1908_v34  ;;  %v1878_v16 = vmul.f32 0.00048828125, %v16656_v53  ;;  %v2018_v15 = vsub.f32 %v13028_v22, %v2002_v31  ;;  %v1971_v39 = vadd.f32 0.5, %v1955_v29  ;;  %v16657_v31 = vld [vmem:[#allocation49_spill] sm:$0xff] }
 0x339   : > { %v2713_v54 = vsub.f32 %v12463_v14, %v2697_v57  ;;  %v16654_v14 = vfloor.f32 %v13062_v0  ;;  %v1909_v37 = vmul.f32 2048.0, %v1893_v13  ;;  %v2223_v40 = vsub.f32 %v12950_v21, %v2207_v43 }
 0x33a   : > { %v13117_v33 = vmul.f32 0.0030694604, %v1924_v38  ;;  %v1894_v22 = vfloor.f32 %v1878_v16  ;;  %v2824_v55 = vmul.f32 2048.0, %v2808_v45  ;;  %v13125_v27 = vmul.f32 %v2018_v15, %v2018_v15 }
 0x33b   : > { %v2730_v26 = vmul.f32 %v13013_v17, %v2713_v54  ;;  %v2793_v57 = vmul.f32 0.00048828125, %v16654_v14  ;;  %v2192_v54 = vfloor.f32 %v2176_v59  ;;  %v2049_v14 = vmul.f32 2.4801588e-05, %v13085_v48 }
 0x33c   : > { %v13115_v59 = vadd.f32 1.0, %v2143_v46  ;;  %v2096_v46 = vadd.f32 0.041666668, %v2080_v50  ;;  %v13129_v38 = vmul.f32 %v13007_v62, %v12993_v1  ;;  %v16659_v29 = vfloor.f32 %v13098_v4 }
 0x33d   : > { %v2747_v3 = vadd.f32 %v13031_v12, %v2730_v26  ;;  %v2809_v11 = vfloor.f32 %v2793_v57  ;;  %v2208_v53 = vmul.f32 2.0, %v2192_v54  ;;  %v2065_v26 = vadd.f32 -0.0013888889, %v2049_v14  ;;  %v13140_v14 = vpop.trf.xlu0 }
 0x33e   : > { %v1797_v57 = vsub.f32 %v16657_v31, %v13074_v24  ;;  %16658 = vst [vmem:[#allocation74_spill] sm:$0xff] %v13129_v38  ;;  %v2794_v54 = vmul.f32 0.00048828125, %v16659_v29  ;;  %v1956_v43 = vmul.f32 0.31830987, %v13117_v33  ;;  %v16660_v24 = vfloor.f32 %v13049_v32  ;;  %v16663_v32 = vld [vmem:[#allocation53_spill] sm:$0xff] }
 0x33f   : > { %v13119_v49 = vmul.f32 325.9493, %v2747_v3  ;;  %v2825_v3 = vmul.f32 2048.0, %v2809_v11  ;;  %v2224_v45 = vsub.f32 %v13005_v51, %v2208_v53  ;;  %v2239_v62 = vmul.f32 2.0, %v2223_v40 }
 0x340   : > { %v2698_v34 = vpop.trf.xlu2  ;;  %v1925_v13 = vsub.f32 %v16660_v24, %v1909_v37  ;;  %v2081_v16 = vmul.f32 %v2065_v26, %v13085_v48  ;;  %v1910_v50 = vmul.f32 2048.0, %v1894_v22  ;;  %v16661_v15 = vfloor.f32 %v13059_v23 }
 0x341   : > { %v2714_v35 = vsub.f32 %v12496_v25, %v2698_v34  ;;  %v13133_v25 = vfloor.f32 %v1971_v39  ;;  %v16420_v21 = vfloor.f32 %v13119_v49  ;;  %v1814_v34 = vmul.f32 %v12653_v42, %v1797_v57 }
 0x342   : > { %v2840_v11 = vsub.f32 %v16661_v15, %v2824_v55  ;;  %v2112_v39 = vmul.f32 %v2096_v46, %v13056_v10  ;;  %v16662_v51 = vfloor.f32 %v13062_v0  ;;  %v1798_v37 = vsub.f32 %v16663_v32, %v1782_v63  ;;  %v1783_v15 = vpop.trf.xlu1 }
 0x343   : > { %v2731_v1 = vmul.f32 %v13013_v17, %v2714_v35  ;;  %v2810_v31 = vfloor.f32 %v2794_v54  ;;  %v2177_v35 = vmul.f32 0.5, %v13036_v18  ;;  %v2003_v40 = vmul.f32 3.1415927, %v13133_v25 }
 0x344   : > { %v2841_v53 = vsub.f32 %v16662_v51, %v2825_v3  ;;  %v1972_v26 = vadd.f32 0.5, %v1956_v43  ;;  %v2795_v23 = vmul.f32 0.00048828125, %v16420_v21  ;;  %v13157_v22 = vmul.f32 2.0, %v2224_v45 }
 0x345   : > { %v13159_v55 = vmul.f32 0.0030694604, %v1925_v13  ;;  %v2748_v0 = vadd.f32 %v13031_v12, %v2731_v1  ;;  %v2255_v57 = vsub.f32 1.0, %v2239_v62  ;;  %v2097_v46 = vadd.f32 0.041666668, %v2081_v16 }
 0x346   : > { %v16664_v63 = vfloor.f32 %v13071_v9  ;;  %v13164_v54 = vmul.f32 0.0030694604, %v2840_v11  ;;  %v1831_v24 = vadd.f32 %v12672_v28, %v1814_v34  ;;  %v2128_v43 = vadd.f32 -0.5, %v2112_v39 }
 0x347   : > { %v13167_v51 = vmul.f32 0.0030694604, %v2841_v53  ;;  %v1815_v45 = vmul.f32 %v12653_v42, %v1798_v37  ;;  %v2826_v32 = vmul.f32 2048.0, %v2810_v31  ;;  %v2193_v13 = vfloor.f32 %v2177_v35 }
 0x348   : > { %v13151_v29 = vpop.trf.xlu2  ;;  %v1926_v3 = vsub.f32 %v16664_v63, %v1910_v50  ;;  %v2019_v21 = vsub.f32 %v13081_v47, %v2003_v40  ;;  %v13171_v1 = vfloor.f32 %v1972_v26  ;;  %v2811_v62 = vfloor.f32 %v2795_v23  ;;  %v13191_v26 = vpop.trf.xlu0 }
 0x349   : > { %v2256_v9 = vsub.f32 1.0, %v13157_v22  ;;  %v1957_v16 = vmul.f32 0.31830987, %v13159_v55  ;;  %v1799_v50 = vsub.f32 %v12384_v61, %v1783_v15  ;;  %v13176_v11 = vmul.f32 325.9493, %v2748_v0 }
 0x34a   : > { %v2113_v34 = vmul.f32 %v2097_v46, %v13085_v48  ;;  %v13179_v39 = vmul.f32 0.0030694604, %v1926_v3  ;;  %v2872_v53 = vmul.f32 0.31830987, %v13164_v54  ;;  %v13182_v37 = vmul.f32 325.9493, %v1831_v24 }
 0x34b   : > { %v13185_v47 = vmul.f32 %v2255_v57, %v13115_v59  ;;  %v2873_v31 = vmul.f32 0.31830987, %v13167_v51  ;;  %v1832_v35 = vadd.f32 %v12672_v28, %v1815_v45  ;;  %v16665_v40 = vfloor.f32 %v13098_v4 }
 0x34c   : > { %v2209_v22 = vmul.f32 2.0, %v2193_v13  ;;  %v13195_v0 = vmul.f32 %v2019_v21, %v2019_v21  ;;  %v2004_v46 = vmul.f32 3.1415927, %v13171_v1  ;;  %v2827_v63 = vmul.f32 2048.0, %v2811_v62 }
 0x34d   : > { %v2842_v61 = vsub.f32 %v16665_v40, %v2826_v32  ;;  %v2144_v59 = vmul.f32 %v2128_v43, %v13056_v10  ;;  %v1973_v57 = vadd.f32 0.5, %v1957_v16  ;;  %v1816_v3 = vmul.f32 %v12653_v42, %v1799_v50  ;;  %v13203_v40 = vpop.trf.xlu1 }
 0x34e   : > { %v16423_v24 = vfloor.f32 %v13176_v11  ;;  %v2129_v15 = vadd.f32 -0.5, %v2113_v34  ;;  %v1958_v4 = vmul.f32 0.31830987, %v13179_v39  ;;  %v2888_v45 = vadd.f32 0.5, %v2872_v53  ;;  %16666 = vst [vmem:[#allocation75_spill] sm:$0xff] %v13203_v40 }
 0x34f   : > { %v16421_v32 = vfloor.f32 %v13182_v37  ;;  %v2050_v21 = vmul.f32 2.4801588e-05, %v13125_v27  ;;  %v2889_v13 = vadd.f32 0.5, %v2873_v31  ;;  %v13206_v38 = vmul.f32 325.9493, %v1832_v35 }
 0x350   : > { %v13193_v23 = vpop.trf.xlu2  ;;  %v13208_v62 = vmul.f32 0.0030694604, %v2842_v61  ;;  %v2225_v10 = vsub.f32 %v13036_v18, %v2209_v22  ;;  %v2020_v42 = vsub.f32 %v13117_v33, %v2004_v46  ;;  %v13214_v43 = vmul.f32 %v13051_v52, %v13000_v7 }
 0x351   : > { %v16668_v16 = vfloor.f32 %v13119_v49  ;;  %v2160_v34 = vadd.f32 1.0, %v2144_v59  ;;  %v13218_v53 = vfloor.f32 %v1973_v57  ;;  %v1833_v31 = vadd.f32 %v12672_v28, %v1816_v3 }
 0x352   : > { %16667 = vst [vmem:[#allocation36_spill] sm:$0xff] %v13214_v43  ;;  %v2796_v35 = vmul.f32 0.00048828125, %v16423_v24  ;;  %v2145_v61 = vmul.f32 %v2129_v15, %v13085_v48  ;;  %v1974_v18 = vadd.f32 0.5, %v1958_v4  ;;  %v13224_v22 = vfloor.f32 %v2888_v45 }
 0x353   : > { %v2843_v50 = vsub.f32 %v16668_v16, %v2827_v63  ;;  %v1879_v7 = vmul.f32 0.00048828125, %v16421_v32  ;;  %v2066_v52 = vadd.f32 -0.0013888889, %v2050_v21  ;;  %v13228_v33 = vfloor.f32 %v2889_v13  ;;  %v13243_v21 = vpop.trf.xlu0 }
 0x354   : > { %16669 = vst [vmem:[#allocation49_spill] sm:$0xff] %v13224_v22  ;;  %v16422_v49 = vfloor.f32 %v13206_v38  ;;  %v2874_v46 = vmul.f32 0.31830987, %v13208_v62  ;;  %v2241_v63 = vmul.f32 2.0, %v2225_v10  ;;  %v13232_v59 = vmul.f32 %v2020_v42, %v2020_v42 }
 0x355   : > { %16670 = vst [vmem:[#allocation53_spill] sm:$0xff] %v13228_v33  ;;  %v13234_v57 = vmul.f32 0.0030694604, %v2843_v50  ;;  %v2715_v48 = vsub.f32 %v12539_v41, %v13151_v29  ;;  %v13238_v3 = vmul.f32 %v2256_v9, %v2160_v34  ;;  %v2005_v15 = vmul.f32 3.1415927, %v13218_v53 }
 0x356   : > { %v13241_v4 = vmul.f32 325.9493, %v1833_v31  ;;  %v2812_v45 = vfloor.f32 %v2796_v35  ;;  %v2161_v13 = vadd.f32 1.0, %v2145_v61  ;;  %v13245_v16 = vfloor.f32 %v1974_v18  ;;  %v13260_v18 = vpop.trf.xlu1 }
 0x357   : > { %v2920_v10 = vmul.f32 3.1415927, %v13224_v22  ;;  %v1895_v42 = vfloor.f32 %v1879_v7  ;;  %v2082_v50 = vmul.f32 %v2066_v52, %v13125_v27  ;;  %v2921_v32 = vmul.f32 3.1415927, %v13228_v33  ;;  %16672 = vst [vmem:[#allocation77_spill] sm:$0xff] %v13260_v18 }
 0x358   : > { %v2701_v28 = vpop.trf.xlu2  ;;  %v1880_v41 = vmul.f32 0.00048828125, %v16422_v49  ;;  %v2890_v29 = vadd.f32 0.5, %v2874_v46  ;;  %v2257_v9 = vsub.f32 1.0, %v2241_v63  ;;  %v13254_v34 = vmul.f32 %v13096_v58, %v13053_v30 }
 0x359   : > { %v2875_v31 = vmul.f32 0.31830987, %v13234_v57  ;;  %v2732_v35 = vmul.f32 %v13013_v17, %v2715_v48  ;;  %v2716_v61 = vsub.f32 %v12577_v44, %v13193_v23  ;;  %v2021_v7 = vsub.f32 %v13159_v55, %v2005_v15 }
 0x35a   : > { %16671 = vst [vmem:[#allocation76_spill] sm:$0xff] %v13254_v34  ;;  %v16424_v52 = vfloor.f32 %v13241_v4  ;;  %v2828_v49 = vmul.f32 2048.0, %v2812_v45  ;;  %v13264_v46 = vmul.f32 %v2257_v9, %v2161_v13  ;;  %v2006_v63 = vmul.f32 3.1415927, %v13245_v16 }
 0x35b   : > { %v2936_v30 = vsub.f32 %v13164_v54, %v2920_v10  ;;  %v1911_v58 = vmul.f32 2048.0, %v1895_v42  ;;  %v2098_v24 = vadd.f32 0.041666668, %v2082_v50  ;;  %v2937_v48 = vsub.f32 %v13167_v51, %v2921_v32 }
 0x35c   : > { %v1896_v40 = vfloor.f32 %v1880_v41  ;;  %v13269_v43 = vfloor.f32 %v2890_v29  ;;  %v2178_v44 = vmul.f32 0.5, %v13077_v6  ;;  %v2891_v55 = vadd.f32 0.5, %v2875_v31 }
 0x35d   : > { %v2749_v15 = vadd.f32 %v13031_v12, %v2732_v35  ;;  %v2733_v45 = vmul.f32 %v13013_v17, %v2716_v61  ;;  %v2051_v13 = vmul.f32 2.4801588e-05, %v13195_v0  ;;  %v13277_v9 = vmul.f32 %v2021_v7, %v2021_v7 }
 0x35e   : > { %16673 = vst [vmem:[#allocation78_spill] sm:$0xff] %v13269_v43  ;;  %v1881_v54 = vmul.f32 0.00048828125, %v16424_v52  ;;  %v16674_v51 = vfloor.f32 %v13176_v11  ;;  %v2717_v10 = vsub.f32 %v12624_v5, %v2701_v28  ;;  %v2022_v42 = vsub.f32 %v13179_v39, %v2006_v63  ;;  %v13293_v52 = vpop.trf.xlu0 }
 0x35f   : > { %v13285_v50 = vmul.f32 %v2936_v30, %v2936_v30  ;;  %v16676_v41 = vfloor.f32 %v13182_v37  ;;  %v2114_v31 = vmul.f32 %v2098_v24, %v13125_v27  ;;  %v13290_v35 = vmul.f32 %v2937_v48, %v2937_v48 }
 0x360   : > { %v13272_v23 = vpop.trf.xlu2  ;;  %v2844_v32 = vsub.f32 %v16674_v51, %v2828_v49  ;;  %v1912_v61 = vmul.f32 2048.0, %v1896_v40  ;;  %v2922_v7 = vmul.f32 3.1415927, %v13269_v43  ;;  %v2194_v11 = vfloor.f32 %v2178_v44 }
 0x361   : > { %16675 = vst [vmem:[#allocation79_spill] sm:$0xff] %v13285_v50  ;;  %v1927_v29 = vsub.f32 %v16676_v41, %v1911_v58  ;;  %v13295_v49 = vfloor.f32 %v2891_v55  ;;  %v13297_v5 = vmul.f32 325.9493, %v2749_v15  ;;  %v2750_v39 = vadd.f32 %v13031_v12, %v2733_v45  ;;  %v13312_v55 = vpop.trf.xlu1 }
 0x362   : > { %16677 = vst [vmem:[#allocation80_spill] sm:$0xff] %v13290_v35  ;;  %v2067_v28 = vadd.f32 -0.0013888889, %v2051_v13  ;;  %v13302_v37 = vmul.f32 %v13140_v14, %v13105_v56  ;;  %v1897_v24 = vfloor.f32 %v1881_v54  ;;  %v13304_v63 = vmul.f32 0.0030694604, %v2844_v32 }
 0x363   : > { %16678 = vst [vmem:[#allocation81_spill] sm:$0xff] %v13295_v49  ;;  %v2734_v40 = vmul.f32 %v13013_v17, %v2717_v10  ;;  %v13307_v30 = vmul.f32 %v2022_v42, %v2022_v42  ;;  %v13309_v58 = vmul.f32 0.0030694604, %v1927_v29  ;;  %v2968_v48 = vmul.f32 2.4801588e-05, %v13285_v50 }
 0x364   : > { %16679 = vst [vmem:[#allocation82_spill] sm:$0xff] %v13302_v37  ;;  %v2130_v44 = vadd.f32 -0.5, %v2114_v31  ;;  %v16681_v15 = vfloor.f32 %v13206_v38  ;;  %v2938_v56 = vsub.f32 %v13208_v62, %v2922_v7  ;;  %v2969_v14 = vmul.f32 2.4801588e-05, %v13290_v35 }
 0x365   : > { %16680 = vst [vmem:[#allocation83_spill] sm:$0xff] %v13312_v55  ;;  %v2210_v13 = vmul.f32 2.0, %v2194_v11  ;;  %v2923_v51 = vmul.f32 3.1415927, %v13295_v49  ;;  %v13322_v10 = vmul.f32 325.9493, %v2750_v39  ;;  %v2083_v42 = vmul.f32 %v2067_v28, %v13195_v0 }
 0x366   : > { %v1928_v45 = vsub.f32 %v16681_v15, %v1912_v61  ;;  %v1913_v41 = vmul.f32 2048.0, %v1897_v24  ;;  %v2876_v29 = vmul.f32 0.31830987, %v13304_v63  ;;  %v13327_v38 = vmul.f32 0.5, %v13224_v22  ;;  %v2329_v55 = vpop.trf.xlu0 }
 0x367   : > { %v2751_v62 = vadd.f32 %v13031_v12, %v2734_v40  ;;  %v13332_v31 = vmul.f32 %v13191_v26, %v13110_v19  ;;  %v2984_v61 = vadd.f32 -0.0013888889, %v2968_v48  ;;  %v2146_v7 = vmul.f32 %v2130_v44, %v13125_v27 }
 0x368   : > { %v13318_v54 = vpop.trf.xlu2  ;;  %16682 = vst [vmem:[#allocation84_spill] sm:$0xff] %v13327_v38  ;;  %v2179_v11 = vmul.f32 0.5, %v13133_v25  ;;  %v13336_v39 = vmul.f32 0.0030694604, %v1928_v45  ;;  %v13338_v28 = vmul.f32 %v2938_v56, %v2938_v56  ;;  %v2985_v24 = vadd.f32 -0.0013888889, %v2969_v14 }
 0x369   : > { %v2226_v15 = vsub.f32 %v13077_v6, %v2210_v13  ;;  %v2939_v32 = vsub.f32 %v13234_v57, %v2923_v51  ;;  %v16684_v40 = vfloor.f32 %v13297_v5  ;;  %v16425_v19 = vfloor.f32 %v13322_v10 }
 0x36a   : > { %16683 = vst [vmem:[#allocation85_spill] sm:$0xff] %v13338_v28  ;;  %v2099_v26 = vadd.f32 0.041666668, %v2083_v42  ;;  %v16685_v48 = vfloor.f32 %v13241_v4  ;;  %v2892_v44 = vadd.f32 0.5, %v2876_v29  ;;  %v13348_v56 = vmul.f32 325.9493, %v2751_v62 }
 0x36b   : > { %v2797_v18 = vmul.f32 0.00048828125, %v16684_v40  ;;  %v3000_v14 = vmul.f32 %v2984_v61, %v13285_v50  ;;  %v2162_v6 = vadd.f32 1.0, %v2146_v7  ;;  %v2718_v57 = vsub.f32 %v12667_v36, %v13272_v23  ;;  %v13364_v36 = vpop.trf.xlu1 }
 0x36c   : > { %v1929_v27 = vsub.f32 %v16685_v48, %v1913_v41  ;;  %v2195_v13 = vfloor.f32 %v2179_v11  ;;  %v13355_v51 = vmul.f32 %v13243_v21, %v13185_v47  ;;  %v3001_v4 = vmul.f32 %v2985_v24, %v13290_v35  ;;  %16687 = vst [vmem:[#allocation87_spill] sm:$0xff] %v13364_v36 }
 0x36d   : > { %v2242_v42 = vmul.f32 2.0, %v2226_v15  ;;  %v2970_v41 = vmul.f32 2.4801588e-05, %v13338_v28  ;;  %v13359_v40 = vmul.f32 %v2939_v32, %v2939_v32  ;;  %v2813_v62 = vfloor.f32 %v2797_v18 }
 0x36e   : > { %v2798_v61 = vmul.f32 0.00048828125, %v16425_v19  ;;  %v2115_v7 = vmul.f32 %v2099_v26, %v13195_v0  ;;  %v13366_v23 = vmul.f32 0.0030694604, %v1929_v27  ;;  %v13368_v47 = vfloor.f32 %v2892_v44 }
 0x36f   : > { %16686 = vst [vmem:[#allocation86_spill] sm:$0xff] %v13359_v40  ;;  %v13372_v11 = vmul.f32 0.5, %v13228_v33  ;;  %v13374_v24 = vadd.f32 0.041666668, %v3000_v14  ;;  %v2735_v18 = vmul.f32 %v13013_v17, %v2718_v57  ;;  %v2211_v32 = vmul.f32 2.0, %v2195_v13 }
 0x370   : > { %v2704_v29 = vpop.trf.xlu2  ;;  %16688 = vst [vmem:[#allocation88_spill] sm:$0xff] %v13368_v47  ;;  %v2052_v15 = vmul.f32 2.4801588e-05, %v13232_v59  ;;  %v3017_v48 = vadd.f32 0.041666668, %v3001_v4  ;;  %v2258_v26 = vsub.f32 1.0, %v2242_v42  ;;  %v2719_v27 = vsub.f32 %v12712_v2, %v13318_v54 }
 0x371   : > { %16689 = vst [vmem:[#allocation89_spill] sm:$0xff] %v13372_v11  ;;  %v2986_v45 = vadd.f32 -0.0013888889, %v2970_v41  ;;  %v2829_v44 = vmul.f32 2048.0, %v2813_v62  ;;  %v2814_v19 = vfloor.f32 %v2798_v61  ;;  %v2131_v36 = vadd.f32 -0.5, %v2115_v7  ;;  %v2330_v7 = vpop.trf.xlu0 }
 0x372   : > { %16690 = vst [vmem:[#allocation90_spill] sm:$0xff] %v13374_v24  ;;  %v2971_v21 = vmul.f32 2.4801588e-05, %v13359_v40  ;;  %v2924_v22 = vmul.f32 3.1415927, %v13368_v47  ;;  %v13384_v14 = vmul.f32 %v13293_v52, %v13238_v3  ;;  %v16691_v57 = vfloor.f32 %v13348_v56 }
 0x373   : > { %v2274_v42 = vmul.f32 %v2258_v26, %v2162_v6  ;;  %v2752_v41 = vadd.f32 %v13031_v12, %v2735_v18  ;;  %v2227_v2 = vsub.f32 %v13133_v25, %v2211_v32  ;;  %v2068_v54 = vadd.f32 -0.0013888889, %v2052_v15 }
 0x374   : > { %v2799_v13 = vmul.f32 0.00048828125, %v16691_v57  ;;  %v13392_v62 = vmul.f32 %v2329_v55, %v13264_v46  ;;  %v13395_v61 = vmul.f32 %v3017_v48, %v13290_v35  ;;  %v3002_v3 = vmul.f32 %v2986_v45, %v13338_v28  ;;  %v13408_v35 = vpop.trf.xlu1 }
 0x375   : > { %v2736_v52 = vmul.f32 %v13013_v17, %v2719_v27  ;;  %v16693_v4 = vfloor.f32 %v13297_v5  ;;  %v2830_v26 = vmul.f32 2048.0, %v2814_v19  ;;  %v2147_v18 = vmul.f32 %v2131_v36, %v13195_v0  ;;  %16694 = vst [vmem:[#allocation92_spill] sm:$0xff] %v13408_v35 }
 0x376   : > { %16692 = vst [vmem:[#allocation91_spill] sm:$0xff] %v13395_v61  ;;  %v2987_v25 = vadd.f32 -0.0013888889, %v2971_v21  ;;  %v2940_v32 = vsub.f32 %v13304_v63, %v2924_v22  ;;  %v2815_v46 = vfloor.f32 %v2799_v13  ;;  %v2180_v55 = vmul.f32 0.5, %v13171_v1 }
 0x377   : > { %v2845_v6 = vsub.f32 %v16693_v4, %v2829_v44  ;;  %v2720_v15 = vsub.f32 %v12763_v60, %v2704_v29  ;;  %v13405_v48 = vmul.f32 325.9493, %v2752_v41  ;;  %v2243_v45 = vmul.f32 2.0, %v2227_v2 }
 0x378   : > { %v2705_v57 = vpop.trf.xlu2  ;;  %v2084_v27 = vmul.f32 %v2068_v54, %v13232_v59  ;;  %v13411_v19 = vadd.f32 0.041666668, %v3002_v3  ;;  %v13414_v0 = vmul.f32 0.5, %v13269_v43  ;;  %v2753_v22 = vadd.f32 %v13031_v12, %v2736_v52 }
 0x379   : > { %v2721_v5 = vsub.f32 %v12807_v8, %v2705_v57  ;;  %v2053_v63 = vmul.f32 2.4801588e-05, %v13277_v9  ;;  %v13418_v36 = vmul.f32 0.0030694604, %v2845_v6  ;;  %v16697_v60 = vfloor.f32 %v13322_v10 }
 0x37a   : > { %16695 = vst [vmem:[#allocation93_spill] sm:$0xff] %v13411_v19  ;;  %v2163_v21 = vadd.f32 1.0, %v2147_v18  ;;  %v3003_v44 = vmul.f32 %v2987_v25, %v13359_v40  ;;  %v13423_v13 = vmul.f32 %v2940_v32, %v2940_v32  ;;  %v2831_v8 = vmul.f32 2048.0, %v2815_v46 }
 0x37b   : > { %16696 = vst [vmem:[#allocation94_spill] sm:$0xff] %v13414_v0  ;;  %v2846_v29 = vsub.f32 %v16697_v60, %v2830_v26  ;;  %v2196_v4 = vfloor.f32 %v2180_v55  ;;  %v2737_v41 = vmul.f32 %v13013_v17, %v2720_v15  ;;  %v16428_v2 = vfloor.f32 %v13405_v48  ;;  %v16717_v0 = vld [vmem:[#allocation69_spill] sm:$0xff] }
 0x37c   : > { %16698 = vst [vmem:[#allocation95_spill] sm:$0xff] %v13423_v13  ;;  %v2259_v54 = vsub.f32 1.0, %v2243_v45  ;;  %v2100_v3 = vadd.f32 0.041666668, %v2084_v27  ;;  %v2738_v52 = vmul.f32 %v13013_v17, %v2721_v5  ;;  %v13429_v6 = vmul.f32 325.9493, %v2753_v22  ;;  %v2331_v27 = vpop.trf.xlu0 }
 0x37d   : > { %v13432_v10 = vmul.f32 0.5, %v13295_v49  ;;  %v2069_v26 = vadd.f32 -0.0013888889, %v2053_v63  ;;  %v13434_v25 = vmul.f32 0.0030694604, %v2846_v29  ;;  %v13436_v32 = vmul.f32 %v2330_v7, %v2274_v42 }
 0x37e   : > { %v2275_v46 = vmul.f32 %v2259_v54, %v2163_v21  ;;  %v3019_v55 = vadd.f32 0.041666668, %v3003_v44  ;;  %v16700_v15 = vfloor.f32 %v13348_v56  ;;  %v2212_v5 = vmul.f32 2.0, %v2196_v4  ;;  %v13457_v54 = vpop.trf.xlu1 }
 0x37f   : > { %16699 = vst [vmem:[#allocation96_spill] sm:$0xff] %v13432_v10  ;;  %v2754_v60 = vadd.f32 %v13031_v12, %v2737_v41  ;;  %v2972_v22 = vmul.f32 2.4801588e-05, %v13423_v13  ;;  %v2800_v57 = vmul.f32 0.00048828125, %v16428_v2  ;;  %v2116_v63 = vmul.f32 %v2100_v3, %v13232_v59 }
 0x380   : > { %v2706_v18 = vpop.trf.xlu2  ;;  %v2847_v45 = vsub.f32 %v16700_v15, %v2831_v8  ;;  %v2755_v29 = vadd.f32 %v13031_v12, %v2738_v52  ;;  %v16430_v7 = vfloor.f32 %v13429_v6  ;;  %v2085_v21 = vmul.f32 %v2069_v26, %v13277_v9  ;;  %16702 = vst [vmem:[#allocation98_spill] sm:$0xff] %v13457_v54 }
 0x381   : > { %v2722_v42 = vsub.f32 %v12846_v20, %v2706_v18  ;;  %v2877_v44 = vmul.f32 0.31830987, %v13418_v36  ;;  %v13451_v8 = vmul.f32 %v2331_v27, %v2275_v46  ;;  %v13454_v4 = vmul.f32 %v3019_v55, %v13359_v40 }
 0x382   : > { %v2181_v41 = vmul.f32 0.5, %v13218_v53  ;;  %v2054_v3 = vmul.f32 2.4801588e-05, %v13307_v30  ;;  %v13460_v20 = vmul.f32 0.0030694604, %v2847_v45  ;;  %v2228_v52 = vsub.f32 %v13171_v1, %v2212_v5 }
 0x383   : > { %16701 = vst [vmem:[#allocation97_spill] sm:$0xff] %v13454_v4  ;;  %v13463_v18 = vmul.f32 325.9493, %v2754_v60  ;;  %v2988_v26 = vadd.f32 -0.0013888889, %v2972_v22  ;;  %v2816_v15 = vfloor.f32 %v2800_v57  ;;  %v2132_v56 = vadd.f32 -0.5, %v2116_v63 }
 0x384   : > { %v13465_v46 = vmul.f32 325.9493, %v2755_v29  ;;  %v2739_v55 = vmul.f32 %v13013_v17, %v2722_v42  ;;  %v2801_v27 = vmul.f32 0.00048828125, %v16430_v7  ;;  %v2101_v2 = vadd.f32 0.041666668, %v2085_v21  ;;  %v16704_v60 = vld [vmem:[#allocation50_spill] sm:$0xff] }
 0x385   : > { %v2893_v35 = vadd.f32 0.5, %v2877_v44  ;;  %v1959_v54 = vmul.f32 0.31830987, %v13309_v58  ;;  %v13472_v33 = vmul.f32 0.5, %v13368_v47  ;;  %v2197_v1 = vfloor.f32 %v2181_v41 }
 0x386   : > { %v2070_v5 = vadd.f32 -0.0013888889, %v2054_v3  ;;  %v2244_v22 = vmul.f32 2.0, %v2228_v52  ;;  %v3004_v29 = vmul.f32 %v2988_v26, %v13423_v13  ;;  %v2878_v42 = vmul.f32 0.31830987, %v13434_v25 }
 0x387   : > { %16703 = vst [vmem:[#allocation99_spill] sm:$0xff] %v13472_v33  ;;  %v2832_v7 = vmul.f32 2048.0, %v2816_v15  ;;  %v2148_v21 = vmul.f32 %v2132_v56, %v13232_v59  ;;  %v2756_v40 = vadd.f32 %v13031_v12, %v2739_v55  ;;  %v2817_v43 = vfloor.f32 %v2801_v27  ;;  %v2332_v15 = vpop.trf.xlu0 }
 0x388   : > { %v2707_v45 = vpop.trf.xlu2  ;;  %v2117_v41 = vmul.f32 %v2101_v2, %v13277_v9  ;;  %v13482_v3 = vfloor.f32 %v2893_v35  ;;  %v2086_v26 = vmul.f32 %v2070_v5, %v13307_v30  ;;  %v16706_v59 = vfloor.f32 %v13463_v18  ;;  %v13496_v5 = vpop.trf.xlu1 }
 0x389   : > { %v2723_v57 = vsub.f32 %v16704_v60, %v2707_v45  ;;  %v1975_v45 = vadd.f32 0.5, %v1959_v54  ;;  %v2213_v60 = vmul.f32 2.0, %v2197_v1  ;;  %v3020_v44 = vadd.f32 0.041666668, %v3004_v29 }
 0x38a   : > { %16705 = vst [vmem:[#allocation50_spill] sm:$0xff] %v13482_v3  ;;  %v2802_v56 = vmul.f32 0.00048828125, %v16706_v59  ;;  %v2182_v55 = vmul.f32 0.5, %v13245_v16  ;;  %v2894_v27 = vadd.f32 0.5, %v2878_v42  ;;  %v16707_v2 = vfloor.f32 %v13405_v48 }
 0x38b   : > { %v2740_v63 = vmul.f32 %v13013_v17, %v2723_v57  ;;  %v2164_v61 = vadd.f32 1.0, %v2148_v21  ;;  %v16708_v54 = vfloor.f32 %v13465_v46  ;;  %v13494_v1 = vmul.f32 325.9493, %v2756_v40 }
 0x38c   : > { %v2848_v35 = vsub.f32 %v16707_v2, %v2832_v7  ;;  %v2833_v57 = vmul.f32 2048.0, %v2817_v43  ;;  %v2133_v38 = vadd.f32 -0.5, %v2117_v41  ;;  %v2925_v49 = vmul.f32 3.1415927, %v13482_v3 }
 0x38d   : > { %v2803_v52 = vmul.f32 0.00048828125, %v16708_v54  ;;  %v13499_v59 = vfloor.f32 %v1975_v45  ;;  %v2260_v29 = vsub.f32 1.0, %v2244_v22  ;;  %v2229_v42 = vsub.f32 %v13218_v53, %v2213_v60 }
 0x38e   : > { %v2102_v11 = vadd.f32 0.041666668, %v2086_v26  ;;  %v2757_v48 = vadd.f32 %v13031_v12, %v2740_v63  ;;  %v2818_v7 = vfloor.f32 %v2802_v56  ;;  %v13504_v21 = vmul.f32 %v3020_v44, %v13423_v13 }
 0x38f   : > { %v2198_v40 = vfloor.f32 %v2182_v55  ;;  %v13506_v2 = vfloor.f32 %v2894_v27  ;;  %v13508_v54 = vmul.f32 0.0030694604, %v2848_v35  ;;  %v2276_v43 = vmul.f32 %v2260_v29, %v2164_v61  ;;  %v2333_v29 = vpop.trf.xlu0 }
 0x390   : > { %16709 = vst [vmem:[#allocation100_spill] sm:$0xff] %v13504_v21  ;;  %v2819_v41 = vfloor.f32 %v2803_v52  ;;  %v16436_v45 = vfloor.f32 %v13494_v1  ;;  %v16710_v22 = vfloor.f32 %v13429_v6  ;;  %v2149_v53 = vmul.f32 %v2133_v38, %v13277_v9  ;;  %v2708_v61 = vpop.trf.xlu2  ;;  %v16711_v38 = vld [vmem:[#allocation70_spill] sm:$0xff] }
 0x391   : > { %v2941_v63 = vsub.f32 %v13418_v36, %v2925_v49  ;;  %v2007_v60 = vmul.f32 3.1415927, %v13499_v59  ;;  %v13516_v44 = vmul.f32 %v2332_v15, %v2276_v43  ;;  %v2245_v26 = vmul.f32 2.0, %v2229_v42  ;;  %v13533_v43 = vpop.trf.xlu1 }
 0x392   : > { %v2849_v24 = vsub.f32 %v16710_v22, %v2833_v57  ;;  %v2118_v56 = vmul.f32 %v2102_v11, %v13307_v30  ;;  %v13519_v55 = vmul.f32 325.9493, %v2757_v48  ;;  %v2834_v52 = vmul.f32 2048.0, %v2818_v7 }
 0x393   : > { %v2214_v27 = vmul.f32 2.0, %v2198_v40  ;;  %v2926_v35 = vmul.f32 3.1415927, %v13506_v2  ;;  %v2879_v6 = vmul.f32 0.31830987, %v13460_v20  ;;  %v2835_v57 = vmul.f32 2048.0, %v2819_v41 }
 0x394   : > { %v2804_v9 = vmul.f32 0.00048828125, %v16436_v45  ;;  %v1960_v49 = vmul.f32 0.31830987, %v13336_v39  ;;  %v2724_v36 = vsub.f32 %v16711_v38, %v2708_v61  ;;  %v13527_v15 = vmul.f32 0.0030694604, %v2849_v24 }
 0x395   : > { %v2165_v11 = vadd.f32 1.0, %v2149_v53  ;;  %v13529_v42 = vmul.f32 %v2941_v63, %v2941_v63  ;;  %v2023_v48 = vsub.f32 %v13309_v58, %v2007_v60  ;;  %v2134_v7 = vadd.f32 -0.5, %v2118_v56 }
 0x396   : > { %v1976_v41 = vadd.f32 0.5, %v1960_v49  ;;  %v2741_v22 = vmul.f32 %v13013_v17, %v2724_v36  ;;  %v16712_v45 = vfloor.f32 %v13463_v18  ;;  %v2230_v24 = vsub.f32 %v13245_v16, %v2214_v27 }
 0x397   : > { %v2942_v53 = vsub.f32 %v13434_v25, %v2926_v35  ;;  %v2895_v61 = vadd.f32 0.5, %v2879_v6  ;;  %v2261_v63 = vsub.f32 1.0, %v2245_v26  ;;  %v16713_v38 = vfloor.f32 %v13465_v46 }
 0x398   : > { %v2850_v13 = vsub.f32 %v16712_v45, %v2834_v52  ;;  %v2820_v60 = vfloor.f32 %v2804_v9  ;;  %v13542_v56 = vfloor.f32 %v1976_v41  ;;  %v2973_v40 = vmul.f32 2.4801588e-05, %v13529_v42 }
 0x399   : > { %v2851_v58 = vsub.f32 %v16713_v38, %v2835_v57  ;;  %v13546_v49 = vmul.f32 0.5, %v13482_v3  ;;  %v13548_v36 = vmul.f32 %v2023_v48, %v2023_v48  ;;  %v2758_v18 = vadd.f32 %v13031_v12, %v2741_v22  ;;  %v13571_v38 = vpop.trf.xlu0 }
 0x39a   : > { %v2277_v16 = vmul.f32 %v2261_v63, %v2165_v11  ;;  %v2150_v25 = vmul.f32 %v2134_v7, %v13307_v30  ;;  %v16714_v45 = vfloor.f32 %v13519_v55  ;;  %v2008_v46 = vmul.f32 3.1415927, %v13542_v56 }
 0x39b   : > { %v13555_v52 = vmul.f32 0.0030694604, %v2850_v13  ;;  %v2246_v27 = vmul.f32 2.0, %v2230_v24  ;;  %v13557_v35 = vmul.f32 %v2942_v53, %v2942_v53  ;;  %v13559_v6 = vfloor.f32 %v2895_v61 }
 0x39c   : > { %v2805_v26 = vmul.f32 0.00048828125, %v16714_v45  ;;  %v13561_v57 = vmul.f32 0.0030694604, %v2851_v58  ;;  %v2836_v9 = vmul.f32 2048.0, %v2820_v60  ;;  %v3102_v48 = vmul.f32 0.5, %v13506_v2  ;;  %v13579_v45 = vpop.trf.xlu1 }
 0x39d   : > { %v2024_v11 = vsub.f32 %v13336_v39, %v2008_v46  ;;  %v13565_v30 = vmul.f32 %v2333_v29, %v2277_v16  ;;  %v2989_v7 = vadd.f32 -0.0013888889, %v2973_v40  ;;  %v2055_v41 = vmul.f32 2.4801588e-05, %v13548_v36  ;;  %16716 = vst [vmem:[#allocation70_spill] sm:$0xff] %v13579_v45 }
 0x39e   : > { %v2774_v22 = vmul.f32 325.9493, %v2758_v18  ;;  %v2166_v13 = vadd.f32 1.0, %v2150_v25  ;;  %v2183_v24 = vmul.f32 0.5, %v13499_v59  ;;  %v2821_v53 = vfloor.f32 %v2805_v26  ;;  %v2709_v26 = vpop.trf.xlu2 }
 0x39f   : > { %v13569_v63 = vmul.f32 %v2024_v11, %v2024_v11  ;;  %v2262_v61 = vsub.f32 1.0, %v2246_v27  ;;  %v2974_v58 = vmul.f32 2.4801588e-05, %v13557_v35  ;;  %v2927_v60 = vmul.f32 3.1415927, %v13559_v6 }
 0x3a0   : > { %v2790_v39 = vfloor.f32 %v2774_v22  ;;  %v2883_v29 = vmul.f32 0.31830987, %v13561_v57  ;;  %v16715_v40 = vfloor.f32 %v13494_v1  ;;  %v3118_v18 = vfloor.f32 %v3102_v48 }
 0x3a1   : > { %v2056_v25 = vmul.f32 2.4801588e-05, %v13569_v63  ;;  %v13582_v46 = vmul.f32 %v2989_v7, %v13529_v42  ;;  %v2071_v27 = vadd.f32 -0.0013888889, %v2055_v41  ;;  %v1961_v50 = vmul.f32 0.31830987, %v13366_v23 }
 0x3a2   : > { %v2852_v16 = vsub.f32 %v16715_v40, %v2836_v9  ;;  %v2806_v11 = vmul.f32 0.00048828125, %v2790_v39  ;;  %v2199_v47 = vfloor.f32 %v2183_v24  ;;  %v2837_v22 = vmul.f32 2048.0, %v2821_v53 }
 0x3a3   : > { %v2072_v4 = vadd.f32 -0.0013888889, %v2056_v25  ;;  %v2725_v3 = vsub.f32 %v16717_v0, %v2709_v26  ;;  %v2990_v1 = vadd.f32 -0.0013888889, %v2974_v58  ;;  %v2943_v9 = vsub.f32 %v13460_v20, %v2927_v60 }
 0x3a4   : > { %v2822_v48 = vfloor.f32 %v2806_v11  ;;  %v1977_v40 = vadd.f32 0.5, %v1961_v50  ;;  %v13587_v21 = vmul.f32 %v2262_v61, %v2166_v13  ;;  %v13589_v45 = vmul.f32 0.0030694604, %v2852_v16 }
 0x3a5   : > { %v13591_v7 = vmul.f32 2.0, %v3118_v18  ;;  %v2742_v41 = vmul.f32 %v13013_v17, %v2725_v3  ;;  %v2899_v10 = vadd.f32 0.5, %v2883_v29  ;;  %v2087_v24 = vmul.f32 %v2071_v27, %v13548_v36  ;;  %v13611_v27 = vpop.trf.xlu0 }
 0x3a6   : > { %v2838_v53 = vmul.f32 2048.0, %v2822_v48  ;;  %v2880_v25 = vmul.f32 0.31830987, %v13508_v54  ;;  %v16718_v0 = vfloor.f32 %v13519_v55  ;;  %v2088_v20 = vmul.f32 %v2072_v4, %v13569_v63 }
 0x3a7   : > { %v13599_v50 = vfloor.f32 %v1977_v40  ;;  %v2759_v13 = vadd.f32 %v13031_v12, %v2742_v41  ;;  %v3006_v61 = vmul.f32 %v2990_v1, %v13557_v35  ;;  %v2215_v60 = vmul.f32 2.0, %v2199_v47 }
 0x3a8   : > { %v2853_v58 = vsub.f32 %v16718_v0, %v2837_v22  ;;  %v13603_v16 = vmul.f32 %v2943_v9, %v2943_v9  ;;  %v2854_v17 = vsub.f32 %v2790_v39, %v2838_v53  ;;  %v2884_v3 = vmul.f32 0.31830987, %v13589_v45  ;;  %v13618_v9 = vpop.trf.xlu1 }
 0x3a9   : > { %v2184_v29 = vmul.f32 0.5, %v13542_v56  ;;  %v2009_v18 = vmul.f32 3.1415927, %v13599_v50  ;;  %v2185_v55 = vmul.f32 0.5, %v13599_v50  ;;  %v2103_v26 = vadd.f32 0.041666668, %v2087_v24 }
 0x3aa   : > { %v2896_v12 = vadd.f32 0.5, %v2880_v25  ;;  %v2775_v11 = vmul.f32 325.9493, %v2759_v13  ;;  %v13613_v47 = vfloor.f32 %v2899_v10  ;;  %v13615_v22 = vmul.f32 0.0030694604, %v2853_v58  ;;  %16719 = vst [vmem:[#allocation69_spill] sm:$0xff] %v13618_v9 }
 0x3ab   : > { %v2104_v39 = vadd.f32 0.041666668, %v2088_v20  ;;  %v2025_v1 = vsub.f32 %v13366_v23, %v2009_v18  ;;  %v2231_v48 = vsub.f32 %v13499_v59, %v2215_v60  ;;  %v2975_v40 = vmul.f32 2.4801588e-05, %v13603_v16 }
 0x3ac   : > { %v13622_v41 = vmul.f32 0.0030694604, %v2854_v17  ;;  %v2791_v24 = vfloor.f32 %v2775_v11  ;;  %v3022_v53 = vadd.f32 0.041666668, %v3006_v61  ;;  %v2200_v0 = vfloor.f32 %v2184_v29 }
 0x3ad   : > { %v2041_v25 = vmul.f32 %v2025_v1, %v2025_v1  ;;  %v2201_v13 = vfloor.f32 %v2185_v55  ;;  %v2900_v10 = vadd.f32 0.5, %v2884_v3  ;;  %v2119_v58 = vmul.f32 %v2103_v26, %v13548_v36 }
 0x3ae   : > { %v13625_v4 = vfloor.f32 %v2896_v12  ;;  %v2807_v20 = vmul.f32 0.00048828125, %v2791_v24  ;;  %v2931_v23 = vmul.f32 3.1415927, %v13613_v47  ;;  %v2885_v18 = vmul.f32 0.31830987, %v13615_v22 }
 0x3af   : > { %v2120_v59 = vmul.f32 %v2104_v39, %v13569_v63  ;;  %v2057_v60 = vmul.f32 2.4801588e-05, %v2041_v25  ;;  %v13630_v17 = vmul.f32 2.0, %v2231_v48  ;;  %v2991_v11 = vadd.f32 -0.0013888889, %v2975_v40 }
 0x3b0   : > { %v2886_v61 = vmul.f32 0.31830987, %v13622_v41  ;;  %v2823_v29 = vfloor.f32 %v2807_v20  ;;  %v3038_v3 = vmul.f32 %v3022_v53, %v13557_v35  ;;  %v2216_v55 = vmul.f32 2.0, %v2200_v0  ;;  %v13638_v40 = vpop.trf.xlu1  ;;  %v2336_v0 = vpop.trf.xlu0 }
 0x3b1   : > { %v2073_v26 = vadd.f32 -0.0013888889, %v2057_v60  ;;  %v2217_v12 = vmul.f32 2.0, %v2201_v13  ;;  %v13634_v1 = vfloor.f32 %v2900_v10  ;;  %v2135_v9 = vadd.f32 -0.5, %v2119_v58  ;;  %16720 = vst [vmem:[#allocation101_spill] sm:$0xff] %v13638_v40 }
 0x3b2   : > { %v2928_v19 = vmul.f32 3.1415927, %v13625_v4  ;;  %v2839_v28 = vmul.f32 2048.0, %v2823_v29  ;;  %v2901_v33 = vadd.f32 0.5, %v2885_v18  ;;  %v2136_v39 = vadd.f32 -0.5, %v2120_v59 }
 0x3b3   : > { %v2089_v37 = vmul.f32 %v2073_v26, %v2041_v25  ;;  %v2881_v48 = vmul.f32 0.31830987, %v13527_v15  ;;  %v2947_v20 = vsub.f32 %v13561_v57, %v2931_v23  ;;  %v3007_v53 = vmul.f32 %v2991_v11, %v13603_v16 }
 0x3b4   : > { %v2902_v60 = vadd.f32 0.5, %v2886_v61  ;;  %v2855_v13 = vsub.f32 %v2791_v24, %v2839_v28  ;;  %v3103_v10 = vmul.f32 0.5, %v13559_v6  ;;  %v2232_v58 = vsub.f32 %v13542_v56, %v2216_v55 }
 0x3b5   : > { %v2105_v34 = vadd.f32 0.041666668, %v2089_v37  ;;  %v2233_v18 = vsub.f32 %v13599_v50, %v2217_v12  ;;  %v2932_v59 = vmul.f32 3.1415927, %v13634_v1  ;;  %v2151_v29 = vmul.f32 %v2135_v9, %v13548_v36 }
 0x3b6   : > { %v2944_v26 = vsub.f32 %v13508_v54, %v2928_v19  ;;  %v2882_v57 = vmul.f32 0.31830987, %v13555_v52  ;;  %v13649_v23 = vfloor.f32 %v2901_v33  ;;  %v2152_v11 = vmul.f32 %v2136_v39, %v13569_v63 }
 0x3b7   : > { %v2121_v28 = vmul.f32 %v2105_v34, %v2041_v25  ;;  %v2897_v24 = vadd.f32 0.5, %v2881_v48  ;;  %v3023_v61 = vadd.f32 0.041666668, %v3007_v53  ;;  %v13652_v40 = vfloor.f32 %v2902_v60 }
 0x3b8   : > { %v13654_v37 = vmul.f32 0.0030694604, %v2855_v13  ;;  %v2898_v56 = vadd.f32 0.5, %v2882_v57  ;;  %v3054_v50 = vadd.f32 -0.5, %v3038_v3  ;;  %v2248_v55 = vmul.f32 2.0, %v2232_v58  ;;  %v13664_v53 = vpop.trf.xlu1 }
 0x3b9   : > { %v2137_v12 = vadd.f32 -0.5, %v2121_v28  ;;  %v2249_v36 = vmul.f32 2.0, %v2233_v18  ;;  %v2948_v19 = vsub.f32 %v13589_v45, %v2932_v59  ;;  %v3119_v54 = vfloor.f32 %v3103_v10  ;;  %16721 = vst [vmem:[#allocation102_spill] sm:$0xff] %v13664_v53  ;;  %v2337_v28 = vpop.trf.xlu0 }
 0x3ba   : > { %v13657_v9 = vmul.f32 %v2944_v26, %v2944_v26  ;;  %v13659_v33 = vfloor.f32 %v2898_v56  ;;  %v2933_v34 = vmul.f32 3.1415927, %v13649_v23  ;;  %v2168_v63 = vadd.f32 1.0, %v2152_v11 }
 0x3bb   : > { %v2153_v39 = vmul.f32 %v2137_v12, %v2041_v25  ;;  %v13662_v48 = vfloor.f32 %v2897_v24  ;;  %v2167_v60 = vadd.f32 1.0, %v2151_v29  ;;  %v3039_v3 = vmul.f32 %v3023_v61, %v13603_v16 }
 0x3bc   : > { %v2934_v13 = vmul.f32 3.1415927, %v13652_v40  ;;  %v2887_v45 = vmul.f32 0.31830987, %v13654_v37  ;;  %v2264_v10 = vsub.f32 1.0, %v2248_v55  ;;  %v2265_v18 = vsub.f32 1.0, %v2249_v36 }
 0x3bd   : > { %v2169_v58 = vadd.f32 1.0, %v2153_v39  ;;  %v2930_v59 = vmul.f32 3.1415927, %v13659_v33  ;;  %v3070_v26 = vmul.f32 %v3054_v50, %v13557_v35  ;;  %v2263_v25 = vsub.f32 1.0, %v13630_v17 }
 0x3be   : > { %v3135_v57 = vmul.f32 2.0, %v3119_v54  ;;  %v2976_v11 = vmul.f32 2.4801588e-05, %v13657_v9  ;;  %v2949_v29 = vsub.f32 %v13615_v22, %v2933_v34  ;;  %v2280_v24 = vmul.f32 %v2264_v10, %v2168_v63 }
 0x3bf   : > { %v2281_v61 = vmul.f32 %v2265_v18, %v2169_v58  ;;  %v2929_v56 = vmul.f32 3.1415927, %v13662_v48  ;;  %v13675_v12 = vmul.f32 %v2948_v19, %v2948_v19  ;;  %v3055_v55 = vadd.f32 -0.5, %v3039_v3 }
 0x3c0   : > { %v2950_v36 = vsub.f32 %v13622_v41, %v2934_v13  ;;  %v2903_v39 = vadd.f32 0.5, %v2887_v45  ;;  %v2279_v53 = vmul.f32 %v2263_v25, %v2167_v60  ;;  %v2352_v35 = vmul.f32 %v2336_v0, %v2280_v24 }
 0x3c1   : > { %v2353_v50 = vmul.f32 %v2337_v28, %v2281_v61  ;;  %v2946_v17 = vsub.f32 %v13555_v52, %v2930_v59  ;;  %v13679_v54 = vmul.f32 %v2947_v20, %v2947_v20  ;;  %v16722_v22 = vsub.f32 %v13506_v2, %v13591_v7 }
 0x3c2   : > { %v3151_v63 = vsub.f32 %v13559_v6, %v3135_v57  ;;  %v2992_v10 = vadd.f32 -0.0013888889, %v2976_v11  ;;  %v2351_v19 = vmul.f32 %v13611_v27, %v2279_v53  ;;  %v13686_v3 = vmul.f32 %v2949_v29, %v2949_v29  ;;  %v13700_v53 = vpop.trf.xlu1 }
 0x3c3   : > { %v3166_v34 = vmul.f32 2.0, %v16722_v22  ;;  %v2361_v41 = vpack.c.bf16 %v2353_v50, %v2352_v35  ;;  %v2945_v60 = vsub.f32 %v13527_v15, %v2929_v56  ;;  %v3086_v0 = vadd.f32 1.0, %v3070_v26 }
 0x3c4   : > { %v3071_v13 = vmul.f32 %v3055_v55, %v13603_v16  ;;  %v13690_v52 = vmul.f32 %v2950_v36, %v2950_v36  ;;  %v13692_v20 = vfloor.f32 %v2903_v39  ;;  %v3021_v2 = vadd.f32 0.041666668, %v13582_v46 }
 0x3c5   : > { %v2350_v6 = vmul.f32 %v13571_v38, %v13587_v21  ;;  %2362 = vmatpush.bf16.msra.mxu2 %v2361_v41  ;;  %v13697_v7 = vmul.f32 %v2946_v17, %v2946_v17  ;;  %v2980_v27 = vmul.f32 2.4801588e-05, %v13675_v12  ;;  %v3182_v15 = vsub.f32 1.0, %v3166_v34 }
 0x3c6   : > { %v3167_v45 = vmul.f32 2.0, %v3151_v63  ;;  %v3008_v16 = vmul.f32 %v2992_v10, %v13657_v9  ;;  %v3104_v58 = vmul.f32 0.5, %v13625_v4  ;;  %v13704_v18 = vmul.f32 %v2945_v60, %v2945_v60 }
 0x3c7   : > { %v2360_v59 = vpack.c.bf16 %v2351_v19, %v2350_v6  ;;  %v2979_v46 = vmul.f32 2.4801588e-05, %v13679_v54  ;;  %v2981_v21 = vmul.f32 2.4801588e-05, %v13686_v3  ;;  %v3198_v38 = vmul.f32 %v3182_v15, %v3086_v0 }
 0x3c8   : > { %v3087_v26 = vadd.f32 1.0, %v3071_v13  ;;  %v2935_v25 = vmul.f32 3.1415927, %v13692_v20  ;;  %v2982_v57 = vmul.f32 2.4801588e-05, %v13690_v52  ;;  %v3117_v11 = vfloor.f32 %v13546_v49 }
 0x3c9   : > { %2363 = vmatpush.bf16.msra.mxu2 %v2360_v59  ;;  %v2978_v28 = vmul.f32 2.4801588e-05, %v13697_v7  ;;  %v2996_v29 = vadd.f32 -0.0013888889, %v2980_v27  ;;  %v2997_v24 = vadd.f32 -0.0013888889, %v2981_v21  ;;  %v13713_v61 = vmul.f32 %v3021_v2, %v13529_v42 }
 0x3ca   : > { %v3024_v56 = vadd.f32 0.041666668, %v3008_v16  ;;  %v3120_v55 = vfloor.f32 %v3104_v58  ;;  %v2998_v36 = vadd.f32 -0.0013888889, %v2982_v57  ;;  %v3183_v39 = vsub.f32 1.0, %v3167_v45  ;;  %v13734_v15 = vpop.trf.xlu1 }
 0x3cb   : > { %v2977_v35 = vmul.f32 2.4801588e-05, %v13704_v18  ;;  %v2359_v50 = vpack.c.bf16 %v13565_v30, %v13516_v44  ;;  %v2995_v17 = vadd.f32 -0.0013888889, %v2979_v46  ;;  %v13719_v22 = vmul.f32 %v13496_v5, %v3198_v38 }
 0x3cc   : > { %v2951_v34 = vsub.f32 %v13654_v37, %v2935_v25  ;;  %v3013_v63 = vmul.f32 %v2997_v24, %v13686_v3  ;;  %v3014_v10 = vmul.f32 %v2998_v36, %v13690_v52  ;;  %v3199_v19 = vmul.f32 %v3183_v39, %v3087_v26 }
 0x3cd   : > { %2364 = vmatpush.bf16.msra.mxu2 %v2359_v50  ;;  %v2994_v41 = vadd.f32 -0.0013888889, %v2978_v28  ;;  %v3012_v60 = vmul.f32 %v2996_v29, %v13675_v12  ;;  %v3110_v0 = vmul.f32 0.5, %v13652_v40  ;;  %v3040_v13 = vmul.f32 %v3024_v56, %v13657_v9 }
 0x3ce   : > { %v13727_v44 = vmul.f32 2.0, %v3120_v55  ;;  %v3109_v5 = vmul.f32 0.5, %v13649_v23  ;;  %v3030_v30 = vadd.f32 0.041666668, %v3014_v10  ;;  %v2993_v2 = vadd.f32 -0.0013888889, %v2977_v35 }
 0x3cf   : > { %v3105_v37 = vmul.f32 0.5, %v13662_v48  ;;  %v2358_v6 = vpack.c.bf16 %v13451_v8, %v13436_v32  ;;  %v3011_v27 = vmul.f32 %v2995_v17, %v13679_v54  ;;  %v13736_v45 = vmul.f32 %v2951_v34, %v2951_v34 }
 0x3d0   : > { %v3108_v16 = vmul.f32 0.5, %v13634_v1  ;;  %v3029_v58 = vadd.f32 0.041666668, %v3013_v63  ;;  %v3126_v59 = vfloor.f32 %v3110_v0  ;;  %v13740_v46 = vmul.f32 %v13533_v43, %v3199_v19 }
 0x3d1   : > { %v3010_v21 = vmul.f32 %v2994_v41, %v13697_v7  ;;  %2365 = vmatpush.bf16.msra.mxu2 %v2358_v6  ;;  %v3107_v38 = vmul.f32 0.5, %v13613_v47  ;;  %v3028_v26 = vadd.f32 0.041666668, %v3012_v60  ;;  %v13744_v32 = vadd.f32 -0.5, %v3040_v13 }
 0x3d2   : > { %v3106_v8 = vmul.f32 0.5, %v13659_v33  ;;  %v3125_v25 = vfloor.f32 %v3109_v5  ;;  %v3046_v57 = vmul.f32 %v3030_v30, %v13690_v52  ;;  %v3009_v28 = vmul.f32 %v2993_v2, %v13704_v18 }
 0x3d3   : > { %v3121_v29 = vfloor.f32 %v3105_v37  ;;  %v2357_v43 = vpack.c.bf16 %v13392_v62, %v13384_v14  ;;  %v3027_v24 = vadd.f32 0.041666668, %v3011_v27  ;;  %v3124_v56 = vfloor.f32 %v3108_v16  ;;  %v3262_v16 = vpop.trf.xlu1 }
 0x3d4   : > { %v3045_v55 = vmul.f32 %v3029_v58, %v13686_v3  ;;  %v3142_v36 = vmul.f32 2.0, %v3126_v59  ;;  %v2983_v39 = vmul.f32 2.4801588e-05, %v13736_v45  ;;  %v3026_v35 = vadd.f32 0.041666668, %v3010_v21 }
 0x3d5   : > { %2366 = vmatpush.bf16.msra.mxu2 %v2357_v43  ;;  %v3123_v50 = vfloor.f32 %v3107_v38  ;;  %v3044_v17 = vmul.f32 %v3028_v26, %v13675_v12  ;;  %v3111_v34 = vmul.f32 0.5, %v13692_v20  ;;  %v3122_v63 = vfloor.f32 %v3106_v8  ;;  %v16723_v8 = vld [vmem:[#allocation76_spill] sm:$0xff] }
 0x3d6   : > { %v3141_v10 = vmul.f32 2.0, %v3125_v25  ;;  %v3062_v19 = vadd.f32 -0.5, %v3046_v57  ;;  %v2999_v41 = vadd.f32 -0.0013888889, %v2983_v39  ;;  %v3025_v60 = vadd.f32 0.041666668, %v3009_v28 }
 0x3d7   : > { %v3043_v14 = vmul.f32 %v3027_v24, %v13679_v54  ;;  %v2356_v62 = vpack.c.bf16 %v13355_v51, %v13332_v31  ;;  %v3127_v0 = vfloor.f32 %v3111_v34  ;;  %v3140_v13 = vmul.f32 2.0, %v3124_v56 }
 0x3d8   : > { %v3061_v5 = vadd.f32 -0.5, %v3045_v55  ;;  %v3158_v30 = vsub.f32 %v13652_v40, %v3142_v36  ;;  %v3015_v2 = vmul.f32 %v2999_v41, %v13736_v45  ;;  %v3042_v37 = vmul.f32 %v3026_v35, %v13697_v7  ;;  %v16724_v40 = vld [vmem:[#allocation82_spill] sm:$0xff] }
 0x3d9   : > { %v3139_v6 = vmul.f32 2.0, %v3123_v50  ;;  %2367 = vmatpush.bf16.msra.mxu2 %v2356_v62  ;;  %v3060_v27 = vadd.f32 -0.5, %v3044_v17  ;;  %v3143_v58 = vmul.f32 2.0, %v3127_v0  ;;  %v3138_v59 = vmul.f32 2.0, %v3122_v63  ;;  %v16726_v63 = vld [vmem:[#allocation36_spill] sm:$0xff] }
 0x3da   : > { %v3157_v21 = vsub.f32 %v13649_v23, %v3141_v10  ;;  %v3078_v38 = vmul.f32 %v3062_v19, %v13690_v52  ;;  %v3031_v31 = vadd.f32 0.041666668, %v3015_v2  ;;  %v3041_v51 = vmul.f32 %v3025_v60, %v13704_v18 }
 0x3db   : > { %v3059_v26 = vadd.f32 -0.5, %v3043_v14  ;;  %v2355_v25 = vpack.c.bf16 %v16724_v40, %v16723_v8  ;;  %v3159_v57 = vsub.f32 %v13692_v20, %v3143_v58  ;;  %v3156_v28 = vsub.f32 %v13634_v1, %v3140_v13  ;;  %v16730_v40 = vld [vmem:[#allocation99_spill] sm:$0xff] }
 0x3dc   : > { %v3077_v43 = vmul.f32 %v3061_v5, %v13686_v3  ;;  %v3174_v24 = vmul.f32 2.0, %v3158_v30  ;;  %v3047_v56 = vmul.f32 %v3031_v31, %v13736_v45  ;;  %v3137_v55 = vmul.f32 2.0, %v3121_v29  ;;  %v16725_v3 = vld [vmem:[#allocation74_spill] sm:$0xff] }
 0x3dd   : > { %v3058_v23 = vadd.f32 -0.5, %v3042_v37  ;;  %v3155_v52 = vsub.f32 %v13613_v47, %v3139_v6  ;;  %2368 = vmatpush.bf16.msra.mxu2 %v2355_v25  ;;  %v3076_v36 = vmul.f32 %v3060_v27, %v13675_v12  ;;  %v3173_v39 = vmul.f32 2.0, %v3157_v21  ;;  %v3263_v6 = vpop.trf.xlu1  ;;  %v16727_v27 = vld [vmem:[#allocation51_spill] sm:$0xff] }
 0x3de   : > { %v3094_v35 = vadd.f32 1.0, %v3078_v38  ;;  %v3063_v50 = vadd.f32 -0.5, %v3047_v56  ;;  %v3175_v17 = vmul.f32 2.0, %v3159_v57  ;;  %v3057_v34 = vadd.f32 -0.5, %v3041_v51 }
 0x3df   : > { %v3154_v20 = vsub.f32 %v13659_v33, %v3138_v59  ;;  %v3075_v1 = vmul.f32 %v3059_v26, %v13679_v54  ;;  %v2354_v10 = vpack.c.bf16 %v16726_v63, %v16725_v3  ;;  %v3172_v19 = vmul.f32 2.0, %v3156_v28  ;;  %v16738_v3 = vld [vmem:[#allocation94_spill] sm:$0xff] }
 0x3e0   : > { %v3093_v29 = vadd.f32 1.0, %v3077_v43  ;;  %v3190_v41 = vsub.f32 1.0, %v3174_v24  ;;  %v3079_v47 = vmul.f32 %v3063_v50, %v13736_v45  ;;  %v3153_v60 = vsub.f32 %v13662_v48, %v3137_v55  ;;  %v16728_v48 = vld [vmem:[#allocation37_spill] sm:$0xff]  ;;  %v16737_v50 = vld [vmem:[#allocation50_spill] sm:$0xff] }
 0x3e1   : > { %v3074_v12 = vmul.f32 %v3058_v23, %v13697_v7  ;;  %v3171_v14 = vmul.f32 2.0, %v3155_v52  ;;  %v3092_v62 = vadd.f32 1.0, %v3076_v36  ;;  %2369 = vmatpush.bf16.msra.mxu2 %v2354_v10  ;;  %v3189_v0 = vsub.f32 1.0, %v3173_v39  ;;  %v16732_v23 = vld [vmem:[#allocation85_spill] sm:$0xff]  ;;  %v16734_v52 = vld [vmem:[#allocation96_spill] sm:$0xff] }
 0x3e2   : > { %v3206_v13 = vmul.f32 %v3190_v41, %v3094_v35  ;;  %v3095_v33 = vadd.f32 1.0, %v3079_v47  ;;  %v3191_v5 = vsub.f32 1.0, %v3175_v17  ;;  %v3152_v54 = vsub.f32 %v13625_v4, %v13727_v44  ;;  %v16740_v10 = vld [vmem:[#allocation97_spill] sm:$0xff] }
 0x3e3   : > { %v3073_v30 = vmul.f32 %v3057_v34, %v13704_v18  ;;  %v3170_v2 = vmul.f32 2.0, %v3154_v20  ;;  %v3091_v37 = vadd.f32 1.0, %v3075_v1  ;;  %v3188_v45 = vsub.f32 1.0, %v3172_v19 }
 0x3e4   : > { %v16729_v58 = vpack.c.bf16 %v16727_v27, %v16728_v48  ;;  %v3205_v7 = vmul.f32 %v3189_v0, %v3093_v29  ;;  %v3207_v59 = vmul.f32 %v3191_v5, %v3095_v33  ;;  %v3283_v21 = vpack.c.bf16 %v13740_v46, %v13719_v22  ;;  %v16741_v29 = vld [vmem:[#allocation88_spill] sm:$0xff]  ;;  %v16744_v33 = vld [vmem:[#allocation90_spill] sm:$0xff]  ;;  %v16772_v46 = vld [vmem:[#allocation61_spill] sm:$0xff] }
 0x3e5   : > { %v3133_v38 = vmul.f32 2.0, %v3117_v11  ;;  %v3072_v4 = vmul.f32 %v13744_v32, %v13657_v9  ;;  %v3169_v18 = vmul.f32 2.0, %v3153_v60  ;;  %v3187_v44 = vsub.f32 1.0, %v3171_v14  ;;  %v16733_v9 = vld [vmem:[#allocation93_spill] sm:$0xff]  ;;  %v16742_v14 = vld [vmem:[#allocation102_spill] sm:$0xff] }
 0x3e6   : > { %2370 = vmatmul.bf16.vlgmr.msra.gmra.mxu2 %v16729_v58  ;;  %v3090_v31 = vadd.f32 1.0, %v3074_v12  ;;  %v3204_v51 = vmul.f32 %v3188_v45, %v3092_v62  ;;  %v3278_v26 = vmul.f32 %v3262_v16, %v3206_v13  ;;  %v3279_v8 = vmul.f32 %v3263_v6, %v3207_v59  ;;  %v16736_v16 = vld [vmem:[#allocation100_spill] sm:$0xff]  ;;  %v16743_v13 = vld [vmem:[#allocation79_spill] sm:$0xff] }
 0x3e7   : > { %v16731_v25 = vfloor.f32 %v16730_v40  ;;  %v3053_v28 = vadd.f32 -0.5, %v13713_v61  ;;  %v3168_v43 = vmul.f32 2.0, %v3152_v54  ;;  %v3186_v24 = vsub.f32 1.0, %v3170_v2  ;;  %v16745_v54 = vld [vmem:[#allocation89_spill] sm:$0xff]  ;;  %v16748_v45 = vld [vmem:[#allocation95_spill] sm:$0xff]  ;;  %v16750_v59 = vld [vmem:[#allocation84_spill] sm:$0xff] }
 0x3e8   : > { %v3089_v56 = vadd.f32 1.0, %v3073_v30  ;;  %v3203_v55 = vmul.f32 %v3187_v44, %v3091_v37  ;;  %v3277_v49 = vmul.f32 %v13734_v15, %v3205_v7  ;;  %v3287_v11 = vpack.c.bf16 %v3279_v8, %v3278_v26  ;;  %v16747_v37 = vld [vmem:[#allocation81_spill] sm:$0xff]  ;;  %v16754_v26 = vld [vmem:[#allocation86_spill] sm:$0xff] }
 0x3e9   : > { %v3132_v57 = vmul.f32 2.0, %v16731_v25  ;;  %v3034_v32 = vmul.f32 %v16733_v9, %v16732_v23  ;;  %v16735_v36 = vfloor.f32 %v16734_v52  ;;  %v3052_v35 = vadd.f32 -0.5, %v16736_v16  ;;  %v16749_v7 = vld [vmem:[#allocation101_spill] sm:$0xff]  ;;  %v16757_v52 = vld [vmem:[#allocation70_spill] sm:$0xff] }
 0x3ea   : > { %v3149_v17 = vsub.f32 %v16737_v50, %v3133_v38  ;;  %v3088_v34 = vadd.f32 1.0, %v3072_v4  ;;  %v3185_v20 = vsub.f32 1.0, %v3169_v18  ;;  %v3202_v61 = vmul.f32 %v3186_v24, %v3090_v31  ;;  %3288 = vmatpush.bf16.msrb.mxu2 %v3287_v11  ;;  %v16752_v18 = vld [vmem:[#allocation91_spill] sm:$0xff]  ;;  %v16753_v31 = vld [vmem:[#allocation78_spill] sm:$0xff] }
 0x3eb   : > { %v3131_v39 = vmul.f32 2.0, %v16735_v36  ;;  %v3276_v1 = vmul.f32 %v13700_v53, %v3204_v51  ;;  %v16739_v63 = vfloor.f32 %v16738_v3  ;;  %v3051_v19 = vadd.f32 -0.5, %v16740_v10  ;;  %v16761_v3 = vld [vmem:[#allocation38_spill] sm:$0xff] }
 0x3ec   : > { %v3148_v41 = vsub.f32 %v16741_v29, %v3132_v57  ;;  %v3069_v47 = vmul.f32 %v3053_v28, %v13529_v42  ;;  %v3184_v60 = vsub.f32 1.0, %v3168_v43  ;;  %v3201_v12 = vmul.f32 %v3185_v20, %v3089_v56  ;;  %v16755_v57 = vld [vmem:[#allocation69_spill] sm:$0xff] }
 0x3ed   : > { %v3130_v15 = vmul.f32 2.0, %v16739_v63  ;;  %v3275_v62 = vmul.f32 %v16742_v14, %v3203_v55  ;;  %v3286_v0 = vpack.c.bf16 %v3277_v49, %v3276_v1  ;;  %v3032_v5 = vmul.f32 %v16744_v33, %v16743_v13  ;;  %v16756_v56 = vld [vmem:[#allocation53_spill] sm:$0xff]  ;;  %v16760_v1 = vld [vmem:[#allocation52_spill] sm:$0xff] }
 0x3ee   : > { %v16746_v53 = vfloor.f32 %v16745_v54  ;;  %v3050_v2 = vadd.f32 -0.5, %v3034_v32  ;;  %v3147_v6 = vsub.f32 %v16747_v37, %v3131_v39  ;;  %v3068_v27 = vmul.f32 %v3052_v35, %v16748_v45  ;;  %v16758_v39 = vld [vmem:[#allocation49_spill] sm:$0xff]  ;;  %v16759_v35 = vld [vmem:[#allocation80_spill] sm:$0xff]  ;;  %v16765_v37 = vld [vmem:[#allocation87_spill] sm:$0xff] }
 0x3ef   : > { %v3165_v48 = vmul.f32 2.0, %v3149_v17  ;;  %v3200_v58 = vmul.f32 %v3184_v60, %v3088_v34  ;;  %v3274_v42 = vmul.f32 %v16749_v7, %v3202_v61  ;;  %3289 = vmatpush.bf16.msrb.mxu2 %v3286_v0  ;;  %v16751_v38 = vfloor.f32 %v16750_v59  ;;  %v16767_v7 = vld [vmem:[#allocation77_spill] sm:$0xff] }
 0x3f0   : > { %v3129_v30 = vmul.f32 2.0, %v16746_v53  ;;  %v3049_v44 = vadd.f32 -0.5, %v16752_v18  ;;  %v3146_v51 = vsub.f32 %v16753_v31, %v3130_v15  ;;  %v3067_v8 = vmul.f32 %v3051_v19, %v16754_v26  ;;  %v16764_v53 = vld [vmem:[#allocation92_spill] sm:$0xff]  ;;  %v16769_v18 = vld [vmem:[#allocation54_spill] sm:$0xff] }
 0x3f1   : > { %v3128_v4 = vmul.f32 2.0, %v16751_v38  ;;  %v3164_v40 = vmul.f32 2.0, %v3148_v41  ;;  %v3085_v25 = vadd.f32 1.0, %v3069_v47  ;;  %v3273_v28 = vmul.f32 %v16755_v57, %v3201_v12  ;;  %v16768_v38 = vld [vmem:[#allocation75_spill] sm:$0xff]  ;;  %v16775_v26 = vld [vmem:[#allocation62_spill] sm:$0xff] }
 0x3f2   : > { %v3285_v43 = vpack.c.bf16 %v3275_v62, %v3274_v42  ;;  %v3048_v24 = vadd.f32 -0.5, %v3032_v5  ;;  %v3145_v55 = vsub.f32 %v16756_v56, %v3129_v30  ;;  %v3066_v49 = vmul.f32 %v3050_v2, %v16732_v23  ;;  %v16763_v62 = vld [vmem:[#allocation98_spill] sm:$0xff] }
 0x3f3   : > { %v3163_v11 = vmul.f32 2.0, %v3147_v6  ;;  %v3084_v9 = vadd.f32 1.0, %v3068_v27  ;;  %v3181_v32 = vsub.f32 1.0, %v3165_v48  ;;  %v3272_v36 = vmul.f32 %v16757_v52, %v3200_v58  ;;  %v16766_v48 = vld [vmem:[#allocation83_spill] sm:$0xff]  ;;  %v16780_v56 = vld [vmem:[#allocation46_spill] sm:$0xff] }
 0x3f4   : > { %3290 = vmatpush.bf16.msrb.mxu2 %v3285_v43  ;;  %v3144_v16 = vsub.f32 %v16758_v39, %v3128_v4  ;;  %v3065_v50 = vmul.f32 %v3049_v44, %v16759_v35  ;;  %v3162_v17 = vmul.f32 2.0, %v3146_v51  ;;  %v3083_v34 = vadd.f32 1.0, %v3067_v8  ;;  %v16770_v44 = vld [vmem:[#allocation59_spill] sm:$0xff]  ;;  %v16776_v8 = vld [vmem:[#allocation44_spill] sm:$0xff]  ;;  %v16784_v35 = vld [vmem:[#allocation57_spill] sm:$0xff] }
 0x3f5   : > { %v3180_v20 = vsub.f32 1.0, %v3164_v40  ;;  %v3197_v61 = vmul.f32 %v3181_v32, %v3085_v25  ;;  %v16762_v63 = vpack.c.bf16 %v16760_v1, %v16761_v3  ;;  %v3284_v15 = vpack.c.bf16 %v3273_v28, %v3272_v36  ;;  %v16778_v25 = vld [vmem:[#allocation60_spill] sm:$0xff]  ;;  %v16779_v28 = vld [vmem:[#allocation63_spill] sm:$0xff]  ;;  %v16783_v36 = vld [vmem:[#allocation66_spill] sm:$0xff] }
 0x3f6   : > { %v3064_v23 = vmul.f32 %v3048_v24, %v16743_v13  ;;  %v3161_v10 = vmul.f32 2.0, %v3145_v55  ;;  %v3082_v19 = vadd.f32 1.0, %v3066_v49  ;;  %v3179_v29 = vsub.f32 1.0, %v3163_v11  ;;  %v16781_v49 = vld [vmem:[#allocation64_spill] sm:$0xff] }
 0x3f7   : > { %2375 = vmatmul.bf16.gmra.mxu2 %v16762_v63  ;;  %v3196_v41 = vmul.f32 %v3180_v20, %v3084_v9  ;;  %v3160_v47 = vmul.f32 2.0, %v3144_v16  ;;  %v3081_v60 = vadd.f32 1.0, %v3065_v50  ;;  %v3178_v12 = vsub.f32 1.0, %v3162_v17  ;;  %v16782_v32 = vld [vmem:[#allocation48_spill] sm:$0xff]  ;;  %v16785_v17 = vld [vmem:[#allocation55_spill] sm:$0xff] }
 0x3f8   : > { %3291 = vmatpush.bf16.msrb.mxu2 %v3284_v15  ;;  %v3195_v14 = vmul.f32 %v3179_v29, %v3083_v34  ;;  %v3269_v0 = vmul.f32 %v16763_v62, %v3197_v61  ;;  %v3080_v33 = vadd.f32 1.0, %v3064_v23  ;;  %v3177_v5 = vsub.f32 1.0, %v3161_v10  ;;  %v16786_v1 = vld [vmem:[#allocation40_spill] sm:$0xff]  ;;  %v16787_v15 = vld [vmem:[#allocation39_spill] sm:$0xff]  ;;  %v16788_v29 = vld [vmem:[#allocation58_spill] sm:$0xff] }
 0x3f9   : > { %v3194_v54 = vmul.f32 %v3178_v12, %v3082_v19  ;;  %v3268_v30 = vmul.f32 %v16764_v53, %v3196_v41  ;;  %v3176_v13 = vsub.f32 1.0, %v3160_v47  ;;  %v16771_v31 = vpack.c.bf16 %v16769_v18, %v16770_v44  ;;  %v16797_v44 = vld [vmem:[#allocation68_spill] sm:$0xff] }
 0x3fa   : > { %v3193_v2 = vmul.f32 %v3177_v5, %v3081_v60  ;;  %v3267_v6 = vmul.f32 %v16765_v37, %v3195_v14  ;;  %v16777_v40 = vpack.c.bf16 %v16775_v26, %v16776_v8  ;;  %v2293_v57 = vmul.f32 0.088388346, %v16778_v25  ;;  %v16789_v60 = vld [vmem:[#allocation56_spill] sm:$0xff] }
 0x3fb   : > { %v3282_v45 = vpack.c.bf16 %v3269_v0, %v3268_v30  ;;  %v3192_v27 = vmul.f32 %v3176_v13, %v3080_v33  ;;  %v3266_v58 = vmul.f32 %v16766_v48, %v3194_v54  ;;  %v2292_v43 = vmul.f32 0.088388346, %v16779_v28  ;;  %v16790_v0 = vld [vmem:[#allocation43_spill] sm:$0xff]  ;;  %v16791_v54 = vld [vmem:[#allocation42_spill] sm:$0xff] }
 0x3fc   : > { %3292 = vmatpush.bf16.msrb.mxu2 %v3283_v21  ;;  %v3265_v42 = vmul.f32 %v16767_v7, %v3193_v2  ;;  %v16773_v21 = vld [vmem:[#allocation41_spill] sm:$0xff]  ;;  %v2295_v55 = vmul.f32 0.088388346, %v16780_v56  ;;  %v2294_v11 = vmul.f32 0.088388346, %v16781_v49 }
 0x3fd   : > { %v3281_v59 = vpack.c.bf16 %v3267_v6, %v3266_v58  ;;  %v3264_v4 = vmul.f32 %v16768_v38, %v3192_v27  ;;  %v16774_v51 = vpack.c.bf16 %v16772_v46, %v16773_v21  ;;  %v2303_v24 = vpack.c.bf16 %v2293_v57, %v2292_v43  ;;  %v16792_v2 = vld [vmem:[#allocation65_spill] sm:$0xff]  ;;  %v16794_v58 = vld [vmem:[#allocation67_spill] sm:$0xff] }
 0x3fe   : > { %v2304_v9 = vpack.c.bf16 %v2295_v55, %v2294_v11  ;;  %v2297_v52 = vmul.f32 0.088388346, %v16782_v32  ;;  %v2296_v39 = vmul.f32 0.088388346, %v16783_v36  ;;  %v3209_v50 = vmul.f32 0.088388346, %v16784_v35 }
 0x3ff   : > { %v3280_v22 = vpack.c.bf16 %v3265_v42, %v3264_v4  ;;  %v3208_v34 = vmul.f32 0.088388346, %v16785_v17  ;;  %v3211_v3 = vmul.f32 0.088388346, %v16786_v1  ;;  %v3210_v23 = vmul.f32 0.088388346, %v16787_v15 }
 0x400   : > { %3293 = vmatpush.bf16.msrb.mxu2 %v3282_v45  ;;  %v2305_v16 = vpack.c.bf16 %v2297_v52, %v2296_v39  ;;  %v3213_v41 = vmul.f32 0.088388346, %v16788_v29  ;;  %v3212_v12 = vmul.f32 0.088388346, %v16789_v60  ;;  %v3215_v33 = vmul.f32 0.088388346, %v16790_v0 }
 0x401   : > { %v3224_v20 = vpack.c.bf16 %v3209_v50, %v3208_v34  ;;  %v3225_v10 = vpack.c.bf16 %v3211_v3, %v3210_v23  ;;  %v3214_v53 = vmul.f32 0.088388346, %v16791_v54  ;;  %v3217_v37 = vmul.f32 0.088388346, %v16792_v2  ;;  %v16793_v45 = vld [vmem:[#allocation45_spill] sm:$0xff]  ;;  %v16795_v42 = vld [vmem:[#allocation47_spill] sm:$0xff] }
 0x402   : > { %v3226_v14 = vpack.c.bf16 %v3213_v41, %v3212_v12  ;;  %v3216_v27 = vmul.f32 0.088388346, %v16793_v45  ;;  %v3219_v7 = vmul.f32 0.088388346, %v16794_v58  ;;  %v16796_v4 = vld [vmem:[#allocation72_spill] sm:$0xff]  ;;  %v16798_v46 = vld [vmem:[#allocation73_spill] sm:$0xff] }
 0x403   : > { %v3227_v30 = vpack.c.bf16 %v3215_v33, %v3214_v53  ;;  %v3221_v18 = vmul.f32 0.088388346, %v16796_v4  ;;  %v3223_v21 = vmul.f32 0.088388346, %v16798_v46 }
 0x404   : > { %3294 = vmatpush.bf16.msrb.mxu2 %v3281_v59  ;;  %v3228_v48 = vpack.c.bf16 %v3217_v37, %v3216_v27  ;;  %v3218_v59 = vmul.f32 0.088388346, %v16795_v42 }
 0x406   : > { %v3229_v38 = vpack.c.bf16 %v3219_v7, %v3218_v59 }
 0x407   : > { %2380 = vmatmul.bf16.gmra.mxu2 %v16771_v31  ;;  %v3220_v31 = vmul.f32 0.088388346, %v16797_v44 }
 0x408   : > { %3295 = vmatpush.bf16.msrb.mxu2 %v3280_v22 }
 0x409   : > { %v3230_v22 = vpack.c.bf16 %v3221_v18, %v3220_v31 }
 0x417   : > { %2385 = vmatmul.bf16.gmra.mxu2 %v16774_v51  ;;  %v16799_v51 = vld [vmem:[#allocation71_spill] sm:$0xff] }
 0x418   : > { %v3222_v26 = vmul.f32 0.088388346, %v16799_v51 }
 0x41a   : > { %v3231_v8 = vpack.c.bf16 %v3223_v21, %v3222_v26 }
 0x427   : > { %2390 = vmatmul.bf16.gmra.mxu2 %v16777_v40 }
 0x437   : > { %2395 = vmatmul.bf16.gmra.mxu2 %v2303_v24 }
 0x447   : > { %2400 = vmatmul.bf16.gmra.mxu2 %v2304_v9 }
 0x457   : > { %2405 = vmatmul.bf16.gmra.mxu2 %v2305_v16 }
 0x467   : > { %3296 = vmatmul.bf16.vlgmr.msrb.gmra.mxu2 %v3224_v20 }
 0x469   : > { %v2371_v61 = vpop.f32.mrf.mxu2 }
 0x46a   : > { %2411 = vmax.xlane.f32.xlu0 %v2371_v61 }
 0x471   : > { %v2373_v63 = vpop.f32.mrf.mxu2 }
 0x472   : > { %2413 = vmax.xlane.f32.xlu2 %v2373_v63 }
 0x477   : > { %3301 = vmatmul.bf16.gmra.mxu2 %v3225_v10 }
 0x47a   : > { %v2376_v19 = vpop.f32.mrf.mxu2 }
 0x47b   : > { %2415 = vmax.xlane.f32.xlu1 %v2376_v19 }
 0x482   : > { %v2378_v47 = vpop.f32.mrf.mxu2 }
 0x483   : > { %2417 = vmax.xlane.f32.xlu0 %v2378_v47 }
 0x487   : > { %3306 = vmatmul.bf16.gmra.mxu2 %v3226_v14 }
 0x48a   : > { %v2381_v62 = vpop.f32.mrf.mxu2 }
 0x48b   : > { %2419 = vmax.xlane.f32.xlu0 %v2381_v62 }
 0x492   : > { %v13861_v5 = vpop.f32.mrf.mxu2 }
 0x493   : > { %2421 = vmax.xlane.f32.xlu2 %v13861_v5 }
 0x497   : > { %3311 = vmatmul.bf16.gmra.mxu2 %v3227_v30 }
 0x49a   : > { %v13865_v13 = vpop.f32.mrf.mxu2 }
 0x49b   : > { %2423 = vmax.xlane.f32.xlu0 %v13865_v13 }
 0x4a2   : > { %v13869_v6 = vpop.f32.mrf.mxu2 }
 0x4a3   : > { %2425 = vmax.xlane.f32.xlu2 %v13869_v6 }
 0x4a7   : > { %3316 = vmatmul.bf16.gmra.mxu2 %v3228_v48 }
 0x4aa   : > { %v13879_v40 = vpop.f32.mrf.mxu2 }
 0x4b2   : > { %v13881_v43 = vpop.f32.mrf.mxu2 }
 0x4b7   : > { %3321 = vmatmul.bf16.gmra.mxu2 %v3229_v38 }
 0x4ba   : > { %v13886_v11 = vpop.f32.mrf.mxu2 }
 0x4c2   : > { %v13892_v16 = vpop.f32.mrf.mxu2 }
 0x4c7   : > { %3326 = vmatmul.bf16.gmra.mxu2 %v3230_v22 }
 0x4ca   : > { %v13900_v1 = vpop.f32.mrf.mxu2 }
 0x4d7   : > { %3331 = vmatmul.bf16.gmra.mxu2 %v3231_v8 }
 0x4dd   : > { %v2412_v25 = vpop.xlane.xlu0 %2411 }
 0x4de   : > { %v2443_v57 = vsub.f32 %v2371_v61, %v2412_v25 }
 0x4e0   : > { %v2459_v28 = vmul.f32 1.442695, %v2443_v57 }
 0x4e2   : > { %10396 = vpow2.f32 %v2459_v28 }
 0x4e5   : > { %v2414_v24 = vpop.xlane.xlu2 %2413 }
 0x4e6   : > { %v2444_v56 = vsub.f32 %v2373_v63, %v2414_v24 }
 0x4e8   : > { %v13883_v55 = vpop.eup %10396  ;;  %v2461_v49 = vmul.f32 1.442695, %v2444_v56 }
 0x4e9   : > { %2491 = vadd.xlane.f32.xlu0 %v13883_v55 }
 0x4ea   : > { %10398 = vpow2.f32 %v2461_v49 }
 0x4ee   : > { %v2416_v9 = vpop.xlane.xlu1 %2415 }
 0x4ef   : > { %v2445_v32 = vsub.f32 %v2376_v19, %v2416_v9  ;;  %v13909_v19 = vpop.f32.mrf.mxu2 }
 0x4f0   : > { %v13888_v52 = vpop.eup %10398 }
 0x4f1   : > { %v2463_v36 = vmul.f32 1.442695, %v2445_v32  ;;  %2493 = vadd.xlane.f32.xlu2 %v13888_v52  ;;  %2427 = vmax.xlane.f32.xlu0 %v13879_v40 }
 0x4f3   : > { %10400 = vpow2.f32 %v2463_v36 }
 0x4f6   : > { %v2418_v39 = vpop.xlane.xlu0 %2417 }
 0x4f7   : > { %v2446_v35 = vsub.f32 %v2378_v47, %v2418_v39  ;;  %v13917_v12 = vpop.f32.mrf.mxu2 }
 0x4f9   : > { %v13894_v50 = vpop.eup %10400  ;;  %v2465_v17 = vmul.f32 1.442695, %v2446_v35  ;;  %2429 = vmax.xlane.f32.xlu2 %v13881_v43 }
 0x4fa   : > { %2495 = vadd.xlane.f32.xlu0 %v13894_v50 }
 0x4fb   : > { %10402 = vpow2.f32 %v2465_v17 }
 0x4fe   : > { %v2420_v34 = vpop.xlane.xlu0 %2419 }
 0x4ff   : > { %v2447_v20 = vsub.f32 %v2381_v62, %v2420_v34 }
 0x501   : > { %v13898_v61 = vpop.eup %10402  ;;  %v2467_v3 = vmul.f32 1.442695, %v2447_v20 }
 0x502   : > { %2497 = vadd.xlane.f32.xlu2 %v13898_v61  ;;  %2431 = vmax.xlane.f32.xlu0 %v13886_v11 }
 0x503   : > { %10404 = vpow2.f32 %v2467_v3 }
 0x506   : > { %v2422_v63 = vpop.xlane.xlu2 %2421 }
 0x507   : > { %v2448_v15 = vsub.f32 %v13861_v5, %v2422_v63  ;;  %v13924_v5 = vpop.f32.mrf.mxu2 }
 0x509   : > { %v13905_v23 = vpop.eup %10404  ;;  %v2469_v10 = vmul.f32 1.442695, %v2448_v15 }
 0x50a   : > { %2499 = vadd.xlane.f32.xlu0 %v13905_v23  ;;  %2433 = vmax.xlane.f32.xlu2 %v13892_v16 }
 0x50b   : > { %10406 = vpow2.f32 %v2469_v10 }
 0x50e   : > { %v2424_v29 = vpop.xlane.xlu0 %2423 }
 0x50f   : > { %v2449_v41 = vsub.f32 %v13865_v13, %v2424_v29  ;;  %v13930_v53 = vpop.f32.mrf.mxu2 }
 0x511   : > { %v13912_v47 = vpop.eup %10406  ;;  %v2471_v60 = vmul.f32 1.442695, %v2449_v41 }
 0x512   : > { %2501 = vadd.xlane.f32.xlu1 %v13912_v47  ;;  %2435 = vmax.xlane.f32.xlu2 %v13900_v1 }
 0x513   : > { %10408 = vpow2.f32 %v2471_v60  ;;  %2437 = vmax.xlane.f32.xlu0 %v13909_v19 }
 0x516   : > { %v2426_v14 = vpop.xlane.xlu2 %2425 }
 0x517   : > { %v2450_v62 = vsub.f32 %v13869_v6, %v2426_v14  ;;  %v13933_v13 = vpop.f32.mrf.mxu2 }
 0x519   : > { %v13920_v0 = vpop.eup %10408  ;;  %v2473_v33 = vmul.f32 1.442695, %v2450_v62 }
 0x51a   : > { %2503 = vadd.xlane.f32.xlu1 %v13920_v0 }
 0x51b   : > { %10410 = vpow2.f32 %v2473_v33  ;;  %2439 = vmax.xlane.f32.xlu0 %v13917_v12 }
 0x51f   : > { %v13936_v45 = vpop.f32.mrf.mxu2 }
 0x521   : > { %v13926_v54 = vpop.eup %10410 }
 0x522   : > { %2505 = vadd.xlane.f32.xlu2 %v13926_v54  ;;  %2441 = vmax.xlane.f32.xlu1 %v13924_v5 }
 0x527   : > { %v13944_v22 = vpop.f32.mrf.mxu2 }
 0x52a   : > { %3337 = vmax.xlane.f32.xlu1 %v13930_v53 }
 0x52f   : > { %v13951_v57 = vpop.f32.mrf.mxu2 }
 0x537   : > { %v13960_v36 = vpop.f32.mrf.mxu2 }
 0x53f   : > { %v13973_v41 = vpop.f32.mrf.mxu2 }
 0x55c   : > { %v2492_v30 = vpop.xlane.xlu0 %2491 }
 0x55d   : > { %10412 = vrcp.f32 %v2492_v30  ;;  %v8659_v30 = vld [vmem:[#allocation11 + $0x150] sm:$0xf] }
 0x563   : > { %v10413_v48 = vpop.eup %10412 }
 0x564   : > { %v2494_v2 = vpop.xlane.xlu2 %2493  ;;  %v2428_v37 = vpop.xlane.xlu0 %2427  ;;  %v2539_v59 = vmul.f32 %v10413_v48, %v13883_v55 }
 0x565   : > { %10414 = vrcp.f32 %v2494_v2  ;;  %v2451_v6 = vsub.f32 %v13879_v40, %v2428_v37  ;;  %v9820_v2 = vld [vmem:[#allocation11 + $0x164] sm:$0xf0] }
 0x567   : > { %v2475_v27 = vmul.f32 1.442695, %v2451_v6  ;;  %v13984_v6 = vpop.f32.mrf.mxu2 }
 0x569   : > { %10416 = vpow2.f32 %v2475_v27  ;;  %v8660_v27 = vor.u32 %v9820_v2, %v8659_v30 }
 0x56b   : > { %v10415_v58 = vpop.eup %10414  ;;  %4818 = vmatpush.bf16.msrb.mxu0 %v8660_v27 }
 0x56c   : > { %v2430_v42 = vpop.xlane.xlu2 %2429  ;;  %v2540_v38 = vmul.f32 %v10415_v58, %v13888_v52 }
 0x56d   : > { %v2496_v7 = vpop.xlane.xlu0 %2495  ;;  %v2452_v4 = vsub.f32 %v13881_v43, %v2430_v42 }
 0x56e   : > { %v2555_v18 = vpack.c.bf16 %v2540_v38, %v2539_v59 }
 0x56f   : > { %v13941_v44 = vpop.eup %10416  ;;  %v2477_v31 = vmul.f32 1.442695, %v2452_v4 }
 0x570   : > { %2507 = vadd.xlane.f32.xlu2 %v13941_v44  ;;  %2619 = vmatmul.bf16.vlgmr.msra.gmra.mxu3 %v2555_v18  ;;  %v13995_v18 = vpop.f32.mrf.mxu2 }
 0x571   : > { %10418 = vpow2.f32 %v2477_v31 }
 0x572   : > { %10420 = vrcp.f32 %v2496_v7 }
 0x575   : > { %v2498_v46 = vpop.xlane.xlu2 %2497  ;;  %v2432_v21 = vpop.xlane.xlu0 %2431 }
 0x576   : > { %10422 = vrcp.f32 %v2498_v46  ;;  %v2453_v51 = vsub.f32 %v13886_v11, %v2432_v21  ;;  %v9814_v46 = vld [vmem:[#allocation11 + $0x134] sm:$0xf0] }
 0x577   : > { %v13947_v26 = vpop.eup %10418 }
 0x578   : > { %v2479_v8 = vmul.f32 1.442695, %v2453_v51  ;;  %2509 = vadd.xlane.f32.xlu0 %v13947_v26  ;;  %3339 = vmax.xlane.f32.xlu2 %v13933_v13  ;;  %v10421_v40 = vpop.eup %10420 }
 0x579   : > { %v2541_v24 = vmul.f32 %v10421_v40, %v13894_v50 }
 0x57a   : > { %10424 = vpow2.f32 %v2479_v8 }
 0x57c   : > { %v10423_v25 = vpop.eup %10422 }
 0x57d   : > { %v2500_v28 = vpop.xlane.xlu0 %2499  ;;  %v2434_v43 = vpop.xlane.xlu2 %2433  ;;  %v2542_v56 = vmul.f32 %v10423_v25, %v13898_v61 }
 0x57e   : > { %v2454_v55 = vsub.f32 %v13892_v16, %v2434_v43 }
 0x57f   : > { %v2556_v49 = vpack.c.bf16 %v2542_v56, %v2541_v24 }
 0x580   : > { %v13956_v11 = vpop.eup %10424  ;;  %v2481_v9 = vmul.f32 1.442695, %v2454_v55  ;;  %3341 = vmax.xlane.f32.xlu2 %v13936_v45 }
 0x581   : > { %2511 = vadd.xlane.f32.xlu0 %v13956_v11  ;;  %2624 = vmatmul.bf16.gmra.mxu3 %v2556_v49 }
 0x582   : > { %10426 = vpow2.f32 %v2481_v9 }
 0x583   : > { %10428 = vrcp.f32 %v2500_v28 }
 0x585   : > { %v2502_v32 = vpop.xlane.xlu1 %2501  ;;  %v2436_v52 = vpop.xlane.xlu2 %2435 }
 0x586   : > { %10430 = vrcp.f32 %v2502_v32  ;;  %v2455_v39 = vsub.f32 %v13900_v1, %v2436_v52  ;;  %v2438_v35 = vpop.xlane.xlu0 %2437 }
 0x587   : > { %v2456_v16 = vsub.f32 %v13909_v19, %v2438_v35 }
 0x588   : > { %v13964_v50 = vpop.eup %10426  ;;  %v2483_v17 = vmul.f32 1.442695, %v2455_v39 }
 0x589   : > { %v2485_v34 = vmul.f32 1.442695, %v2456_v16  ;;  %2513 = vadd.xlane.f32.xlu1 %v13964_v50  ;;  %3343 = vmax.xlane.f32.xlu0 %v13944_v22  ;;  %v10429_v20 = vpop.eup %10428  ;;  %v9808_v16 = vld [vmem:[#allocation11 + $0x104] sm:$0xf0] }
 0x58a   : > { %10432 = vpow2.f32 %v2483_v17  ;;  %v2543_v63 = vmul.f32 %v10429_v20, %v13905_v23 }
 0x58b   : > { %10434 = vpow2.f32 %v2485_v34 }
 0x58c   : > { %v10431_v61 = vpop.eup %10430 }
 0x58d   : > { %v2504_v3 = vpop.xlane.xlu1 %2503  ;;  %v2544_v1 = vmul.f32 %v10431_v61, %v13912_v47 }
 0x58e   : > { %v2440_v15 = vpop.xlane.xlu0 %2439 }
 0x58f   : > { %v2457_v10 = vsub.f32 %v13917_v12, %v2440_v15  ;;  %v2557_v19 = vpack.c.bf16 %v2544_v1, %v2543_v63 }
 0x590   : > { %v13971_v29 = vpop.eup %10432 }
 0x591   : > { %v13975_v60 = vpop.eup %10434  ;;  %v2487_v14 = vmul.f32 1.442695, %v2457_v10  ;;  %2515 = vadd.xlane.f32.xlu1 %v13971_v29  ;;  %3345 = vmax.xlane.f32.xlu0 %v13951_v57 }
 0x592   : > { %2517 = vadd.xlane.f32.xlu2 %v13975_v60  ;;  %2629 = vmatmul.bf16.gmra.mxu3 %v2557_v19 }
 0x593   : > { %10436 = vpow2.f32 %v2487_v14 }
 0x594   : > { %10438 = vrcp.f32 %v2504_v3 }
 0x595   : > { %v2506_v23 = vpop.xlane.xlu2 %2505  ;;  %v2442_v47 = vpop.xlane.xlu1 %2441 }
 0x596   : > { %10440 = vrcp.f32 %v2506_v23  ;;  %v2458_v12 = vsub.f32 %v13924_v5, %v2442_v47 }
 0x598   : > { %v2489_v62 = vmul.f32 1.442695, %v2458_v12 }
 0x599   : > { %v13981_v33 = vpop.eup %10436  ;;  %3347 = vmax.xlane.f32.xlu1 %v13960_v36 }
 0x59a   : > { %v10439_v37 = vpop.eup %10438  ;;  %10442 = vpow2.f32 %v2489_v62  ;;  %2519 = vadd.xlane.f32.xlu2 %v13981_v33 }
 0x59b   : > { %v2545_v7 = vmul.f32 %v10439_v37, %v13920_v0  ;;  %v14001_v0 = vpop.f32.mrf.mxu2 }
 0x59c   : > { %v10441_v48 = vpop.eup %10440 }
 0x59d   : > { %v3338_v58 = vpop.xlane.xlu1 %3337  ;;  %v2546_v5 = vmul.f32 %v10441_v48, %v13926_v54  ;;  %v8587_v48 = vld [vmem:[#allocation11 + $0xc0] sm:$0xf] }
 0x59e   : > { %v3369_v42 = vsub.f32 %v13930_v53, %v3338_v58  ;;  %v8635_v53 = vld [vmem:[#allocation11 + $0x120] sm:$0xf]  ;;  %v9802_v58 = vld [vmem:[#allocation11 + $0xd4] sm:$0xf0] }
 0x59f   : > { %v2558_v59 = vpack.c.bf16 %v2546_v5, %v2545_v7  ;;  %v8636_v21 = vor.u32 %v9814_v46, %v8635_v53  ;;  %v8588_v7 = vor.u32 %v9802_v58, %v8587_v48 }
 0x5a0   : > { %v13990_v38 = vpop.eup %10442  ;;  %v3385_v4 = vmul.f32 1.442695, %v3369_v42 }
 0x5a1   : > { %2521 = vadd.xlane.f32.xlu0 %v13990_v38  ;;  %3349 = vmax.xlane.f32.xlu1 %v13973_v41 }
 0x5a2   : > { %10444 = vpow2.f32 %v3385_v4  ;;  %3351 = vmax.xlane.f32.xlu2 %v13984_v6  ;;  %2634 = vmatmul.bf16.gmra.mxu3 %v2558_v59 }
 0x5a3   : > { %v14004_v54 = vpop.f32.mrf.mxu2  ;;  %4819 = vmatpush.bf16.msrb.mxu0 %v8636_v21 }
 0x5a8   : > { %v13997_v31 = vpop.eup %10444 }
 0x5a9   : > { %3417 = vadd.xlane.f32.xlu0 %v13997_v31 }
 0x5aa   : > { %3353 = vmax.xlane.f32.xlu2 %v13995_v18 }
 0x5b1   : > { %3355 = vmax.xlane.f32.xlu0 %v14001_v0 }
 0x5b9   : > { %3357 = vmax.xlane.f32.xlu0 %v14004_v54 }
 0x5e3   : > { %v2508_v51 = vpop.xlane.xlu2 %2507 }
 0x5e4   : > { %10446 = vrcp.f32 %v2508_v51 }
 0x5ea   : > { %v10447_v43 = vpop.eup %10446 }
 0x5eb   : > { %v2510_v8 = vpop.xlane.xlu0 %2509  ;;  %v3340_v40 = vpop.xlane.xlu2 %3339  ;;  %v2547_v49 = vmul.f32 %v10447_v43, %v13941_v44  ;;  %v8539_v43 = vld [vmem:[#allocation11 + $0x60] sm:$0xf] }
 0x5ec   : > { %10448 = vrcp.f32 %v2510_v8  ;;  %v3370_v25 = vsub.f32 %v13933_v13, %v3340_v40  ;;  %v8611_v13 = vld [vmem:[#allocation11 + $0xf0] sm:$0xf] }
 0x5ed   : > { %v8612_v17 = vor.u32 %v9808_v16, %v8611_v13 }
 0x5ee   : > { %v3387_v28 = vmul.f32 1.442695, %v3370_v25 }
 0x5ef   : > { %4820 = vmatpush.bf16.msrb.mxu0 %v8612_v17 }
 0x5f0   : > { %10450 = vpow2.f32 %v3387_v28 }
 0x5f2   : > { %v10449_v24 = vpop.eup %10448 }
 0x5f3   : > { %v3342_v55 = vpop.xlane.xlu2 %3341  ;;  %v2548_v9 = vmul.f32 %v10449_v24, %v13947_v26  ;;  %4821 = vmatpush.bf16.msrb.mxu0 %v8588_v7 }
 0x5f4   : > { %v2512_v56 = vpop.xlane.xlu0 %2511  ;;  %v3371_v32 = vsub.f32 %v13936_v45, %v3342_v55  ;;  %v14017_v45 = vpop.f32.mrf.mxu2 }
 0x5f5   : > { %v2559_v52 = vpack.c.bf16 %v2548_v9, %v2547_v49 }
 0x5f6   : > { %v14011_v39 = vpop.eup %10450  ;;  %v3389_v35 = vmul.f32 1.442695, %v3371_v32 }
 0x5f7   : > { %3419 = vadd.xlane.f32.xlu1 %v14011_v39  ;;  %2639 = vmatmul.bf16.gmra.mxu3 %v2559_v52 }
 0x5f8   : > { %10452 = vpow2.f32 %v3389_v35 }
 0x5f9   : > { %10454 = vrcp.f32 %v2512_v56 }
 0x5fc   : > { %v2514_v34 = vpop.xlane.xlu1 %2513  ;;  %v3344_v20 = vpop.xlane.xlu0 %3343 }
 0x5fd   : > { %10456 = vrcp.f32 %v2514_v34  ;;  %v3372_v44 = vsub.f32 %v13944_v22, %v3344_v20  ;;  %v14027_v62 = vpop.f32.mrf.mxu2 }
 0x5fe   : > { %v14015_v26 = vpop.eup %10452 }
 0x5ff   : > { %v3391_v61 = vmul.f32 1.442695, %v3372_v44  ;;  %3421 = vadd.xlane.f32.xlu1 %v14015_v26  ;;  %v10455_v3 = vpop.eup %10454 }
 0x600   : > { %v2549_v10 = vmul.f32 %v10455_v3, %v13956_v11 }
 0x601   : > { %10458 = vpow2.f32 %v3391_v61 }
 0x603   : > { %v10457_v63 = vpop.eup %10456 }
 0x604   : > { %v2516_v1 = vpop.xlane.xlu1 %2515  ;;  %v3346_v15 = vpop.xlane.xlu0 %3345  ;;  %v2550_v19 = vmul.f32 %v10457_v63, %v13964_v50 }
 0x605   : > { %v2518_v14 = vpop.xlane.xlu2 %2517  ;;  %v3373_v22 = vsub.f32 %v13951_v57, %v3346_v15  ;;  %10460 = vrcp.f32 %v2516_v1  ;;  %v14034_v5 = vpop.f32.mrf.mxu2  ;;  %v8515_v15 = vld [vmem:[#allocation11 + $0x30] sm:$0xf] }
 0x606   : > { %v2560_v23 = vpack.c.bf16 %v2550_v19, %v2549_v10  ;;  %v9784_v10 = vld [vmem:[#allocation11 + $0x44] sm:$0xf0]  ;;  %v8491_v19 = vld [vmem:[#allocation11] sm:$0xf] }
 0x607   : > { %v14023_v47 = vpop.eup %10458  ;;  %v3393_v12 = vmul.f32 1.442695, %v3373_v22  ;;  %3359 = vmax.xlane.f32.xlu1 %v14017_v45  ;;  %v9778_v22 = vld [vmem:[#allocation11 + $0x14] sm:$0xf0] }
 0x608   : > { %3423 = vadd.xlane.f32.xlu2 %v14023_v47  ;;  %2644 = vmatmul.bf16.gmra.mxu3 %v2560_v23  ;;  %v8492_v23 = vor.u32 %v9778_v22, %v8491_v19 }
 0x609   : > { %10462 = vpow2.f32 %v3393_v12  ;;  %v16800_v12 = vld [vmem:[#allocation20_spill] sm:$0xff] }
 0x60a   : > { %10464 = vrcp.f32 %v2518_v14  ;;  %v8516_v14 = vor.u32 %v9784_v10, %v8515_v15 }
 0x60b   : > { %v10461_v2 = vpop.eup %10460 }
 0x60c   : > { %v3348_v11 = vpop.xlane.xlu1 %3347  ;;  %v2551_v42 = vmul.f32 %v10461_v2, %v13971_v29  ;;  %v8563_v29 = vld [vmem:[#allocation11 + $0x90] sm:$0xf] }
 0x60d   : > { %v2520_v30 = vpop.xlane.xlu2 %2519  ;;  %v3374_v50 = vsub.f32 %v13960_v36, %v3348_v11  ;;  %v14044_v56 = vpop.f32.mrf.mxu2  ;;  %v9868_v11 = vld [vmem:[#allocation11 + $0x2e4] sm:$0xf0] }
 0x60f   : > { %v14030_v57 = vpop.eup %10462  ;;  %v3395_v37 = vmul.f32 1.442695, %v3374_v50  ;;  %3361 = vmax.xlane.f32.xlu1 %v14027_v62  ;;  %v16801_v50 = vld [vmem:[#allocation22_spill] sm:$0xff] }
 0x610   : > { %v10465_v27 = vpop.eup %10464  ;;  %3425 = vadd.xlane.f32.xlu2 %v14030_v57 }
 0x611   : > { %10466 = vpow2.f32 %v3395_v37  ;;  %v2552_v59 = vmul.f32 %v10465_v27, %v13975_v60  ;;  %v9796_v60 = vld [vmem:[#allocation11 + $0xa4] sm:$0xf0] }
 0x612   : > { %v8564_v28 = vor.u32 %v9796_v60, %v8563_v29 }
 0x613   : > { %v2561_v40 = vpack.c.bf16 %v2552_v59, %v2551_v42  ;;  %v16802_v59 = vld [vmem:[#allocation24_spill] sm:$0xff] }
 0x614   : > { %v2522_v36 = vpop.xlane.xlu0 %2521  ;;  %v3350_v4 = vpop.xlane.xlu1 %3349  ;;  %4822 = vmatpush.bf16.msrb.mxu0 %v8564_v28 }
 0x615   : > { %v3375_v53 = vsub.f32 %v13973_v41, %v3350_v4  ;;  %v3352_v46 = vpop.xlane.xlu2 %3351  ;;  %10468 = vrcp.f32 %v2522_v36  ;;  %v9790_v41 = vld [vmem:[#allocation11 + $0x74] sm:$0xf0]  ;;  %v14057_v20 = vpop.f32.mrf.mxu2  ;;  %v8827_v36 = vld [vmem:[#allocation11 + $0x2a0] sm:$0xf] }
 0x616   : > { %v3376_v21 = vsub.f32 %v13984_v6, %v3352_v46  ;;  %v8540_v6 = vor.u32 %v9790_v41, %v8539_v43  ;;  %v9862_v4 = vld [vmem:[#allocation11 + $0x2b4] sm:$0xf0] }
 0x617   : > { %v14040_v51 = vpop.eup %10466  ;;  %v3397_v8 = vmul.f32 1.442695, %v3375_v53  ;;  %v8828_v53 = vor.u32 %v9862_v4, %v8827_v36  ;;  %v9892_v4 = vld [vmem:[#allocation11 + $0x3a4] sm:$0xf0] }
 0x618   : > { %v3399_v25 = vmul.f32 1.442695, %v3376_v21  ;;  %3427 = vadd.xlane.f32.xlu0 %v14040_v51  ;;  %3363 = vmax.xlane.f32.xlu2 %v14034_v5 }
 0x619   : > { %10470 = vpow2.f32 %v3397_v8  ;;  %2649 = vmatmul.bf16.gmra.mxu3 %v2561_v40  ;;  %4823 = vmatpush.bf16.msrb.mxu0 %v8540_v6 }
 0x61a   : > { %10472 = vpow2.f32 %v3399_v25 }
 0x61b   : > { %10474 = vrcp.f32 %v2520_v30  ;;  %v10469_v49 = vpop.eup %10468 }
 0x61c   : > { %v3418_v24 = vpop.xlane.xlu0 %3417  ;;  %v2554_v16 = vmul.f32 %v10469_v49, %v13990_v38  ;;  %v9916_v49 = vld [vmem:[#allocation11 + $0x464] sm:$0xf0] }
 0x61d   : > { %v3354_v55 = vpop.xlane.xlu2 %3353  ;;  %4824 = vmatpush.bf16.msrb.mxu0 %v8516_v14 }
 0x61e   : > { %v3377_v9 = vsub.f32 %v13995_v18, %v3354_v55  ;;  %v16803_v55 = vld [vmem:[#allocation30_spill] sm:$0xff] }
 0x61f   : > { %v14047_v32 = vpop.eup %10470 }
 0x620   : > { %v14049_v52 = vpop.eup %10472  ;;  %v3401_v35 = vmul.f32 1.442695, %v3377_v9  ;;  %3429 = vadd.xlane.f32.xlu0 %v14047_v32  ;;  %3365 = vmax.xlane.f32.xlu2 %v14044_v56 }
 0x621   : > { %3431 = vadd.xlane.f32.xlu1 %v14049_v52  ;;  %v10475_v13 = vpop.eup %10474  ;;  %4825 = vmatpush.bf16.msrb.mxu0 %v8492_v23 }
 0x622   : > { %10476 = vpow2.f32 %v3401_v35  ;;  %v2553_v18 = vmul.f32 %v10475_v13, %v13981_v33  ;;  %v14083_v35 = vpop.f32.mrf.mxu3  ;;  %v9019_v13 = vld [vmem:[#allocation11 + $0x420] sm:$0xf] }
 0x623   : > { %16804 = vst [vmem:[#allocation76_spill] sm:$0xff] %v14083_v35  ;;  %v9091_v35 = vld [vmem:[#allocation11 + $0x4b0] sm:$0xf] }
 0x624   : > { %v3356_v17 = vpop.xlane.xlu0 %3355  ;;  %v2562_v61 = vpack.c.bf16 %v2554_v16, %v2553_v18  ;;  %4826 = vmatmul.bf16.vlgmr.msrb.gmra.mxu0 %v16800_v12  ;;  %v9910_v16 = vld [vmem:[#allocation11 + $0x434] sm:$0xf0]  ;;  %v9904_v18 = vld [vmem:[#allocation11 + $0x404] sm:$0xf0] }
 0x625   : > { %v3378_v34 = vsub.f32 %v14001_v0, %v3356_v17  ;;  %v8995_v17 = vld [vmem:[#allocation11 + $0x3f0] sm:$0xf] }
 0x627   : > { %v3403_v44 = vmul.f32 1.442695, %v3378_v34  ;;  %v9020_v34 = vor.u32 %v9910_v16, %v9019_v13  ;;  %v9880_v13 = vld [vmem:[#allocation11 + $0x344] sm:$0xf0]  ;;  %v9817_v16 = vld [vmem:[#allocation11 + $0x154] sm:$0xf] }
 0x628   : > { %v14059_v3 = vpop.eup %10476  ;;  %3367 = vmax.xlane.f32.xlu0 %v14057_v20 }
 0x629   : > { %10478 = vpow2.f32 %v3403_v44  ;;  %3433 = vadd.xlane.f32.xlu1 %v14059_v3  ;;  %2654 = vmatmul.bf16.gmra.mxu3 %v2562_v61 }
 0x62a   : > { %v14092_v23 = vpop.f32.mrf.mxu3 }
 0x62b   : > { %16805 = vst [vmem:[#allocation82_spill] sm:$0xff] %v14092_v23  ;;  %v9021_v23 = vld [vmem:[#allocation11 + $0x438] sm:$0xf0] }
 0x62c   : > { %v3358_v63 = vpop.xlane.xlu0 %3357 }
 0x62d   : > { %v3379_v38 = vsub.f32 %v14004_v54, %v3358_v63  ;;  %v8851_v54 = vld [vmem:[#allocation11 + $0x2d0] sm:$0xf]  ;;  %v8996_v63 = vor.u32 %v9904_v18, %v8995_v17 }
 0x62e   : > { %v8852_v30 = vor.u32 %v9868_v11, %v8851_v54  ;;  %v8803_v11 = vld [vmem:[#allocation11 + $0x270] sm:$0xf] }
 0x62f   : > { %v14064_v1 = vpop.eup %10478  ;;  %v3405_v0 = vmul.f32 1.442695, %v3379_v38  ;;  %v8707_v18 = vld [vmem:[#allocation11 + $0x1b0] sm:$0xf] }
 0x630   : > { %3435 = vadd.xlane.f32.xlu2 %v14064_v1  ;;  %4867 = vmatpush.bf16.msrb.mxu1 %v8852_v30  ;;  %v9856_v30 = vld [vmem:[#allocation11 + $0x284] sm:$0xf0] }
 0x631   : > { %10480 = vpow2.f32 %v3405_v0 }
 0x632   : > { %10482 = vrcp.f32 %v3418_v24  ;;  %v14105_v17 = vpop.f32.mrf.mxu3 }
 0x633   : > { %16807 = vst [vmem:[#allocation74_spill] sm:$0xff] %v14105_v17  ;;  %v9907_v17 = vld [vmem:[#allocation11 + $0x424] sm:$0xf] }
 0x634   : > { %4831 = vmatmul.bf16.gmra.mxu0 %v16801_v50  ;;  %4868 = vmatpush.bf16.msrb.mxu1 %v8828_v53 }
 0x637   : > { %v14067_v33 = vpop.eup %10480 }
 0x638   : > { %3437 = vadd.xlane.f32.xlu0 %v14067_v33  ;;  %v10483_v37 = vpop.eup %10482 }
 0x639   : > { %v3465_v58 = vmul.f32 %v10483_v37, %v13997_v31 }
 0x644   : > { %4836 = vmatmul.bf16.gmra.mxu0 %v16802_v59 }
 0x654   : > { %4841 = vmatmul.bf16.gmra.mxu0 %v16803_v55 }
 0x66a   : > { %v3420_v2 = vpop.xlane.xlu1 %3419 }
 0x66b   : > { %10484 = vrcp.f32 %v3420_v2  ;;  %v8971_v2 = vld [vmem:[#allocation11 + $0x3c0] sm:$0xf] }
 0x671   : > { %v10485_v27 = vpop.eup %10484 }
 0x672   : > { %v3422_v48 = vpop.xlane.xlu1 %3421  ;;  %v3466_v7 = vmul.f32 %v10485_v27, %v14011_v39 }
 0x673   : > { %10486 = vrcp.f32 %v3422_v48  ;;  %v16806_v48 = vld [vmem:[#allocation29_spill] sm:$0xff] }
 0x674   : > { %v3481_v42 = vpack.c.bf16 %v3466_v7, %v3465_v58  ;;  %4846 = vmatmul.bf16.gmra.mxu0 %v16806_v48  ;;  %v8804_v58 = vor.u32 %v9856_v30, %v8803_v11  ;;  %v9850_v7 = vld [vmem:[#allocation11 + $0x254] sm:$0xf0] }
 0x676   : > { %3529 = vmatmul.bf16.vlgmr.msrb.gmra.mxu3 %v3481_v42  ;;  %v8947_v42 = vld [vmem:[#allocation11 + $0x390] sm:$0xf]  ;;  %4869 = vmatpush.bf16.msrb.mxu1 %v8804_v58 }
 0x677   : > { %v8948_v53 = vor.u32 %v9892_v4, %v8947_v42  ;;  %v9805_v42 = vld [vmem:[#allocation11 + $0xf4] sm:$0xf] }
 0x679   : > { %v10487_v25 = vpop.eup %10486 }
 0x67a   : > { %v3360_v21 = vpop.xlane.xlu1 %3359  ;;  %v3467_v60 = vmul.f32 %v10487_v25, %v14015_v26 }
 0x67b   : > { %v3424_v46 = vpop.xlane.xlu2 %3423  ;;  %v3380_v8 = vsub.f32 %v14017_v45, %v3360_v21  ;;  %v9043_v45 = vld [vmem:[#allocation11 + $0x450] sm:$0xf]  ;;  %v9844_v21 = vld [vmem:[#allocation11 + $0x224] sm:$0xf0] }
 0x67c   : > { %10488 = vrcp.f32 %v3424_v46  ;;  %v9044_v9 = vor.u32 %v9916_v49, %v9043_v45  ;;  %v8755_v46 = vld [vmem:[#allocation11 + $0x210] sm:$0xf] }
 0x67d   : > { %v3407_v40 = vmul.f32 1.442695, %v3380_v8  ;;  %v8923_v8 = vld [vmem:[#allocation11 + $0x360] sm:$0xf]  ;;  %v380_v49 = vld [vmem:[%s11085_s20 + $0x18] sm:$0xff] }
 0x67e   : > { %4916 = vmatpush.bf16.msra.mxu2 %v9044_v9  ;;  %v383_v9 = vld [vmem:[%s11085_s20 + $0x30] sm:$0xff] }
 0x67f   : > { %10490 = vpow2.f32 %v3407_v40  ;;  %v9886_v40 = vld [vmem:[#allocation11 + $0x374] sm:$0xf0] }
 0x680   : > { %v8924_v45 = vor.u32 %v9886_v40, %v8923_v8  ;;  %v9799_v40 = vld [vmem:[#allocation11 + $0xc4] sm:$0xf] }
 0x682   : > { %v10489_v31 = vpop.eup %10488  ;;  %v3362_v39 = vpop.xlane.xlu1 %3361  ;;  %4917 = vmatpush.bf16.msra.mxu2 %v9020_v34  ;;  %v8661_v34 = vld [vmem:[#allocation11 + $0x168] sm:$0xf0] }
 0x683   : > { %v3426_v29 = vpop.xlane.xlu2 %3425  ;;  %v3468_v28 = vmul.f32 %v10489_v31, %v14023_v47  ;;  %v3381_v43 = vsub.f32 %v14027_v62, %v3362_v39  ;;  %v8731_v31 = vld [vmem:[#allocation11 + $0x1e0] sm:$0xf] }
 0x685   : > { %v3482_v41 = vpack.c.bf16 %v3468_v28, %v3467_v60  ;;  %v14079_v6 = vpop.eup %10490  ;;  %v3409_v24 = vmul.f32 1.442695, %v3381_v43  ;;  %v8756_v60 = vor.u32 %v9844_v21, %v8755_v46  ;;  %v9838_v28 = vld [vmem:[#allocation11 + $0x1f4] sm:$0xf0]  ;;  %v8899_v43 = vld [vmem:[#allocation11 + $0x330] sm:$0xf]  ;;  %v14122_v21 = vpop.f32.mrf.mxu3 }
 0x686   : > { %3439 = vadd.xlane.f32.xlu1 %v14079_v6  ;;  %4918 = vmatpush.bf16.msra.mxu2 %v8996_v63  ;;  %16809 = vst [vmem:[#allocation36_spill] sm:$0xff] %v14122_v21 }
 0x687   : > { %3534 = vmatmul.bf16.gmra.mxu3 %v3482_v41  ;;  %10492 = vpow2.f32 %v3409_v24  ;;  %v379_v41 = vld [vmem:[%s11085_s20 + $0x10] sm:$0xff] }
 0x688   : > { %10494 = vrcp.f32 %v3426_v29 }
 0x68b   : > { %v3428_v26 = vpop.xlane.xlu0 %3427  ;;  %v3364_v47 = vpop.xlane.xlu2 %3363 }
 0x68c   : > { %10496 = vrcp.f32 %v3428_v26  ;;  %v3382_v62 = vsub.f32 %v14034_v5, %v3364_v47  ;;  %v384_v26 = vld [vmem:[%s11085_s20 + $0x38] sm:$0xff] }
 0x68d   : > { %v14086_v44 = vpop.eup %10492  ;;  %v14110_v63 = vpack.c.bf16 %v384_v26, %v383_v9 }
 0x68e   : > { %v3411_v61 = vmul.f32 1.442695, %v3382_v62  ;;  %3441 = vadd.xlane.f32.xlu2 %v14086_v44  ;;  %v10495_v38 = vpop.eup %10494 }
 0x68f   : > { %v3469_v19 = vmul.f32 %v10495_v38, %v14030_v57  ;;  %v9898_v57 = vld [vmem:[#allocation11 + $0x3d4] sm:$0xf0]  ;;  %v8664_v38 = vor.u32 %v9817_v16, %v8661_v34  ;;  %v9787_v16 = vld [vmem:[#allocation11 + $0x64] sm:$0xf]  ;;  %v14135_v34 = vpop.f32.mrf.mxu3 }
 0x690   : > { %10498 = vpow2.f32 %v3411_v61  ;;  %v14108_v61 = vpack.c.bf16 %v380_v49, %v379_v41  ;;  %v9793_v41 = vld [vmem:[#allocation11 + $0x94] sm:$0xf]  ;;  %16811 = vst [vmem:[#allocation51_spill] sm:$0xff] %v14135_v34 }
 0x691   : > { %5014 = vmatpush.bf16.msra.mxu0 %v8664_v38 }
 0x692   : > { %v10497_v0 = vpop.eup %10496  ;;  %v3794_v30 = vunpack.c.l.b16 %v14108_v61 }
 0x693   : > { %v3430_v15 = vpop.xlane.xlu0 %3429  ;;  %v3366_v10 = vpop.xlane.xlu2 %3365  ;;  %v3470_v5 = vmul.f32 %v10497_v0, %v14040_v51  ;;  %v8972_v51 = vor.u32 %v9898_v57, %v8971_v2  ;;  %v3796_v2 = vunpack.c.l.b16 %v14110_v63 }
 0x694   : > { %v3432_v14 = vpop.xlane.xlu1 %3431  ;;  %v3383_v22 = vsub.f32 %v14044_v56, %v3366_v10  ;;  %10500 = vrcp.f32 %v3430_v15  ;;  %v8779_v56 = vld [vmem:[#allocation11 + $0x240] sm:$0xf]  ;;  %v8900_v10 = vor.u32 %v9880_v13, %v8899_v43 }
 0x695   : > { %v3483_v54 = vpack.c.bf16 %v3470_v5, %v3469_v19  ;;  %10502 = vrcp.f32 %v3432_v14  ;;  %v8780_v36 = vor.u32 %v9850_v7, %v8779_v56  ;;  %4919 = vmatpush.bf16.msra.mxu2 %v8972_v51  ;;  %v9832_v19 = vld [vmem:[#allocation11 + $0x1c4] sm:$0xf0]  ;;  %v9811_v5 = vld [vmem:[#allocation11 + $0x124] sm:$0xf]  ;;  %v8637_v14 = vld [vmem:[#allocation11 + $0x138] sm:$0xf0] }
 0x696   : > { %v14094_v37 = vpop.eup %10498  ;;  %v3413_v27 = vmul.f32 1.442695, %v3383_v22  ;;  %v8875_v22 = vld [vmem:[#allocation11 + $0x300] sm:$0xf]  ;;  %v8708_v11 = vor.u32 %v9832_v19, %v8707_v18  ;;  %v9826_v51 = vld [vmem:[#allocation11 + $0x194] sm:$0xf0] }
 0x697   : > { %3443 = vadd.xlane.f32.xlu0 %v14094_v37  ;;  %3539 = vmatmul.bf16.gmra.mxu3 %v3483_v54  ;;  %v9874_v54 = vld [vmem:[#allocation11 + $0x314] sm:$0xf0]  ;;  %v16808_v7 = vld [vmem:[#allocation28_spill] sm:$0xff]  ;;  %v9781_v19 = vld [vmem:[#allocation11 + $0x34] sm:$0xf] }
 0x698   : > { %10504 = vpow2.f32 %v3413_v27  ;;  %4870 = vmatpush.bf16.msrb.mxu1 %v8780_v36  ;;  %v8640_v27 = vor.u32 %v9811_v5, %v8637_v14  ;;  %4851 = vmatmul.bf16.gmra.mxu0 %v16808_v7  ;;  %v8613_v36 = vld [vmem:[#allocation11 + $0x108] sm:$0xf0]  ;;  %v16812_v5 = vld [vmem:[#allocation27_spill] sm:$0xff]  ;;  %v9235_v14 = vld [vmem:[#allocation11 + $0x5d0] sm:$0xf] }
 0x699   : > { %4920 = vmatpush.bf16.msra.mxu2 %v8948_v53  ;;  %v14120_v53 = vpack.c.b16 %v3796_v2, %v3794_v30  ;;  %v8616_v8 = vor.u32 %v9805_v42, %v8613_v36  ;;  %v9775_v30 = vld [vmem:[#allocation11 + $0x4] sm:$0xf]  ;;  %v8493_v2 = vld [vmem:[#allocation11 + $0x18] sm:$0xf0] }
 0x69a   : > { %v10501_v29 = vpop.eup %10500  ;;  %5015 = vmatpush.bf16.msra.mxu0 %v8640_v27  ;;  %v395_v27 = vld [vmem:[%s11085_s20 + $0x90] sm:$0xff]  ;;  %v16814_v42 = vld [vmem:[#allocation23_spill] sm:$0xff] }
 0x69b   : > { %v3368_v25 = vpop.xlane.xlu0 %3367  ;;  %v10503_v24 = vpop.eup %10502  ;;  %v3471_v0 = vmul.f32 %v10501_v29, %v14047_v32  ;;  %v8876_v32 = vor.u32 %v9874_v54, %v8875_v22  ;;  %v388_v29 = vld [vmem:[%s11085_s20 + $0x58] sm:$0xff]  ;;  %v9964_v22 = vld [vmem:[#allocation11 + $0x5e4] sm:$0xf0] }
 0x69c   : > { %v3384_v39 = vsub.f32 %v14057_v20, %v3368_v25  ;;  %v8732_v20 = vor.u32 %v9838_v28, %v8731_v31  ;;  %4871 = vmatpush.bf16.msrb.mxu1 %v8756_v60  ;;  %v3472_v15 = vmul.f32 %v10503_v24, %v14049_v52  ;;  %v8683_v52 = vld [vmem:[#allocation11 + $0x180] sm:$0xf]  ;;  %v3434_v4 = vpop.xlane.xlu1 %3433  ;;  %v8589_v25 = vld [vmem:[#allocation11 + $0xd8] sm:$0xf0]  ;;  %v387_v31 = vld [vmem:[%s11085_s20 + $0x50] sm:$0xff]  ;;  %v9236_v54 = vor.u32 %v9964_v22, %v9235_v14 }
 0x69d   : > { %4921 = vmatpush.bf16.msra.mxu2 %v8924_v45  ;;  %v8684_v46 = vor.u32 %v9826_v51, %v8683_v52  ;;  %v392_v60 = vld [vmem:[%s11085_s20 + $0x78] sm:$0xff]  ;;  %v8592_v28 = vor.u32 %v9799_v40, %v8589_v25  ;;  %v8565_v24 = vld [vmem:[#allocation11 + $0xa8] sm:$0xf0]  ;;  %v14130_v9 = vpack.c.bf16 %v388_v29, %v387_v31  ;;  %v8496_v51 = vor.u32 %v9775_v30, %v8493_v2 }
 0x69e   : > { %v14103_v47 = vpop.eup %10504  ;;  %v3415_v62 = vmul.f32 1.442695, %v3384_v39  ;;  %v3484_v57 = vpack.c.bf16 %v3472_v15, %v3471_v0  ;;  %v391_v39 = vld [vmem:[%s11085_s20 + $0x70] sm:$0xff]  ;;  %5016 = vmatpush.bf16.msra.mxu0 %v8616_v8  ;;  %v8568_v13 = vor.u32 %v9793_v41, %v8565_v24  ;;  %4965 = vmatpush.bf16.msra.mxu3 %v9236_v54  ;;  %v400_v52 = vld [vmem:[%s11085_s20 + $0xb8] sm:$0xff] }
 0x69f   : > { %3445 = vadd.xlane.f32.xlu1 %v14103_v47  ;;  %v16810_v45 = vld [vmem:[#allocation21_spill] sm:$0xff]  ;;  %v14132_v26 = vpack.c.bf16 %v392_v60, %v391_v39  ;;  %v3798_v38 = vunpack.c.l.b16 %v14130_v9  ;;  %v16815_v40 = vld [vmem:[#allocation26_spill] sm:$0xff] }
 0x6a0   : > { %10506 = vpow2.f32 %v3415_v62  ;;  %4872 = vmatpush.bf16.msrb.mxu1 %v8732_v20  ;;  %v8541_v20 = vld [vmem:[#allocation11 + $0x78] sm:$0xf0]  ;;  %v403_v29 = vld [vmem:[%s11085_s20 + $0xd0] sm:$0xff]  ;;  %v404_v39 = vld [vmem:[%s11085_s20 + $0xd8] sm:$0xff] }
 0x6a1   : > { %4922 = vmatpush.bf16.msra.mxu2 %v8900_v10  ;;  %v3800_v0 = vunpack.c.l.b16 %v14132_v26  ;;  %v8544_v10 = vor.u32 %v9787_v16, %v8541_v20  ;;  %v407_v60 = vld [vmem:[%s11085_s20 + $0xf0] sm:$0xff]  ;;  %v14168_v41 = vpack.c.bf16 %v404_v39, %v403_v29  ;;  %v412_v54 = vld [vmem:[%s11085_s20 + $0x118] sm:$0xff] }
 0x6a2   : > { %5017 = vmatpush.bf16.msra.mxu0 %v8592_v28  ;;  %v408_v28 = vld [vmem:[%s11085_s20 + $0xf8] sm:$0xff]  ;;  %v411_v14 = vld [vmem:[%s11085_s20 + $0x110] sm:$0xff] }
 0x6a3   : > { %v3436_v58 = vpop.xlane.xlu2 %3435  ;;  %v14170_v24 = vpack.c.bf16 %v408_v28, %v407_v60  ;;  %v416_v30 = vld [vmem:[%s11085_s20 + $0x138] sm:$0xff]  ;;  %v14196_v2 = vpack.c.bf16 %v412_v54, %v411_v14  ;;  %v9952_v28 = vld [vmem:[#allocation11 + $0x584] sm:$0xf0] }
 0x6a4   : > { %10508 = vrcp.f32 %v3436_v58  ;;  %4873 = vmatpush.bf16.msrb.mxu1 %v8708_v11  ;;  %v14145_v58 = vpop.f32.mrf.mxu3  ;;  %v9187_v60 = vld [vmem:[#allocation11 + $0x570] sm:$0xf]  ;;  %v423_v14 = vld [vmem:[%s11085_s20 + $0x170] sm:$0xff] }
 0x6a5   : > { %4923 = vmatpush.bf16.msra.mxu2 %v8876_v32  ;;  %10510 = vrcp.f32 %v3434_v4  ;;  %16813 = vst [vmem:[#allocation37_spill] sm:$0xff] %v14145_v58  ;;  %v399_v32 = vld [vmem:[%s11085_s20 + $0xb0] sm:$0xff]  ;;  %v3808_v16 = vunpack.c.l.b16 %v14170_v24  ;;  %v432_v58 = vld [vmem:[%s11085_s20 + $0x1b8] sm:$0xff] }
 0x6a6   : > { %v14116_v56 = vpop.eup %10506  ;;  %5018 = vmatpush.bf16.msra.mxu0 %v8568_v13  ;;  %v14153_v4 = vpack.c.bf16 %v400_v52, %v399_v32  ;;  %v3806_v13 = vunpack.c.l.b16 %v14168_v41 }
 0x6a7   : > { %3447 = vadd.xlane.f32.xlu2 %v14116_v56  ;;  %3544 = vmatmul.bf16.gmra.mxu3 %v3484_v57  ;;  %v396_v57 = vld [vmem:[%s11085_s20 + $0x98] sm:$0xff] }
 0x6a8   : > { %4924 = vmatmul.bf16.vlgmr.msra.gmra.mxu2 %v14120_v53  ;;  %4874 = vmatpush.bf16.msrb.mxu1 %v8684_v46  ;;  %v14151_v36 = vpack.c.bf16 %v396_v57, %v395_v27  ;;  %v3804_v8 = vunpack.c.l.b16 %v14153_v4  ;;  %v14179_v20 = vpack.c.b16 %v3808_v16, %v3806_v13  ;;  %v3810_v57 = vunpack.c.l.b16 %v14196_v2  ;;  %v419_v13 = vld [vmem:[%s11085_s20 + $0x150] sm:$0xff] }
 0x6a9   : > { %4856 = vmatmul.bf16.gmra.mxu0 %v16812_v5 }
 0x6aa   : > { %v10509_v43 = vpop.eup %10508  ;;  %5019 = vmatpush.bf16.msra.mxu0 %v8544_v10  ;;  %v3802_v46 = vunpack.c.l.b16 %v14151_v36 }
 0x6ab   : > { %4875 = vmatmul.bf16.vlgmr.msrb.gmra.mxu1 %v16810_v45  ;;  %v10511_v49 = vpop.eup %10510  ;;  %v3474_v62 = vmul.f32 %v10509_v43, %v14064_v1  ;;  %v8517_v1 = vld [vmem:[#allocation11 + $0x48] sm:$0xf0]  ;;  %v3438_v39 = vpop.xlane.xlu0 %3437 }
 0x6ac   : > { %v3473_v18 = vmul.f32 %v10511_v49, %v14059_v3  ;;  %v14141_v3 = vpack.c.b16 %v3800_v0, %v3798_v38  ;;  %v8520_v11 = vor.u32 %v9781_v19, %v8517_v1  ;;  %v14158_v25 = vpop.f32.mrf.mxu3  ;;  %v14160_v31 = vpack.c.b16 %v3804_v8, %v3802_v46  ;;  %v16817_v43 = vld [vmem:[#allocation25_spill] sm:$0xff]  ;;  %v16820_v0 = vld [vmem:[#allocation35_spill] sm:$0xff]  ;;  %v9211_v19 = vld [vmem:[#allocation11 + $0x5a0] sm:$0xf] }
 0x6ad   : > { %16816 = vst [vmem:[#allocation99_spill] sm:$0xff] %v14158_v25  ;;  %v9958_v1 = vld [vmem:[#allocation11 + $0x5b4] sm:$0xf0]  ;;  %v16824_v8 = vld [vmem:[#allocation34_spill] sm:$0xff]  ;;  %10512 = vrcp.f32 %v3438_v39 }
 0x6ae   : > { %v3485_v15 = vpack.c.bf16 %v3474_v62, %v3473_v18  ;;  %5020 = vmatpush.bf16.msra.mxu0 %v8520_v11  ;;  %v14174_v62 = vpop.f32.mrf.mxu0  ;;  %v9212_v22 = vor.u32 %v9958_v1, %v9211_v19  ;;  %v415_v11 = vld [vmem:[%s11085_s20 + $0x130] sm:$0xff]  ;;  %v9188_v19 = vor.u32 %v9952_v28, %v9187_v60  ;;  %v420_v1 = vld [vmem:[%s11085_s20 + $0x158] sm:$0xff] }
 0x6af   : > { %v14198_v27 = vpack.c.bf16 %v416_v30, %v415_v11  ;;  %v14219_v54 = vpack.c.bf16 %v420_v1, %v419_v13  ;;  %v16827_v28 = vld [vmem:[#allocation33_spill] sm:$0xff] }
 0x6b0   : > { %4966 = vmatpush.bf16.msra.mxu3 %v9212_v22  ;;  %v424_v22 = vld [vmem:[%s11085_s20 + $0x178] sm:$0xff] }
 0x6b1   : > { %v3812_v32 = vunpack.c.l.b16 %v14198_v27  ;;  %v14221_v11 = vpack.c.bf16 %v424_v22, %v423_v14  ;;  %v9163_v22 = vld [vmem:[#allocation11 + $0x540] sm:$0xf] }
 0x6b2   : > { %5021 = vmatpush.bf16.msra.mxu0 %v8496_v51 }
 0x6b3   : > { %v14204_v51 = vpack.c.b16 %v3812_v32, %v3810_v57  ;;  %v3814_v57 = vunpack.c.l.b16 %v14219_v54  ;;  %v3816_v32 = vunpack.c.l.b16 %v14221_v11  ;;  %v10513_v60 = vpop.eup %10512 }
 0x6b4   : > { %v14172_v49 = vpop.f32.mrf.mxu3  ;;  %4967 = vmatpush.bf16.msra.mxu3 %v9188_v19  ;;  %v3475_v39 = vmul.f32 %v10513_v60, %v14067_v33  ;;  %v428_v33 = vld [vmem:[%s11085_s20 + $0x198] sm:$0xff]  ;;  %v431_v60 = vld [vmem:[%s11085_s20 + $0x1b0] sm:$0xff] }
 0x6b5   : > { %16818 = vst [vmem:[#allocation85_spill] sm:$0xff] %v14172_v49  ;;  %v9940_v49 = vld [vmem:[#allocation11 + $0x524] sm:$0xf0] }
 0x6b6   : > { %v14183_v38 = vpop.f32.mrf.mxu0  ;;  %16822 = vst [vmem:[#allocation100_spill] sm:$0xff] %v14204_v51 }
 0x6b7   : > { %3549 = vmatmul.bf16.gmra.mxu3 %v3485_v15 }
 0x6b8   : > { %4929 = vmatmul.bf16.gmra.mxu2 %v14141_v3 }
 0x6b9   : > { %4861 = vmatmul.bf16.gmra.mxu0 %v16815_v40 }
 0x6bb   : > { %4880 = vmatmul.bf16.gmra.mxu1 %v16814_v42 }
 0x6bc   : > { %v14181_v18 = vpop.f32.mrf.mxu3 }
 0x6bd   : > { %16819 = vst [vmem:[#allocation93_spill] sm:$0xff] %v14181_v18  ;;  %v9139_v18 = vld [vmem:[#allocation11 + $0x510] sm:$0xf] }
 0x6be   : > { %v14189_v10 = vpop.f32.mrf.mxu0  ;;  %v9140_v25 = vor.u32 %v9940_v49, %v9139_v18 }
 0x6c4   : > { %v14187_v15 = vpop.f32.mrf.mxu3 }
 0x6c5   : > { %16821 = vst [vmem:[#allocation96_spill] sm:$0xff] %v14187_v15  ;;  %v14227_v15 = vpack.c.b16 %v3816_v32, %v3814_v57 }
 0x6c6   : > { %v14202_v52 = vpop.f32.mrf.mxu0 }
 0x6c7   : > { %16826 = vst [vmem:[#allocation97_spill] sm:$0xff] %v14227_v15 }
 0x6c8   : > { %4934 = vmatmul.bf16.gmra.mxu2 %v14160_v31 }
 0x6c9   : > { %5022 = vmatmul.bf16.vlgmr.msra.gmra.mxu0 %v16800_v12 }
 0x6cb   : > { %4885 = vmatmul.bf16.gmra.mxu1 %v16817_v43 }
 0x6cc   : > { %v14206_v46 = vpop.f32.mrf.mxu3 }
 0x6cd   : > { %16823 = vst [vmem:[#allocation50_spill] sm:$0xff] %v14206_v46 }
 0x6ce   : > { %v14210_v29 = vpop.f32.mrf.mxu0 }
 0x6d4   : > { %v14214_v16 = vpop.f32.mrf.mxu3 }
 0x6d5   : > { %16825 = vst [vmem:[#allocation94_spill] sm:$0xff] %v14214_v16 }
 0x6d6   : > { %v14225_v46 = vpop.f32.mrf.mxu0 }
 0x6d8   : > { %4939 = vmatmul.bf16.gmra.mxu2 %v14179_v20 }
 0x6d9   : > { %5027 = vmatmul.bf16.gmra.mxu0 %v16801_v50 }
 0x6db   : > { %4890 = vmatmul.bf16.gmra.mxu1 %v16820_v0 }
 0x6dc   : > { %v14231_v1 = vpop.f32.mrf.mxu3 }
 0x6dd   : > { %16828 = vst [vmem:[#allocation88_spill] sm:$0xff] %v14231_v1  ;;  %v427_v1 = vld [vmem:[%s11085_s20 + $0x190] sm:$0xff] }
 0x6de   : > { %v14235_v14 = vpop.f32.mrf.mxu0 }
 0x6e4   : > { %v14248_v21 = vpop.f32.mrf.mxu3 }
 0x6e5   : > { %16831 = vst [vmem:[#allocation90_spill] sm:$0xff] %v14248_v21 }
 0x6e6   : > { %v14250_v49 = vpop.f32.mrf.mxu0 }
 0x6e8   : > { %4944 = vmatmul.bf16.gmra.mxu2 %v14204_v51 }
 0x6e9   : > { %5032 = vmatmul.bf16.gmra.mxu0 %v16802_v59 }
 0x6eb   : > { %4895 = vmatmul.bf16.gmra.mxu1 %v16824_v8 }
 0x6f8   : > { %4949 = vmatmul.bf16.gmra.mxu2 %v14227_v15 }
 0x6f9   : > { %v3440_v30 = vpop.xlane.xlu1 %3439  ;;  %5037 = vmatmul.bf16.gmra.mxu0 %v16803_v55 }
 0x6fa   : > { %10514 = vrcp.f32 %v3440_v30  ;;  %v9946_v30 = vld [vmem:[#allocation11 + $0x554] sm:$0xf0] }
 0x6fb   : > { %4900 = vmatmul.bf16.gmra.mxu1 %v16827_v28  ;;  %v9164_v32 = vor.u32 %v9946_v30, %v9163_v22  ;;  %v9913_v22 = vld [vmem:[#allocation11 + $0x454] sm:$0xf]  ;;  %v9045_v30 = vld [vmem:[#allocation11 + $0x468] sm:$0xf0] }
 0x6fc   : > { %v9048_v18 = vor.u32 %v9913_v22, %v9045_v30 }
 0x6fd   : > { %4968 = vmatpush.bf16.msra.mxu3 %v9164_v32  ;;  %v9865_v32 = vld [vmem:[#allocation11 + $0x2d4] sm:$0xf] }
 0x6fe   : > { %5112 = vmatpush.bf16.msrb.mxu2 %v9048_v18  ;;  %v9859_v18 = vld [vmem:[#allocation11 + $0x2a4] sm:$0xf] }
 0x700   : > { %v10515_v13 = vpop.eup %10514 }
 0x701   : > { %v3476_v19 = vmul.f32 %v10515_v13, %v14079_v6  ;;  %v3442_v16 = vpop.xlane.xlu2 %3441  ;;  %v14242_v6 = vpack.c.bf16 %v428_v33, %v427_v1  ;;  %v14244_v13 = vpack.c.bf16 %v432_v58, %v431_v60  ;;  %4969 = vmatpush.bf16.msra.mxu3 %v9140_v25  ;;  %v9934_v1 = vld [vmem:[#allocation11 + $0x4f4] sm:$0xf0]  ;;  %v8853_v58 = vld [vmem:[#allocation11 + $0x2e8] sm:$0xf0]  ;;  %v16833_v25 = vld [vmem:[#allocation32_spill] sm:$0xff] }
 0x702   : > { %10516 = vrcp.f32 %v3442_v16  ;;  %v8856_v60 = vor.u32 %v9865_v32, %v8853_v58  ;;  %v8997_v58 = vld [vmem:[#allocation11 + $0x408] sm:$0xf0] }
 0x703   : > { %v3486_v57 = vpack.c.bf16 %v3476_v19, %v3475_v39  ;;  %16829 = vst [vmem:[#allocation102_spill] sm:$0xff] %v14242_v6  ;;  %v3818_v39 = vunpack.c.l.b16 %v14242_v6  ;;  %v3820_v19 = vunpack.c.l.b16 %v14244_v13  ;;  %v9928_v6 = vld [vmem:[#allocation11 + $0x4c4] sm:$0xf0] }
 0x704   : > { %16830 = vst [vmem:[#allocation79_spill] sm:$0xff] %v14244_v13  ;;  %v9024_v13 = vor.u32 %v9907_v17, %v9021_v23  ;;  %5063 = vmatpush.bf16.msra.mxu1 %v8856_v60  ;;  %v9092_v22 = vor.u32 %v9928_v6, %v9091_v35  ;;  %v8829_v23 = vld [vmem:[#allocation11 + $0x2b8] sm:$0xf0]  ;;  %v9901_v17 = vld [vmem:[#allocation11 + $0x3f4] sm:$0xf]  ;;  %v14260_v35 = vpop.f32.mrf.mxu3 }
 0x705   : > { %3554 = vmatmul.bf16.gmra.mxu3 %v3486_v57  ;;  %v9115_v57 = vld [vmem:[#allocation11 + $0x4e0] sm:$0xf]  ;;  %v14252_v33 = vpack.c.b16 %v3820_v19, %v3818_v39  ;;  %v8832_v32 = vor.u32 %v9859_v18, %v8829_v23  ;;  %v9922_v60 = vld [vmem:[#allocation11 + $0x494] sm:$0xf0]  ;;  %16834 = vst [vmem:[#allocation81_spill] sm:$0xff] %v14260_v35  ;;  %v9000_v6 = vor.u32 %v9901_v17, %v8997_v58  ;;  %v436_v18 = vld [vmem:[%s11085_s20 + $0x1d8] sm:$0xff] }
 0x706   : > { %v9116_v16 = vor.u32 %v9934_v1, %v9115_v57  ;;  %5113 = vmatpush.bf16.msrb.mxu2 %v9024_v13  ;;  %v14258_v57 = vpop.f32.mrf.mxu0  ;;  %v9853_v13 = vld [vmem:[#allocation11 + $0x274] sm:$0xf]  ;;  %v439_v35 = vld [vmem:[%s11085_s20 + $0x1f0] sm:$0xff] }
 0x707   : > { %16832 = vst [vmem:[#allocation89_spill] sm:$0xff] %v14252_v33  ;;  %v440_v17 = vld [vmem:[%s11085_s20 + $0x1f8] sm:$0xff] }
 0x708   : > { %4954 = vmatmul.bf16.gmra.mxu2 %v14252_v33  ;;  %4970 = vmatpush.bf16.msra.mxu3 %v9116_v16  ;;  %v9067_v16 = vld [vmem:[#allocation11 + $0x480] sm:$0xf] }
 0x709   : > { %5064 = vmatpush.bf16.msra.mxu1 %v8832_v32  ;;  %5042 = vmatmul.bf16.gmra.mxu0 %v16806_v48 }
 0x70a   : > { %v3444_v34 = vpop.xlane.xlu0 %3443  ;;  %5114 = vmatpush.bf16.msrb.mxu2 %v9000_v6  ;;  %v8781_v6 = vld [vmem:[#allocation11 + $0x258] sm:$0xf0] }
 0x70b   : > { %10518 = vrcp.f32 %v3444_v34  ;;  %v10517_v34 = vpop.eup %10516  ;;  %4905 = vmatmul.bf16.gmra.mxu1 %v16833_v25 }
 0x70c   : > { %v3477_v39 = vmul.f32 %v10517_v34, %v14086_v44  ;;  %4971 = vmatpush.bf16.msra.mxu3 %v9092_v22  ;;  %v9068_v44 = vor.u32 %v9922_v60, %v9067_v16  ;;  %v8805_v34 = vld [vmem:[#allocation11 + $0x288] sm:$0xf0]  ;;  %v9895_v22 = vld [vmem:[#allocation11 + $0x3c4] sm:$0xf]  ;;  %v14269_v16 = vpack.c.bf16 %v440_v17, %v439_v35  ;;  %v14277_v48 = vpop.f32.mrf.mxu3 }
 0x70d   : > { %v9847_v60 = vld [vmem:[#allocation11 + $0x244] sm:$0xf]  ;;  %16837 = vst [vmem:[#allocation84_spill] sm:$0xff] %v14277_v48  ;;  %v8901_v48 = vld [vmem:[#allocation11 + $0x348] sm:$0xf0] }
 0x70e   : > { %v9883_v17 = vld [vmem:[#allocation11 + $0x364] sm:$0xf] }
 0x710   : > { %4972 = vmatpush.bf16.msra.mxu3 %v9068_v44  ;;  %v9889_v44 = vld [vmem:[#allocation11 + $0x394] sm:$0xf] }
 0x711   : > { %v10519_v30 = vpop.eup %10518 }
 0x712   : > { %v3478_v19 = vmul.f32 %v10519_v30, %v14094_v37  ;;  %v3446_v37 = vpop.xlane.xlu1 %3445  ;;  %v8808_v30 = vor.u32 %v9853_v13, %v8805_v34  ;;  %v3824_v13 = vunpack.c.l.b16 %v14269_v16  ;;  %v14273_v34 = vpop.f32.mrf.mxu0 }
 0x713   : > { %10520 = vrcp.f32 %v3446_v37 }
 0x714   : > { %v3487_v1 = vpack.c.bf16 %v3478_v19, %v3477_v39  ;;  %v8973_v39 = vld [vmem:[#allocation11 + $0x3d8] sm:$0xf0]  ;;  %v435_v19 = vld [vmem:[%s11085_s20 + $0x1d0] sm:$0xff]  ;;  %5065 = vmatpush.bf16.msra.mxu1 %v8808_v30  ;;  %s8343_s20 = sshll.u32 %s8340_s2, 4  ;;  %s8344_s20 = int_to_ptr.hbm [resolvable:$true] %s8343_s20 }
 0x715   : > { %v8976_v23 = vor.u32 %v9895_v22, %v8973_v39  ;;  %v14267_v58 = vpack.c.bf16 %v436_v18, %v435_v19  ;;  %v8784_v22 = vor.u32 %v9847_v60, %v8781_v6  ;;  %v8949_v39 = vld [vmem:[#allocation11 + $0x3a8] sm:$0xf0]  ;;  %v9841_v19 = vld [vmem:[#allocation11 + $0x214] sm:$0xf]  ;;  %v8925_v30 = vld [vmem:[#allocation11 + $0x378] sm:$0xf0] }
 0x716   : > { %3559 = vmatmul.bf16.gmra.mxu3 %v3487_v1  ;;  %v8757_v18 = vld [vmem:[#allocation11 + $0x228] sm:$0xf0]  ;;  %v8952_v37 = vor.u32 %v9889_v44, %v8949_v39  ;;  %v9877_v39 = vld [vmem:[#allocation11 + $0x334] sm:$0xf]  ;;  %s10832_s9 = sshra.s32 %s8344_s20, 4  ;;  %s10833_s9 = int_to_ptr.hbm [resolvable:$true] %s10832_s9 }
 0x717   : > { %16835 = vst [vmem:[#allocation95_spill] sm:$0xff] %v14267_v58  ;;  %v3822_v32 = vunpack.c.l.b16 %v14267_v58  ;;  %5115 = vmatpush.bf16.msrb.mxu2 %v8976_v23  ;;  %v8760_v21 = vor.u32 %v9841_v19, %v8757_v18  ;;  %v16838_v23 = vld [vmem:[#allocation31_spill] sm:$0xff]  ;;  %s10834_s15 = scalar_lea.hbm %s10833_s9, 512  ;;  %p10839_p13 = scmp.lt.s32.totalorder %s10833_s9, %s16302_s7 }
 0x718   : > { %5066 = vmatpush.bf16.msra.mxu1 %v8784_v22  ;;  %v8733_v22 = vld [vmem:[#allocation11 + $0x1f8] sm:$0xf0]  ;;  %p10835_p1 = scmp.ne.s32.totalorder %s10833_s9, %s10834_s15  ;;  %p10840_p7 = scmp.lt.s32.totalorder %s10838_s29, %s10834_s15 }
 0x719   : > { %v14275_v35 = vpack.c.b16 %v3824_v13, %v3822_v32  ;;  %v10521_v58 = vpop.eup %10520  ;;  %v9835_v13 = vld [vmem:[#allocation11 + $0x1e4] sm:$0xf]  ;;  %5047 = vmatmul.bf16.gmra.mxu0 %v16808_v7 }
 0x71a   : > { %v3448_v1 = vpop.xlane.xlu2 %3447  ;;  %v3479_v6 = vmul.f32 %v10521_v58, %v14103_v47  ;;  %v14283_v32 = vpop.f32.mrf.mxu0  ;;  %v8736_v18 = vor.u32 %v9835_v13, %v8733_v22  ;;  %v8685_v58 = vld [vmem:[#allocation11 + $0x198] sm:$0xf0]  ;;  %p10836_p3 = pnand %p10835_p1, %p11042_p0  ;;  %p10841_p8 = por %p10840_p7, %p10839_p13 }
 0x71b   : > { %10522 = vrcp.f32 %v3448_v1  ;;  %16836 = vst [vmem:[#allocation101_spill] sm:$0xff] %v14275_v35  ;;  %4959 = vmatmul.bf16.gmra.mxu2 %v14275_v35  ;;  %4910 = vmatmul.bf16.gmra.mxu1 %v16838_v23  ;;  %v8928_v1 = vor.u32 %v9883_v17, %v8925_v30  ;;  %v8904_v35 = vor.u32 %v9877_v39, %v8901_v48  ;;  %v8709_v17 = vld [vmem:[#allocation11 + $0x1c8] sm:$0xf0]  ;;  %v9871_v30 = vld [vmem:[#allocation11 + $0x304] sm:$0xf]  ;;  %v14285_v23 = vpop.f32.mrf.mxu3 }
 0x71c   : > { %5116 = vmatpush.bf16.msrb.mxu2 %v8952_v37  ;;  %5067 = vmatpush.bf16.msra.mxu1 %v8760_v21  ;;  %v9829_v37 = vld [vmem:[#allocation11 + $0x1b4] sm:$0xf]  ;;  %16839 = vst [vmem:[#allocation91_spill] sm:$0xff] %v14285_v23  ;;  %v9823_v21 = vld [vmem:[#allocation11 + $0x184] sm:$0xf]  ;;  %p10837_p5 = pneg %p10836_p3 }
 0x71d   : > { %v8712_v47 = vor.u32 %v9829_v37, %v8709_v17  ;;  %v8688_v48 = vor.u32 %v9823_v21, %v8685_v58  ;;  %v8619_v21 = vld [vmem:[#allocation11 + $0xf8] sm:$0xf]  ;;  %v9931_v23 = vld [vmem:[#allocation11 + $0x4e4] sm:$0xf] }
 0x71e   : > { %p10842_p9 = pnand %p10841_p8, %p10837_p5 }
 0x720   : > { %5117 = vmatpush.bf16.msrb.mxu2 %v8928_v1  ;;  %5068 = vmatpush.bf16.msra.mxu1 %v8736_v18  ;;  %v9821_v1 = vld [vmem:[#allocation11 + $0x16c] sm:$0xf0]  ;;  %v3797_v18 = vunpack.c.h.b16 %v14110_v63  ;;  %v9815_v63 = vld [vmem:[#allocation11 + $0x13c] sm:$0xf0] }
 0x721   : > { %v10523_v60 = vpop.eup %10522 }
 0x722   : > { %v3480_v44 = vmul.f32 %v10523_v60, %v14116_v56  ;;  %v8877_v56 = vld [vmem:[#allocation11 + $0x318] sm:$0xf0]  ;;  %v14288_v13 = vpop.f32.mrf.mxu0 }
 0x723   : > { %v8880_v60 = vor.u32 %v9871_v30, %v8877_v56  ;;  %v14296_v17 = vpop.f32.mrf.mxu3 }
 0x724   : > { %v3488_v19 = vpack.c.bf16 %v3480_v44, %v3479_v6  ;;  %5118 = vmatpush.bf16.msrb.mxu2 %v8904_v35  ;;  %v8667_v6 = vld [vmem:[#allocation11 + $0x158] sm:$0xf]  ;;  %5069 = vmatpush.bf16.msra.mxu1 %v8712_v47  ;;  %16840 = vst [vmem:[#allocation78_spill] sm:$0xff] %v14296_v17 }
 0x725   : > { %v8668_v44 = vor.u32 %v9821_v1, %v8667_v6  ;;  %v9809_v6 = vld [vmem:[#allocation11 + $0x10c] sm:$0xf0] }
 0x726   : > { %3564 = vmatmul.bf16.gmra.mxu3 %v3488_v19  ;;  %v3795_v19 = vunpack.c.h.b16 %v14108_v61  ;;  %v8643_v61 = vld [vmem:[#allocation11 + $0x128] sm:$0xf] }
 0x727   : > { %5210 = vmatpush.bf16.msrb.mxu0 %v8668_v44  ;;  %v8620_v44 = vor.u32 %v9809_v6, %v8619_v21 }
 0x728   : > { %5119 = vmatpush.bf16.msrb.mxu2 %v8880_v60  ;;  %v4876_v22 = vpop.f32.mrf.mxu1  ;;  %5070 = vmatpush.bf16.msra.mxu1 %v8688_v48  ;;  %v14299_v30 = vpack.c.b16 %v3797_v18, %v3795_v19  ;;  %v8644_v60 = vor.u32 %v9815_v63, %v8643_v61  ;;  %v8595_v48 = vld [vmem:[#allocation11 + $0xc8] sm:$0xf] }
 0x729   : > { %v4877_v39 = vadd.f32 %v4876_v22, %v14174_v62  ;;  %5052 = vmatmul.bf16.gmra.mxu0 %v16812_v5  ;;  %v9803_v22 = vld [vmem:[#allocation11 + $0xdc] sm:$0xf0] }
 0x72a   : > { %v14301_v47 = vpop.f32.mrf.mxu0 }
 0x72b   : > { %5120 = vmatmul.bf16.vlgmr.msrb.gmra.mxu2 %v14120_v53  ;;  %v4925_v35 = vpop.f32.mrf.mxu2  ;;  %5071 = vmatmul.bf16.vlgmr.msra.gmra.mxu1 %v16810_v45 }
 0x72c   : > { %v14294_v37 = vadd.f32 %v4925_v35, %v4877_v39  ;;  %5211 = vmatpush.bf16.msrb.mxu0 %v8644_v60  ;;  %v14308_v39 = vpop.f32.mrf.mxu3  ;;  %v8596_v35 = vor.u32 %v9803_v22, %v8595_v48 }
 0x72d   : > { %16841 = vst [vmem:[#allocation86_spill] sm:$0xff] %v14308_v39  ;;  %v3803_v39 = vunpack.c.h.b16 %v14151_v36 }
 0x730   : > { %v4878_v56 = vpop.f32.mrf.mxu1  ;;  %5212 = vmatpush.bf16.msrb.mxu0 %v8620_v44  ;;  %v8547_v44 = vld [vmem:[#allocation11 + $0x68] sm:$0xf] }
 0x731   : > { %v4879_v62 = vadd.f32 %v4878_v56, %v14183_v38  ;;  %v3799_v56 = vunpack.c.h.b16 %v14130_v9  ;;  %v8571_v9 = vld [vmem:[#allocation11 + $0x98] sm:$0xf] }
 0x732   : > { %v14310_v19 = vpop.f32.mrf.mxu0 }
 0x733   : > { %v4927_v58 = vpop.f32.mrf.mxu2 }
 0x734   : > { %v14305_v1 = vadd.f32 %v4927_v58, %v4879_v62  ;;  %v3801_v62 = vunpack.c.h.b16 %v14132_v26  ;;  %5213 = vmatpush.bf16.msrb.mxu0 %v8596_v35  ;;  %v9797_v26 = vld [vmem:[#allocation11 + $0xac] sm:$0xf0] }
 0x735   : > { %v8572_v22 = vor.u32 %v9797_v26, %v8571_v9  ;;  %v3805_v9 = vunpack.c.h.b16 %v14153_v4  ;;  %v8499_v26 = vld [vmem:[#allocation11 + $0x8] sm:$0xf] }
 0x736   : > { %4973 = vmatmul.bf16.vlgmr.msra.gmra.mxu3 %v14299_v30  ;;  %v14319_v21 = vpack.c.b16 %v3801_v62, %v3799_v56  ;;  %v8523_v56 = vld [vmem:[#allocation11 + $0x38] sm:$0xf]  ;;  %v9785_v62 = vld [vmem:[#allocation11 + $0x4c] sm:$0xf0] }
 0x738   : > { %v4881_v38 = vpop.f32.mrf.mxu1  ;;  %5214 = vmatpush.bf16.msrb.mxu0 %v8572_v22 }
 0x739   : > { %v4882_v18 = vadd.f32 %v4881_v38, %v14189_v10  ;;  %v14323_v10 = vpop.f32.mrf.mxu3  ;;  %v9791_v38 = vld [vmem:[#allocation11 + $0x7c] sm:$0xf0]  ;;  %5057 = vmatmul.bf16.gmra.mxu0 %v16815_v40 }
 0x73a   : > { %v14321_v58 = vpop.f32.mrf.mxu0  ;;  %16842 = vst [vmem:[#allocation69_spill] sm:$0xff] %v14323_v10  ;;  %v8548_v35 = vor.u32 %v9791_v38, %v8547_v44 }
 0x73b   : > { %5125 = vmatmul.bf16.gmra.mxu2 %v14141_v3  ;;  %v4930_v61 = vpop.f32.mrf.mxu2  ;;  %5076 = vmatmul.bf16.gmra.mxu1 %v16814_v42 }
 0x73c   : > { %v14316_v63 = vadd.f32 %v4930_v61, %v4882_v18  ;;  %5215 = vmatpush.bf16.msrb.mxu0 %v8548_v35  ;;  %v9961_v35 = vld [vmem:[#allocation11 + $0x5d4] sm:$0xf] }
 0x740   : > { %v4883_v60 = vpop.f32.mrf.mxu1 }
 0x741   : > { %v4884_v6 = vadd.f32 %v4883_v60, %v14202_v52  ;;  %v8524_v60 = vor.u32 %v9785_v62, %v8523_v56  ;;  %v9237_v56 = vld [vmem:[#allocation11 + $0x5e8] sm:$0xf0] }
 0x742   : > { %v14330_v61 = vpop.f32.mrf.mxu0 }
 0x743   : > { %v4932_v48 = vpop.f32.mrf.mxu2  ;;  %5216 = vmatpush.bf16.msrb.mxu0 %v8524_v60 }
 0x744   : > { %v14327_v18 = vadd.f32 %v4932_v48, %v4884_v6  ;;  %v9779_v6 = vld [vmem:[#allocation11 + $0x1c] sm:$0xf0]  ;;  %v14335_v48 = vpop.f32.mrf.mxu3 }
 0x745   : > { %16843 = vst [vmem:[#allocation53_spill] sm:$0xff] %v14335_v48  ;;  %v8500_v38 = vor.u32 %v9779_v6, %v8499_v26  ;;  %v9240_v48 = vor.u32 %v9961_v35, %v9237_v56  ;;  %v3809_v6 = vunpack.c.h.b16 %v14170_v24  ;;  %v9213_v24 = vld [vmem:[#allocation11 + $0x5b8] sm:$0xf0] }
 0x746   : > { %4978 = vmatmul.bf16.gmra.mxu3 %v14319_v21 }
 0x747   : > { %5217 = vmatpush.bf16.msrb.mxu0 %v8500_v38  ;;  %5161 = vmatpush.bf16.msrb.mxu3 %v9240_v48 }
 0x748   : > { %v4886_v10 = vpop.f32.mrf.mxu1 }
 0x749   : > { %v4887_v52 = vadd.f32 %v4886_v10, %v14210_v29  ;;  %v14341_v29 = vpack.c.b16 %v3805_v9, %v3803_v39 }
 0x74a   : > { %v14343_v10 = vpop.f32.mrf.mxu0  ;;  %5218 = vmatmul.bf16.vlgmr.msrb.gmra.mxu0 %v16800_v12 }
 0x74b   : > { %5130 = vmatmul.bf16.gmra.mxu2 %v14160_v31  ;;  %v4935_v44 = vpop.f32.mrf.mxu2  ;;  %5081 = vmatmul.bf16.gmra.mxu1 %v16817_v43 }
 0x74c   : > { %v14338_v22 = vadd.f32 %v4935_v44, %v4887_v52  ;;  %v14350_v60 = vpop.f32.mrf.mxu3 }
 0x74d   : > { %16844 = vst [vmem:[#allocation70_spill] sm:$0xff] %v14350_v60  ;;  %v3817_v60 = vunpack.c.h.b16 %v14221_v11 }
 0x750   : > { %v4888_v36 = vpop.f32.mrf.mxu1 }
 0x751   : > { %v4889_v4 = vadd.f32 %v4888_v36, %v14225_v46  ;;  %v3807_v46 = vunpack.c.h.b16 %v14168_v41  ;;  %v9955_v41 = vld [vmem:[#allocation11 + $0x5a4] sm:$0xf] }
 0x752   : > { %v14352_v39 = vpop.f32.mrf.mxu0 }
 0x753   : > { %v4937_v62 = vpop.f32.mrf.mxu2  ;;  %v14361_v36 = vpack.c.b16 %v3809_v6, %v3807_v46 }
 0x754   : > { %v14347_v52 = vadd.f32 %v4937_v62, %v4889_v4  ;;  %v14363_v4 = vpop.f32.mrf.mxu3  ;;  %v9216_v62 = vor.u32 %v9955_v41, %v9213_v24 }
 0x755   : > { %16845 = vst [vmem:[#allocation49_spill] sm:$0xff] %v14361_v36 }
 0x756   : > { %4983 = vmatmul.bf16.gmra.mxu3 %v14341_v29  ;;  %16846 = vst [vmem:[#allocation80_spill] sm:$0xff] %v14363_v4 }
 0x757   : > { %5162 = vmatpush.bf16.msrb.mxu3 %v9216_v62  ;;  %v9949_v62 = vld [vmem:[#allocation11 + $0x574] sm:$0xf] }
 0x758   : > { %v4891_v9 = vpop.f32.mrf.mxu1 }
 0x759   : > { %v4892_v26 = vadd.f32 %v4891_v9, %v14235_v14 }
 0x75a   : > { %v14365_v48 = vpop.f32.mrf.mxu0  ;;  %5223 = vmatmul.bf16.gmra.mxu0 %v16801_v50 }
 0x75b   : > { %5135 = vmatmul.bf16.gmra.mxu2 %v14179_v20  ;;  %v4940_v44 = vpop.f32.mrf.mxu2  ;;  %5086 = vmatmul.bf16.gmra.mxu1 %v16820_v0 }
 0x75c   : > { %v14358_v38 = vadd.f32 %v4940_v44, %v4892_v26  ;;  %v14374_v6 = vpop.f32.mrf.mxu3  ;;  %v3811_v44 = vunpack.c.h.b16 %v14196_v2 }
 0x75d   : > { %16847 = vst [vmem:[#allocation52_spill] sm:$0xff] %v14374_v6 }
 0x760   : > { %v4893_v35 = vpop.f32.mrf.mxu1 }
 0x761   : > { %v4894_v14 = vadd.f32 %v4893_v35, %v14250_v49  ;;  %v3813_v49 = vunpack.c.h.b16 %v14198_v27  ;;  %v9189_v27 = vld [vmem:[#allocation11 + $0x588] sm:$0xf0] }
 0x762   : > { %v14372_v26 = vpop.f32.mrf.mxu0 }
 0x763   : > { %v4942_v56 = vpop.f32.mrf.mxu2 }
 0x764   : > { %v14369_v9 = vadd.f32 %v4942_v56, %v4894_v14  ;;  %v14381_v14 = vpack.c.b16 %v3813_v49, %v3811_v44  ;;  %v14389_v6 = vpop.f32.mrf.mxu3 }
 0x765   : > { %16849 = vst [vmem:[#allocation98_spill] sm:$0xff] %v14389_v6 }
 0x766   : > { %4988 = vmatmul.bf16.gmra.mxu3 %v14361_v36  ;;  %16848 = vst [vmem:[#allocation38_spill] sm:$0xff] %v14381_v14 }
 0x768   : > { %v4896_v46 = vpop.f32.mrf.mxu1 }
 0x769   : > { %v4897_v35 = vadd.f32 %v4896_v46, %v14258_v57  ;;  %v9192_v57 = vor.u32 %v9949_v62, %v9189_v27 }
 0x76a   : > { %v14385_v24 = vpop.f32.mrf.mxu0  ;;  %5228 = vmatmul.bf16.gmra.mxu0 %v16802_v59 }
 0x76b   : > { %5140 = vmatmul.bf16.gmra.mxu2 %v14204_v51  ;;  %v4945_v4 = vpop.f32.mrf.mxu2  ;;  %5091 = vmatmul.bf16.gmra.mxu1 %v16824_v8 }
 0x76c   : > { %v14383_v41 = vadd.f32 %v4945_v4, %v4897_v35  ;;  %5163 = vmatpush.bf16.msrb.mxu3 %v9192_v57  ;;  %v3815_v35 = vunpack.c.h.b16 %v14219_v54  ;;  %v9943_v57 = vld [vmem:[#allocation11 + $0x544] sm:$0xf] }
 0x76e   : > { %v14403_v27 = vpack.c.b16 %v3817_v60, %v3815_v35 }
 0x770   : > { %v4898_v56 = vpop.f32.mrf.mxu1  ;;  %16852 = vst [vmem:[#allocation83_spill] sm:$0xff] %v14403_v27 }
 0x771   : > { %v4899_v2 = vadd.f32 %v4898_v56, %v14273_v34  ;;  %v14400_v56 = vpop.f32.mrf.mxu3 }
 0x772   : > { %v14394_v4 = vpop.f32.mrf.mxu0  ;;  %16851 = vst [vmem:[#allocation87_spill] sm:$0xff] %v14400_v56 }
 0x773   : > { %v4947_v46 = vpop.f32.mrf.mxu2 }
 0x774   : > { %v14392_v44 = vadd.f32 %v4947_v46, %v4899_v2  ;;  %v9165_v46 = vld [vmem:[#allocation11 + $0x558] sm:$0xf0] }
 0x775   : > { %v9168_v54 = vor.u32 %v9943_v57, %v9165_v46  ;;  %v9117_v46 = vld [vmem:[#allocation11 + $0x4f8] sm:$0xf0] }
 0x776   : > { %4993 = vmatmul.bf16.gmra.mxu3 %v14381_v14  ;;  %16850 = vst [vmem:[#allocation92_spill] sm:$0xff] %v14392_v44  ;;  %v9027_v44 = vld [vmem:[#allocation11 + $0x428] sm:$0xf] }
 0x777   : > { %5164 = vmatpush.bf16.msrb.mxu3 %v9168_v54  ;;  %v8859_v54 = vld [vmem:[#allocation11 + $0x2d8] sm:$0xf] }
 0x778   : > { %v4901_v49 = vpop.f32.mrf.mxu1 }
 0x779   : > { %v4902_v34 = vadd.f32 %v4901_v49, %v14283_v32  ;;  %v9937_v32 = vld [vmem:[#allocation11 + $0x514] sm:$0xf]  ;;  %v9141_v49 = vld [vmem:[#allocation11 + $0x528] sm:$0xf0] }
 0x77a   : > { %v14407_v6 = vpop.f32.mrf.mxu0  ;;  %v9144_v56 = vor.u32 %v9937_v32, %v9141_v49  ;;  %5233 = vmatmul.bf16.gmra.mxu0 %v16803_v55  ;;  %v9911_v32 = vld [vmem:[#allocation11 + $0x43c] sm:$0xf0]  ;;  %v9925_v49 = vld [vmem:[#allocation11 + $0x4b4] sm:$0xf] }
 0x77b   : > { %5145 = vmatmul.bf16.gmra.mxu2 %v14227_v15  ;;  %v4950_v62 = vpop.f32.mrf.mxu2  ;;  %5096 = vmatmul.bf16.gmra.mxu1 %v16827_v28  ;;  %v9869_v28 = vld [vmem:[#allocation11 + $0x2ec] sm:$0xf0]  ;;  %v9028_v15 = vor.u32 %v9911_v32, %v9027_v44 }
 0x77c   : > { %v14405_v2 = vadd.f32 %v4950_v62, %v4902_v34  ;;  %5165 = vmatpush.bf16.msrb.mxu3 %v9144_v56  ;;  %v9051_v34 = vld [vmem:[#allocation11 + $0x458] sm:$0xf]  ;;  %v9917_v62 = vld [vmem:[#allocation11 + $0x46c] sm:$0xf0]  ;;  %v9093_v56 = vld [vmem:[#allocation11 + $0x4c8] sm:$0xf0] }
 0x77d   : > { %v9052_v57 = vor.u32 %v9917_v62, %v9051_v34  ;;  %v9096_v59 = vor.u32 %v9925_v49, %v9093_v56  ;;  %v16856_v34 = vld [vmem:[#allocation79_spill] sm:$0xff]  ;;  %v9905_v49 = vld [vmem:[#allocation11 + $0x40c] sm:$0xf0] }
 0x77e   : > { %16853 = vst [vmem:[#allocation77_spill] sm:$0xff] %v14405_v2  ;;  %v3821_v62 = vunpack.c.h.b16 %v16856_v34 }
 0x77f   : > { %5308 = vmatpush.bf16.msra.mxu2 %v9052_v57 }
 0x780   : > { %v4903_v17 = vpop.f32.mrf.mxu1 }
 0x781   : > { %v4904_v11 = vadd.f32 %v4903_v17, %v14288_v13  ;;  %v9120_v13 = vor.u32 %v9931_v23, %v9117_v46  ;;  %v8860_v17 = vor.u32 %v9869_v28, %v8859_v54  ;;  %v8835_v54 = vld [vmem:[#allocation11 + $0x2a8] sm:$0xf] }
 0x783   : > { %v4952_v35 = vpop.f32.mrf.mxu2  ;;  %5166 = vmatpush.bf16.msrb.mxu3 %v9120_v13  ;;  %5259 = vmatpush.bf16.msrb.mxu1 %v8860_v17  ;;  %v9863_v13 = vld [vmem:[#allocation11 + $0x2bc] sm:$0xf0]  ;;  %v9003_v17 = vld [vmem:[#allocation11 + $0x3f8] sm:$0xf] }
 0x784   : > { %v14412_v2 = vadd.f32 %v4952_v35, %v4904_v11  ;;  %v16855_v11 = vld [vmem:[#allocation102_spill] sm:$0xff]  ;;  %5309 = vmatpush.bf16.msra.mxu2 %v9028_v15  ;;  %v8836_v32 = vor.u32 %v9863_v13, %v8835_v54  ;;  %v9004_v15 = vor.u32 %v9905_v49, %v9003_v17 }
 0x785   : > { %v3819_v35 = vunpack.c.h.b16 %v16855_v11 }
 0x786   : > { %4998 = vmatmul.bf16.gmra.mxu3 %v14403_v27  ;;  %16854 = vst [vmem:[#allocation75_spill] sm:$0xff] %v14412_v2  ;;  %v14414_v27 = vpop.f32.mrf.mxu0 }
 0x787   : > { %5167 = vmatpush.bf16.msrb.mxu3 %v9096_v59  ;;  %v14423_v44 = vpack.c.b16 %v3821_v62, %v3819_v35  ;;  %5260 = vmatpush.bf16.msrb.mxu1 %v8836_v32  ;;  %v8979_v35 = vld [vmem:[#allocation11 + $0x3c8] sm:$0xf] }
 0x788   : > { %v3555_v60 = vpop.f32.mrf.mxu3  ;;  %v4906_v55 = vpop.f32.mrf.mxu1  ;;  %5310 = vmatpush.bf16.msra.mxu2 %v9004_v15 }
 0x789   : > { %v4907_v2 = vadd.f32 %v4906_v55, %v14301_v47  ;;  %16858 = vst [vmem:[#allocation59_spill] sm:$0xff] %v14423_v44  ;;  %v9919_v55 = vld [vmem:[#allocation11 + $0x484] sm:$0xf]  ;;  %v9069_v47 = vld [vmem:[#allocation11 + $0x498] sm:$0xf0] }
 0x78a   : > { %v9072_v11 = vor.u32 %v9919_v55, %v9069_v47  ;;  %v8787_v55 = vld [vmem:[#allocation11 + $0x248] sm:$0xf]  ;;  %v9851_v47 = vld [vmem:[#allocation11 + $0x25c] sm:$0xf0] }
 0x78b   : > { %5150 = vmatmul.bf16.gmra.mxu2 %v14252_v33  ;;  %v4955_v23 = vpop.f32.mrf.mxu2  ;;  %5101 = vmatmul.bf16.gmra.mxu1 %v16833_v25  ;;  %v8788_v15 = vor.u32 %v9851_v47, %v8787_v55  ;;  %v16864_v55 = vld [vmem:[#allocation31_spill] sm:$0xff] }
 0x78c   : > { %v14425_v46 = vadd.f32 %v4955_v23, %v4907_v2  ;;  %v8811_v2 = vld [vmem:[#allocation11 + $0x278] sm:$0xf]  ;;  %5168 = vmatpush.bf16.msrb.mxu3 %v9072_v11  ;;  %v16860_v23 = vld [vmem:[#allocation29_spill] sm:$0xff] }
 0x78d   : > { %5238 = vmatmul.bf16.gmra.mxu0 %v16860_v23  ;;  %v8763_v11 = vld [vmem:[#allocation11 + $0x218] sm:$0xf]  ;;  %v8931_v23 = vld [vmem:[#allocation11 + $0x368] sm:$0xf] }
 0x78e   : > { %16859 = vst [vmem:[#allocation61_spill] sm:$0xff] %v14425_v46  ;;  %v14427_v34 = vpop.f32.mrf.mxu0 }
 0x790   : > { %v3557_v28 = vpop.f32.mrf.mxu3  ;;  %v4908_v56 = vpop.f32.mrf.mxu1 }
 0x791   : > { %v14421_v57 = vpack.c.bf16 %v3557_v28, %v3555_v60  ;;  %v4909_v59 = vadd.f32 %v4908_v56, %v14310_v19  ;;  %v9857_v60 = vld [vmem:[#allocation11 + $0x28c] sm:$0xf0]  ;;  %v9899_v28 = vld [vmem:[#allocation11 + $0x3dc] sm:$0xf0]  ;;  %v8955_v19 = vld [vmem:[#allocation11 + $0x398] sm:$0xf] }
 0x792   : > { %v8812_v62 = vor.u32 %v9857_v60, %v8811_v2  ;;  %v8980_v54 = vor.u32 %v9899_v28, %v8979_v35  ;;  %v9845_v2 = vld [vmem:[#allocation11 + $0x22c] sm:$0xf0]  ;;  %v16862_v60 = vld [vmem:[#allocation95_spill] sm:$0xff]  ;;  %v3825_v35 = vunpack.c.h.b16 %v14269_v16 }
 0x793   : > { %16857 = vst [vmem:[#allocation54_spill] sm:$0xff] %v14421_v57  ;;  %v4957_v17 = vpop.f32.mrf.mxu2  ;;  %v9893_v57 = vld [vmem:[#allocation11 + $0x3ac] sm:$0xf0]  ;;  %v3823_v46 = vunpack.c.h.b16 %v16862_v60 }
 0x794   : > { %5261 = vmatpush.bf16.msrb.mxu1 %v8812_v62  ;;  %v14432_v49 = vadd.f32 %v4957_v17, %v4909_v59  ;;  %5311 = vmatpush.bf16.msra.mxu2 %v8980_v54  ;;  %v8956_v28 = vor.u32 %v9893_v57, %v8955_v19  ;;  %v9887_v62 = vld [vmem:[#allocation11 + $0x37c] sm:$0xf0]  ;;  %v16863_v59 = vld [vmem:[#allocation101_spill] sm:$0xff]  ;;  %v8764_v17 = vor.u32 %v9845_v2, %v8763_v11 }
 0x795   : > { %v14443_v25 = vpack.c.b16 %v3825_v35, %v3823_v46  ;;  %v9839_v19 = vld [vmem:[#allocation11 + $0x1fc] sm:$0xf0]  ;;  %v9833_v46 = vld [vmem:[#allocation11 + $0x1cc] sm:$0xf0]  ;;  %v8883_v35 = vld [vmem:[#allocation11 + $0x308] sm:$0xf] }
 0x796   : > { %5003 = vmatmul.bf16.gmra.mxu3 %v14423_v44  ;;  %16861 = vst [vmem:[#allocation41_spill] sm:$0xff] %v14432_v49  ;;  %v14434_v56 = vpop.f32.mrf.mxu0  ;;  %v8932_v49 = vor.u32 %v9887_v62, %v8931_v23  ;;  %v8907_v23 = vld [vmem:[#allocation11 + $0x338] sm:$0xf] }
 0x797   : > { %16866 = vst [vmem:[#allocation44_spill] sm:$0xff] %v14443_v25 }
 0x798   : > { %v4911_v32 = vpop.f32.mrf.mxu1  ;;  %5262 = vmatpush.bf16.msrb.mxu1 %v8788_v15  ;;  %5312 = vmatpush.bf16.msra.mxu2 %v8956_v28  ;;  %v9875_v28 = vld [vmem:[#allocation11 + $0x31c] sm:$0xf0] }
 0x799   : > { %v3560_v13 = vpop.f32.mrf.mxu3  ;;  %v4912_v54 = vadd.f32 %v4911_v32, %v14321_v58  ;;  %v8739_v32 = vld [vmem:[#allocation11 + $0x1e8] sm:$0xf] }
 0x79a   : > { %v8740_v11 = vor.u32 %v9839_v19, %v8739_v32 }
 0x79b   : > { %5155 = vmatmul.bf16.gmra.mxu2 %v16863_v59  ;;  %5106 = vmatmul.bf16.gmra.mxu1 %v16864_v55 }
 0x79c   : > { %5263 = vmatpush.bf16.msrb.mxu1 %v8764_v17  ;;  %5313 = vmatpush.bf16.msra.mxu2 %v8932_v49  ;;  %v8884_v17 = vor.u32 %v9875_v28, %v8883_v35 }
 0x79d   : > { %5243 = vmatmul.bf16.gmra.mxu0 %v16808_v7 }
 0x79e   : > { %v4960_v60 = vpop.f32.mrf.mxu2  ;;  %v14448_v58 = vpop.f32.mrf.mxu0 }
 0x79f   : > { %v14445_v16 = vadd.f32 %v4960_v60, %v4912_v54 }
 0x7a0   : > { %v4913_v57 = vpop.f32.mrf.mxu1  ;;  %5264 = vmatpush.bf16.msrb.mxu1 %v8740_v11 }
 0x7a1   : > { %v3562_v44 = vpop.f32.mrf.mxu3  ;;  %16867 = vst [vmem:[#allocation60_spill] sm:$0xff] %v14445_v16  ;;  %v4914_v15 = vadd.f32 %v4913_v57, %v14330_v61  ;;  %v9827_v16 = vld [vmem:[#allocation11 + $0x19c] sm:$0xf0] }
 0x7a2   : > { %v14441_v47 = vpack.c.bf16 %v3562_v44, %v3560_v13  ;;  %v9881_v44 = vld [vmem:[#allocation11 + $0x34c] sm:$0xf0]  ;;  %v8715_v13 = vld [vmem:[#allocation11 + $0x1b8] sm:$0xf] }
 0x7a3   : > { %v8908_v2 = vor.u32 %v9881_v44, %v8907_v23  ;;  %v8716_v62 = vor.u32 %v9833_v46, %v8715_v13  ;;  %v8669_v46 = vld [vmem:[#allocation11 + $0x170] sm:$0xf0] }
 0x7a4   : > { %16865 = vst [vmem:[#allocation62_spill] sm:$0xff] %v14441_v47  ;;  %v8691_v47 = vld [vmem:[#allocation11 + $0x188] sm:$0xf] }
 0x7a5   : > { %5314 = vmatpush.bf16.msra.mxu2 %v8908_v2  ;;  %5265 = vmatpush.bf16.msrb.mxu1 %v8716_v62  ;;  %v8692_v61 = vor.u32 %v9827_v16, %v8691_v47 }
 0x7a6   : > { %5008 = vmatmul.bf16.gmra.mxu3 %v14443_v25  ;;  %v4962_v54 = vpop.f32.mrf.mxu2  ;;  %v14454_v57 = vpop.f32.mrf.mxu0 }
 0x7a7   : > { %v14452_v60 = vadd.f32 %v4962_v54, %v4914_v15  ;;  %v9818_v15 = vld [vmem:[#allocation11 + $0x15c] sm:$0xf]  ;;  %v9812_v54 = vld [vmem:[#allocation11 + $0x12c] sm:$0xf] }
 0x7a8   : > { %v5072_v32 = vpop.f32.mrf.mxu1  ;;  %v8672_v47 = vor.u32 %v9818_v15, %v8669_v46 }
 0x7a9   : > { %v3565_v49 = vpop.f32.mrf.mxu3  ;;  %5315 = vmatpush.bf16.msra.mxu2 %v8884_v17  ;;  %v5073_v19 = vadd.f32 %v5072_v32, %v14343_v10  ;;  %5266 = vmatpush.bf16.msrb.mxu1 %v8692_v61  ;;  %v8645_v17 = vld [vmem:[#allocation11 + $0x140] sm:$0xf0]  ;;  %v9806_v32 = vld [vmem:[#allocation11 + $0xfc] sm:$0xf] }
 0x7aa   : > { %5406 = vmatpush.bf16.msra.mxu0 %v8672_v47  ;;  %v8648_v61 = vor.u32 %v9812_v54, %v8645_v17  ;;  %v8597_v54 = vld [vmem:[#allocation11 + $0xe0] sm:$0xf0]  ;;  %v9782_v17 = vld [vmem:[#allocation11 + $0x3c] sm:$0xf] }
 0x7ac   : > { %5316 = vmatmul.bf16.vlgmr.msra.gmra.mxu2 %v14120_v53  ;;  %5267 = vmatmul.bf16.vlgmr.msrb.gmra.mxu1 %v16810_v45 }
 0x7ad   : > { %5248 = vmatmul.bf16.gmra.mxu0 %v16812_v5 }
 0x7ae   : > { %v5121_v44 = vpop.f32.mrf.mxu2  ;;  %v14464_v16 = vpop.f32.mrf.mxu0  ;;  %5407 = vmatpush.bf16.msra.mxu0 %v8648_v61 }
 0x7af   : > { %v14460_v13 = vadd.f32 %v5121_v44, %v5073_v19  ;;  %v8621_v19 = vld [vmem:[#allocation11 + $0x110] sm:$0xf0] }
 0x7b0   : > { %v5074_v2 = vpop.f32.mrf.mxu1 }
 0x7b1   : > { %v3567_v23 = vpop.f32.mrf.mxu3  ;;  %v5075_v10 = vadd.f32 %v5074_v2, %v14352_v39  ;;  %v8624_v39 = vor.u32 %v9806_v32, %v8621_v19  ;;  %v8573_v32 = vld [vmem:[#allocation11 + $0xb0] sm:$0xf0] }
 0x7b2   : > { %v14458_v11 = vpack.c.bf16 %v3567_v23, %v3565_v49 }
 0x7b3   : > { %5408 = vmatpush.bf16.msra.mxu0 %v8624_v39 }
 0x7b4   : > { %16868 = vst [vmem:[#allocation63_spill] sm:$0xff] %v14458_v11  ;;  %v8525_v11 = vld [vmem:[#allocation11 + $0x50] sm:$0xf0] }
 0x7b6   : > { %5169 = vmatmul.bf16.vlgmr.msrb.gmra.mxu3 %v14299_v30  ;;  %v5123_v49 = vpop.f32.mrf.mxu2  ;;  %v14471_v23 = vpop.f32.mrf.mxu0 }
 0x7b7   : > { %v14469_v62 = vadd.f32 %v5123_v49, %v5075_v10  ;;  %v9800_v49 = vld [vmem:[#allocation11 + $0xcc] sm:$0xf] }
 0x7b8   : > { %v5077_v44 = vpop.f32.mrf.mxu1 }
 0x7b9   : > { %v4974_v35 = vpop.f32.mrf.mxu3  ;;  %v5078_v15 = vadd.f32 %v5077_v44, %v14365_v48  ;;  %v8600_v48 = vor.u32 %v9800_v49, %v8597_v54  ;;  %v8549_v49 = vld [vmem:[#allocation11 + $0x80] sm:$0xf0] }
 0x7ba   : > { %v4975_v28 = vadd.f32 %v4974_v35, %v14294_v37 }
 0x7bb   : > { %5409 = vmatpush.bf16.msra.mxu0 %v8600_v48 }
 0x7bc   : > { %5321 = vmatmul.bf16.gmra.mxu2 %v14141_v3  ;;  %v14476_v2 = vmul.f32 0.088388346, %v4975_v28  ;;  %5272 = vmatmul.bf16.gmra.mxu1 %v16814_v42  ;;  %v9794_v28 = vld [vmem:[#allocation11 + $0x9c] sm:$0xf] }
 0x7bd   : > { %v8576_v44 = vor.u32 %v9794_v28, %v8573_v32  ;;  %5253 = vmatmul.bf16.gmra.mxu0 %v16815_v40 }
 0x7be   : > { %v5126_v47 = vpop.f32.mrf.mxu2  ;;  %16869 = vst [vmem:[#allocation46_spill] sm:$0xff] %v14476_v2  ;;  %v14486_v61 = vpop.f32.mrf.mxu0 }
 0x7bf   : > { %v14478_v10 = vadd.f32 %v5126_v47, %v5078_v15  ;;  %5410 = vmatpush.bf16.msra.mxu0 %v8576_v44  ;;  %v9788_v47 = vld [vmem:[#allocation11 + $0x6c] sm:$0xf] }
 0x7c0   : > { %v8552_v54 = vor.u32 %v9788_v47, %v8549_v49  ;;  %v9776_v44 = vld [vmem:[#allocation11 + $0xc] sm:$0xf] }
 0x7c1   : > { %v4976_v46 = vpop.f32.mrf.mxu3 }
 0x7c2   : > { %v4977_v37 = vadd.f32 %v4976_v46, %v14305_v1  ;;  %v5079_v1 = vpop.f32.mrf.mxu1 }
 0x7c3   : > { %v5080_v19 = vadd.f32 %v5079_v1, %v14372_v26  ;;  %5411 = vmatpush.bf16.msra.mxu0 %v8552_v54  ;;  %v8528_v1 = vor.u32 %v9782_v17, %v8525_v11  ;;  %v9243_v11 = vld [vmem:[#allocation11 + $0x5d8] sm:$0xf]  ;;  %v9965_v17 = vld [vmem:[#allocation11 + $0x5ec] sm:$0xf0] }
 0x7c4   : > { %v14480_v35 = vmul.f32 0.088388346, %v4977_v37 }
 0x7c6   : > { %16870 = vst [vmem:[#allocation64_spill] sm:$0xff] %v14480_v35  ;;  %5174 = vmatmul.bf16.gmra.mxu3 %v14319_v21  ;;  %v5128_v46 = vpop.f32.mrf.mxu2  ;;  %v14495_v2 = vpop.f32.mrf.mxu0 }
 0x7c7   : > { %v14493_v37 = vadd.f32 %v5128_v46, %v5080_v19  ;;  %5412 = vmatpush.bf16.msra.mxu0 %v8528_v1 }
 0x7c9   : > { %v4979_v15 = vpop.f32.mrf.mxu3 }
 0x7ca   : > { %v14491_v39 = vadd.f32 %v4979_v15, %v14316_v63  ;;  %v5082_v26 = vpop.f32.mrf.mxu1  ;;  %v8501_v15 = vld [vmem:[#allocation11 + $0x20] sm:$0xf0] }
 0x7cb   : > { %v5083_v48 = vadd.f32 %v5082_v26, %v14385_v24  ;;  %v8504_v46 = vor.u32 %v9776_v44, %v8501_v15 }
 0x7cc   : > { %16871 = vst [vmem:[#allocation48_spill] sm:$0xff] %v14491_v39  ;;  %5326 = vmatmul.bf16.gmra.mxu2 %v14160_v31  ;;  %5277 = vmatmul.bf16.gmra.mxu1 %v16817_v43 }
 0x7cd   : > { %5413 = vmatpush.bf16.msra.mxu0 %v8504_v46 }
 0x7ce   : > { %v5131_v32 = vpop.f32.mrf.mxu2  ;;  %v14506_v47 = vpop.f32.mrf.mxu0 }
 0x7cf   : > { %v14502_v19 = vadd.f32 %v5131_v32, %v5083_v48 }
 0x7d0   : > { %5414 = vmatmul.bf16.vlgmr.msra.gmra.mxu0 %v16800_v12 }
 0x7d1   : > { %v4981_v28 = vpop.f32.mrf.mxu3 }
 0x7d2   : > { %v14500_v63 = vadd.f32 %v4981_v28, %v14327_v18  ;;  %v5084_v24 = vpop.f32.mrf.mxu1  ;;  %v9244_v18 = vor.u32 %v9965_v17, %v9243_v11  ;;  %v9219_v17 = vld [vmem:[#allocation11 + $0x5a8] sm:$0xf] }
 0x7d3   : > { %v5085_v49 = vadd.f32 %v5084_v24, %v14394_v4 }
 0x7d4   : > { %16872 = vst [vmem:[#allocation66_spill] sm:$0xff] %v14500_v63  ;;  %5357 = vmatpush.bf16.msra.mxu3 %v9244_v18 }
 0x7d6   : > { %5179 = vmatmul.bf16.gmra.mxu3 %v14341_v29  ;;  %v5133_v48 = vpop.f32.mrf.mxu2  ;;  %v14515_v32 = vpop.f32.mrf.mxu0 }
 0x7d7   : > { %v14513_v1 = vadd.f32 %v5133_v48, %v5085_v49  ;;  %v9959_v49 = vld [vmem:[#allocation11 + $0x5bc] sm:$0xf0] }
 0x7d8   : > { %v9220_v18 = vor.u32 %v9959_v49, %v9219_v17 }
 0x7d9   : > { %v4984_v54 = vpop.f32.mrf.mxu3 }
 0x7da   : > { %v14510_v26 = vadd.f32 %v4984_v54, %v14338_v22  ;;  %v5087_v28 = vpop.f32.mrf.mxu1  ;;  %5358 = vmatpush.bf16.msra.mxu3 %v9220_v18  ;;  %v9953_v18 = vld [vmem:[#allocation11 + $0x58c] sm:$0xf0] }
 0x7db   : > { %v5088_v44 = vadd.f32 %v5087_v28, %v14407_v6 }
 0x7dc   : > { %16873 = vst [vmem:[#allocation57_spill] sm:$0xff] %v14510_v26  ;;  %5331 = vmatmul.bf16.gmra.mxu2 %v14179_v20  ;;  %5282 = vmatmul.bf16.gmra.mxu1 %v16820_v0 }
 0x7de   : > { %v5136_v46 = vpop.f32.mrf.mxu2  ;;  %v14526_v11 = vpop.f32.mrf.mxu0 }
 0x7df   : > { %v14522_v24 = vadd.f32 %v5136_v46, %v5088_v44 }
 0x7e0   : > { %5419 = vmatmul.bf16.gmra.mxu0 %v16801_v50 }
 0x7e1   : > { %v4986_v15 = vpop.f32.mrf.mxu3 }
 0x7e2   : > { %v14520_v4 = vadd.f32 %v4986_v15, %v14347_v52  ;;  %v5089_v22 = vpop.f32.mrf.mxu1 }
 0x7e3   : > { %v5090_v6 = vadd.f32 %v5089_v22, %v14414_v27 }
 0x7e4   : > { %16874 = vst [vmem:[#allocation55_spill] sm:$0xff] %v14520_v4  ;;  %v16881_v4 = vld [vmem:[#allocation97_spill] sm:$0xff] }
 0x7e6   : > { %5184 = vmatmul.bf16.gmra.mxu3 %v14361_v36  ;;  %v5138_v48 = vpop.f32.mrf.mxu2  ;;  %v14535_v15 = vpop.f32.mrf.mxu0 }
 0x7e7   : > { %v14533_v28 = vadd.f32 %v5138_v48, %v5090_v6  ;;  %v9195_v6 = vld [vmem:[#allocation11 + $0x578] sm:$0xf] }
 0x7e9   : > { %v4989_v54 = vpop.f32.mrf.mxu3 }
 0x7ea   : > { %v14530_v52 = vadd.f32 %v4989_v54, %v14358_v38  ;;  %v5092_v44 = vpop.f32.mrf.mxu1  ;;  %v9196_v54 = vor.u32 %v9953_v18, %v9195_v6 }
 0x7eb   : > { %v5093_v46 = vadd.f32 %v5092_v44, %v14427_v34  ;;  %v16879_v44 = vld [vmem:[#allocation24_spill] sm:$0xff] }
 0x7ec   : > { %16875 = vst [vmem:[#allocation40_spill] sm:$0xff] %v14530_v52  ;;  %5336 = vmatmul.bf16.gmra.mxu2 %v14204_v51  ;;  %5287 = vmatmul.bf16.gmra.mxu1 %v16824_v8 }
 0x7ed   : > { %5359 = vmatpush.bf16.msra.mxu3 %v9196_v54  ;;  %v9171_v54 = vld [vmem:[#allocation11 + $0x548] sm:$0xf] }
 0x7ee   : > { %v5141_v22 = vpop.f32.mrf.mxu2  ;;  %v14546_v49 = vpop.f32.mrf.mxu0 }
 0x7ef   : > { %v14542_v17 = vadd.f32 %v5141_v22, %v5093_v46 }
 0x7f0   : > { %5424 = vmatmul.bf16.gmra.mxu0 %v16879_v44  ;;  %v9866_v44 = vld [vmem:[#allocation11 + $0x2dc] sm:$0xf] }
 0x7f1   : > { %v4991_v35 = vpop.f32.mrf.mxu3  ;;  %16877 = vst [vmem:[#allocation58_spill] sm:$0xff] %v14542_v17 }
 0x7f2   : > { %v14540_v27 = vadd.f32 %v4991_v35, %v14369_v9  ;;  %v5094_v38 = vpop.f32.mrf.mxu1 }
 0x7f3   : > { %v5095_v34 = vadd.f32 %v5094_v38, %v14434_v56  ;;  %v16882_v56 = vld [vmem:[#allocation92_spill] sm:$0xff] }
 0x7f4   : > { %16876 = vst [vmem:[#allocation39_spill] sm:$0xff] %v14540_v27 }
 0x7f6   : > { %5189 = vmatmul.bf16.gmra.mxu3 %v14381_v14  ;;  %v5143_v35 = vpop.f32.mrf.mxu2  ;;  %v14555_v52 = vpop.f32.mrf.mxu0 }
 0x7f7   : > { %v14553_v46 = vadd.f32 %v5143_v35, %v5095_v34  ;;  %v16886_v35 = vld [vmem:[#allocation83_spill] sm:$0xff] }
 0x7f9   : > { %v4994_v48 = vpop.f32.mrf.mxu3  ;;  %16880 = vst [vmem:[#allocation43_spill] sm:$0xff] %v14553_v46  ;;  %v9123_v46 = vld [vmem:[#allocation11 + $0x4e8] sm:$0xf] }
 0x7fa   : > { %v14550_v9 = vadd.f32 %v4994_v48, %v14383_v41  ;;  %v5097_v22 = vpop.f32.mrf.mxu1  ;;  %v16885_v41 = vld [vmem:[#allocation33_spill] sm:$0xff]  ;;  %v9947_v48 = vld [vmem:[#allocation11 + $0x55c] sm:$0xf0] }
 0x7fb   : > { %v5098_v27 = vadd.f32 %v5097_v22, %v14448_v58  ;;  %v9172_v34 = vor.u32 %v9947_v48, %v9171_v54  ;;  %v9147_v58 = vld [vmem:[#allocation11 + $0x518] sm:$0xf]  ;;  %v9941_v22 = vld [vmem:[#allocation11 + $0x52c] sm:$0xf0]  ;;  %v9914_v54 = vld [vmem:[#allocation11 + $0x45c] sm:$0xf] }
 0x7fc   : > { %16878 = vst [vmem:[#allocation56_spill] sm:$0xff] %v14550_v9  ;;  %5341 = vmatmul.bf16.gmra.mxu2 %v16881_v4  ;;  %5292 = vmatmul.bf16.gmra.mxu1 %v16885_v41  ;;  %v9053_v48 = vld [vmem:[#allocation11 + $0x470] sm:$0xf0]  ;;  %v9935_v4 = vld [vmem:[#allocation11 + $0x4fc] sm:$0xf0] }
 0x7fd   : > { %5360 = vmatpush.bf16.msra.mxu3 %v9172_v34  ;;  %v8861_v34 = vld [vmem:[#allocation11 + $0x2f0] sm:$0xf0] }
 0x7fe   : > { %v5146_v6 = vpop.f32.mrf.mxu2  ;;  %v14566_v39 = vpop.f32.mrf.mxu0 }
 0x7ff   : > { %v14562_v18 = vadd.f32 %v5146_v6, %v5098_v27 }
 0x801   : > { %v4996_v26 = vpop.f32.mrf.mxu3  ;;  %16884 = vst [vmem:[#allocation65_spill] sm:$0xff] %v14562_v18  ;;  %v16889_v18 = vld [vmem:[#allocation30_spill] sm:$0xff] }
 0x802   : > { %v14560_v38 = vadd.f32 %v4996_v26, %v16882_v56  ;;  %v5099_v9 = vpop.f32.mrf.mxu1  ;;  %v9148_v26 = vor.u32 %v9941_v22, %v9147_v58  ;;  %5429 = vmatmul.bf16.gmra.mxu0 %v16889_v18  ;;  %v9908_v58 = vld [vmem:[#allocation11 + $0x42c] sm:$0xf]  ;;  %v16894_v18 = vld [vmem:[#allocation32_spill] sm:$0xff] }
 0x803   : > { %v5100_v63 = vadd.f32 %v5099_v9, %v14454_v57  ;;  %v9124_v9 = vor.u32 %v9935_v4, %v9123_v46 }
 0x804   : > { %16883 = vst [vmem:[#allocation42_spill] sm:$0xff] %v14560_v38  ;;  %v16887_v38 = vld [vmem:[#allocation77_spill] sm:$0xff]  ;;  %5361 = vmatpush.bf16.msra.mxu3 %v9148_v26  ;;  %v9929_v26 = vld [vmem:[#allocation11 + $0x4cc] sm:$0xf0] }
 0x806   : > { %5194 = vmatmul.bf16.gmra.mxu3 %v16886_v35  ;;  %v5148_v6 = vpop.f32.mrf.mxu2  ;;  %v9056_v35 = vor.u32 %v9914_v54, %v9053_v48  ;;  %v14575_v57 = vpop.f32.mrf.mxu0  ;;  %v16891_v48 = vld [vmem:[#allocation75_spill] sm:$0xff] }
 0x807   : > { %v14573_v41 = vadd.f32 %v5148_v6, %v5100_v63  ;;  %v9099_v6 = vld [vmem:[#allocation11 + $0x4b8] sm:$0xf] }
 0x808   : > { %5504 = vmatpush.bf16.msrb.mxu2 %v9056_v35  ;;  %5362 = vmatpush.bf16.msra.mxu3 %v9124_v9  ;;  %v9902_v35 = vld [vmem:[#allocation11 + $0x3fc] sm:$0xf]  ;;  %v9005_v9 = vld [vmem:[#allocation11 + $0x410] sm:$0xf0] }
 0x809   : > { %v4999_v56 = vpop.f32.mrf.mxu3  ;;  %16890 = vst [vmem:[#allocation67_spill] sm:$0xff] %v14573_v41 }
 0x80a   : > { %v14570_v27 = vadd.f32 %v4999_v56, %v16887_v38  ;;  %v5102_v17 = vpop.f32.mrf.mxu1  ;;  %v9029_v38 = vld [vmem:[#allocation11 + $0x440] sm:$0xf0]  ;;  %v8864_v56 = vor.u32 %v9866_v44, %v8861_v34  ;;  %v9075_v34 = vld [vmem:[#allocation11 + $0x488] sm:$0xf] }
 0x80b   : > { %v5103_v22 = vadd.f32 %v5102_v17, %v14464_v16  ;;  %v9032_v63 = vor.u32 %v9908_v58, %v9029_v38  ;;  %v9860_v16 = vld [vmem:[#allocation11 + $0x2ac] sm:$0xf]  ;;  %v8837_v17 = vld [vmem:[#allocation11 + $0x2c0] sm:$0xf0]  ;;  %v16895_v58 = vld [vmem:[#allocation59_spill] sm:$0xff] }
 0x80c   : > { %16888 = vst [vmem:[#allocation45_spill] sm:$0xff] %v14570_v27  ;;  %v9100_v27 = vor.u32 %v9929_v26, %v9099_v6  ;;  %5346 = vmatmul.bf16.gmra.mxu2 %v14252_v33  ;;  %5455 = vmatpush.bf16.msra.mxu1 %v8864_v56  ;;  %v8840_v44 = vor.u32 %v9860_v16, %v8837_v17  ;;  %v9923_v26 = vld [vmem:[#allocation11 + $0x49c] sm:$0xf0]  ;;  %v16898_v33 = vld [vmem:[#allocation29_spill] sm:$0xff] }
 0x80d   : > { %5505 = vmatpush.bf16.msrb.mxu2 %v9032_v63  ;;  %5297 = vmatmul.bf16.gmra.mxu1 %v16894_v18  ;;  %v9008_v6 = vor.u32 %v9902_v35, %v9005_v9 }
 0x80e   : > { %v5151_v4 = vpop.f32.mrf.mxu2  ;;  %5363 = vmatpush.bf16.msra.mxu3 %v9100_v27  ;;  %v14586_v56 = vpop.f32.mrf.mxu0 }
 0x80f   : > { %v14582_v46 = vadd.f32 %v5151_v4, %v5103_v22  ;;  %v8813_v22 = vld [vmem:[#allocation11 + $0x290] sm:$0xf0]  ;;  %v9896_v4 = vld [vmem:[#allocation11 + $0x3cc] sm:$0xf] }
 0x810   : > { %5456 = vmatpush.bf16.msra.mxu1 %v8840_v44  ;;  %v8789_v44 = vld [vmem:[#allocation11 + $0x260] sm:$0xf0] }
 0x811   : > { %v5001_v54 = vpop.f32.mrf.mxu3  ;;  %16893 = vst [vmem:[#allocation72_spill] sm:$0xff] %v14582_v46  ;;  %5506 = vmatpush.bf16.msrb.mxu2 %v9008_v6  ;;  %v16896_v46 = vld [vmem:[#allocation61_spill] sm:$0xff] }
 0x812   : > { %v14580_v41 = vadd.f32 %v5001_v54, %v16891_v48  ;;  %v5104_v38 = vpop.f32.mrf.mxu1  ;;  %v9854_v54 = vld [vmem:[#allocation11 + $0x27c] sm:$0xf]  ;;  %v9076_v48 = vor.u32 %v9923_v26, %v9075_v34  ;;  %5434 = vmatmul.bf16.gmra.mxu0 %v16898_v33 }
 0x813   : > { %v5105_v63 = vadd.f32 %v5104_v38, %v14471_v23  ;;  %v8816_v27 = vor.u32 %v9854_v54, %v8813_v22  ;;  %v9848_v23 = vld [vmem:[#allocation11 + $0x24c] sm:$0xf]  ;;  %v9890_v34 = vld [vmem:[#allocation11 + $0x39c] sm:$0xf]  ;;  %v8957_v38 = vld [vmem:[#allocation11 + $0x3b0] sm:$0xf0] }
 0x814   : > { %16892 = vst [vmem:[#allocation47_spill] sm:$0xff] %v14580_v41  ;;  %v8981_v41 = vld [vmem:[#allocation11 + $0x3e0] sm:$0xf0]  ;;  %5364 = vmatpush.bf16.msra.mxu3 %v9076_v48  ;;  %v8792_v9 = vor.u32 %v9848_v23, %v8789_v44  ;;  %v9842_v26 = vld [vmem:[#allocation11 + $0x21c] sm:$0xf]  ;;  %v8960_v54 = vor.u32 %v9890_v34, %v8957_v38 }
 0x815   : > { %v8984_v16 = vor.u32 %v9896_v4, %v8981_v41  ;;  %5457 = vmatpush.bf16.msra.mxu1 %v8816_v27  ;;  %v8765_v22 = vld [vmem:[#allocation11 + $0x230] sm:$0xf0]  ;;  %v8933_v48 = vld [vmem:[#allocation11 + $0x380] sm:$0xf0]  ;;  %v9836_v34 = vld [vmem:[#allocation11 + $0x1ec] sm:$0xf] }
 0x816   : > { %5199 = vmatmul.bf16.gmra.mxu3 %v16895_v58  ;;  %v5153_v18 = vpop.f32.mrf.mxu2  ;;  %v14595_v41 = vpop.f32.mrf.mxu0  ;;  %v8741_v38 = vld [vmem:[#allocation11 + $0x200] sm:$0xf0] }
 0x817   : > { %v14593_v35 = vadd.f32 %v5153_v18, %v5105_v63  ;;  %5507 = vmatpush.bf16.msrb.mxu2 %v8984_v16  ;;  %v8768_v18 = vor.u32 %v9842_v26, %v8765_v22  ;;  %v16899_v16 = vld [vmem:[#allocation41_spill] sm:$0xff]  ;;  %v9878_v26 = vld [vmem:[#allocation11 + $0x33c] sm:$0xf]  ;;  %v8909_v22 = vld [vmem:[#allocation11 + $0x350] sm:$0xf0] }
 0x819   : > { %v5004_v17 = vpop.f32.mrf.mxu3  ;;  %5458 = vmatpush.bf16.msra.mxu1 %v8792_v9 }
 0x81a   : > { %v14590_v58 = vadd.f32 %v5004_v17, %v16896_v46  ;;  %v5107_v6 = vpop.f32.mrf.mxu1  ;;  %v9884_v46 = vld [vmem:[#allocation11 + $0x36c] sm:$0xf] }
 0x81b   : > { %v5108_v4 = vadd.f32 %v5107_v6, %v14486_v61  ;;  %5508 = vmatpush.bf16.msrb.mxu2 %v8960_v54  ;;  %v8936_v63 = vor.u32 %v9884_v46, %v8933_v48  ;;  %v8744_v54 = vor.u32 %v9836_v34, %v8741_v38  ;;  %v9830_v46 = vld [vmem:[#allocation11 + $0x1bc] sm:$0xf]  ;;  %v8717_v48 = vld [vmem:[#allocation11 + $0x1d0] sm:$0xf0] }
 0x81c   : > { %16897 = vst [vmem:[#allocation68_spill] sm:$0xff] %v14590_v58  ;;  %5351 = vmatmul.bf16.gmra.mxu2 %v16863_v59 }
 0x81d   : > { %5459 = vmatpush.bf16.msra.mxu1 %v8768_v18  ;;  %v8885_v18 = vld [vmem:[#allocation11 + $0x320] sm:$0xf0] }
 0x81e   : > { %v5156_v23 = vpop.f32.mrf.mxu2  ;;  %5302 = vmatmul.bf16.gmra.mxu1 %v16864_v55  ;;  %v14606_v9 = vpop.f32.mrf.mxu0 }
 0x81f   : > { %v14602_v44 = vadd.f32 %v5156_v23, %v5108_v4  ;;  %5509 = vmatpush.bf16.msrb.mxu2 %v8936_v63  ;;  %v8912_v4 = vor.u32 %v9878_v26, %v8909_v22  ;;  %v8720_v63 = vor.u32 %v9830_v46, %v8717_v48  ;;  %v16902_v23 = vld [vmem:[#allocation60_spill] sm:$0xff] }
 0x821   : > { %v5006_v27 = vpop.f32.mrf.mxu3  ;;  %16901 = vst [vmem:[#allocation71_spill] sm:$0xff] %v14602_v44  ;;  %5460 = vmatpush.bf16.msra.mxu1 %v8744_v54 }
 0x822   : > { %v14600_v17 = vadd.f32 %v5006_v27, %v16899_v16  ;;  %v5109_v61 = vpop.f32.mrf.mxu1  ;;  %v9872_v27 = vld [vmem:[#allocation11 + $0x30c] sm:$0xf]  ;;  %5439 = vmatmul.bf16.gmra.mxu0 %v16808_v7 }
 0x823   : > { %v5110_v6 = vadd.f32 %v5109_v61, %v14495_v2  ;;  %5510 = vmatpush.bf16.msrb.mxu2 %v8912_v4  ;;  %v8888_v44 = vor.u32 %v9872_v27, %v8885_v18  ;;  %v9824_v2 = vld [vmem:[#allocation11 + $0x18c] sm:$0xf]  ;;  %v8693_v61 = vld [vmem:[#allocation11 + $0x1a0] sm:$0xf0] }
 0x824   : > { %16900 = vst [vmem:[#allocation73_spill] sm:$0xff] %v14600_v17  ;;  %v8696_v34 = vor.u32 %v9824_v2, %v8693_v61  ;;  %v9816_v2 = vld [vmem:[#allocation11 + $0x144] sm:$0xf0] }
 0x825   : > { %5461 = vmatpush.bf16.msra.mxu1 %v8720_v63 }
 0x826   : > { %5204 = vmatmul.bf16.gmra.mxu3 %v14443_v25  ;;  %v5158_v17 = vpop.f32.mrf.mxu2  ;;  %v14615_v38 = vpop.f32.mrf.mxu0 }
 0x827   : > { %v14613_v25 = vadd.f32 %v5158_v17, %v5110_v6  ;;  %5511 = vmatpush.bf16.msrb.mxu2 %v8888_v44  ;;  %v8675_v17 = vld [vmem:[#allocation11 + $0x160] sm:$0xf]  ;;  %v9822_v6 = vld [vmem:[#allocation11 + $0x174] sm:$0xf0] }
 0x828   : > { %v8676_v44 = vor.u32 %v9822_v6, %v8675_v17 }
 0x829   : > { %v5009_v16 = vpop.f32.mrf.mxu3  ;;  %5462 = vmatpush.bf16.msra.mxu1 %v8696_v34 }
 0x82a   : > { %v14610_v58 = vadd.f32 %v5009_v16, %v16902_v23  ;;  %v5268_v54 = vpop.f32.mrf.mxu1  ;;  %5602 = vmatpush.bf16.msrb.mxu0 %v8676_v44  ;;  %v8651_v23 = vld [vmem:[#allocation11 + $0x130] sm:$0xf] }
 0x82b   : > { %v5269_v46 = vadd.f32 %v5268_v54, %v14506_v47  ;;  %v8652_v34 = vor.u32 %v9816_v2, %v8651_v23  ;;  %v9810_v54 = vld [vmem:[#allocation11 + $0x114] sm:$0xf0] }
 0x82c   : > { %16903 = vst [vmem:[#allocation20_spill] sm:$0xff] %v14610_v58  ;;  %5512 = vmatmul.bf16.vlgmr.msrb.gmra.mxu2 %v14120_v53  ;;  %v9149_v58 = vld [vmem:[#allocation11 + $0x530] sm:$0xf0] }
 0x82e   : > { %5463 = vmatmul.bf16.vlgmr.msra.gmra.mxu1 %v16810_v45  ;;  %v14626_v27 = vpop.f32.mrf.mxu0  ;;  %5603 = vmatpush.bf16.msrb.mxu0 %v8652_v34  ;;  %v8531_v34 = vld [vmem:[#allocation11 + $0x40] sm:$0xf] }
 0x82f   : > { %v5317_v48 = vpop.f32.mrf.mxu2 }
 0x830   : > { %v14623_v4 = vadd.f32 %v5317_v48, %v5269_v46 }
 0x831   : > { %v5011_v26 = vpop.f32.mrf.mxu3 }
 0x832   : > { %v14619_v22 = vadd.f32 %v5011_v26, %v14452_v60  ;;  %v5270_v16 = vpop.f32.mrf.mxu1  ;;  %5444 = vmatmul.bf16.gmra.mxu0 %v16812_v5  ;;  %v8627_v26 = vld [vmem:[#allocation11 + $0x100] sm:$0xf] }
 0x833   : > { %v5271_v63 = vadd.f32 %v5270_v16, %v14515_v32  ;;  %v8628_v48 = vor.u32 %v9810_v54, %v8627_v26 }
 0x834   : > { %16904 = vst [vmem:[#allocation22_spill] sm:$0xff] %v14619_v22 }
 0x835   : > { %5604 = vmatpush.bf16.msrb.mxu0 %v8628_v48 }
 0x836   : > { %5365 = vmatmul.bf16.vlgmr.msra.gmra.mxu3 %v14299_v30  ;;  %v14633_v46 = vpop.f32.mrf.mxu0 }
 0x837   : > { %v5319_v47 = vpop.f32.mrf.mxu2 }
 0x838   : > { %v14631_v61 = vadd.f32 %v5319_v47, %v5271_v63  ;;  %v8603_v63 = vld [vmem:[#allocation11 + $0xd0] sm:$0xf]  ;;  %v9804_v47 = vld [vmem:[#allocation11 + $0xe4] sm:$0xf0] }
 0x839   : > { %v5170_v18 = vpop.f32.mrf.mxu3  ;;  %v8604_v2 = vor.u32 %v9804_v47, %v8603_v63 }
 0x83a   : > { %v5171_v60 = vadd.f32 %v5170_v18, %v14460_v13  ;;  %v5273_v13 = vpop.f32.mrf.mxu1 }
 0x83b   : > { %v5274_v6 = vadd.f32 %v5273_v13, %v14526_v11  ;;  %v8579_v11 = vld [vmem:[#allocation11 + $0xa0] sm:$0xf]  ;;  %5605 = vmatpush.bf16.msrb.mxu0 %v8604_v2 }
 0x83c   : > { %5517 = vmatmul.bf16.gmra.mxu2 %v14141_v3  ;;  %v14638_v44 = vmul.f32 0.088388346, %v5171_v60  ;;  %v9798_v60 = vld [vmem:[#allocation11 + $0xb4] sm:$0xf0] }
 0x83d   : > { %v8580_v26 = vor.u32 %v9798_v60, %v8579_v11 }
 0x83e   : > { %16905 = vst [vmem:[#allocation28_spill] sm:$0xff] %v14638_v44  ;;  %5468 = vmatmul.bf16.gmra.mxu1 %v16814_v42  ;;  %v9786_v44 = vld [vmem:[#allocation11 + $0x54] sm:$0xf0] }
 0x83f   : > { %v5322_v16 = vpop.f32.mrf.mxu2  ;;  %5606 = vmatpush.bf16.msrb.mxu0 %v8580_v26  ;;  %v8532_v11 = vor.u32 %v9786_v44, %v8531_v34  ;;  %v9962_v44 = vld [vmem:[#allocation11 + $0x5dc] sm:$0xf]  ;;  %v9245_v34 = vld [vmem:[#allocation11 + $0x5f0] sm:$0xf0] }
 0x840   : > { %v14643_v23 = vadd.f32 %v5322_v16, %v5274_v6  ;;  %v8555_v6 = vld [vmem:[#allocation11 + $0x70] sm:$0xf]  ;;  %v9792_v16 = vld [vmem:[#allocation11 + $0x84] sm:$0xf0] }
 0x841   : > { %v5172_v17 = vpop.f32.mrf.mxu3  ;;  %v8556_v47 = vor.u32 %v9792_v16, %v8555_v6 }
 0x842   : > { %v5173_v32 = vadd.f32 %v5172_v17, %v14469_v62  ;;  %v14648_v62 = vpop.f32.mrf.mxu0  ;;  %v5275_v48 = vpop.f32.mrf.mxu1  ;;  %5449 = vmatmul.bf16.gmra.mxu0 %v16815_v40 }
 0x843   : > { %v5276_v13 = vadd.f32 %v5275_v48, %v14535_v15  ;;  %5607 = vmatpush.bf16.msrb.mxu0 %v8556_v47  ;;  %v8507_v48 = vld [vmem:[#allocation11 + $0x10] sm:$0xf] }
 0x844   : > { %v14640_v18 = vmul.f32 0.088388346, %v5173_v32 }
 0x846   : > { %16906 = vst [vmem:[#allocation21_spill] sm:$0xff] %v14640_v18  ;;  %5370 = vmatmul.bf16.gmra.mxu3 %v14319_v21 }
 0x847   : > { %v5324_v32 = vpop.f32.mrf.mxu2  ;;  %5608 = vmatpush.bf16.msrb.mxu0 %v8532_v11 }
 0x848   : > { %v14655_v63 = vadd.f32 %v5324_v32, %v5276_v13  ;;  %v9780_v13 = vld [vmem:[#allocation11 + $0x24] sm:$0xf0] }
 0x849   : > { %v5175_v54 = vpop.f32.mrf.mxu3  ;;  %v8508_v6 = vor.u32 %v9780_v13, %v8507_v48 }
 0x84a   : > { %v14651_v17 = vadd.f32 %v5175_v54, %v14478_v10  ;;  %v14657_v2 = vpop.f32.mrf.mxu0  ;;  %v5278_v10 = vpop.f32.mrf.mxu1 }
 0x84b   : > { %v5279_v26 = vadd.f32 %v5278_v10, %v14546_v49  ;;  %5609 = vmatpush.bf16.msrb.mxu0 %v8508_v6 }
 0x84c   : > { %16907 = vst [vmem:[#allocation27_spill] sm:$0xff] %v14651_v17  ;;  %5522 = vmatmul.bf16.gmra.mxu2 %v14160_v31 }
 0x84e   : > { %5473 = vmatmul.bf16.gmra.mxu1 %v16817_v43 }
 0x84f   : > { %v5327_v54 = vpop.f32.mrf.mxu2 }
 0x850   : > { %v14665_v32 = vadd.f32 %v5327_v54, %v5279_v26 }
 0x851   : > { %v5177_v60 = vpop.f32.mrf.mxu3 }
 0x852   : > { %v14661_v15 = vadd.f32 %v5177_v60, %v14493_v37  ;;  %v14668_v16 = vpop.f32.mrf.mxu0  ;;  %v9248_v37 = vor.u32 %v9962_v44, %v9245_v34  ;;  %v5280_v60 = vpop.f32.mrf.mxu1  ;;  %5610 = vmatmul.bf16.vlgmr.msrb.gmra.mxu0 %v16800_v12  ;;  %v9956_v34 = vld [vmem:[#allocation11 + $0x5ac] sm:$0xf] }
 0x853   : > { %v5281_v11 = vadd.f32 %v5280_v60, %v14555_v52 }
 0x854   : > { %16908 = vst [vmem:[#allocation23_spill] sm:$0xff] %v14661_v15  ;;  %5553 = vmatpush.bf16.msrb.mxu3 %v9248_v37  ;;  %v9221_v37 = vld [vmem:[#allocation11 + $0x5c0] sm:$0xf0]  ;;  %v9938_v15 = vld [vmem:[#allocation11 + $0x51c] sm:$0xf] }
 0x855   : > { %v9224_v60 = vor.u32 %v9956_v34, %v9221_v37 }
 0x856   : > { %5375 = vmatmul.bf16.gmra.mxu3 %v14341_v29 }
 0x857   : > { %v5329_v10 = vpop.f32.mrf.mxu2 }
 0x858   : > { %v14675_v26 = vadd.f32 %v5329_v10, %v5281_v11  ;;  %5554 = vmatpush.bf16.msrb.mxu3 %v9224_v60  ;;  %v9950_v60 = vld [vmem:[#allocation11 + $0x57c] sm:$0xf] }
 0x859   : > { %v5180_v47 = vpop.f32.mrf.mxu3 }
 0x85a   : > { %v14671_v49 = vadd.f32 %v5180_v47, %v14502_v19  ;;  %v14677_v54 = vpop.f32.mrf.mxu0  ;;  %v5283_v13 = vpop.f32.mrf.mxu1 }
 0x85b   : > { %v5284_v44 = vadd.f32 %v5283_v13, %v14566_v39 }
 0x85c   : > { %16909 = vst [vmem:[#allocation26_spill] sm:$0xff] %v14671_v49  ;;  %5527 = vmatmul.bf16.gmra.mxu2 %v14179_v20  ;;  %v16914_v49 = vld [vmem:[#allocation58_spill] sm:$0xff] }
 0x85e   : > { %5478 = vmatmul.bf16.gmra.mxu1 %v16820_v0 }
 0x85f   : > { %v5332_v19 = vpop.f32.mrf.mxu2 }
 0x860   : > { %v14685_v52 = vadd.f32 %v5332_v19, %v5284_v44 }
 0x861   : > { %v5182_v48 = vpop.f32.mrf.mxu3 }
 0x862   : > { %v14681_v6 = vadd.f32 %v5182_v48, %v14513_v1  ;;  %v14688_v47 = vpop.f32.mrf.mxu0  ;;  %v5285_v10 = vpop.f32.mrf.mxu1  ;;  %5615 = vmatmul.bf16.gmra.mxu0 %v16801_v50 }
 0x863   : > { %v5286_v39 = vadd.f32 %v5285_v10, %v14575_v57 }
 0x864   : > { %16910 = vst [vmem:[#allocation25_spill] sm:$0xff] %v14681_v6  ;;  %v16918_v6 = vld [vmem:[#allocation97_spill] sm:$0xff] }
 0x866   : > { %5380 = vmatmul.bf16.gmra.mxu3 %v14361_v36 }
 0x867   : > { %v5334_v48 = vpop.f32.mrf.mxu2 }
 0x868   : > { %v14695_v13 = vadd.f32 %v5334_v48, %v5286_v39 }
 0x869   : > { %v5185_v11 = vpop.f32.mrf.mxu3 }
 0x86a   : > { %v14691_v1 = vadd.f32 %v5185_v11, %v14522_v24  ;;  %v14697_v44 = vpop.f32.mrf.mxu0  ;;  %v5288_v18 = vpop.f32.mrf.mxu1  ;;  %v9197_v11 = vld [vmem:[#allocation11 + $0x590] sm:$0xf0] }
 0x86b   : > { %v5289_v37 = vadd.f32 %v5288_v18, %v14586_v56  ;;  %v9200_v39 = vor.u32 %v9950_v60, %v9197_v11  ;;  %v16916_v18 = vld [vmem:[#allocation24_spill] sm:$0xff]  ;;  %v16919_v60 = vld [vmem:[#allocation43_spill] sm:$0xff] }
 0x86c   : > { %16911 = vst [vmem:[#allocation102_spill] sm:$0xff] %v14691_v1  ;;  %5532 = vmatmul.bf16.gmra.mxu2 %v14204_v51 }
 0x86d   : > { %5555 = vmatpush.bf16.msrb.mxu3 %v9200_v39 }
 0x86e   : > { %5483 = vmatmul.bf16.gmra.mxu1 %v16824_v8 }
 0x86f   : > { %v5337_v24 = vpop.f32.mrf.mxu2 }
 0x870   : > { %v14705_v57 = vadd.f32 %v5337_v24, %v5289_v37 }
 0x871   : > { %v5187_v19 = vpop.f32.mrf.mxu3 }
 0x872   : > { %v14701_v34 = vadd.f32 %v5187_v19, %v14533_v28  ;;  %16913 = vst [vmem:[#allocation95_spill] sm:$0xff] %v14705_v57  ;;  %v14708_v10 = vpop.f32.mrf.mxu0  ;;  %v5290_v1 = vpop.f32.mrf.mxu1  ;;  %5620 = vmatmul.bf16.gmra.mxu0 %v16916_v18  ;;  %v9035_v18 = vld [vmem:[#allocation11 + $0x430] sm:$0xf]  ;;  %v9912_v57 = vld [vmem:[#allocation11 + $0x444] sm:$0xf0] }
 0x873   : > { %v5291_v56 = vadd.f32 %v5290_v1, %v14595_v41  ;;  %v9944_v41 = vld [vmem:[#allocation11 + $0x54c] sm:$0xf]  ;;  %v9173_v1 = vld [vmem:[#allocation11 + $0x560] sm:$0xf0] }
 0x874   : > { %16912 = vst [vmem:[#allocation79_spill] sm:$0xff] %v14701_v34 }
 0x876   : > { %5385 = vmatmul.bf16.gmra.mxu3 %v14381_v14 }
 0x877   : > { %v5339_v19 = vpop.f32.mrf.mxu2 }
 0x878   : > { %v14715_v37 = vadd.f32 %v5339_v19, %v5291_v56  ;;  %v9176_v56 = vor.u32 %v9944_v41, %v9173_v1  ;;  %v16923_v19 = vld [vmem:[#allocation83_spill] sm:$0xff] }
 0x879   : > { %v5190_v48 = vpop.f32.mrf.mxu3  ;;  %v9918_v41 = vld [vmem:[#allocation11 + $0x474] sm:$0xf0] }
 0x87a   : > { %v14711_v28 = vadd.f32 %v5190_v48, %v16914_v49  ;;  %16917 = vst [vmem:[#allocation31_spill] sm:$0xff] %v14715_v37  ;;  %v14717_v24 = vpop.f32.mrf.mxu0  ;;  %v5293_v17 = vpop.f32.mrf.mxu1  ;;  %v16921_v48 = vld [vmem:[#allocation33_spill] sm:$0xff]  ;;  %5556 = vmatpush.bf16.msrb.mxu3 %v9176_v56  ;;  %v9152_v37 = vor.u32 %v9938_v15, %v9149_v58  ;;  %v8867_v56 = vld [vmem:[#allocation11 + $0x2e0] sm:$0xf]  ;;  %v9870_v15 = vld [vmem:[#allocation11 + $0x2f4] sm:$0xf0] }
 0x87b   : > { %v5294_v39 = vadd.f32 %v5293_v17, %v14606_v9 }
 0x87c   : > { %16915 = vst [vmem:[#allocation101_spill] sm:$0xff] %v14711_v28  ;;  %5537 = vmatmul.bf16.gmra.mxu2 %v16918_v6  ;;  %v9125_v6 = vld [vmem:[#allocation11 + $0x500] sm:$0xf0] }
 0x87e   : > { %5488 = vmatmul.bf16.gmra.mxu1 %v16921_v48  ;;  %v16926_v48 = vld [vmem:[#allocation30_spill] sm:$0xff]  ;;  %5557 = vmatpush.bf16.msrb.mxu3 %v9152_v37 }
 0x87f   : > { %v5342_v49 = vpop.f32.mrf.mxu2  ;;  %v9101_v37 = vld [vmem:[#allocation11 + $0x4d0] sm:$0xf0] }
 0x880   : > { %v14725_v28 = vadd.f32 %v5342_v49, %v5294_v39  ;;  %v9059_v49 = vld [vmem:[#allocation11 + $0x460] sm:$0xf] }
 0x881   : > { %v5192_v34 = vpop.f32.mrf.mxu3 }
 0x882   : > { %v14721_v11 = vadd.f32 %v5192_v34, %v16919_v60  ;;  %16922 = vst [vmem:[#allocation77_spill] sm:$0xff] %v14725_v28  ;;  %v14728_v22 = vpop.f32.mrf.mxu0  ;;  %v5295_v60 = vpop.f32.mrf.mxu1  ;;  %5625 = vmatmul.bf16.gmra.mxu0 %v16926_v48  ;;  %v9060_v28 = vor.u32 %v9918_v41, %v9059_v49  ;;  %v16929_v49 = vld [vmem:[#allocation67_spill] sm:$0xff] }
 0x883   : > { %v5296_v17 = vadd.f32 %v5295_v60, %v14615_v38  ;;  %v8868_v38 = vor.u32 %v9870_v15, %v8867_v56  ;;  %v9926_v60 = vld [vmem:[#allocation11 + $0x4bc] sm:$0xf]  ;;  %v9906_v15 = vld [vmem:[#allocation11 + $0x414] sm:$0xf0] }
 0x884   : > { %16920 = vst [vmem:[#allocation92_spill] sm:$0xff] %v14721_v11  ;;  %v16924_v11 = vld [vmem:[#allocation65_spill] sm:$0xff]  ;;  %5700 = vmatpush.bf16.msra.mxu2 %v9060_v28 }
 0x885   : > { %5651 = vmatpush.bf16.msrb.mxu1 %v8868_v38  ;;  %v9864_v28 = vld [vmem:[#allocation11 + $0x2c4] sm:$0xf0] }
 0x886   : > { %5390 = vmatmul.bf16.gmra.mxu3 %v16923_v19  ;;  %v9932_v19 = vld [vmem:[#allocation11 + $0x4ec] sm:$0xf] }
 0x887   : > { %v5344_v39 = vpop.f32.mrf.mxu2  ;;  %v9128_v58 = vor.u32 %v9932_v19, %v9125_v6 }
 0x888   : > { %v14735_v1 = vadd.f32 %v5344_v39, %v5296_v17  ;;  %v16928_v17 = vld [vmem:[#allocation89_spill] sm:$0xff] }
 0x889   : > { %v5195_v34 = vpop.f32.mrf.mxu3  ;;  %5558 = vmatpush.bf16.msrb.mxu3 %v9128_v58  ;;  %v9011_v58 = vld [vmem:[#allocation11 + $0x400] sm:$0xf] }
 0x88a   : > { %v14731_v9 = vadd.f32 %v5195_v34, %v16924_v11  ;;  %16927 = vst [vmem:[#allocation61_spill] sm:$0xff] %v14735_v1  ;;  %v14737_v11 = vpop.f32.mrf.mxu0  ;;  %v9036_v34 = vor.u32 %v9912_v57, %v9035_v18  ;;  %v5298_v39 = vpop.f32.mrf.mxu1  ;;  %v16931_v1 = vld [vmem:[#allocation32_spill] sm:$0xff]  ;;  %v8843_v57 = vld [vmem:[#allocation11 + $0x2b0] sm:$0xf]  ;;  %v9012_v38 = vor.u32 %v9906_v15, %v9011_v58 }
 0x88b   : > { %v5299_v6 = vadd.f32 %v5298_v39, %v14626_v27  ;;  %v8844_v56 = vor.u32 %v9864_v28, %v8843_v57  ;;  %v16934_v28 = vld [vmem:[#allocation72_spill] sm:$0xff]  ;;  %v8795_v15 = vld [vmem:[#allocation11 + $0x250] sm:$0xf] }
 0x88c   : > { %16925 = vst [vmem:[#allocation75_spill] sm:$0xff] %v14731_v9  ;;  %v9104_v9 = vor.u32 %v9926_v60, %v9101_v37  ;;  %5542 = vmatmul.bf16.gmra.mxu2 %v16928_v17  ;;  %v9920_v60 = vld [vmem:[#allocation11 + $0x48c] sm:$0xf]  ;;  %v16933_v37 = vld [vmem:[#allocation59_spill] sm:$0xff]  ;;  %v8963_v17 = vld [vmem:[#allocation11 + $0x3a0] sm:$0xf] }
 0x88d   : > { %5701 = vmatpush.bf16.msra.mxu2 %v9036_v34  ;;  %5652 = vmatpush.bf16.msrb.mxu1 %v8844_v56 }
 0x88e   : > { %5493 = vmatmul.bf16.gmra.mxu1 %v16931_v1  ;;  %5559 = vmatpush.bf16.msrb.mxu3 %v9104_v9  ;;  %v8987_v9 = vld [vmem:[#allocation11 + $0x3d0] sm:$0xf]  ;;  %v9900_v1 = vld [vmem:[#allocation11 + $0x3e4] sm:$0xf0] }
 0x88f   : > { %v5347_v19 = vpop.f32.mrf.mxu2 }
 0x890   : > { %v14745_v18 = vadd.f32 %v5347_v19, %v5299_v6  ;;  %v8988_v6 = vor.u32 %v9900_v1, %v8987_v9  ;;  %v8771_v1 = vld [vmem:[#allocation11 + $0x220] sm:$0xf]  ;;  %v9888_v9 = vld [vmem:[#allocation11 + $0x384] sm:$0xf0] }
 0x891   : > { %v5197_v48 = vpop.f32.mrf.mxu3  ;;  %5702 = vmatpush.bf16.msra.mxu2 %v9012_v38 }
 0x892   : > { %v14741_v41 = vadd.f32 %v5197_v48, %v16929_v49  ;;  %16932 = vst [vmem:[#allocation41_spill] sm:$0xff] %v14745_v18  ;;  %v9077_v48 = vld [vmem:[#allocation11 + $0x4a0] sm:$0xf0]  ;;  %v8819_v49 = vld [vmem:[#allocation11 + $0x280] sm:$0xf]  ;;  %v14748_v27 = vpop.f32.mrf.mxu0  ;;  %v5300_v57 = vpop.f32.mrf.mxu1  ;;  %5630 = vmatmul.bf16.gmra.mxu0 %v16898_v33 }
 0x893   : > { %v9080_v34 = vor.u32 %v9920_v60, %v9077_v48  ;;  %v5301_v58 = vadd.f32 %v5300_v57, %v14633_v46  ;;  %v9846_v48 = vld [vmem:[#allocation11 + $0x234] sm:$0xf0] }
 0x894   : > { %16930 = vst [vmem:[#allocation29_spill] sm:$0xff] %v14741_v41  ;;  %v9858_v41 = vld [vmem:[#allocation11 + $0x294] sm:$0xf0]  ;;  %v8772_v46 = vor.u32 %v9846_v48, %v8771_v1  ;;  %v16937_v1 = vld [vmem:[#allocation44_spill] sm:$0xff] }
 0x895   : > { %v8820_v39 = vor.u32 %v9858_v41, %v8819_v49  ;;  %5560 = vmatpush.bf16.msrb.mxu3 %v9080_v34  ;;  %v9894_v41 = vld [vmem:[#allocation11 + $0x3b4] sm:$0xf0]  ;;  %5703 = vmatpush.bf16.msra.mxu2 %v8988_v6  ;;  %v8939_v34 = vld [vmem:[#allocation11 + $0x370] sm:$0xf] }
 0x896   : > { %5395 = vmatmul.bf16.gmra.mxu3 %v16933_v37  ;;  %v9852_v37 = vld [vmem:[#allocation11 + $0x264] sm:$0xf0]  ;;  %v8964_v38 = vor.u32 %v9894_v41, %v8963_v17  ;;  %v8940_v57 = vor.u32 %v9888_v9, %v8939_v34  ;;  %v8723_v34 = vld [vmem:[#allocation11 + $0x1c0] sm:$0xf]  ;;  %v8891_v9 = vld [vmem:[#allocation11 + $0x310] sm:$0xf] }
 0x897   : > { %5653 = vmatpush.bf16.msrb.mxu1 %v8820_v39  ;;  %v8796_v56 = vor.u32 %v9852_v37, %v8795_v15  ;;  %v5349_v60 = vpop.f32.mrf.mxu2  ;;  %v9840_v15 = vld [vmem:[#allocation11 + $0x204] sm:$0xf0] }
 0x898   : > { %v14755_v49 = vadd.f32 %v5349_v60, %v5301_v58  ;;  %v8747_v58 = vld [vmem:[#allocation11 + $0x1f0] sm:$0xf]  ;;  %v8915_v60 = vld [vmem:[#allocation11 + $0x340] sm:$0xf] }
 0x899   : > { %v5200_v19 = vpop.f32.mrf.mxu3  ;;  %5704 = vmatpush.bf16.msra.mxu2 %v8964_v38  ;;  %v8748_v41 = vor.u32 %v9840_v15, %v8747_v58  ;;  %v9882_v38 = vld [vmem:[#allocation11 + $0x354] sm:$0xf0]  ;;  %v8699_v15 = vld [vmem:[#allocation11 + $0x190] sm:$0xf] }
 0x89a   : > { %v14751_v18 = vadd.f32 %v5200_v19, %v16934_v28  ;;  %v14757_v19 = vpop.f32.mrf.mxu0  ;;  %v8916_v48 = vor.u32 %v9882_v38, %v8915_v60  ;;  %v9828_v60 = vld [vmem:[#allocation11 + $0x1a4] sm:$0xf0] }
 0x89b   : > { %5654 = vmatpush.bf16.msrb.mxu1 %v8796_v56  ;;  %v5303_v37 = vpop.f32.mrf.mxu1  ;;  %v8700_v38 = vor.u32 %v9828_v60, %v8699_v15  ;;  %v9813_v15 = vld [vmem:[#allocation11 + $0x134] sm:$0xf]  ;;  %v8653_v60 = vld [vmem:[#allocation11 + $0x148] sm:$0xf0] }
 0x89c   : > { %16935 = vst [vmem:[#allocation60_spill] sm:$0xff] %v14751_v18  ;;  %5547 = vmatmul.bf16.gmra.mxu2 %v16863_v59  ;;  %v5304_v17 = vadd.f32 %v5303_v37, %v14648_v62 }
 0x89d   : > { %5705 = vmatpush.bf16.msra.mxu2 %v8940_v57 }
 0x89e   : > { %5498 = vmatmul.bf16.gmra.mxu1 %v16864_v55 }
 0x89f   : > { %5655 = vmatpush.bf16.msrb.mxu1 %v8772_v46  ;;  %v5352_v6 = vpop.f32.mrf.mxu2  ;;  %v9876_v46 = vld [vmem:[#allocation11 + $0x324] sm:$0xf0] }
 0x8a0   : > { %v14765_v56 = vadd.f32 %v5352_v6, %v5304_v17  ;;  %v8892_v57 = vor.u32 %v9876_v46, %v8891_v9  ;;  %v16938_v17 = vld [vmem:[#allocation71_spill] sm:$0xff] }
 0x8a1   : > { %v5202_v28 = vpop.f32.mrf.mxu3  ;;  %5706 = vmatpush.bf16.msra.mxu2 %v8916_v48  ;;  %v8677_v46 = vld [vmem:[#allocation11 + $0x178] sm:$0xf0] }
 0x8a2   : > { %v14761_v39 = vadd.f32 %v5202_v28, %v14593_v35  ;;  %v9834_v35 = vld [vmem:[#allocation11 + $0x1d4] sm:$0xf0]  ;;  %v14768_v28 = vpop.f32.mrf.mxu0  ;;  %5635 = vmatmul.bf16.gmra.mxu0 %v16808_v7 }
 0x8a3   : > { %5656 = vmatpush.bf16.msrb.mxu1 %v8748_v41  ;;  %v8724_v62 = vor.u32 %v9834_v35, %v8723_v34  ;;  %v5305_v18 = vpop.f32.mrf.mxu1 }
 0x8a4   : > { %16936 = vst [vmem:[#allocation58_spill] sm:$0xff] %v14761_v39  ;;  %v5306_v58 = vadd.f32 %v5305_v18, %v14657_v2 }
 0x8a5   : > { %5707 = vmatpush.bf16.msra.mxu2 %v8892_v57 }
 0x8a6   : > { %5400 = vmatmul.bf16.gmra.mxu3 %v16937_v1 }
 0x8a7   : > { %5657 = vmatpush.bf16.msrb.mxu1 %v8724_v62  ;;  %v5354_v39 = vpop.f32.mrf.mxu2  ;;  %v9819_v62 = vld [vmem:[#allocation11 + $0x164] sm:$0xf] }
 0x8a8   : > { %v14775_v41 = vadd.f32 %v5354_v39, %v5306_v58  ;;  %v8680_v39 = vor.u32 %v9819_v62, %v8677_v46 }
 0x8a9   : > { %v5205_v37 = vpop.f32.mrf.mxu3 }
 0x8aa   : > { %v14771_v6 = vadd.f32 %v5205_v37, %v16938_v17  ;;  %v14777_v34 = vpop.f32.mrf.mxu0  ;;  %5798 = vmatpush.bf16.msra.mxu0 %v8680_v39 }
 0x8ab   : > { %5658 = vmatpush.bf16.msrb.mxu1 %v8700_v38  ;;  %v5464_v35 = vpop.f32.mrf.mxu1  ;;  %v9807_v38 = vld [vmem:[#allocation11 + $0x104] sm:$0xf] }
 0x8ac   : > { %16939 = vst [vmem:[#allocation43_spill] sm:$0xff] %v14771_v6  ;;  %5708 = vmatmul.bf16.vlgmr.msra.gmra.mxu2 %v14120_v53  ;;  %v5465_v2 = vadd.f32 %v5464_v35, %v14668_v16  ;;  %v8629_v35 = vld [vmem:[#allocation11 + $0x118] sm:$0xf0]  ;;  %v9783_v6 = vld [vmem:[#allocation11 + $0x44] sm:$0xf] }
 0x8ad   : > { %v8632_v62 = vor.u32 %v9807_v38, %v8629_v35  ;;  %v9795_v35 = vld [vmem:[#allocation11 + $0xa4] sm:$0xf] }
 0x8ae   : > { %5659 = vmatmul.bf16.vlgmr.msrb.gmra.mxu1 %v16810_v45 }
 0x8af   : > { %v5513_v18 = vpop.f32.mrf.mxu2 }
 0x8b0   : > { %v14785_v57 = vadd.f32 %v5513_v18, %v5465_v2 }
 0x8b1   : > { %v5207_v48 = vpop.f32.mrf.mxu3 }
 0x8b2   : > { %v14781_v9 = vadd.f32 %v5207_v48, %v14613_v25  ;;  %v14788_v37 = vpop.f32.mrf.mxu0  ;;  %5640 = vmatmul.bf16.gmra.mxu0 %v16812_v5  ;;  %v8656_v48 = vor.u32 %v9813_v15, %v8653_v60  ;;  %v8605_v60 = vld [vmem:[#allocation11 + $0xe8] sm:$0xf0] }
 0x8b3   : > { %v5466_v58 = vpop.f32.mrf.mxu1 }
 0x8b4   : > { %16940 = vst [vmem:[#allocation65_spill] sm:$0xff] %v14781_v9  ;;  %v5467_v16 = vadd.f32 %v5466_v58, %v14677_v54  ;;  %5799 = vmatpush.bf16.msra.mxu0 %v8656_v48  ;;  %v8533_v9 = vld [vmem:[#allocation11 + $0x58] sm:$0xf0] }
 0x8b6   : > { %5561 = vmatmul.bf16.vlgmr.msrb.gmra.mxu3 %v14299_v30 }
 0x8b7   : > { %v5515_v2 = vpop.f32.mrf.mxu2 }
 0x8b8   : > { %v14795_v18 = vadd.f32 %v5515_v2, %v5467_v16  ;;  %5800 = vmatpush.bf16.msra.mxu0 %v8632_v62  ;;  %v9801_v16 = vld [vmem:[#allocation11 + $0xd4] sm:$0xf]  ;;  %v8581_v2 = vld [vmem:[#allocation11 + $0xb8] sm:$0xf0] }
 0x8b9   : > { %v5366_v17 = vpop.f32.mrf.mxu3  ;;  %v8608_v48 = vor.u32 %v9801_v16, %v8605_v60 }
 0x8ba   : > { %v14791_v25 = vadd.f32 %v5366_v17, %v14623_v4  ;;  %v14797_v46 = vpop.f32.mrf.mxu0 }
 0x8bb   : > { %v5469_v4 = vpop.f32.mrf.mxu1 }
 0x8bc   : > { %16941 = vst [vmem:[#allocation67_spill] sm:$0xff] %v14791_v25  ;;  %5713 = vmatmul.bf16.gmra.mxu2 %v14141_v3  ;;  %v5470_v17 = vadd.f32 %v5469_v4, %v14688_v47  ;;  %5801 = vmatpush.bf16.msra.mxu0 %v8608_v48 }
 0x8be   : > { %5664 = vmatmul.bf16.gmra.mxu1 %v16814_v42 }
 0x8bf   : > { %v5518_v15 = vpop.f32.mrf.mxu2 }
 0x8c0   : > { %v14807_v38 = vadd.f32 %v5518_v15, %v5470_v17  ;;  %v9789_v17 = vld [vmem:[#allocation11 + $0x74] sm:$0xf]  ;;  %v8557_v15 = vld [vmem:[#allocation11 + $0x88] sm:$0xf0] }
 0x8c1   : > { %v5368_v39 = vpop.f32.mrf.mxu3  ;;  %v8560_v16 = vor.u32 %v9789_v17, %v8557_v15  ;;  %v8509_v17 = vld [vmem:[#allocation11 + $0x28] sm:$0xf0] }
 0x8c2   : > { %v14801_v54 = vadd.f32 %v5368_v39, %v14631_v61  ;;  %v14810_v62 = vpop.f32.mrf.mxu0  ;;  %v8584_v61 = vor.u32 %v9795_v35, %v8581_v2  ;;  %5645 = vmatmul.bf16.gmra.mxu0 %v16815_v40  ;;  %v8536_v35 = vor.u32 %v9783_v6, %v8533_v9 }
 0x8c3   : > { %v5471_v39 = vpop.f32.mrf.mxu1 }
 0x8c4   : > { %16942 = vst [vmem:[#allocation72_spill] sm:$0xff] %v14801_v54  ;;  %v5472_v58 = vadd.f32 %v5471_v39, %v14697_v44  ;;  %5802 = vmatpush.bf16.msra.mxu0 %v8584_v61 }
 0x8c6   : > { %5566 = vmatmul.bf16.gmra.mxu3 %v14319_v21 }
 0x8c7   : > { %v5520_v60 = vpop.f32.mrf.mxu2 }
 0x8c8   : > { %v14817_v25 = vadd.f32 %v5520_v60, %v5472_v58  ;;  %5803 = vmatpush.bf16.msra.mxu0 %v8560_v16  ;;  %v9777_v58 = vld [vmem:[#allocation11 + $0x14] sm:$0xf] }
 0x8c9   : > { %v5371_v47 = vpop.f32.mrf.mxu3  ;;  %v8512_v6 = vor.u32 %v9777_v58, %v8509_v17 }
 0x8ca   : > { %v14813_v4 = vadd.f32 %v5371_v47, %v14643_v23  ;;  %v14819_v48 = vpop.f32.mrf.mxu0 }
 0x8cb   : > { %v5474_v23 = vpop.f32.mrf.mxu1 }
 0x8cc   : > { %16943 = vst [vmem:[#allocation44_spill] sm:$0xff] %v14813_v4  ;;  %5718 = vmatmul.bf16.gmra.mxu2 %v14160_v31  ;;  %v5475_v47 = vadd.f32 %v5474_v23, %v14708_v10  ;;  %5804 = vmatpush.bf16.msra.mxu0 %v8536_v35  ;;  %v8869_v4 = vld [vmem:[#allocation11 + $0x2f8] sm:$0xf0] }
 0x8ce   : > { %5669 = vmatmul.bf16.gmra.mxu1 %v16817_v43 }
 0x8cf   : > { %v5523_v39 = vpop.f32.mrf.mxu2 }
 0x8d0   : > { %v14829_v15 = vadd.f32 %v5523_v39, %v5475_v47  ;;  %5805 = vmatpush.bf16.msra.mxu0 %v8512_v6 }
 0x8d1   : > { %v5373_v2 = vpop.f32.mrf.mxu3 }
 0x8d2   : > { %v14823_v44 = vadd.f32 %v5373_v2, %v14655_v63  ;;  %v14832_v9 = vpop.f32.mrf.mxu0 }
 0x8d3   : > { %v5476_v16 = vpop.f32.mrf.mxu1  ;;  %5806 = vmatmul.bf16.vlgmr.msra.gmra.mxu0 %v16800_v12 }
 0x8d4   : > { %16944 = vst [vmem:[#allocation71_spill] sm:$0xff] %v14823_v44  ;;  %v5477_v60 = vadd.f32 %v5476_v16, %v14717_v24 }
 0x8d6   : > { %5571 = vmatmul.bf16.gmra.mxu3 %v14341_v29 }
 0x8d7   : > { %v5525_v35 = vpop.f32.mrf.mxu2 }
 0x8d8   : > { %v14839_v2 = vadd.f32 %v5525_v35, %v5477_v60 }
 0x8d9   : > { %v5376_v63 = vpop.f32.mrf.mxu3 }
 0x8da   : > { %v14835_v10 = vadd.f32 %v5376_v63, %v14665_v32  ;;  %v14841_v23 = vpop.f32.mrf.mxu0 }
 0x8db   : > { %v5479_v39 = vpop.f32.mrf.mxu1 }
 0x8dc   : > { %5723 = vmatmul.bf16.gmra.mxu2 %v14179_v20  ;;  %v5480_v17 = vadd.f32 %v5479_v39, %v14728_v22 }
 0x8de   : > { %5674 = vmatmul.bf16.gmra.mxu1 %v16820_v0  ;;  %v16964_v0 = vld [vmem:[#allocation57_spill] sm:$0xff] }
 0x8df   : > { %v5528_v24 = vpop.f32.mrf.mxu2 }
 0x8e0   : > { %v14851_v12 = vadd.f32 %v5528_v24, %v5480_v17 }
 0x8e1   : > { %v5378_v47 = vpop.f32.mrf.mxu3 }
 0x8e2   : > { %v14845_v58 = vadd.f32 %v5378_v47, %v14675_v26  ;;  %16945 = vst [vmem:[#allocation103_spill] sm:$0xff] %v14851_v12  ;;  %v14854_v6 = vpop.f32.mrf.mxu0  ;;  %v16963_v12 = vld [vmem:[#allocation30_spill] sm:$0xff] }
 0x8e3   : > { %v5481_v16 = vpop.f32.mrf.mxu1  ;;  %5811 = vmatmul.bf16.gmra.mxu0 %v16801_v50 }
 0x8e4   : > { %v5482_v26 = vadd.f32 %v5481_v16, %v14737_v11  ;;  %v9966_v16 = vld [vmem:[#allocation11 + $0x5f4] sm:$0xf0] }
 0x8e6   : > { %5576 = vmatmul.bf16.gmra.mxu3 %v14361_v36  ;;  %v9107_v36 = vld [vmem:[#allocation11 + $0x4c0] sm:$0xf] }
 0x8e7   : > { %v5530_v22 = vpop.f32.mrf.mxu2 }
 0x8e8   : > { %v14861_v35 = vadd.f32 %v5530_v22, %v5482_v26 }
 0x8e9   : > { %v5381_v63 = vpop.f32.mrf.mxu3 }
 0x8ea   : > { %v14857_v60 = vadd.f32 %v5381_v63, %v14685_v52  ;;  %16946 = vst [vmem:[#allocation104_spill] sm:$0xff] %v14861_v35  ;;  %v14863_v47 = vpop.f32.mrf.mxu0  ;;  %v9251_v63 = vld [vmem:[#allocation11 + $0x5e0] sm:$0xf] }
 0x8eb   : > { %v5484_v17 = vpop.f32.mrf.mxu1  ;;  %v9252_v22 = vor.u32 %v9966_v16, %v9251_v63  ;;  %v16949_v52 = vld [vmem:[#allocation24_spill] sm:$0xff] }
 0x8ec   : > { %5728 = vmatmul.bf16.gmra.mxu2 %v14204_v51  ;;  %v5485_v61 = vadd.f32 %v5484_v17, %v14748_v27  ;;  %v9954_v51 = vld [vmem:[#allocation11 + $0x594] sm:$0xf0]  ;;  %v16952_v63 = vld [vmem:[#allocation48_spill] sm:$0xff] }
 0x8ed   : > { %5749 = vmatpush.bf16.msra.mxu3 %v9252_v22  ;;  %v14887_v16 = vmul.f32 0.088388346, %v16952_v63 }
 0x8ee   : > { %5679 = vmatmul.bf16.gmra.mxu1 %v16824_v8  ;;  %v9227_v8 = vld [vmem:[#allocation11 + $0x5b0] sm:$0xf] }
 0x8ef   : > { %v5533_v11 = vpop.f32.mrf.mxu2  ;;  %16953 = vst [vmem:[#allocation24_spill] sm:$0xff] %v14887_v16  ;;  %v16959_v16 = vld [vmem:[#allocation83_spill] sm:$0xff] }
 0x8f0   : > { %v14873_v50 = vadd.f32 %v5533_v11, %v5485_v61  ;;  %v9960_v61 = vld [vmem:[#allocation11 + $0x5c4] sm:$0xf0]  ;;  %v9203_v11 = vld [vmem:[#allocation11 + $0x580] sm:$0xf] }
 0x8f1   : > { %v5383_v39 = vpop.f32.mrf.mxu3  ;;  %v9228_v35 = vor.u32 %v9960_v61, %v9227_v8  ;;  %v16956_v8 = vld [vmem:[#allocation31_spill] sm:$0xff] }
 0x8f2   : > { %v14867_v24 = vadd.f32 %v5383_v39, %v14695_v13  ;;  %16947 = vst [vmem:[#allocation105_spill] sm:$0xff] %v14873_v50  ;;  %v14876_v26 = vpop.f32.mrf.mxu0  ;;  %v16948_v39 = vld [vmem:[#allocation95_spill] sm:$0xff]  ;;  %v16950_v50 = vld [vmem:[#allocation66_spill] sm:$0xff] }
 0x8f3   : > { %v5486_v13 = vpop.f32.mrf.mxu1  ;;  %5816 = vmatmul.bf16.gmra.mxu0 %v16949_v52  ;;  %5750 = vmatpush.bf16.msra.mxu3 %v9228_v35 }
 0x8f4   : > { %v5487_v17 = vadd.f32 %v5486_v13, %v14757_v19  ;;  %v16955_v13 = vld [vmem:[#allocation97_spill] sm:$0xff] }
 0x8f6   : > { %5581 = vmatmul.bf16.gmra.mxu3 %v14381_v14  ;;  %v14884_v14 = vmul.f32 0.088388346, %v16950_v50 }
 0x8f7   : > { %v5535_v54 = vpop.f32.mrf.mxu2 }
 0x8f8   : > { %16951 = vst [vmem:[#allocation95_spill] sm:$0xff] %v14884_v14  ;;  %v14889_v22 = vadd.f32 %v5535_v54, %v5487_v17  ;;  %v9179_v17 = vld [vmem:[#allocation11 + $0x550] sm:$0xf]  ;;  %v9155_v14 = vld [vmem:[#allocation11 + $0x520] sm:$0xf] }
 0x8f9   : > { %v5386_v32 = vpop.f32.mrf.mxu3 }
 0x8fa   : > { %v14879_v27 = vadd.f32 %v5386_v32, %v16948_v39  ;;  %16954 = vst [vmem:[#allocation66_spill] sm:$0xff] %v14889_v22  ;;  %v9204_v32 = vor.u32 %v9954_v51, %v9203_v11  ;;  %v14891_v39 = vpop.f32.mrf.mxu0  ;;  %v16957_v51 = vld [vmem:[#allocation33_spill] sm:$0xff] }
 0x8fb   : > { %v5489_v50 = vpop.f32.mrf.mxu1  ;;  %v9948_v11 = vld [vmem:[#allocation11 + $0x564] sm:$0xf0] }
 0x8fc   : > { %5733 = vmatmul.bf16.gmra.mxu2 %v16955_v13  ;;  %5751 = vmatpush.bf16.msra.mxu3 %v9204_v32  ;;  %v5490_v63 = vadd.f32 %v5489_v50, %v14768_v28  ;;  %v9180_v19 = vor.u32 %v9948_v11, %v9179_v17  ;;  %v9942_v32 = vld [vmem:[#allocation11 + $0x534] sm:$0xf0]  ;;  %v9131_v17 = vld [vmem:[#allocation11 + $0x4f0] sm:$0xf] }
 0x8fd   : > { %v16961_v28 = vld [vmem:[#allocation55_spill] sm:$0xff] }
 0x8fe   : > { %5684 = vmatmul.bf16.gmra.mxu1 %v16957_v51  ;;  %v14909_v50 = vmul.f32 0.088388346, %v16961_v28  ;;  %v9037_v28 = vld [vmem:[#allocation11 + $0x448] sm:$0xf0] }
 0x8ff   : > { %v5538_v35 = vpop.f32.mrf.mxu2 }
 0x900   : > { %v14903_v22 = vadd.f32 %v5538_v35, %v5490_v63  ;;  %5752 = vmatpush.bf16.msra.mxu3 %v9180_v19  ;;  %16962 = vst [vmem:[#allocation55_spill] sm:$0xff] %v14909_v50  ;;  %v9915_v63 = vld [vmem:[#allocation11 + $0x464] sm:$0xf]  ;;  %v9061_v35 = vld [vmem:[#allocation11 + $0x478] sm:$0xf0] }
 0x901   : > { %v5388_v52 = vpop.f32.mrf.mxu3  ;;  %v9064_v11 = vor.u32 %v9915_v63, %v9061_v35  ;;  %v9897_v50 = vld [vmem:[#allocation11 + $0x3d4] sm:$0xf] }
 0x902   : > { %v14897_v61 = vadd.f32 %v5388_v52, %v16956_v8  ;;  %16958 = vst [vmem:[#allocation48_spill] sm:$0xff] %v14903_v22  ;;  %v14906_v13 = vpop.f32.mrf.mxu0  ;;  %v9156_v52 = vor.u32 %v9942_v32, %v9155_v14  ;;  %v9936_v22 = vld [vmem:[#allocation11 + $0x504] sm:$0xf0]  ;;  %v9909_v32 = vld [vmem:[#allocation11 + $0x434] sm:$0xf] }
 0x903   : > { %16960 = vst [vmem:[#allocation31_spill] sm:$0xff] %v14906_v13  ;;  %v5491_v54 = vpop.f32.mrf.mxu1  ;;  %5821 = vmatmul.bf16.gmra.mxu0 %v16963_v12  ;;  %v9132_v19 = vor.u32 %v9936_v22, %v9131_v17  ;;  %v14914_v13 = vmul.f32 0.088388346, %v16964_v0  ;;  %5896 = vmatpush.bf16.msrb.mxu2 %v9064_v11  ;;  %v9930_v12 = vld [vmem:[#allocation11 + $0x4d4] sm:$0xf0]  ;;  %v16968_v17 = vld [vmem:[#allocation77_spill] sm:$0xff] }
 0x904   : > { %v5492_v51 = vadd.f32 %v5491_v54, %v14777_v34  ;;  %5753 = vmatpush.bf16.msra.mxu3 %v9156_v52  ;;  %v9040_v54 = vor.u32 %v9909_v32, %v9037_v28  ;;  %v9108_v63 = vor.u32 %v9930_v12, %v9107_v36  ;;  %v9861_v32 = vld [vmem:[#allocation11 + $0x2b4] sm:$0xf]  ;;  %v8845_v28 = vld [vmem:[#allocation11 + $0x2c8] sm:$0xf0]  ;;  %v9903_v12 = vld [vmem:[#allocation11 + $0x404] sm:$0xf] }
 0x905   : > { %16965 = vst [vmem:[#allocation30_spill] sm:$0xff] %v14914_v13  ;;  %v9083_v13 = vld [vmem:[#allocation11 + $0x490] sm:$0xf] }
 0x906   : > { %5586 = vmatmul.bf16.gmra.mxu3 %v16959_v16  ;;  %v9867_v16 = vld [vmem:[#allocation11 + $0x2e4] sm:$0xf] }
 0x907   : > { %v5540_v44 = vpop.f32.mrf.mxu2  ;;  %v8872_v14 = vor.u32 %v9867_v16, %v8869_v4  ;;  %v16967_v16 = vld [vmem:[#allocation89_spill] sm:$0xff]  ;;  %5897 = vmatpush.bf16.msrb.mxu2 %v9040_v54 }
 0x908   : > { %v14916_v34 = vadd.f32 %v5540_v44, %v5492_v51  ;;  %5754 = vmatpush.bf16.msra.mxu3 %v9132_v19  ;;  %v16969_v44 = vld [vmem:[#allocation61_spill] sm:$0xff] }
 0x909   : > { %v5391_v8 = vpop.f32.mrf.mxu3  ;;  %5847 = vmatpush.bf16.msra.mxu1 %v8872_v14  ;;  %v16970_v14 = vld [vmem:[#allocation32_spill] sm:$0xff] }
 0x90a   : > { %16966 = vst [vmem:[#allocation57_spill] sm:$0xff] %v14916_v34  ;;  %v14918_v52 = vpop.f32.mrf.mxu0  ;;  %v14924_v0 = vadd.f32 %v5391_v8, %v16968_v17  ;;  %v8848_v8 = vor.u32 %v9861_v32, %v8845_v28  ;;  %v9013_v17 = vld [vmem:[#allocation11 + $0x418] sm:$0xf0]  ;;  %v8989_v34 = vld [vmem:[#allocation11 + $0x3e8] sm:$0xf0] }
 0x90b   : > { %v5494_v35 = vpop.f32.mrf.mxu1 }
 0x90c   : > { %5738 = vmatmul.bf16.gmra.mxu2 %v16967_v16  ;;  %v5495_v11 = vadd.f32 %v5494_v35, %v14788_v37  ;;  %5755 = vmatpush.bf16.msra.mxu3 %v9108_v63  ;;  %v9016_v37 = vor.u32 %v9903_v12, %v9013_v17  ;;  %v9855_v63 = vld [vmem:[#allocation11 + $0x284] sm:$0xf]  ;;  %v8821_v35 = vld [vmem:[#allocation11 + $0x298] sm:$0xf0]  ;;  %v8797_v12 = vld [vmem:[#allocation11 + $0x268] sm:$0xf0] }
 0x90d   : > { %5848 = vmatpush.bf16.msra.mxu1 %v8848_v8  ;;  %v16973_v17 = vld [vmem:[#allocation39_spill] sm:$0xff] }
 0x90e   : > { %5689 = vmatmul.bf16.gmra.mxu1 %v16970_v14  ;;  %v8824_v14 = vor.u32 %v9855_v63, %v8821_v35  ;;  %5898 = vmatpush.bf16.msrb.mxu2 %v9016_v37  ;;  %v8965_v8 = vld [vmem:[#allocation11 + $0x3b8] sm:$0xf0] }
 0x90f   : > { %v5543_v19 = vpop.f32.mrf.mxu2 }
 0x910   : > { %v14933_v22 = vadd.f32 %v5543_v19, %v5495_v11  ;;  %v8992_v11 = vor.u32 %v9897_v50, %v8989_v34  ;;  %v8773_v50 = vld [vmem:[#allocation11 + $0x238] sm:$0xf0]  ;;  %v16974_v34 = vld [vmem:[#allocation40_spill] sm:$0xff] }
 0x911   : > { %v5393_v4 = vpop.f32.mrf.mxu3  ;;  %5849 = vmatpush.bf16.msra.mxu1 %v8824_v14  ;;  %v14944_v35 = vmul.f32 0.088388346, %v16974_v34  ;;  %v9879_v34 = vld [vmem:[#allocation11 + $0x344] sm:$0xf] }
 0x912   : > { %v14927_v51 = vadd.f32 %v5393_v4, %v16969_v44  ;;  %16971 = vst [vmem:[#allocation77_spill] sm:$0xff] %v14933_v22  ;;  %v9924_v4 = vld [vmem:[#allocation11 + $0x4a4] sm:$0xf0]  ;;  %v16972_v44 = vld [vmem:[#allocation59_spill] sm:$0xff]  ;;  %v14936_v36 = vpop.f32.mrf.mxu0  ;;  %v9849_v22 = vld [vmem:[#allocation11 + $0x254] sm:$0xf]  ;;  %5899 = vmatpush.bf16.msrb.mxu2 %v8992_v11 }
 0x913   : > { %v9084_v54 = vor.u32 %v9924_v4, %v9083_v13  ;;  %v5496_v32 = vpop.f32.mrf.mxu1  ;;  %5826 = vmatmul.bf16.gmra.mxu0 %v16898_v33  ;;  %v9891_v13 = vld [vmem:[#allocation11 + $0x3a4] sm:$0xf]  ;;  %v14941_v4 = vmul.f32 0.088388346, %v16973_v17  ;;  %v9885_v33 = vld [vmem:[#allocation11 + $0x374] sm:$0xf] }
 0x914   : > { %v5497_v28 = vadd.f32 %v5496_v32, %v14797_v46  ;;  %v8968_v37 = vor.u32 %v9891_v13, %v8965_v8  ;;  %v8941_v32 = vld [vmem:[#allocation11 + $0x388] sm:$0xf0] }
 0x915   : > { %5756 = vmatpush.bf16.msra.mxu3 %v9084_v54  ;;  %v9843_v54 = vld [vmem:[#allocation11 + $0x224] sm:$0xf]  ;;  %v8944_v14 = vor.u32 %v9885_v33, %v8941_v32  ;;  %v16976_v13 = vld [vmem:[#allocation41_spill] sm:$0xff] }
 0x916   : > { %5591 = vmatmul.bf16.gmra.mxu3 %v16972_v44  ;;  %v8800_v44 = vor.u32 %v9849_v22, %v8797_v12  ;;  %v8776_v17 = vor.u32 %v9843_v54, %v8773_v50  ;;  %5900 = vmatpush.bf16.msrb.mxu2 %v8968_v37  ;;  %v9837_v37 = vld [vmem:[#allocation11 + $0x1f4] sm:$0xf]  ;;  %v8749_v50 = vld [vmem:[#allocation11 + $0x208] sm:$0xf0]  ;;  %v8917_v22 = vld [vmem:[#allocation11 + $0x358] sm:$0xf0] }
 0x917   : > { %v5545_v63 = vpop.f32.mrf.mxu2  ;;  %v8752_v32 = vor.u32 %v9837_v37, %v8749_v50  ;;  %v8701_v37 = vld [vmem:[#allocation11 + $0x1a8] sm:$0xf0]  ;;  %v16978_v50 = vld [vmem:[#allocation42_spill] sm:$0xff] }
 0x918   : > { %v14946_v46 = vadd.f32 %v5545_v63, %v5497_v28  ;;  %5850 = vmatpush.bf16.msra.mxu1 %v8800_v44 }
 0x919   : > { %v5396_v19 = vpop.f32.mrf.mxu3 }
 0x91a   : > { %v14948_v16 = vpop.f32.mrf.mxu0  ;;  %v14954_v8 = vadd.f32 %v5396_v19, %v16976_v13  ;;  %5901 = vmatpush.bf16.msrb.mxu2 %v8944_v14  ;;  %v8920_v19 = vor.u32 %v9879_v34, %v8917_v22  ;;  %v8893_v13 = vld [vmem:[#allocation11 + $0x328] sm:$0xf0]  ;;  %v14968_v22 = vmul.f32 0.088388346, %v16978_v50 }
 0x91b   : > { %16975 = vst [vmem:[#allocation61_spill] sm:$0xff] %v14948_v16  ;;  %v5499_v12 = vpop.f32.mrf.mxu1 }
 0x91c   : > { %5743 = vmatmul.bf16.gmra.mxu2 %v16863_v59  ;;  %v5500_v63 = vadd.f32 %v5499_v12, %v14810_v62  ;;  %5851 = vmatpush.bf16.msra.mxu1 %v8776_v17  ;;  %v9873_v62 = vld [vmem:[#allocation11 + $0x314] sm:$0xf] }
 0x91d   : > { %v8896_v14 = vor.u32 %v9873_v62, %v8893_v13 }
 0x91e   : > { %5694 = vmatmul.bf16.gmra.mxu1 %v16864_v55  ;;  %5902 = vmatpush.bf16.msrb.mxu2 %v8920_v19 }
 0x91f   : > { %v5548_v54 = vpop.f32.mrf.mxu2 }
 0x920   : > { %v14960_v33 = vadd.f32 %v5548_v54, %v5500_v63  ;;  %5852 = vmatpush.bf16.msra.mxu1 %v8752_v32  ;;  %v9825_v54 = vld [vmem:[#allocation11 + $0x194] sm:$0xf]  ;;  %v16979_v32 = vld [vmem:[#allocation56_spill] sm:$0xff] }
 0x921   : > { %v5398_v11 = vpop.f32.mrf.mxu3  ;;  %v8704_v34 = vor.u32 %v9825_v54, %v8701_v37 }
 0x922   : > { %v5399_v28 = vadd.f32 %v5398_v11, %v14755_v49  ;;  %v9831_v49 = vld [vmem:[#allocation11 + $0x1c4] sm:$0xf]  ;;  %v8725_v11 = vld [vmem:[#allocation11 + $0x1d8] sm:$0xf0]  ;;  %v14963_v17 = vpop.f32.mrf.mxu0  ;;  %5903 = vmatpush.bf16.msrb.mxu2 %v8896_v14 }
 0x923   : > { %16977 = vst [vmem:[#allocation39_spill] sm:$0xff] %v14963_v17  ;;  %v8728_v12 = vor.u32 %v9831_v49, %v8725_v11  ;;  %5831 = vmatmul.bf16.gmra.mxu0 %v16808_v7  ;;  %v14971_v49 = vmul.f32 0.088388346, %v16979_v32 }
 0x924   : > { %v6024_v44 = vpack.c.bf16 %v5399_v28, %v14954_v8  ;;  %v5501_v28 = vpop.f32.mrf.mxu1 }
 0x925   : > { %v5502_v63 = vadd.f32 %v5501_v28, %v14819_v48  ;;  %5853 = vmatpush.bf16.msra.mxu1 %v8728_v12 }
 0x926   : > { %5596 = vmatmul.bf16.gmra.mxu3 %v16937_v1 }
 0x927   : > { %v5550_v16 = vpop.f32.mrf.mxu2 }
 0x928   : > { %v14973_v19 = vadd.f32 %v5550_v16, %v5502_v63 }
 0x929   : > { %v5401_v8 = vpop.f32.mrf.mxu3  ;;  %5854 = vmatpush.bf16.msra.mxu1 %v8704_v34 }
 0x92a   : > { %v14975_v11 = vpop.f32.mrf.mxu0  ;;  %v5402_v12 = vadd.f32 %v5401_v8, %v14765_v56  ;;  %v16983_v8 = vld [vmem:[#allocation45_spill] sm:$0xff] }
 0x92b   : > { %16980 = vst [vmem:[#allocation40_spill] sm:$0xff] %v14975_v11  ;;  %v14998_v34 = vmul.f32 0.088388346, %v16983_v8 }
 0x92c   : > { %5904 = vmatmul.bf16.vlgmr.msrb.gmra.mxu2 %v14120_v53  ;;  %v5660_v62 = vpop.f32.mrf.mxu1 }
 0x92d   : > { %v5661_v14 = vadd.f32 %v5660_v62, %v14832_v9 }
 0x92e   : > { %5855 = vmatmul.bf16.vlgmr.msra.gmra.mxu1 %v16810_v45 }
 0x92f   : > { %v5709_v54 = vpop.f32.mrf.mxu2 }
 0x930   : > { %v14984_v16 = vadd.f32 %v5709_v54, %v5661_v14 }
 0x931   : > { %v5403_v48 = vpop.f32.mrf.mxu3 }
 0x932   : > { %v5404_v13 = vadd.f32 %v5403_v48, %v14775_v41  ;;  %v14987_v63 = vpop.f32.mrf.mxu0  ;;  %v16982_v41 = vld [vmem:[#allocation47_spill] sm:$0xff] }
 0x933   : > { %16981 = vst [vmem:[#allocation41_spill] sm:$0xff] %v14987_v63  ;;  %5836 = vmatmul.bf16.gmra.mxu0 %v16812_v5  ;;  %v14995_v9 = vmul.f32 0.088388346, %v16982_v41  ;;  %v16988_v41 = vld [vmem:[#allocation68_spill] sm:$0xff]  ;;  %v17030_v63 = vld [vmem:[#allocation25_spill] sm:$0xff] }
 0x934   : > { %v6025_v28 = vpack.c.bf16 %v5404_v13, %v5402_v12  ;;  %v5662_v53 = vpop.f32.mrf.mxu1 }
 0x935   : > { %v5663_v56 = vadd.f32 %v5662_v53, %v14841_v23 }
 0x936   : > { %5757 = vmatmul.bf16.vlgmr.msra.gmra.mxu3 %v14299_v30  ;;  %6034 = vmatpush.bf16.xpose.msrb.mxu0 %v6025_v28  ;;  %v16985_v28 = vpack.c.bf16 %v14927_v51, %v14924_v0  ;;  %v16989_v51 = vpack.c.bf16 %v14897_v61, %v14879_v27  ;;  %v16991_v61 = vpack.c.bf16 %v14867_v24, %v14857_v60 }
 0x937   : > { %v5711_v45 = vpop.f32.mrf.mxu2  ;;  %v16994_v60 = vpack.c.bf16 %v14845_v58, %v14835_v10  ;;  %v16997_v10 = vld [vmem:[#allocation35_spill] sm:$0xff] }
 0x938   : > { %v15000_v32 = vadd.f32 %v5711_v45, %v5663_v56  ;;  %v15031_v45 = vmul.f32 0.088388346, %v16988_v41 }
 0x939   : > { %v5562_v37 = vpop.f32.mrf.mxu3 }
 0x93a   : > { %v14990_v50 = vadd.f32 %v5562_v37, %v14785_v57  ;;  %v15002_v48 = vpop.f32.mrf.mxu0  ;;  %v9229_v57 = vld [vmem:[#allocation11 + $0x5c8] sm:$0xf0] }
 0x93b   : > { %16984 = vst [vmem:[#allocation42_spill] sm:$0xff] %v15002_v48 }
 0x93c   : > { %5909 = vmatmul.bf16.gmra.mxu2 %v14141_v3  ;;  %v5665_v23 = vpop.f32.mrf.mxu1 }
 0x93d   : > { %v5666_v12 = vadd.f32 %v5665_v23, %v14854_v6 }
 0x93e   : > { %6035 = vmatpush.bf16.xpose.msrb.mxu0 %v6024_v44  ;;  %5860 = vmatmul.bf16.gmra.mxu1 %v16814_v42  ;;  %v16987_v42 = vld [vmem:[#allocation73_spill] sm:$0xff] }
 0x93f   : > { %v5714_v14 = vpop.f32.mrf.mxu2  ;;  %v15028_v53 = vmul.f32 0.088388346, %v16987_v42  ;;  %v16993_v42 = vld [vmem:[#allocation20_spill] sm:$0xff] }
 0x940   : > { %v15014_v44 = vadd.f32 %v5714_v14, %v5666_v12  ;;  %v17008_v12 = vld [vmem:[#allocation104_spill] sm:$0xff] }
 0x941   : > { %v5564_v62 = vpop.f32.mrf.mxu3 }
 0x942   : > { %v15008_v5 = vadd.f32 %v5564_v62, %v14795_v18  ;;  %v15020_v3 = vpop.f32.mrf.mxu0 }
 0x943   : > { %16986 = vst [vmem:[#allocation56_spill] sm:$0xff] %v15020_v3  ;;  %5841 = vmatmul.bf16.gmra.mxu0 %v16815_v40  ;;  %v17041_v3 = vld [vmem:[#allocation55_spill] sm:$0xff] }
 0x944   : > { %v5667_v54 = vpop.f32.mrf.mxu1 }
 0x945   : > { %v5668_v37 = vadd.f32 %v5667_v54, %v14863_v47  ;;  %v16992_v54 = vld [vmem:[#allocation22_spill] sm:$0xff] }
 0x946   : > { %5762 = vmatmul.bf16.gmra.mxu3 %v14319_v21  ;;  %6036 = vmatpush.bf16.xpose.msrb.mxu0 %v16985_v28 }
 0x947   : > { %v5716_v56 = vpop.f32.mrf.mxu2 }
 0x948   : > { %v15033_v0 = vadd.f32 %v5716_v56, %v5668_v37  ;;  %v15063_v37 = vmul.f32 0.088388346, %v16992_v54  ;;  %v15066_v56 = vmul.f32 0.088388346, %v16993_v42  ;;  %v17002_v42 = vld [vmem:[#allocation103_spill] sm:$0xff] }
 0x949   : > { %v5567_v18 = vpop.f32.mrf.mxu3 }
 0x94a   : > { %v15023_v6 = vadd.f32 %v5567_v18, %v14807_v38  ;;  %v15038_v8 = vpop.f32.mrf.mxu0 }
 0x94b   : > { %16990 = vst [vmem:[#allocation47_spill] sm:$0xff] %v15038_v8 }
 0x94c   : > { %5914 = vmatmul.bf16.gmra.mxu2 %v14160_v31  ;;  %v5670_v40 = vpop.f32.mrf.mxu1 }
 0x94d   : > { %v5671_v23 = vadd.f32 %v5670_v40, %v14876_v26  ;;  %v16996_v40 = vld [vmem:[#allocation31_spill] sm:$0xff] }
 0x94e   : > { %6037 = vmatpush.bf16.xpose.msrb.mxu0 %v16989_v51  ;;  %5865 = vmatmul.bf16.gmra.mxu1 %v16817_v43 }
 0x94f   : > { %v5719_v14 = vpop.f32.mrf.mxu2 }
 0x950   : > { %v15050_v27 = vadd.f32 %v5719_v14, %v5671_v23  ;;  %v9253_v14 = vld [vmem:[#allocation11 + $0x5f8] sm:$0xf0] }
 0x951   : > { %v5569_v47 = vpop.f32.mrf.mxu3 }
 0x952   : > { %v15044_v62 = vadd.f32 %v5569_v47, %v14817_v25  ;;  %v15056_v31 = vpop.f32.mrf.mxu0 }
 0x954   : > { %v5672_v28 = vpop.f32.mrf.mxu1 }
 0x955   : > { %v5673_v18 = vadd.f32 %v5672_v28, %v14891_v39  ;;  %v16999_v28 = vld [vmem:[#allocation71_spill] sm:$0xff] }
 0x956   : > { %5767 = vmatmul.bf16.gmra.mxu3 %v14341_v29  ;;  %6038 = vmatpush.bf16.xpose.msrb.mxu0 %v16991_v61 }
 0x957   : > { %v5721_v43 = vpop.f32.mrf.mxu2 }
 0x958   : > { %v15068_v41 = vadd.f32 %v5721_v43, %v5673_v18  ;;  %v17000_v18 = vld [vmem:[#allocation44_spill] sm:$0xff] }
 0x959   : > { %v5572_v25 = vpop.f32.mrf.mxu3  ;;  %v17001_v54 = vpack.c.bf16 %v16999_v28, %v17000_v18  ;;  %v17007_v18 = vld [vmem:[#allocation100_spill] sm:$0xff] }
 0x95a   : > { %v15059_v26 = vadd.f32 %v5572_v25, %v14829_v15  ;;  %v15073_v24 = vpop.f32.mrf.mxu0  ;;  %v16998_v25 = vld [vmem:[#allocation49_spill] sm:$0xff] }
 0x95b   : > { %16995 = vst [vmem:[#allocation45_spill] sm:$0xff] %v15073_v24  ;;  %v17019_v24 = vld [vmem:[#allocation97_spill] sm:$0xff] }
 0x95c   : > { %5919 = vmatmul.bf16.gmra.mxu2 %v14179_v20  ;;  %v5675_v39 = vpop.f32.mrf.mxu1 }
 0x95d   : > { %v5676_v23 = vadd.f32 %v5675_v39, %v16996_v40 }
 0x95e   : > { %6039 = vmatpush.bf16.xpose.msrb.mxu0 %v16994_v60  ;;  %5870 = vmatmul.bf16.gmra.mxu1 %v16997_v10 }
 0x95f   : > { %v5724_v61 = vpop.f32.mrf.mxu2 }
 0x960   : > { %v15085_v58 = vadd.f32 %v5724_v61, %v5676_v23  ;;  %v17003_v23 = vld [vmem:[#allocation72_spill] sm:$0xff]  ;;  %v17004_v61 = vld [vmem:[#allocation67_spill] sm:$0xff] }
 0x961   : > { %v5574_v51 = vpop.f32.mrf.mxu3  ;;  %v17005_v10 = vpack.c.bf16 %v17003_v23, %v17004_v61 }
 0x962   : > { %v15079_v47 = vadd.f32 %v5574_v51, %v14839_v2  ;;  %v15091_v20 = vpop.f32.mrf.mxu0 }
 0x964   : > { %v5677_v43 = vpop.f32.mrf.mxu1 }
 0x965   : > { %v5678_v51 = vadd.f32 %v5677_v43, %v14918_v52 }
 0x966   : > { %5772 = vmatmul.bf16.gmra.mxu3 %v16998_v25  ;;  %6040 = vmatpush.bf16.xpose.msrb.mxu0 %v17001_v54 }
 0x967   : > { %v5726_v39 = vpop.f32.mrf.mxu2 }
 0x968   : > { %v15097_v40 = vadd.f32 %v5726_v39, %v5678_v51  ;;  %v17010_v51 = vld [vmem:[#allocation64_spill] sm:$0xff]  ;;  %v17011_v39 = vld [vmem:[#allocation46_spill] sm:$0xff] }
 0x969   : > { %v5577_v2 = vpop.f32.mrf.mxu3  ;;  %v17012_v23 = vpack.c.bf16 %v17010_v51, %v17011_v39  ;;  %v9951_v51 = vld [vmem:[#allocation11 + $0x584] sm:$0xf]  ;;  %v17016_v39 = vld [vmem:[#allocation23_spill] sm:$0xff] }
 0x96a   : > { %v15094_v60 = vadd.f32 %v5577_v2, %v17002_v42  ;;  %v15102_v13 = vpop.f32.mrf.mxu0  ;;  %v17009_v42 = vld [vmem:[#allocation34_spill] sm:$0xff] }
 0x96b   : > { %17006 = vst [vmem:[#allocation73_spill] sm:$0xff] %v15102_v13 }
 0x96c   : > { %5924 = vmatmul.bf16.gmra.mxu2 %v17007_v18  ;;  %v5680_v54 = vpop.f32.mrf.mxu1  ;;  %v9963_v18 = vld [vmem:[#allocation11 + $0x5e4] sm:$0xf] }
 0x96d   : > { %v5681_v2 = vadd.f32 %v5680_v54, %v14936_v36  ;;  %v17015_v36 = vld [vmem:[#allocation105_spill] sm:$0xff] }
 0x96e   : > { %6041 = vmatpush.bf16.xpose.msrb.mxu0 %v17005_v10  ;;  %5875 = vmatmul.bf16.gmra.mxu1 %v17009_v42  ;;  %v17013_v10 = vld [vmem:[#allocation38_spill] sm:$0xff] }
 0x96f   : > { %v5729_v43 = vpop.f32.mrf.mxu2  ;;  %v9957_v42 = vld [vmem:[#allocation11 + $0x5b4] sm:$0xf] }
 0x970   : > { %v15115_v61 = vadd.f32 %v5729_v43, %v5681_v2  ;;  %v15126_v2 = vmul.f32 0.088388346, %v17016_v39  ;;  %v9232_v43 = vor.u32 %v9957_v42, %v9229_v57  ;;  %v17021_v39 = vld [vmem:[#allocation66_spill] sm:$0xff] }
 0x971   : > { %v5579_v28 = vpop.f32.mrf.mxu3 }
 0x972   : > { %v15106_v15 = vadd.f32 %v5579_v28, %v17008_v12  ;;  %v9256_v12 = vor.u32 %v9963_v18, %v9253_v14  ;;  %v15123_v52 = vpop.f32.mrf.mxu0  ;;  %v17018_v14 = vld [vmem:[#allocation27_spill] sm:$0xff] }
 0x973   : > { %v15131_v18 = vmul.f32 0.088388346, %v17018_v14 }
 0x974   : > { %v15118_v38 = vpop.f32.mrf.mxu1  ;;  %5945 = vmatpush.bf16.msrb.mxu3 %v9256_v12 }
 0x975   : > { %6042 = vmatmul.bf16.vlgmr.msrb.gmra.mxu0 %v17012_v23  ;;  %17014 = vst [vmem:[#allocation68_spill] sm:$0xff] %v15118_v38  ;;  %v9205_v23 = vld [vmem:[#allocation11 + $0x598] sm:$0xf0] }
 0x976   : > { %5777 = vmatmul.bf16.gmra.mxu3 %v17013_v10  ;;  %v9208_v12 = vor.u32 %v9951_v51, %v9205_v23  ;;  %v17024_v51 = vld [vmem:[#allocation33_spill] sm:$0xff] }
 0x977   : > { %v15128_v7 = vpop.f32.mrf.mxu2  ;;  %v9181_v23 = vld [vmem:[#allocation11 + $0x568] sm:$0xf0] }
 0x978   : > { %17017 = vst [vmem:[#allocation22_spill] sm:$0xff] %v15128_v7  ;;  %5946 = vmatpush.bf16.msrb.mxu3 %v9232_v43  ;;  %v9945_v43 = vld [vmem:[#allocation11 + $0x554] sm:$0xf]  ;;  %v17026_v7 = vld [vmem:[#allocation24_spill] sm:$0xff] }
 0x979   : > { %v5582_v28 = vpop.f32.mrf.mxu3 }
 0x97a   : > { %v15121_v54 = vadd.f32 %v5582_v28, %v17015_v36  ;;  %v15143_v42 = vpop.f32.mrf.mxu0  ;;  %v17025_v28 = vld [vmem:[#allocation95_spill] sm:$0xff] }
 0x97b   : > { %17022 = vst [vmem:[#allocation31_spill] sm:$0xff] %v15143_v42  ;;  %v9933_v42 = vld [vmem:[#allocation11 + $0x4f4] sm:$0xf] }
 0x97c   : > { %5929 = vmatmul.bf16.gmra.mxu2 %v17019_v24  ;;  %v15136_v13 = vpop.f32.mrf.mxu1  ;;  %5947 = vmatpush.bf16.msrb.mxu3 %v9208_v12  ;;  %v17027_v24 = vpack.c.bf16 %v17025_v28, %v17026_v7  ;;  %v17028_v12 = vld [vmem:[#allocation83_spill] sm:$0xff]  ;;  %v9927_v7 = vld [vmem:[#allocation11 + $0x4c4] sm:$0xf] }
 0x97d   : > { %17020 = vst [vmem:[#allocation20_spill] sm:$0xff] %v15136_v13  ;;  %v9184_v13 = vor.u32 %v9945_v43, %v9181_v23  ;;  %v9109_v28 = vld [vmem:[#allocation11 + $0x4d8] sm:$0xf0]  ;;  %v17033_v43 = vld [vmem:[#allocation26_spill] sm:$0xff] }
 0x97e   : > { %5880 = vmatmul.bf16.gmra.mxu1 %v17024_v51  ;;  %v15155_v51 = vmul.f32 0.088388346, %v17030_v63  ;;  %v15160_v23 = vmul.f32 0.088388346, %v17033_v43 }
 0x97f   : > { %v15145_v14 = vpop.f32.mrf.mxu2 }
 0x980   : > { %17023 = vst [vmem:[#allocation35_spill] sm:$0xff] %v15145_v14  ;;  %5948 = vmatpush.bf16.msrb.mxu3 %v9184_v13  ;;  %v9133_v14 = vld [vmem:[#allocation11 + $0x508] sm:$0xf0]  ;;  %v9112_v13 = vor.u32 %v9927_v7, %v9109_v28  ;;  %v17040_v7 = vld [vmem:[#allocation32_spill] sm:$0xff]  ;;  %v9921_v28 = vld [vmem:[#allocation11 + $0x494] sm:$0xf] }
 0x981   : > { %v5584_v36 = vpop.f32.mrf.mxu3  ;;  %17031 = vst [vmem:[#allocation71_spill] sm:$0xff] %v15155_v51  ;;  %v9136_v48 = vor.u32 %v9933_v42, %v9133_v14  ;;  %v17038_v14 = vld [vmem:[#allocation57_spill] sm:$0xff] }
 0x982   : > { %v15139_v38 = vadd.f32 %v5584_v36, %v17021_v39  ;;  %v9939_v36 = vld [vmem:[#allocation11 + $0x524] sm:$0xf]  ;;  %v9157_v39 = vld [vmem:[#allocation11 + $0x538] sm:$0xf0]  ;;  %17034 = vst [vmem:[#allocation103_spill] sm:$0xff] %v15160_v23 }
 0x983   : > { %v9160_v17 = vor.u32 %v9939_v36, %v9157_v39  ;;  %v9085_v36 = vld [vmem:[#allocation11 + $0x4a8] sm:$0xf0] }
 0x984   : > { %v15152_v11 = vpop.f32.mrf.mxu1 }
 0x985   : > { %6047 = vmatmul.bf16.gmra.mxu0 %v17027_v24  ;;  %17029 = vst [vmem:[#allocation49_spill] sm:$0xff] %v15152_v11  ;;  %5949 = vmatpush.bf16.msrb.mxu3 %v9160_v17  ;;  %v15162_v24 = vpop.f32.mrf.mxu0  ;;  %v17035_v11 = vld [vmem:[#allocation89_spill] sm:$0xff]  ;;  %v17037_v17 = vld [vmem:[#allocation48_spill] sm:$0xff] }
 0x986   : > { %5782 = vmatmul.bf16.gmra.mxu3 %v17028_v12 }
 0x987   : > { %v15157_v8 = vpop.f32.mrf.mxu2 }
 0x988   : > { %17032 = vst [vmem:[#allocation44_spill] sm:$0xff] %v15157_v8 }
 0x989   : > { %v5587_v57 = vpop.f32.mrf.mxu3  ;;  %5950 = vmatpush.bf16.msrb.mxu3 %v9136_v48 }
 0x98a   : > { %v15170_v42 = vadd.f32 %v5587_v57, %v17037_v17  ;;  %v17044_v57 = vld [vmem:[#allocation59_spill] sm:$0xff] }
 0x98c   : > { %5934 = vmatmul.bf16.gmra.mxu2 %v17035_v11  ;;  %v15167_v63 = vpop.f32.mrf.mxu1  ;;  %v17042_v11 = vld [vmem:[#allocation30_spill] sm:$0xff] }
 0x98d   : > { %17036 = vst [vmem:[#allocation72_spill] sm:$0xff] %v15167_v63  ;;  %5951 = vmatpush.bf16.msrb.mxu3 %v9112_v13  ;;  %v17043_v23 = vpack.c.bf16 %v17041_v3, %v17042_v11  ;;  %v9088_v63 = vor.u32 %v9921_v28, %v9085_v36 }
 0x98e   : > { %5885 = vmatmul.bf16.gmra.mxu1 %v17040_v7  ;;  %v17049_v7 = vld [vmem:[#allocation102_spill] sm:$0xff] }
 0x98f   : > { %v15177_v48 = vpop.f32.mrf.mxu2  ;;  %v15194_v51 = vmul.f32 0.088388346, %v17049_v7  ;;  %v17052_v7 = vpack.c.bf16 %v14941_v4, %v14944_v35 }
 0x990   : > { %17039 = vst [vmem:[#allocation67_spill] sm:$0xff] %v15177_v48 }
 0x991   : > { %v5589_v39 = vpop.f32.mrf.mxu3  ;;  %5952 = vmatpush.bf16.msrb.mxu3 %v9088_v63  ;;  %v17050_v63 = vld [vmem:[#allocation77_spill] sm:$0xff] }
 0x992   : > { %v15173_v8 = vadd.f32 %v5589_v39, %v17038_v14  ;;  %v15184_v39 = vpop.f32.mrf.mxu0  ;;  %v17047_v14 = vld [vmem:[#allocation79_spill] sm:$0xff] }
 0x993   : > { %17045 = vst [vmem:[#allocation100_spill] sm:$0xff] %v15184_v39  ;;  %v15189_v43 = vmul.f32 0.088388346, %v17047_v14 }
 0x994   : > { %v15186_v17 = vpop.f32.mrf.mxu1 }
 0x995   : > { %6052 = vmatmul.bf16.gmra.mxu0 %v17043_v23  ;;  %17046 = vst [vmem:[#allocation104_spill] sm:$0xff] %v15186_v17 }
 0x996   : > { %5787 = vmatmul.bf16.gmra.mxu3 %v17044_v57 }
 0x997   : > { %v15191_v48 = vpop.f32.mrf.mxu2 }
 0x998   : > { %17048 = vst [vmem:[#allocation34_spill] sm:$0xff] %v15191_v48  ;;  %v17054_v48 = vld [vmem:[#allocation92_spill] sm:$0xff] }
 0x999   : > { %v5592_v13 = vpop.f32.mrf.mxu3 }
 0x99a   : > { %v5593_v28 = vadd.f32 %v5592_v13, %v17050_v63  ;;  %v15203_v39 = vpop.f32.mrf.mxu0  ;;  %v15215_v13 = vmul.f32 0.088388346, %v17054_v48  ;;  %v17057_v63 = vld [vmem:[#allocation101_spill] sm:$0xff] }
 0x99c   : > { %5939 = vmatmul.bf16.gmra.mxu2 %v16863_v59  ;;  %v15199_v36 = vpop.f32.mrf.mxu1 }
 0x99e   : > { %5890 = vmatmul.bf16.gmra.mxu1 %v16864_v55  ;;  %v9371_v55 = vld [vmem:[#allocation13 + $0xe0] sm:$0xf] }
 0x99f   : > { %v15205_v17 = vpop.f32.mrf.mxu2 }
 0x9a0   : > { %17051 = vst [vmem:[#allocation64_spill] sm:$0xff] %v15205_v17 }
 0x9a1   : > { %v5594_v23 = vpop.f32.mrf.mxu3 }
 0x9a2   : > { %v5595_v11 = vadd.f32 %v5594_v23, %v14946_v46  ;;  %v15217_v46 = vpop.f32.mrf.mxu0 }
 0x9a3   : > { %17055 = vst [vmem:[#allocation38_spill] sm:$0xff] %v15217_v46  ;;  %v17059_v46 = vpack.c.bf16 %v14968_v22, %v14971_v49  ;;  %v9993_v22 = vld [vmem:[#allocation13 + $0xcc] sm:$0xf0]  ;;  %v17062_v49 = vld [vmem:[#allocation29_spill] sm:$0xff] }
 0x9a4   : > { %v6330_v14 = vpack.c.bf16 %v5595_v11, %v5593_v28  ;;  %v15212_v3 = vpop.f32.mrf.mxu1  ;;  %v15222_v28 = vmul.f32 0.088388346, %v17057_v63 }
 0x9a5   : > { %6057 = vmatmul.bf16.gmra.mxu0 %v17052_v7  ;;  %17053 = vst [vmem:[#allocation46_spill] sm:$0xff] %v15212_v3 }
 0x9a6   : > { %5792 = vmatmul.bf16.gmra.mxu3 %v16937_v1  ;;  %17058 = vst [vmem:[#allocation23_spill] sm:$0xff] %v15222_v28  ;;  %v9997_v28 = vld [vmem:[#allocation13 + $0xec] sm:$0xf0] }
 0x9a7   : > { %v15219_v23 = vpop.f32.mrf.mxu2 }
 0x9a8   : > { %17056 = vst [vmem:[#allocation105_spill] sm:$0xff] %v15219_v23 }
 0x9a9   : > { %v5597_v59 = vpop.f32.mrf.mxu3 }
 0x9aa   : > { %v5598_v11 = vadd.f32 %v5597_v59, %v14960_v33  ;;  %v15235_v63 = vpop.f32.mrf.mxu0  ;;  %v9372_v33 = vor.u32 %v9997_v28, %v9371_v55  ;;  %v9339_v28 = vld [vmem:[#allocation13 + $0xa0] sm:$0xf]  ;;  %v9989_v55 = vld [vmem:[#allocation13 + $0xac] sm:$0xf0] }
 0x9ab   : > { %17060 = vst [vmem:[#allocation27_spill] sm:$0xff] %v15235_v63 }
 0x9ac   : > { %v5856_v35 = vpop.f32.mrf.mxu1  ;;  %7480 = vmatpush.bf16.msra.mxu0 %v9372_v33 }
 0x9ad   : > { %v5857_v17 = vadd.f32 %v5856_v35, %v15056_v31 }
 0x9af   : > { %v5905_v3 = vpop.f32.mrf.mxu2 }
 0x9b0   : > { %v15232_v23 = vadd.f32 %v5905_v3, %v5857_v17  ;;  %v15243_v17 = vmul.f32 0.088388346, %v17062_v49  ;;  %v9323_v49 = vld [vmem:[#allocation13 + $0x80] sm:$0xf] }
 0x9b1   : > { %v5599_v4 = vpop.f32.mrf.mxu3 }
 0x9b2   : > { %v5600_v7 = vadd.f32 %v5599_v4, %v14973_v19  ;;  %v9355_v4 = vld [vmem:[#allocation13 + $0xc0] sm:$0xf] }
 0x9b3   : > { %v9356_v3 = vor.u32 %v9993_v22, %v9355_v4 }
 0x9b4   : > { %v6331_v48 = vpack.c.bf16 %v5600_v7, %v5598_v11  ;;  %v15237_v19 = vpop.f32.mrf.mxu1  ;;  %v9340_v11 = vor.u32 %v9989_v55, %v9339_v28  ;;  %v15252_v7 = vpop.f32.mrf.mxu0 }
 0x9b5   : > { %6062 = vmatmul.bf16.gmra.mxu0 %v17059_v46  ;;  %17061 = vst [vmem:[#allocation97_spill] sm:$0xff] %v15237_v19  ;;  %v17064_v46 = vld [vmem:[#allocation75_spill] sm:$0xff] }
 0x9b6   : > { %5953 = vmatmul.bf16.vlgmr.msrb.gmra.mxu3 %v14299_v30  ;;  %6340 = vmatpush.bf16.xpose.msra.mxu2 %v6331_v48  ;;  %v15248_v35 = vmul.f32 0.088388346, %v17064_v46  ;;  %17065 = vst [vmem:[#allocation33_spill] sm:$0xff] %v15252_v7  ;;  %v17066_v46 = vpack.c.bf16 %v14995_v9, %v14998_v34  ;;  %v9291_v34 = vld [vmem:[#allocation13 + $0x40] sm:$0xf] }
 0x9b7   : > { %v15245_v30 = vpop.f32.mrf.mxu2  ;;  %7481 = vmatpush.bf16.msra.mxu0 %v9356_v3  ;;  %v9985_v3 = vld [vmem:[#allocation13 + $0x8c] sm:$0xf0] }
 0x9b8   : > { %17063 = vst [vmem:[#allocation66_spill] sm:$0xff] %v15245_v30  ;;  %v9324_v55 = vor.u32 %v9985_v3, %v9323_v49  ;;  %v17071_v49 = vld [vmem:[#allocation60_spill] sm:$0xff] }
 0x9b9   : > { %v5758_v59 = vpop.f32.mrf.mxu3  ;;  %v15282_v3 = vmul.f32 0.088388346, %v17071_v49  ;;  %v17073_v49 = vpack.c.bf16 %v15028_v53, %v15031_v45  ;;  %v17078_v45 = vld [vmem:[#allocation43_spill] sm:$0xff]  ;;  %v17112_v30 = vld [vmem:[#allocation64_spill] sm:$0xff] }
 0x9ba   : > { %v15240_v31 = vadd.f32 %v5758_v59, %v14984_v16 }
 0x9bb   : > { %7482 = vmatpush.bf16.msra.mxu0 %v9340_v11  ;;  %v9981_v11 = vld [vmem:[#allocation13 + $0x6c] sm:$0xf0] }
 0x9bc   : > { %v5861_v33 = vpop.f32.mrf.mxu1  ;;  %v15274_v9 = vpop.f32.mrf.mxu0 }
 0x9bd   : > { %v5862_v4 = vadd.f32 %v5861_v33, %v15091_v20  ;;  %v9307_v20 = vld [vmem:[#allocation13 + $0x60] sm:$0xf] }
 0x9be   : > { %6341 = vmatpush.bf16.xpose.msra.mxu2 %v6330_v14 }
 0x9bf   : > { %v5910_v14 = vpop.f32.mrf.mxu2  ;;  %7483 = vmatpush.bf16.msra.mxu0 %v9324_v55  ;;  %v9973_v55 = vld [vmem:[#allocation13 + $0x2c] sm:$0xf0] }
 0x9c0   : > { %v15263_v28 = vadd.f32 %v5910_v14, %v5862_v4  ;;  %v9977_v4 = vld [vmem:[#allocation13 + $0x4c] sm:$0xf0] }
 0x9c1   : > { %v5760_v48 = vpop.f32.mrf.mxu3  ;;  %v17069_v14 = vld [vmem:[#allocation58_spill] sm:$0xff] }
 0x9c2   : > { %v15255_v59 = vadd.f32 %v5760_v48, %v15000_v32  ;;  %v17067_v32 = vpack.c.bf16 %v15173_v8, %v15170_v42  ;;  %v9308_v48 = vor.u32 %v9981_v11, %v9307_v20  ;;  %v9292_v8 = vor.u32 %v9977_v4, %v9291_v34  ;;  %v17100_v20 = vld [vmem:[#allocation99_spill] sm:$0xff]  ;;  %v17101_v4 = vld [vmem:[#allocation85_spill] sm:$0xff] }
 0x9c4   : > { %v15269_v22 = vpop.f32.mrf.mxu1  ;;  %7484 = vmatpush.bf16.msra.mxu0 %v9308_v48 }
 0x9c5   : > { %6067 = vmatmul.bf16.gmra.mxu0 %v17066_v46  ;;  %17068 = vst [vmem:[#allocation95_spill] sm:$0xff] %v15269_v22  ;;  %v17072_v46 = vpack.c.bf16 %v15139_v38, %v15121_v54  ;;  %v15295_v38 = vpop.f32.mrf.mxu0  ;;  %v17114_v22 = vld [vmem:[#allocation40_spill] sm:$0xff] }
 0x9c6   : > { %5958 = vmatmul.bf16.gmra.mxu3 %v14319_v21  ;;  %6342 = vmatpush.bf16.xpose.msra.mxu2 %v17067_v32  ;;  %v15277_v21 = vmul.f32 0.088388346, %v17069_v14  ;;  %v9259_v14 = vld [vmem:[#allocation13] sm:$0xf] }
 0x9c7   : > { %v15279_v42 = vpop.f32.mrf.mxu2 }
 0x9c8   : > { %17070 = vst [vmem:[#allocation24_spill] sm:$0xff] %v15279_v42  ;;  %7485 = vmatpush.bf16.msra.mxu0 %v9292_v8  ;;  %v9969_v8 = vld [vmem:[#allocation13 + $0xc] sm:$0xf0] }
 0x9c9   : > { %v5763_v33 = vpop.f32.mrf.mxu3 }
 0x9ca   : > { %v15272_v16 = vadd.f32 %v5763_v33, %v15014_v44  ;;  %v9275_v44 = vld [vmem:[#allocation13 + $0x20] sm:$0xf] }
 0x9cb   : > { %v9276_v32 = vor.u32 %v9973_v55, %v9275_v44  ;;  %v9260_v44 = vor.u32 %v9969_v8, %v9259_v14 }
 0x9cc   : > { %v5866_v33 = vpop.f32.mrf.mxu1 }
 0x9cd   : > { %v5867_v34 = vadd.f32 %v5866_v33, %v15123_v52  ;;  %7486 = vmatpush.bf16.msra.mxu0 %v9276_v32 }
 0x9ce   : > { %6343 = vmatpush.bf16.xpose.msra.mxu2 %v17072_v46 }
 0x9cf   : > { %v5915_v54 = vpop.f32.mrf.mxu2 }
 0x9d0   : > { %v15300_v46 = vadd.f32 %v5915_v54, %v5867_v34  ;;  %v15317_v34 = vmul.f32 0.088388346, %v17078_v45 }
 0x9d1   : > { %v5765_v11 = vpop.f32.mrf.mxu3  ;;  %7487 = vmatpush.bf16.msra.mxu0 %v9260_v44 }
 0x9d2   : > { %v15290_v48 = vadd.f32 %v5765_v11, %v15033_v0  ;;  %v17074_v0 = vpack.c.bf16 %v15106_v15, %v15094_v60  ;;  %v17076_v11 = vld [vmem:[#allocation65_spill] sm:$0xff]  ;;  %v15322_v15 = vpop.f32.mrf.mxu0 }
 0x9d3   : > { %v15312_v33 = vmul.f32 0.088388346, %v17076_v11 }
 0x9d4   : > { %v15306_v55 = vpop.f32.mrf.mxu1 }
 0x9d5   : > { %6072 = vmatmul.bf16.gmra.mxu0 %v17073_v49  ;;  %17075 = vst [vmem:[#allocation83_spill] sm:$0xff] %v15306_v55  ;;  %v17106_v49 = vld [vmem:[#allocation47_spill] sm:$0xff]  ;;  %v17116_v55 = vld [vmem:[#allocation34_spill] sm:$0xff] }
 0x9d6   : > { %5963 = vmatmul.bf16.gmra.mxu3 %v14341_v29  ;;  %6344 = vmatpush.bf16.xpose.msra.mxu2 %v17074_v0  ;;  %v17079_v29 = vpack.c.bf16 %v15079_v47, %v15059_v26  ;;  %v17080_v26 = vpack.c.bf16 %v15063_v37, %v15066_v56  ;;  %v17081_v0 = vpack.c.bf16 %v15044_v62, %v15023_v6 }
 0x9d7   : > { %v15314_v53 = vpop.f32.mrf.mxu2  ;;  %v17084_v37 = vpack.c.bf16 %v15008_v5, %v14990_v50  ;;  %v17087_v5 = vld [vmem:[#allocation21_spill] sm:$0xff] }
 0x9d8   : > { %17077 = vst [vmem:[#allocation25_spill] sm:$0xff] %v15314_v53 }
 0x9d9   : > { %v5768_v52 = vpop.f32.mrf.mxu3 }
 0x9da   : > { %v15309_v32 = vadd.f32 %v5768_v52, %v15050_v27 }
 0x9dc   : > { %v5871_v27 = vpop.f32.mrf.mxu1 }
 0x9dd   : > { %v5872_v8 = vadd.f32 %v5871_v27, %v15162_v24  ;;  %v17086_v27 = vld [vmem:[#allocation82_spill] sm:$0xff] }
 0x9de   : > { %6345 = vmatpush.bf16.xpose.msra.mxu2 %v17079_v29 }
 0x9df   : > { %v5920_v44 = vpop.f32.mrf.mxu2 }
 0x9e0   : > { %v15335_v47 = vadd.f32 %v5920_v44, %v5872_v8  ;;  %v17088_v44 = vld [vmem:[#allocation28_spill] sm:$0xff] }
 0x9e1   : > { %v5770_v54 = vpop.f32.mrf.mxu3 }
 0x9e2   : > { %v15327_v14 = vadd.f32 %v5770_v54, %v15068_v41  ;;  %v15341_v41 = vpop.f32.mrf.mxu0  ;;  %v17085_v54 = vld [vmem:[#allocation76_spill] sm:$0xff] }
 0x9e3   : > { %v15361_v8 = vpack.c.bf16 %v17086_v27, %v17085_v54  ;;  %v17091_v54 = vld [vmem:[#allocation36_spill] sm:$0xff] }
 0x9e4   : > { %v15343_v24 = vpop.f32.mrf.mxu1 }
 0x9e5   : > { %6077 = vmatmul.bf16.gmra.mxu0 %v17080_v26  ;;  %17082 = vst [vmem:[#allocation26_spill] sm:$0xff] %v15343_v24  ;;  %v17089_v26 = vpack.c.bf16 %v17087_v5, %v17088_v44  ;;  %v17094_v44 = vld [vmem:[#allocation51_spill] sm:$0xff] }
 0x9e6   : > { %5968 = vmatmul.bf16.gmra.mxu3 %v16998_v25  ;;  %6346 = vmatpush.bf16.xpose.msra.mxu2 %v17081_v0 }
 0x9e7   : > { %v15348_v45 = vpop.f32.mrf.mxu2 }
 0x9e8   : > { %17083 = vst [vmem:[#allocation89_spill] sm:$0xff] %v15348_v45  ;;  %v17115_v45 = vld [vmem:[#allocation49_spill] sm:$0xff] }
 0x9e9   : > { %v5773_v52 = vpop.f32.mrf.mxu3 }
 0x9ea   : > { %v15346_v11 = vadd.f32 %v5773_v52, %v15085_v58  ;;  %v17107_v58 = vld [vmem:[#allocation46_spill] sm:$0xff] }
 0x9ec   : > { %v5876_v25 = vpop.f32.mrf.mxu1 }
 0x9ed   : > { %v5877_v62 = vadd.f32 %v5876_v25, %v15203_v39  ;;  %v17090_v25 = vld [vmem:[#allocation74_spill] sm:$0xff] }
 0x9ee   : > { %6347 = vmatpush.bf16.xpose.msra.mxu2 %v17084_v37  ;;  %v15385_v27 = vpack.c.bf16 %v17091_v54, %v17090_v25  ;;  %v17096_v25 = vld [vmem:[#allocation71_spill] sm:$0xff] }
 0x9ef   : > { %v5925_v50 = vpop.f32.mrf.mxu2  ;;  %v17097_v54 = vld [vmem:[#allocation103_spill] sm:$0xff] }
 0x9f1   : > { %v5775_v56 = vpop.f32.mrf.mxu3 }
 0x9f2   : > { %v15354_v29 = vadd.f32 %v5775_v56, %v15097_v40  ;;  %v15356_v6 = vpop.f32.mrf.mxu0  ;;  %v15370_v40 = vadd.f32 %v5925_v50, %v5877_v62 }
 0x9f3   : > { %6083 = vmax.xlane.f32.xlu2 %v15356_v6 }
 0x9f5   : > { %6348 = vmatmul.bf16.vlgmr.msra.gmra.mxu2 %v17089_v26  ;;  %7488 = vmatmul.bf16.vlgmr.msra.gmra.mxu0 %v15361_v8  ;;  %v17095_v26 = vld [vmem:[#allocation37_spill] sm:$0xff] }
 0x9f6   : > { %5973 = vmatmul.bf16.gmra.mxu3 %v17013_v10  ;;  %v17092_v10 = vpack.c.bf16 %v15126_v2, %v15131_v18  ;;  %v17098_v2 = vpack.c.bf16 %v17096_v25, %v17097_v54  ;;  %v17105_v54 = vld [vmem:[#allocation56_spill] sm:$0xff] }
 0x9f9   : > { %v5778_v39 = vpop.f32.mrf.mxu3 }
 0x9fa   : > { %v15374_v0 = vadd.f32 %v5778_v39, %v15115_v61  ;;  %v15376_v52 = vpop.f32.mrf.mxu0  ;;  %v15400_v39 = vpack.c.bf16 %v17095_v26, %v17094_v44  ;;  %v15414_v44 = vpack.c.bf16 %v17101_v4, %v17100_v20  ;;  %v17103_v26 = vpack.c.bf16 %v15189_v43, %v15194_v51  ;;  %v17108_v4 = vld [vmem:[#allocation42_spill] sm:$0xff]  ;;  %v17110_v51 = vld [vmem:[#allocation41_spill] sm:$0xff]  ;;  %v17111_v43 = vld [vmem:[#allocation72_spill] sm:$0xff] }
 0x9fb   : > { %6085 = vmax.xlane.f32.xlu0 %v15376_v52  ;;  %v5698_v20 = vadd.f32 %v17107_v58, %v17106_v49  ;;  %v17118_v49 = vld [vmem:[#allocation93_spill] sm:$0xff]  ;;  %v17119_v58 = vld [vmem:[#allocation96_spill] sm:$0xff] }
 0x9fc   : > { %17102 = vst [vmem:[#allocation32_spill] sm:$0xff] %v15414_v44 }
 0xa01   : > { %v15379_v37 = vpop.f32.mrf.mxu3 }
 0xa02   : > { %v15381_v56 = vpop.f32.mrf.mxu0 }
 0xa03   : > { %6087 = vmax.xlane.f32.xlu0 %v15381_v56 }
 0xa05   : > { %6353 = vmatmul.bf16.gmra.mxu2 %v17092_v10  ;;  %7493 = vmatmul.bf16.gmra.mxu0 %v15385_v27 }
 0xa06   : > { %5978 = vmatmul.bf16.gmra.mxu3 %v17028_v12 }
 0xa09   : > { %v5783_v61 = vpop.f32.mrf.mxu3 }
 0xa0a   : > { %v15393_v62 = vpop.f32.mrf.mxu0 }
 0xa0b   : > { %17093 = vst [vmem:[#allocation48_spill] sm:$0xff] %v15393_v62  ;;  %6089 = vmax.xlane.f32.xlu1 %v15393_v62 }
 0xa11   : > { %v5785_v50 = vpop.f32.mrf.mxu3 }
 0xa12   : > { %v15396_v5 = vpop.f32.mrf.mxu0 }
 0xa15   : > { %6358 = vmatmul.bf16.gmra.mxu2 %v17098_v2  ;;  %7498 = vmatmul.bf16.gmra.mxu0 %v15400_v39  ;;  %v5696_v2 = vadd.f32 %v15199_v36, %v17105_v54 }
 0xa16   : > { %5983 = vmatmul.bf16.gmra.mxu3 %v17044_v57 }
 0xa17   : > { %v5745_v42 = vadd.f32 %v17112_v30, %v5696_v2  ;;  %v17122_v30 = vld [vmem:[#allocation67_spill] sm:$0xff] }
 0xa19   : > { %v5788_v18 = vpop.f32.mrf.mxu3 }
 0xa1a   : > { %v15407_v12 = vpop.f32.mrf.mxu0 }
 0xa1b   : > { %17099 = vst [vmem:[#allocation57_spill] sm:$0xff] %v15407_v12  ;;  %6093 = vmax.xlane.f32.xlu2 %v15407_v12  ;;  %v17109_v12 = vld [vmem:[#allocation104_spill] sm:$0xff] }
 0xa1c   : > { %v5693_v62 = vadd.f32 %v17109_v12, %v17108_v4  ;;  %v15441_v12 = vpack.c.bf16 %v17119_v58, %v17118_v49  ;;  %v17120_v4 = vld [vmem:[#allocation39_spill] sm:$0xff] }
 0xa1e   : > { %v5742_v24 = vadd.f32 %v17116_v55, %v5693_v62 }
 0xa21   : > { %v5790_v10 = vpop.f32.mrf.mxu3 }
 0xa22   : > { %v15410_v60 = vpop.f32.mrf.mxu0 }
 0xa25   : > { %6363 = vmatmul.bf16.gmra.mxu2 %v17103_v26  ;;  %7503 = vmatmul.bf16.gmra.mxu0 %v15414_v44  ;;  %v5691_v26 = vadd.f32 %v17111_v43, %v17110_v51  ;;  %v17121_v51 = vld [vmem:[#allocation20_spill] sm:$0xff] }
 0xa26   : > { %5988 = vmatmul.bf16.gmra.mxu3 %v16937_v1  ;;  %v17113_v1 = vld [vmem:[#allocation105_spill] sm:$0xff]  ;;  %v5686_v43 = vadd.f32 %v17121_v51, %v17120_v4  ;;  %v17128_v4 = vld [vmem:[#allocation35_spill] sm:$0xff] }
 0xa27   : > { %v5747_v19 = vadd.f32 %v17113_v1, %v5698_v20  ;;  %v5740_v2 = vadd.f32 %v17122_v30, %v5691_v26  ;;  %v15446_v20 = vpop.f32.mrf.mxu2  ;;  %v5791_v1 = vadd.f32 %v5790_v10, %v5742_v24 }
 0xa28   : > { %v5735_v51 = vadd.f32 %v17128_v4, %v5686_v43  ;;  %v9309_v4 = vld [vmem:[#allocation13 + $0x70] sm:$0xf0] }
 0xa29   : > { %v5793_v57 = vpop.f32.mrf.mxu3  ;;  %v5789_v58 = vadd.f32 %v5788_v18, %v5740_v2  ;;  %v9987_v18 = vld [vmem:[#allocation13 + $0xa4] sm:$0xf]  ;;  %v9341_v2 = vld [vmem:[#allocation13 + $0xb0] sm:$0xf0] }
 0xa2a   : > { %v15421_v25 = vpop.f32.mrf.mxu0  ;;  %v5794_v36 = vadd.f32 %v5793_v57, %v5745_v42  ;;  %v9373_v42 = vld [vmem:[#allocation13 + $0xf0] sm:$0xf0]  ;;  %v17127_v57 = vld [vmem:[#allocation44_spill] sm:$0xff]  ;;  %v5784_v30 = vadd.f32 %v5783_v61, %v5735_v51  ;;  %v17134_v51 = vpack.c.bf16 %v15354_v29, %v15346_v11 }
 0xa2b   : > { %17104 = vst [vmem:[#allocation55_spill] sm:$0xff] %v15421_v25  ;;  %6097 = vmax.xlane.f32.xlu2 %v15421_v25  ;;  %v5688_v25 = vadd.f32 %v17115_v45, %v17114_v22  ;;  %v17123_v22 = vld [vmem:[#allocation23_spill] sm:$0xff]  ;;  %v17126_v45 = vld [vmem:[#allocation68_spill] sm:$0xff]  ;;  %v6032_v10 = vpack.c.bf16 %v5791_v1, %v5789_v58  ;;  %v9344_v1 = vor.u32 %v9987_v18, %v9341_v2  ;;  %v9277_v29 = vld [vmem:[#allocation13 + $0x30] sm:$0xf0] }
 0xa2c   : > { %v17124_v55 = vpack.c.bf16 %v15215_v13, %v17123_v22  ;;  %v17129_v13 = vld [vmem:[#allocation22_spill] sm:$0xff]  ;;  %v17133_v58 = vpack.c.bf16 %v15243_v17, %v15248_v35  ;;  %v17135_v17 = vpack.c.bf16 %v15327_v14, %v15309_v32  ;;  %v9975_v35 = vld [vmem:[#allocation13 + $0x44] sm:$0xf]  ;;  %v17138_v32 = vpack.c.bf16 %v15255_v59, %v15240_v31 }
 0xa2d   : > { %v5737_v49 = vadd.f32 %v17127_v57, %v5688_v25  ;;  %v9357_v25 = vld [vmem:[#allocation13 + $0xd0] sm:$0xf0]  ;;  %v9971_v11 = vld [vmem:[#allocation13 + $0x24] sm:$0xf] }
 0xa2e   : > { %v9280_v18 = vor.u32 %v9971_v11, %v9277_v29  ;;  %v17139_v14 = vld [vmem:[#allocation88_spill] sm:$0xff] }
 0xa2f   : > { %v5786_v24 = vadd.f32 %v5785_v50, %v5737_v49  ;;  %v9983_v49 = vld [vmem:[#allocation13 + $0x84] sm:$0xf] }
 0xa31   : > { %v5795_v53 = vpop.f32.mrf.mxu3  ;;  %v6031_v50 = vpack.c.bf16 %v5786_v24, %v5784_v30  ;;  %v9293_v30 = vld [vmem:[#allocation13 + $0x50] sm:$0xf0] }
 0xa32   : > { %v5796_v54 = vadd.f32 %v5795_v53, %v5747_v19  ;;  %v15437_v63 = vpop.f32.mrf.mxu0  ;;  %v9995_v19 = vld [vmem:[#allocation13 + $0xe4] sm:$0xf]  ;;  %v17125_v53 = vld [vmem:[#allocation61_spill] sm:$0xff] }
 0xa33   : > { %17117 = vst [vmem:[#allocation30_spill] sm:$0xff] %v15437_v63  ;;  %v5683_v62 = vadd.f32 %v17126_v45, %v17125_v53  ;;  %v9376_v26 = vor.u32 %v9995_v19, %v9373_v42  ;;  %v9991_v53 = vld [vmem:[#allocation13 + $0xc4] sm:$0xf]  ;;  %v15463_v19 = vpop.f32.mrf.mxu2  ;;  %v17131_v45 = vld [vmem:[#allocation50_spill] sm:$0xff] }
 0xa34   : > { %v6033_v7 = vpack.c.bf16 %v5796_v54, %v5794_v36 }
 0xa35   : > { %6368 = vmatmul.bf16.gmra.mxu2 %v17124_v55  ;;  %7508 = vmatmul.bf16.gmra.mxu0 %v15441_v12  ;;  %v5732_v54 = vadd.f32 %v17129_v13, %v5683_v62  ;;  %v17132_v62 = vld [vmem:[#allocation94_spill] sm:$0xff] }
 0xa36   : > { %6235 = vmatpush.bf16.msrb.mxu1 %v6033_v7  ;;  %7676 = vmatpush.bf16.msrb.mxu0 %v9376_v26  ;;  %v9360_v7 = vor.u32 %v9991_v53, %v9357_v25  ;;  %v15472_v57 = vpack.c.bf16 %v17132_v62, %v17131_v45  ;;  %v9296_v53 = vor.u32 %v9975_v35, %v9293_v30 }
 0xa37   : > { %v5781_v43 = vadd.f32 %v15379_v37, %v5732_v54  ;;  %v9325_v37 = vld [vmem:[#allocation13 + $0x90] sm:$0xf0]  ;;  %v17136_v25 = vpack.c.bf16 %v15290_v48, %v15272_v16  ;;  %v17141_v48 = vpack.c.bf16 %v15277_v21, %v15282_v3  ;;  %v17146_v3 = vpack.c.bf16 %v15312_v33, %v15317_v34 }
 0xa38   : > { %v9328_v26 = vor.u32 %v9983_v49, %v9325_v37  ;;  %v9261_v16 = vld [vmem:[#allocation13 + $0x10] sm:$0xf0] }
 0xa39   : > { %v5954_v36 = vpop.f32.mrf.mxu3  ;;  %v6030_v61 = vpack.c.bf16 %v5781_v43, %v15374_v0  ;;  %v9979_v0 = vld [vmem:[#allocation13 + $0x64] sm:$0xf]  ;;  %v17140_v43 = vld [vmem:[#allocation90_spill] sm:$0xff] }
 0xa3a   : > { %v15458_v22 = vadd.f32 %v5954_v36, %v15232_v23  ;;  %v15460_v55 = vpop.f32.mrf.mxu0  ;;  %6236 = vmatpush.bf16.msrb.mxu1 %v6032_v10  ;;  %7677 = vmatpush.bf16.msrb.mxu0 %v9360_v7  ;;  %v9312_v24 = vor.u32 %v9979_v0, %v9309_v4 }
 0xa3b   : > { %17130 = vst [vmem:[#allocation59_spill] sm:$0xff] %v15460_v55  ;;  %v15481_v10 = vpop.f32.mrf.mxu2 }
 0xa3e   : > { %6237 = vmatpush.bf16.msrb.mxu1 %v6031_v50  ;;  %7678 = vmatpush.bf16.msrb.mxu0 %v9344_v1  ;;  %v15505_v50 = vpack.c.bf16 %v17140_v43, %v17139_v14  ;;  %v9967_v1 = vld [vmem:[#allocation13 + $0x4] sm:$0xf] }
 0xa41   : > { %v15466_v23 = vpop.f32.mrf.mxu3 }
 0xa42   : > { %v15468_v42 = vpop.f32.mrf.mxu0  ;;  %6238 = vmatpush.bf16.msrb.mxu1 %v6030_v61  ;;  %7679 = vmatpush.bf16.msrb.mxu0 %v9328_v26  ;;  %v9264_v61 = vor.u32 %v9967_v1, %v9261_v16  ;;  %v17145_v26 = vld [vmem:[#allocation84_spill] sm:$0xff] }
 0xa43   : > { %v15496_v7 = vpop.f32.mrf.mxu2 }
 0xa45   : > { %6373 = vmatmul.bf16.gmra.mxu2 %v17133_v58  ;;  %7513 = vmatmul.bf16.gmra.mxu0 %v15472_v57  ;;  %v17144_v58 = vld [vmem:[#allocation81_spill] sm:$0xff] }
 0xa46   : > { %6239 = vmatpush.bf16.msrb.mxu1 %v17134_v51  ;;  %7680 = vmatpush.bf16.msrb.mxu0 %v9312_v24  ;;  %v15524_v21 = vpack.c.bf16 %v17145_v26, %v17144_v58  ;;  %v15537_v24 = vpop.f32.mrf.mxu1 }
 0xa49   : > { %v5959_v36 = vpop.f32.mrf.mxu3 }
 0xa4a   : > { %v15484_v13 = vadd.f32 %v5959_v36, %v15263_v28  ;;  %v15486_v54 = vpop.f32.mrf.mxu0  ;;  %6240 = vmatpush.bf16.msrb.mxu1 %v17135_v17  ;;  %7681 = vmatpush.bf16.msrb.mxu0 %v9296_v53 }
 0xa4b   : > { %v15516_v59 = vpop.f32.mrf.mxu2 }
 0xa4e   : > { %6241 = vmatpush.bf16.msrb.mxu1 %v17136_v25  ;;  %7682 = vmatpush.bf16.msrb.mxu0 %v9280_v18  ;;  %v15547_v53 = vpop.f32.mrf.mxu1 }
 0xa51   : > { %v15494_v28 = vpop.f32.mrf.mxu3 }
 0xa52   : > { %v15498_v2 = vpop.f32.mrf.mxu0  ;;  %6242 = vmatpush.bf16.msrb.mxu1 %v17138_v32  ;;  %7683 = vmatpush.bf16.msrb.mxu0 %v9264_v61 }
 0xa53   : > { %17137 = vst [vmem:[#allocation79_spill] sm:$0xff] %v15498_v2 }
 0xa55   : > { %6378 = vmatmul.bf16.gmra.mxu2 %v17141_v48  ;;  %7518 = vmatmul.bf16.gmra.mxu0 %v15505_v50 }
 0xa56   : > { %v5883_v14 = vpop.f32.mrf.mxu1 }
 0xa59   : > { %v5964_v45 = vpop.f32.mrf.mxu3 }
 0xa5a   : > { %v15512_v62 = vadd.f32 %v5964_v45, %v15300_v46  ;;  %v15514_v31 = vpop.f32.mrf.mxu0  ;;  %v15530_v46 = vpop.f32.mrf.mxu2 }
 0xa5b   : > { %17142 = vst [vmem:[#allocation102_spill] sm:$0xff] %v15514_v31 }
 0xa5e   : > { %v5886_v58 = vpop.f32.mrf.mxu1 }
 0xa61   : > { %v15518_v49 = vpop.f32.mrf.mxu3 }
 0xa62   : > { %v15520_v37 = vpop.f32.mrf.mxu0  ;;  %v15539_v17 = vpop.f32.mrf.mxu2 }
 0xa63   : > { %17143 = vst [vmem:[#allocation77_spill] sm:$0xff] %v15520_v37 }
 0xa65   : > { %6383 = vmatmul.bf16.gmra.mxu2 %v17146_v3  ;;  %7523 = vmatmul.bf16.gmra.mxu0 %v15524_v21 }
 0xa66   : > { %v6084_v36 = vpop.xlane.xlu2 %6083 }
 0xa67   : > { %v6115_v33 = vsub.f32 %v15356_v6, %v6084_v36 }
 0xa69   : > { %v5969_v0 = vpop.f32.mrf.mxu3  ;;  %v6131_v30 = vmul.f32 1.442695, %v6115_v33 }
 0xa6a   : > { %v15533_v4 = vadd.f32 %v5969_v0, %v15335_v47  ;;  %v15535_v51 = vpop.f32.mrf.mxu0 }
 0xa6b   : > { %17147 = vst [vmem:[#allocation92_spill] sm:$0xff] %v15535_v51  ;;  %10524 = vpow2.f32 %v6131_v30  ;;  %v5888_v30 = vpop.f32.mrf.mxu1 }
 0xa6c   : > { %v5889_v51 = vadd.f32 %v5888_v30, %v15295_v38  ;;  %v17158_v38 = vld [vmem:[#allocation27_spill] sm:$0xff] }
 0xa6d   : > { %v9998_v30 = vld [vmem:[#allocation13 + $0xf4] sm:$0xf0] }
 0xa6e   : > { %v6086_v18 = vpop.xlane.xlu0 %6085 }
 0xa6f   : > { %v6116_v36 = vsub.f32 %v15376_v52, %v6086_v18 }
 0xa71   : > { %v15541_v35 = vpop.f32.mrf.mxu3  ;;  %v15557_v6 = vpop.eup %10524 }
 0xa72   : > { %v15544_v34 = vpop.f32.mrf.mxu0 }
 0xa73   : > { %17148 = vst [vmem:[#allocation101_spill] sm:$0xff] %v15544_v34  ;;  %v5891_v52 = vpop.f32.mrf.mxu1 }
 0xa74   : > { %v5892_v34 = vadd.f32 %v5891_v52, %v15322_v15 }
 0xa75   : > { %7684 = vmatmul.bf16.vlgmr.msrb.gmra.mxu0 %v15361_v8 }
 0xa76   : > { %v5941_v37 = vadd.f32 %v15530_v46, %v5892_v34 }
 0xa78   : > { %v15549_v47 = vpop.f32.mrf.mxu2 }
 0xa79   : > { %v5974_v11 = vpop.f32.mrf.mxu3  ;;  %6389 = vmax.xlane.f32.xlu0 %v15549_v47 }
 0xa7a   : > { %v15553_v29 = vadd.f32 %v5974_v11, %v15370_v40  ;;  %v15555_v25 = vpop.f32.mrf.mxu0  ;;  %v6088_v40 = vpop.xlane.xlu0 %6087 }
 0xa7b   : > { %17149 = vst [vmem:[#allocation29_spill] sm:$0xff] %v15555_v25  ;;  %v6117_v61 = vsub.f32 %v15381_v56, %v6088_v40  ;;  %v6133_v56 = vmul.f32 1.442695, %v6116_v36 }
 0xa7d   : > { %v6135_v26 = vmul.f32 1.442695, %v6117_v61 }
 0xa7f   : > { %10526 = vpow2.f32 %v6135_v26 }
 0xa80   : > { %v15559_v32 = vpop.f32.mrf.mxu2  ;;  %10528 = vpow2.f32 %v6133_v56  ;;  %v5893_v56 = vpop.f32.mrf.mxu1 }
 0xa81   : > { %v15561_v43 = vpop.f32.mrf.mxu3  ;;  %6163 = vadd.xlane.f32.xlu0 %v15557_v6  ;;  %6391 = vmax.xlane.f32.xlu1 %v15559_v32 }
 0xa82   : > { %v15565_v1 = vpop.f32.mrf.mxu0 }
 0xa83   : > { %17150 = vst [vmem:[#allocation75_spill] sm:$0xff] %v15565_v1 }
 0xa85   : > { %7689 = vmatmul.bf16.gmra.mxu0 %v15385_v27  ;;  %v15585_v11 = vpop.eup %10526 }
 0xa86   : > { %17153 = vst [vmem:[#allocation65_spill] sm:$0xff] %v15585_v11  ;;  %v15593_v18 = vpop.eup %10528 }
 0xa88   : > { %v15568_v16 = vpop.f32.mrf.mxu2 }
 0xa89   : > { %v15570_v48 = vpop.f32.mrf.mxu3  ;;  %6091 = vmax.xlane.f32.xlu1 %v15396_v5  ;;  %6099 = vmax.xlane.f32.xlu0 %v15437_v63 }
 0xa8a   : > { %v15575_v45 = vpop.f32.mrf.mxu0 }
 0xa8b   : > { %17151 = vst [vmem:[#allocation58_spill] sm:$0xff] %v15575_v45 }
 0xa90   : > { %v15577_v3 = vpop.f32.mrf.mxu2 }
 0xa91   : > { %v5981_v0 = vpop.f32.mrf.mxu3  ;;  %6393 = vmax.xlane.f32.xlu1 %v15568_v16  ;;  %6395 = vmax.xlane.f32.xlu2 %v15577_v3 }
 0xa92   : > { %v15582_v33 = vpop.f32.mrf.mxu0 }
 0xa93   : > { %17152 = vst [vmem:[#allocation60_spill] sm:$0xff] %v15582_v33 }
 0xa95   : > { %7694 = vmatmul.bf16.gmra.mxu0 %v15400_v39 }
 0xa98   : > { %v15587_v40 = vpop.f32.mrf.mxu2 }
 0xa99   : > { %v5984_v61 = vpop.f32.mrf.mxu3  ;;  %6095 = vmax.xlane.f32.xlu1 %v15410_v60  ;;  %6167 = vadd.xlane.f32.xlu2 %v15585_v11  ;;  %v5894_v11 = vadd.f32 %v5893_v56, %v15341_v41 }
 0xa9a   : > { %v15591_v45 = vpop.f32.mrf.mxu0 }
 0xa9b   : > { %17154 = vst [vmem:[#allocation43_spill] sm:$0xff] %v15591_v45  ;;  %v5943_v63 = vadd.f32 %v15539_v17, %v5894_v11  ;;  %v17159_v11 = vld [vmem:[#allocation38_spill] sm:$0xff] }
 0xaa0   : > { %v15595_v26 = vpop.f32.mrf.mxu2 }
 0xaa1   : > { %v5986_v33 = vpop.f32.mrf.mxu3  ;;  %6165 = vadd.xlane.f32.xlu1 %v15593_v18  ;;  %6397 = vmax.xlane.f32.xlu2 %v15587_v40 }
 0xaa2   : > { %6399 = vmax.xlane.f32.xlu0 %v15595_v26  ;;  %v15600_v36 = vpop.f32.mrf.mxu0 }
 0xaa3   : > { %17155 = vst [vmem:[#allocation76_spill] sm:$0xff] %v15600_v36  ;;  %v5887_v36 = vadd.f32 %v5886_v58, %v15274_v9  ;;  %v5882_v9 = vadd.f32 %v15547_v53, %v17158_v38  ;;  %v9379_v58 = vld [vmem:[#allocation13 + $0xe8] sm:$0xf]  ;;  %v17163_v38 = vld [vmem:[#allocation83_spill] sm:$0xff] }
 0xaa5   : > { %7699 = vmatmul.bf16.gmra.mxu0 %v15414_v44  ;;  %v5936_v46 = vadd.f32 %v15496_v7, %v5887_v36  ;;  %v17160_v7 = vld [vmem:[#allocation100_spill] sm:$0xff] }
 0xaa8   : > { %v15603_v1 = vpop.f32.mrf.mxu2 }
 0xaa9   : > { %v5989_v45 = vpop.f32.mrf.mxu3  ;;  %6101 = vmax.xlane.f32.xlu1 %v15460_v55  ;;  %v17157_v55 = vld [vmem:[#allocation33_spill] sm:$0xff] }
 0xaaa   : > { %6401 = vmax.xlane.f32.xlu0 %v15603_v1  ;;  %v15607_v25 = vpop.f32.mrf.mxu0  ;;  %v5884_v44 = vadd.f32 %v5883_v14, %v17157_v55  ;;  %v5990_v15 = vadd.f32 %v5989_v45, %v5941_v37  ;;  %v5879_v55 = vadd.f32 %v15537_v24, %v17159_v11  ;;  %v5985_v37 = vadd.f32 %v5984_v61, %v5936_v46  ;;  %v9994_v61 = vld [vmem:[#allocation13 + $0xd4] sm:$0xf0]  ;;  %v17164_v46 = vld [vmem:[#allocation89_spill] sm:$0xff] }
 0xaab   : > { %17156 = vst [vmem:[#allocation82_spill] sm:$0xff] %v15607_v25  ;;  %v5938_v25 = vadd.f32 %v15516_v59, %v5889_v51 }
 0xaac   : > { %v5933_v59 = vadd.f32 %v15481_v10, %v5884_v44  ;;  %v9363_v10 = vld [vmem:[#allocation13 + $0xc8] sm:$0xf] }
 0xaad   : > { %v5987_v34 = vadd.f32 %v5986_v33, %v5938_v25  ;;  %v17161_v25 = vld [vmem:[#allocation26_spill] sm:$0xff]  ;;  %v5928_v33 = vadd.f32 %v15446_v20, %v5879_v55  ;;  %v9364_v56 = vor.u32 %v9994_v61, %v9363_v10  ;;  %v17167_v55 = vld [vmem:[#allocation25_spill] sm:$0xff] }
 0xaae   : > { %v5982_v51 = vadd.f32 %v5981_v0, %v5933_v59  ;;  %v5874_v45 = vadd.f32 %v17161_v25, %v17160_v7  ;;  %v9982_v7 = vld [vmem:[#allocation13 + $0x74] sm:$0xf0]  ;;  %v17168_v25 = vld [vmem:[#allocation45_spill] sm:$0xff] }
 0xaaf   : > { %v6338_v53 = vpack.c.bf16 %v5987_v34, %v5985_v37  ;;  %v5977_v0 = vadd.f32 %v15561_v43, %v5928_v33  ;;  %v17165_v43 = vld [vmem:[#allocation73_spill] sm:$0xff] }
 0xab0   : > { %v15615_v2 = vpop.f32.mrf.mxu2  ;;  %v5923_v34 = vadd.f32 %v17164_v46, %v5874_v45  ;;  %v17169_v45 = vld [vmem:[#allocation97_spill] sm:$0xff] }
 0xab1   : > { %v5991_v31 = vpop.f32.mrf.mxu3  ;;  %6403 = vmax.xlane.f32.xlu1 %v15615_v2  ;;  %v5859_v33 = vadd.f32 %v17169_v45, %v17168_v25 }
 0xab2   : > { %v5992_v52 = vadd.f32 %v5991_v31, %v5943_v63  ;;  %v15620_v41 = vpop.f32.mrf.mxu0  ;;  %v9380_v63 = vor.u32 %v9998_v30, %v9379_v58  ;;  %v5931_v31 = vadd.f32 %v15463_v19, %v5882_v9  ;;  %v9347_v19 = vld [vmem:[#allocation13 + $0xa8] sm:$0xf]  ;;  %v17166_v30 = vld [vmem:[#allocation95_spill] sm:$0xff] }
 0xab3   : > { %v5864_v11 = vadd.f32 %v17166_v30, %v17165_v43 }
 0xab4   : > { %v6339_v17 = vpack.c.bf16 %v5992_v52, %v5990_v15  ;;  %7872 = vmatpush.bf16.msra.mxu0 %v9380_v63  ;;  %v5980_v24 = vadd.f32 %v15570_v48, %v5931_v31  ;;  %v9990_v15 = vld [vmem:[#allocation13 + $0xb4] sm:$0xf0]  ;;  %v5972_v48 = vadd.f32 %v15541_v35, %v5923_v34  ;;  %v9331_v63 = vld [vmem:[#allocation13 + $0x88] sm:$0xf] }
 0xab5   : > { %7704 = vmatmul.bf16.gmra.mxu0 %v15441_v12  ;;  %v17162_v52 = vld [vmem:[#allocation31_spill] sm:$0xff]  ;;  %v9348_v20 = vor.u32 %v9990_v15, %v9347_v19 }
 0xab6   : > { %6541 = vmatpush.bf16.msra.mxu3 %v6339_v17  ;;  %v6337_v36 = vpack.c.bf16 %v5982_v51, %v5980_v24  ;;  %v5869_v9 = vadd.f32 %v17163_v38, %v17162_v52  ;;  %v6336_v17 = vpack.c.bf16 %v5977_v0, %v15553_v29  ;;  %v9986_v31 = vld [vmem:[#allocation13 + $0x94] sm:$0xf0]  ;;  %v6335_v35 = vpack.c.bf16 %v5972_v48, %v15533_v4  ;;  %v17170_v24 = vld [vmem:[#allocation24_spill] sm:$0xff]  ;;  %v17171_v4 = vld [vmem:[#allocation66_spill] sm:$0xff] }
 0xab7   : > { %v9332_v29 = vor.u32 %v9986_v31, %v9331_v63  ;;  %v5913_v10 = vadd.f32 %v17170_v24, %v5864_v11  ;;  %v9978_v15 = vld [vmem:[#allocation13 + $0x54] sm:$0xf0]  ;;  %v9267_v48 = vld [vmem:[#allocation13 + $0x8] sm:$0xf]  ;;  %v6094_v63 = vpop.xlane.xlu2 %6093 }
 0xab8   : > { %v15630_v14 = vpop.f32.mrf.mxu2  ;;  %7873 = vmatpush.bf16.msra.mxu0 %v9364_v56  ;;  %v5918_v59 = vadd.f32 %v17167_v55, %v5869_v9  ;;  %v9299_v56 = vld [vmem:[#allocation13 + $0x48] sm:$0xf]  ;;  %v9974_v34 = vld [vmem:[#allocation13 + $0x34] sm:$0xf0] }
 0xab9   : > { %6405 = vmax.xlane.f32.xlu2 %v15630_v14  ;;  %v5962_v19 = vadd.f32 %v15494_v28, %v5913_v10  ;;  %v9300_v46 = vor.u32 %v9978_v15, %v9299_v56 }
 0xaba   : > { %6542 = vmatpush.bf16.msra.mxu3 %v6338_v53  ;;  %v15637_v44 = vpop.f32.mrf.mxu0  ;;  %v5967_v51 = vadd.f32 %v15518_v49, %v5918_v59  ;;  %v9315_v53 = vld [vmem:[#allocation13 + $0x68] sm:$0xf] }
 0xabb   : > { %v9316_v61 = vor.u32 %v9982_v7, %v9315_v53  ;;  %v6333_v38 = vpack.c.bf16 %v5962_v19, %v15484_v13  ;;  %v17172_v7 = vld [vmem:[#allocation48_spill] sm:$0xff] }
 0xabc   : > { %7874 = vmatpush.bf16.msra.mxu0 %v9348_v20  ;;  %v6334_v0 = vpack.c.bf16 %v5967_v51, %v15512_v62  ;;  %v9283_v62 = vld [vmem:[#allocation13 + $0x28] sm:$0xf] }
 0xabd   : > { %v9284_v20 = vor.u32 %v9974_v34, %v9283_v62 }
 0xabe   : > { %6543 = vmatpush.bf16.msra.mxu3 %v6337_v36  ;;  %v5908_v36 = vadd.f32 %v17171_v4, %v5859_v33 }
 0xabf   : > { %v15687_v45 = vpop.xlane.xlu2 %6097 }
 0xac0   : > { %v15645_v58 = vpop.f32.mrf.mxu2  ;;  %7875 = vmatpush.bf16.msra.mxu0 %v9332_v29  ;;  %v5957_v52 = vadd.f32 %v15466_v23, %v5908_v36 }
 0xac1   : > { %6407 = vmax.xlane.f32.xlu0 %v15645_v58 }
 0xac2   : > { %6544 = vmatpush.bf16.msra.mxu3 %v6336_v17  ;;  %v15651_v37 = vpop.f32.mrf.mxu0  ;;  %v6332_v28 = vpack.c.bf16 %v5957_v52, %v15458_v22  ;;  %v9970_v17 = vld [vmem:[#allocation13 + $0x14] sm:$0xf0]  ;;  %v6090_v22 = vpop.xlane.xlu1 %6089 }
 0xac3   : > { %v9268_v43 = vor.u32 %v9970_v17, %v9267_v48  ;;  %v6118_v25 = vsub.f32 %v17172_v7, %v6090_v22  ;;  %v17173_v48 = vld [vmem:[#allocation57_spill] sm:$0xff] }
 0xac4   : > { %7876 = vmatpush.bf16.msra.mxu0 %v9316_v61  ;;  %v6120_v17 = vsub.f32 %v17173_v48, %v6094_v63 }
 0xac5   : > { %7709 = vmatmul.bf16.gmra.mxu0 %v15472_v57  ;;  %v6137_v33 = vmul.f32 1.442695, %v6118_v25 }
 0xac6   : > { %6545 = vmatpush.bf16.msra.mxu3 %v6335_v35 }
 0xac8   : > { %v15661_v49 = vpop.f32.mrf.mxu2  ;;  %7877 = vmatpush.bf16.msra.mxu0 %v9300_v46 }
 0xac9   : > { %6409 = vmax.xlane.f32.xlu1 %v15661_v49 }
 0xaca   : > { %6546 = vmatpush.bf16.msra.mxu3 %v6334_v0  ;;  %v15667_v9 = vpop.f32.mrf.mxu0 }
 0xacc   : > { %7878 = vmatpush.bf16.msra.mxu0 %v9284_v20 }
 0xace   : > { %6547 = vmatpush.bf16.msra.mxu3 %v6333_v38 }
 0xad0   : > { %7879 = vmatpush.bf16.msra.mxu0 %v9268_v43  ;;  %v15693_v61 = vpop.f32.mrf.mxu2  ;;  %v6141_v43 = vmul.f32 1.442695, %v6120_v17 }
 0xad2   : > { %6548 = vmatpush.bf16.msra.mxu3 %v6332_v28  ;;  %v15671_v23 = vpop.f32.mrf.mxu0 }
 0xad5   : > { %7714 = vmatmul.bf16.gmra.mxu0 %v15505_v50 }
 0xada   : > { %v15673_v13 = vpop.f32.mrf.mxu0 }
 0xae2   : > { %v15676_v30 = vpop.f32.mrf.mxu0 }
 0xae5   : > { %7719 = vmatmul.bf16.gmra.mxu0 %v15524_v21 }
 0xaea   : > { %v15679_v31 = vpop.f32.mrf.mxu0 }
 0xaec   : > { %v6390_v11 = vpop.xlane.xlu0 %6389 }
 0xaed   : > { %v6421_v55 = vsub.f32 %v15549_v47, %v6390_v11 }
 0xaef   : > { %v6437_v59 = vmul.f32 1.442695, %v6421_v55 }
 0xaf1   : > { %10530 = vpow2.f32 %v6437_v59 }
 0xaf2   : > { %v15689_v24 = vpop.f32.mrf.mxu0 }
 0xaf4   : > { %v6392_v51 = vpop.xlane.xlu1 %6391 }
 0xaf5   : > { %v6422_v35 = vsub.f32 %v15559_v32, %v6392_v51  ;;  %7880 = vmatmul.bf16.vlgmr.msra.gmra.mxu0 %v15361_v8  ;;  %v6164_v32 = vpop.xlane.xlu0 %6163 }
 0xaf7   : > { %v15683_v29 = vpop.eup %10530  ;;  %v6439_v53 = vmul.f32 1.442695, %v6422_v35  ;;  %v15725_v35 = vpop.f32.mrf.mxu2 }
 0xaf8   : > { %6469 = vadd.xlane.f32.xlu2 %v15683_v29 }
 0xaf9   : > { %10532 = vpow2.f32 %v6439_v53 }
 0xafa   : > { %10534 = vpow2.f32 %v6137_v33  ;;  %v15702_v38 = vpop.f32.mrf.mxu0 }
 0xafc   : > { %v6092_v47 = vpop.xlane.xlu1 %6091 }
 0xafd   : > { %v6119_v46 = vsub.f32 %v15396_v5, %v6092_v47  ;;  %v15708_v34 = vpop.xlane.xlu0 %6099 }
 0xaff   : > { %v15691_v10 = vpop.eup %10532 }
 0xb00   : > { %6411 = vmax.xlane.f32.xlu2 %v15693_v61  ;;  %6471 = vadd.xlane.f32.xlu0 %v15691_v10  ;;  %v15700_v56 = vpop.eup %10534 }
 0xb02   : > { %v15718_v5 = vpop.f32.mrf.mxu0 }
 0xb03   : > { %17174 = vst [vmem:[#allocation21_spill] sm:$0xff] %v15718_v5 }
 0xb04   : > { %v6394_v19 = vpop.xlane.xlu1 %6393  ;;  %v6396_v0 = vpop.xlane.xlu2 %6395 }
 0xb05   : > { %v6423_v4 = vsub.f32 %v15568_v16, %v6394_v19  ;;  %v6424_v36 = vsub.f32 %v15577_v3, %v6396_v0  ;;  %7885 = vmatmul.bf16.gmra.mxu0 %v15385_v27  ;;  %v6139_v16 = vmul.f32 1.442695, %v6119_v46 }
 0xb07   : > { %v6441_v15 = vmul.f32 1.442695, %v6423_v4  ;;  %v6443_v52 = vmul.f32 1.442695, %v6424_v36 }
 0xb08   : > { %6169 = vadd.xlane.f32.xlu0 %v15700_v56 }
 0xb09   : > { %10536 = vpow2.f32 %v6441_v15 }
 0xb0a   : > { %10538 = vpow2.f32 %v6443_v52  ;;  %v15732_v33 = vpop.f32.mrf.mxu0 }
 0xb0b   : > { %10540 = vpow2.f32 %v6139_v16  ;;  %17175 = vst [vmem:[#allocation28_spill] sm:$0xff] %v15732_v33  ;;  %v17176_v16 = vld [vmem:[#allocation32_spill] sm:$0xff] }
 0xb0c   : > { %v6096_v28 = vpop.xlane.xlu1 %6095  ;;  %v15706_v62 = vpop.xlane.xlu2 %6167  ;;  %10542 = vrcp.f32 %v6164_v32 }
 0xb0d   : > { %v6121_v47 = vsub.f32 %v15410_v60, %v6096_v28 }
 0xb0f   : > { %v15710_v3 = vpop.eup %10536  ;;  %v6143_v0 = vmul.f32 1.442695, %v6121_v47  ;;  %v17181_v47 = vld [vmem:[#allocation79_spill] sm:$0xff] }
 0xb10   : > { %v15712_v20 = vpop.eup %10538  ;;  %6473 = vadd.xlane.f32.xlu1 %v15710_v3  ;;  %6105 = vmax.xlane.f32.xlu0 %v15486_v54 }
 0xb11   : > { %6475 = vadd.xlane.f32.xlu2 %v15712_v20  ;;  %v15723_v51 = vpop.eup %10540 }
 0xb12   : > { %v10543_v25 = vpop.eup %10542  ;;  %v15749_v48 = vpop.f32.mrf.mxu0 }
 0xb13   : > { %17177 = vst [vmem:[#allocation74_spill] sm:$0xff] %v15749_v48  ;;  %v9595_v48 = vld [vmem:[#allocation13 + $0x2a0] sm:$0xf] }
 0xb14   : > { %v6166_v22 = vpop.xlane.xlu1 %6165  ;;  %v6398_v11 = vpop.xlane.xlu2 %6397 }
 0xb15   : > { %10544 = vrcp.f32 %v6166_v22  ;;  %v6425_v55 = vsub.f32 %v15587_v40, %v6398_v11  ;;  %v6400_v59 = vpop.xlane.xlu0 %6399  ;;  %7890 = vmatmul.bf16.gmra.mxu0 %v15400_v39  ;;  %v17178_v11 = vld [vmem:[#allocation102_spill] sm:$0xff] }
 0xb16   : > { %v6426_v63 = vsub.f32 %v15595_v26, %v6400_v59  ;;  %10546 = vpow2.f32 %v6141_v43  ;;  %v6211_v26 = vmul.f32 %v10543_v25, %v15557_v6 }
 0xb17   : > { %v6445_v53 = vmul.f32 1.442695, %v6425_v55 }
 0xb18   : > { %v6447_v7 = vmul.f32 1.442695, %v6426_v63  ;;  %6171 = vadd.xlane.f32.xlu1 %v15723_v51  ;;  %6413 = vmax.xlane.f32.xlu0 %v15725_v35 }
 0xb19   : > { %10548 = vpow2.f32 %v6445_v53  ;;  %6103 = vmax.xlane.f32.xlu2 %v15468_v42 }
 0xb1a   : > { %10550 = vpow2.f32 %v6447_v7  ;;  %v15764_v25 = vpop.f32.mrf.mxu0 }
 0xb1b   : > { %v10545_v40 = vpop.eup %10544  ;;  %10552 = vpow2.f32 %v6143_v0  ;;  %17180 = vst [vmem:[#allocation36_spill] sm:$0xff] %v15764_v25  ;;  %v9381_v0 = vld [vmem:[#allocation13 + $0xf8] sm:$0xf0] }
 0xb1c   : > { %v6212_v32 = vmul.f32 %v10545_v40, %v15593_v18  ;;  %v6102_v19 = vpop.xlane.xlu1 %6101  ;;  %v15735_v4 = vpop.eup %10546 }
 0xb1d   : > { %v6402_v52 = vpop.xlane.xlu0 %6401  ;;  %v15745_v18 = vpop.f32.mrf.mxu2 }
 0xb1e   : > { %v6227_v36 = vpack.c.bf16 %v6212_v32, %v6211_v26  ;;  %v6427_v6 = vsub.f32 %v15603_v1, %v6402_v52  ;;  %v17179_v1 = vld [vmem:[#allocation55_spill] sm:$0xff]  ;;  %v9996_v32 = vld [vmem:[#allocation13 + $0xec] sm:$0xf] }
 0xb1f   : > { %v15737_v15 = vpop.eup %10548  ;;  %v6122_v55 = vsub.f32 %v17179_v1, %v15687_v45  ;;  %v9384_v52 = vor.u32 %v9996_v32, %v9381_v0 }
 0xb20   : > { %v15739_v60 = vpop.eup %10550  ;;  %6243 = vmatmul.bf16.vlgmr.msrb.gmra.mxu1 %v6227_v36  ;;  %6477 = vadd.xlane.f32.xlu0 %v15737_v15  ;;  %v6449_v17 = vmul.f32 1.442695, %v6427_v6 }
 0xb21   : > { %6479 = vadd.xlane.f32.xlu1 %v15739_v60  ;;  %6173 = vadd.xlane.f32.xlu2 %v15735_v4  ;;  %v15751_v43 = vpop.eup %10552  ;;  %v6145_v59 = vmul.f32 1.442695, %v6122_v55  ;;  %v9992_v55 = vld [vmem:[#allocation13 + $0xcc] sm:$0xf] }
 0xb22   : > { %8068 = vmatpush.bf16.msrb.mxu0 %v9384_v52  ;;  %v15782_v1 = vpop.f32.mrf.mxu0 }
 0xb23   : > { %17184 = vst [vmem:[#allocation51_spill] sm:$0xff] %v15782_v1 }
 0xb24   : > { %v6404_v46 = vpop.xlane.xlu1 %6403 }
 0xb25   : > { %v6428_v28 = vsub.f32 %v15615_v2, %v6404_v46  ;;  %7895 = vmatmul.bf16.gmra.mxu0 %v17176_v16  ;;  %v15758_v2 = vpop.f32.mrf.mxu2 }
 0xb27   : > { %v6451_v22 = vmul.f32 1.442695, %v6428_v28 }
 0xb28   : > { %6175 = vadd.xlane.f32.xlu0 %v15751_v43 }
 0xb29   : > { %10554 = vpow2.f32 %v6451_v22  ;;  %6415 = vmax.xlane.f32.xlu1 %v15745_v18  ;;  %6109 = vmax.xlane.f32.xlu2 %v17178_v11 }
 0xb2a   : > { %10556 = vpow2.f32 %v6449_v17  ;;  %v17182_v17 = vld [vmem:[#allocation59_spill] sm:$0xff] }
 0xb2b   : > { %10558 = vpow2.f32 %v6145_v59  ;;  %v6124_v22 = vsub.f32 %v17182_v17, %v6102_v19  ;;  %v9365_v59 = vld [vmem:[#allocation13 + $0xd8] sm:$0xf0]  ;;  %v17185_v17 = vld [vmem:[#allocation77_spill] sm:$0xff] }
 0xb2c   : > { %v6406_v53 = vpop.xlane.xlu2 %6405 }
 0xb2d   : > { %v6429_v45 = vsub.f32 %v15630_v14, %v6406_v53  ;;  %v15772_v6 = vpop.f32.mrf.mxu2  ;;  %v17183_v14 = vld [vmem:[#allocation30_spill] sm:$0xff]  ;;  %v9988_v53 = vld [vmem:[#allocation13 + $0xac] sm:$0xf] }
 0xb2f   : > { %v15760_v63 = vpop.eup %10554  ;;  %v6453_v36 = vmul.f32 1.442695, %v6429_v45  ;;  %v9368_v45 = vor.u32 %v9992_v55, %v9365_v59  ;;  %v9980_v55 = vld [vmem:[#allocation13 + $0x6c] sm:$0xf]  ;;  %v9317_v59 = vld [vmem:[#allocation13 + $0x78] sm:$0xf0] }
 0xb30   : > { %v15762_v7 = vpop.eup %10556  ;;  %6483 = vadd.xlane.f32.xlu0 %v15760_v63 }
 0xb31   : > { %6107 = vmax.xlane.f32.xlu1 %v17181_v47  ;;  %6481 = vadd.xlane.f32.xlu2 %v15762_v7  ;;  %v15774_v28 = vpop.eup %10558 }
 0xb32   : > { %8069 = vmatpush.bf16.msrb.mxu0 %v9368_v45  ;;  %v9320_v45 = vor.u32 %v9980_v55, %v9317_v59  ;;  %v9968_v59 = vld [vmem:[#allocation13 + $0xc] sm:$0xf] }
 0xb34   : > { %v6408_v40 = vpop.xlane.xlu0 %6407 }
 0xb35   : > { %v6430_v26 = vsub.f32 %v15645_v58, %v6408_v40  ;;  %7900 = vmatmul.bf16.gmra.mxu0 %v15441_v12  ;;  %v6123_v58 = vsub.f32 %v17183_v14, %v15708_v34  ;;  %v9349_v40 = vld [vmem:[#allocation13 + $0xb8] sm:$0xf0]  ;;  %v15792_v14 = vpop.f32.mrf.mxu0 }
 0xb36   : > { %v9352_v19 = vor.u32 %v9988_v53, %v9349_v40  ;;  %17186 = vst [vmem:[#allocation37_spill] sm:$0xff] %v15792_v14  ;;  %v9269_v14 = vld [vmem:[#allocation13 + $0x18] sm:$0xf0] }
 0xb37   : > { %v6455_v46 = vmul.f32 1.442695, %v6430_v26  ;;  %v6149_v26 = vmul.f32 1.442695, %v6124_v22  ;;  %v6147_v32 = vmul.f32 1.442695, %v6123_v58 }
 0xb38   : > { %6419 = vmax.xlane.f32.xlu0 %v15772_v6  ;;  %8070 = vmatpush.bf16.msrb.mxu0 %v9352_v19  ;;  %v9333_v22 = vld [vmem:[#allocation13 + $0x98] sm:$0xf0] }
 0xb39   : > { %10560 = vpow2.f32 %v6455_v46  ;;  %6177 = vadd.xlane.f32.xlu1 %v15774_v28  ;;  %6417 = vmax.xlane.f32.xlu2 %v15758_v2  ;;  %v9301_v19 = vld [vmem:[#allocation13 + $0x58] sm:$0xf0] }
 0xb3a   : > { %10562 = vpow2.f32 %v6453_v36  ;;  %v9984_v36 = vld [vmem:[#allocation13 + $0x8c] sm:$0xf] }
 0xb3b   : > { %10564 = vpow2.f32 %v6149_v26  ;;  %v9336_v58 = vor.u32 %v9984_v36, %v9333_v22  ;;  %v9972_v22 = vld [vmem:[#allocation13 + $0x2c] sm:$0xf] }
 0xb3c   : > { %v6410_v52 = vpop.xlane.xlu1 %6409  ;;  %10566 = vpow2.f32 %v6147_v32  ;;  %v9976_v32 = vld [vmem:[#allocation13 + $0x4c] sm:$0xf] }
 0xb3d   : > { %v6431_v34 = vsub.f32 %v15661_v49, %v6410_v52  ;;  %8071 = vmatpush.bf16.msrb.mxu0 %v9336_v58  ;;  %v17187_v49 = vld [vmem:[#allocation92_spill] sm:$0xff]  ;;  %v9304_v52 = vor.u32 %v9976_v32, %v9301_v19  ;;  %v15802_v36 = vpop.f32.mrf.mxu0  ;;  %v9285_v58 = vld [vmem:[#allocation13 + $0x38] sm:$0xf0] }
 0xb3e   : > { %17188 = vst [vmem:[#allocation71_spill] sm:$0xff] %v15802_v36  ;;  %v9288_v55 = vor.u32 %v9972_v22, %v9285_v58  ;;  %v9627_v19 = vld [vmem:[#allocation13 + $0x2e0] sm:$0xf]  ;;  %v10057_v58 = vld [vmem:[#allocation13 + $0x2cc] sm:$0xf0] }
 0xb3f   : > { %v15784_v0 = vpop.eup %10560  ;;  %v6457_v53 = vmul.f32 1.442695, %v6431_v34  ;;  %v9611_v22 = vld [vmem:[#allocation13 + $0x2c0] sm:$0xf] }
 0xb40   : > { %v15786_v46 = vpop.eup %10562  ;;  %6111 = vmax.xlane.f32.xlu0 %v17185_v17 }
 0xb41   : > { %6485 = vadd.xlane.f32.xlu1 %v15786_v46  ;;  %6487 = vadd.xlane.f32.xlu2 %v15784_v0  ;;  %v15795_v40 = vpop.eup %10564  ;;  %10568 = vpow2.f32 %v6457_v53  ;;  %v9272_v53 = vor.u32 %v9968_v59, %v9269_v14  ;;  %v10053_v14 = vld [vmem:[#allocation13 + $0x2ac] sm:$0xf0] }
 0xb42   : > { %v15797_v26 = vpop.eup %10566  ;;  %8072 = vmatpush.bf16.msrb.mxu0 %v9320_v45 }
 0xb45   : > { %7905 = vmatmul.bf16.gmra.mxu0 %v15472_v57  ;;  %v15808_v45 = vpop.f32.mrf.mxu0 }
 0xb46   : > { %8073 = vmatpush.bf16.msrb.mxu0 %v9304_v52  ;;  %17189 = vst [vmem:[#allocation103_spill] sm:$0xff] %v15808_v45  ;;  %v10061_v52 = vld [vmem:[#allocation13 + $0x2ec] sm:$0xf0] }
 0xb47   : > { %v15804_v34 = vpop.eup %10568  ;;  %v9628_v36 = vor.u32 %v10061_v52, %v9627_v19  ;;  %v9579_v52 = vld [vmem:[#allocation13 + $0x280] sm:$0xf] }
 0xb48   : > { %6181 = vadd.xlane.f32.xlu0 %v15795_v40 }
 0xb49   : > { %6179 = vadd.xlane.f32.xlu2 %v15797_v26  ;;  %6113 = vmax.xlane.f32.xlu1 %v17187_v49 }
 0xb4a   : > { %8074 = vmatpush.bf16.msrb.mxu0 %v9288_v55  ;;  %7578 = vmatpush.bf16.msrb.mxu2 %v9628_v36  ;;  %v9612_v55 = vor.u32 %v10057_v58, %v9611_v22  ;;  %v9563_v22 = vld [vmem:[#allocation13 + $0x260] sm:$0xf]  ;;  %v10045_v58 = vld [vmem:[#allocation13 + $0x26c] sm:$0xf0] }
 0xb4d   : > { %v15810_v32 = vpop.f32.mrf.mxu0 }
 0xb4e   : > { %8075 = vmatpush.bf16.msrb.mxu0 %v9272_v53  ;;  %17190 = vst [vmem:[#allocation99_spill] sm:$0xff] %v15810_v32  ;;  %7579 = vmatpush.bf16.msrb.mxu2 %v9612_v55  ;;  %v9596_v32 = vor.u32 %v10053_v14, %v9595_v48 }
 0xb51   : > { %6489 = vadd.xlane.f32.xlu1 %v15804_v34 }
 0xb52   : > { %7580 = vmatpush.bf16.msrb.mxu2 %v9596_v32 }
 0xb55   : > { %7910 = vmatmul.bf16.gmra.mxu0 %v15505_v50  ;;  %v15813_v25 = vpop.f32.mrf.mxu0 }
 0xb56   : > { %17191 = vst [vmem:[#allocation85_spill] sm:$0xff] %v15813_v25  ;;  %v10049_v25 = vld [vmem:[#allocation13 + $0x28c] sm:$0xf0] }
 0xb5d   : > { %v15817_v19 = vpop.f32.mrf.mxu0 }
 0xb65   : > { %7915 = vmatmul.bf16.gmra.mxu0 %v15524_v21  ;;  %v15825_v32 = vpop.f32.mrf.mxu0 }
 0xb6b   : > { %v6470_v1 = vpop.xlane.xlu2 %6469 }
 0xb6c   : > { %10570 = vrcp.f32 %v6470_v1  ;;  %v9580_v1 = vor.u32 %v10049_v25, %v9579_v52 }
 0xb6e   : > { %7581 = vmatpush.bf16.msrb.mxu2 %v9580_v1 }
 0xb72   : > { %v10571_v33 = vpop.eup %10570 }
 0xb73   : > { %v6412_v59 = vpop.xlane.xlu2 %6411  ;;  %v6472_v45 = vpop.xlane.xlu0 %6471 }
 0xb74   : > { %v6432_v53 = vsub.f32 %v15693_v61, %v6412_v59  ;;  %10572 = vrcp.f32 %v6472_v45  ;;  %v6517_v61 = vmul.f32 %v10571_v33, %v15683_v29  ;;  %v9531_v29 = vld [vmem:[#allocation13 + $0x220] sm:$0xf] }
 0xb75   : > { %8076 = vmatmul.bf16.vlgmr.msrb.gmra.mxu0 %v15361_v8  ;;  %v9564_v8 = vor.u32 %v10045_v58, %v9563_v22  ;;  %v10037_v22 = vld [vmem:[#allocation13 + $0x22c] sm:$0xf0] }
 0xb76   : > { %v6459_v36 = vmul.f32 1.442695, %v6432_v53  ;;  %v10041_v53 = vld [vmem:[#allocation13 + $0x24c] sm:$0xf0] }
 0xb77   : > { %7582 = vmatpush.bf16.msrb.mxu2 %v9564_v8 }
 0xb78   : > { %10574 = vpow2.f32 %v6459_v36 }
 0xb79   : > { %10576 = vrcp.f32 %v15706_v62  ;;  %v9547_v62 = vld [vmem:[#allocation13 + $0x240] sm:$0xf] }
 0xb7a   : > { %v10573_v5 = vpop.eup %10572  ;;  %v9548_v1 = vor.u32 %v10041_v53, %v9547_v62 }
 0xb7b   : > { %v6518_v48 = vmul.f32 %v10573_v5, %v15691_v10  ;;  %v6170_v45 = vpop.xlane.xlu0 %6169  ;;  %v17192_v5 = vld [vmem:[#allocation65_spill] sm:$0xff] }
 0xb7c   : > { %10578 = vrcp.f32 %v6170_v45  ;;  %7583 = vmatpush.bf16.msrb.mxu2 %v9548_v1  ;;  %v9532_v45 = vor.u32 %v10037_v22, %v9531_v29 }
 0xb7d   : > { %v6533_v55 = vpack.c.bf16 %v6518_v48, %v6517_v61 }
 0xb7e   : > { %v15822_v14 = vpop.eup %10574 }
 0xb7f   : > { %6549 = vmatmul.bf16.vlgmr.msra.gmra.mxu3 %v6533_v55  ;;  %6491 = vadd.xlane.f32.xlu2 %v15822_v14  ;;  %v10577_v25 = vpop.eup %10576  ;;  %v9515_v55 = vld [vmem:[#allocation13 + $0x200] sm:$0xf] }
 0xb80   : > { %v6213_v36 = vmul.f32 %v10577_v25, %v17192_v5  ;;  %7584 = vmatpush.bf16.msrb.mxu2 %v9532_v45  ;;  %v10033_v25 = vld [vmem:[#allocation13 + $0x20c] sm:$0xf0] }
 0xb82   : > { %v10579_v59 = vpop.eup %10578 }
 0xb83   : > { %v6474_v33 = vpop.xlane.xlu1 %6473  ;;  %v6106_v10 = vpop.xlane.xlu0 %6105  ;;  %v6214_v52 = vmul.f32 %v10579_v59, %v15700_v56  ;;  %v9516_v59 = vor.u32 %v10033_v25, %v9515_v55 }
 0xb84   : > { %v6476_v58 = vpop.xlane.xlu2 %6475  ;;  %10580 = vrcp.f32 %v6474_v33  ;;  %v6126_v61 = vsub.f32 %v15486_v54, %v6106_v10  ;;  %v15831_v56 = vpop.f32.mrf.mxu0 }
 0xb85   : > { %10582 = vrcp.f32 %v6476_v58  ;;  %8081 = vmatmul.bf16.gmra.mxu0 %v15385_v27  ;;  %v6228_v48 = vpack.c.bf16 %v6214_v52, %v6213_v36  ;;  %7585 = vmatpush.bf16.msrb.mxu2 %v9516_v59 }
 0xb86   : > { %v6153_v8 = vmul.f32 1.442695, %v6126_v61 }
 0xb87   : > { %6248 = vmatmul.bf16.gmra.mxu1 %v6228_v48 }
 0xb88   : > { %10584 = vpow2.f32 %v6153_v8 }
 0xb8a   : > { %v10581_v5 = vpop.eup %10580 }
 0xb8b   : > { %v10583_v62 = vpop.eup %10582  ;;  %v6172_v53 = vpop.xlane.xlu1 %6171  ;;  %v6519_v54 = vmul.f32 %v10581_v5, %v15710_v3 }
 0xb8c   : > { %v6414_v33 = vpop.xlane.xlu0 %6413  ;;  %v6104_v10 = vpop.xlane.xlu2 %6103  ;;  %v6520_v29 = vmul.f32 %v10583_v62, %v15712_v20 }
 0xb8d   : > { %v6433_v27 = vsub.f32 %v15725_v35, %v6414_v33  ;;  %v6125_v36 = vsub.f32 %v15468_v42, %v6104_v10  ;;  %v15840_v35 = vpop.f32.mrf.mxu0 }
 0xb8e   : > { %v15837_v52 = vpop.eup %10584  ;;  %v6534_v22 = vpack.c.bf16 %v6520_v29, %v6519_v54 }
 0xb8f   : > { %v6461_v1 = vmul.f32 1.442695, %v6433_v27  ;;  %v6151_v58 = vmul.f32 1.442695, %v6125_v36  ;;  %6185 = vadd.xlane.f32.xlu1 %v15837_v52 }
 0xb90   : > { %6554 = vmatmul.bf16.gmra.mxu3 %v6534_v22 }
 0xb91   : > { %10586 = vpow2.f32 %v6461_v1 }
 0xb92   : > { %10588 = vpow2.f32 %v6151_v58 }
 0xb93   : > { %10590 = vrcp.f32 %v6172_v53 }
 0xb94   : > { %v6478_v3 = vpop.xlane.xlu0 %6477  ;;  %v6480_v61 = vpop.xlane.xlu1 %6479 }
 0xb95   : > { %v6174_v48 = vpop.xlane.xlu2 %6173  ;;  %10592 = vrcp.f32 %v6478_v3  ;;  %8086 = vmatmul.bf16.gmra.mxu0 %v15400_v39  ;;  %v15855_v1 = vpop.f32.mrf.mxu0 }
 0xb96   : > { %10594 = vrcp.f32 %v6480_v61 }
 0xb97   : > { %v15843_v42 = vpop.eup %10586  ;;  %10596 = vrcp.f32 %v6174_v48 }
 0xb98   : > { %v15845_v20 = vpop.eup %10588  ;;  %6493 = vadd.xlane.f32.xlu2 %v15843_v42 }
 0xb99   : > { %6183 = vadd.xlane.f32.xlu0 %v15845_v20  ;;  %v10591_v45 = vpop.eup %10590 }
 0xb9a   : > { %v6215_v27 = vmul.f32 %v10591_v45, %v15723_v51 }
 0xb9b   : > { %v10593_v8 = vpop.eup %10592 }
 0xb9c   : > { %v10595_v55 = vpop.eup %10594  ;;  %v6176_v25 = vpop.xlane.xlu0 %6175  ;;  %v6521_v5 = vmul.f32 %v10593_v8, %v15737_v15 }
 0xb9d   : > { %v10597_v59 = vpop.eup %10596  ;;  %v6416_v62 = vpop.xlane.xlu1 %6415  ;;  %v6522_v39 = vmul.f32 %v10595_v55, %v15739_v60 }
 0xb9e   : > { %v6110_v53 = vpop.xlane.xlu2 %6109  ;;  %v6434_v33 = vsub.f32 %v15745_v18, %v6416_v62  ;;  %v6244_v10 = vpop.f32.mrf.mxu1  ;;  %v6216_v29 = vmul.f32 %v10597_v59, %v15735_v4 }
 0xb9f   : > { %v6128_v54 = vsub.f32 %v17178_v11, %v6110_v53  ;;  %v6535_v36 = vpack.c.bf16 %v6522_v39, %v6521_v5  ;;  %v15867_v8 = vpop.f32.mrf.mxu0 }
 0xba0   : > { %v6463_v22 = vmul.f32 1.442695, %v6434_v33  ;;  %v6229_v15 = vpack.c.bf16 %v6216_v29, %v6215_v27 }
 0xba1   : > { %v6157_v58 = vmul.f32 1.442695, %v6128_v54  ;;  %6559 = vmatmul.bf16.gmra.mxu3 %v6535_v36 }
 0xba2   : > { %10598 = vpow2.f32 %v6463_v22  ;;  %6253 = vmatmul.bf16.gmra.mxu1 %v6229_v15 }
 0xba3   : > { %10600 = vpow2.f32 %v6157_v58 }
 0xba4   : > { %v6484_v60 = vpop.xlane.xlu0 %6483 }
 0xba5   : > { %10602 = vrcp.f32 %v6484_v60  ;;  %v6108_v18 = vpop.xlane.xlu1 %6107  ;;  %8091 = vmatmul.bf16.gmra.mxu0 %v17176_v16 }
 0xba6   : > { %v6482_v3 = vpop.xlane.xlu2 %6481  ;;  %v6127_v11 = vsub.f32 %v17181_v47, %v6108_v18  ;;  %v6246_v51 = vpop.f32.mrf.mxu1 }
 0xba7   : > { %10604 = vrcp.f32 %v6482_v3  ;;  %v15859_v4 = vpack.c.bf16 %v6246_v51, %v6244_v10 }
 0xba8   : > { %v15861_v61 = vpop.eup %10598  ;;  %v6155_v48 = vmul.f32 1.442695, %v6127_v11 }
 0xba9   : > { %v15863_v45 = vpop.eup %10600  ;;  %6495 = vadd.xlane.f32.xlu0 %v15861_v61  ;;  %7586 = vmatmul.bf16.vlgmr.msrb.gmra.mxu2 %v15859_v4 }
 0xbaa   : > { %10606 = vpow2.f32 %v6155_v48  ;;  %6189 = vadd.xlane.f32.xlu2 %v15863_v45 }
 0xbab   : > { %v10603_v47 = vpop.eup %10602  ;;  %10608 = vrcp.f32 %v6176_v25 }
 0xbac   : > { %v6420_v16 = vpop.xlane.xlu0 %6419  ;;  %v6524_v5 = vmul.f32 %v10603_v47, %v15760_v63 }
 0xbad   : > { %v10605_v55 = vpop.eup %10604  ;;  %v6436_v59 = vsub.f32 %v15772_v6, %v6420_v16  ;;  %v6178_v62 = vpop.xlane.xlu1 %6177 }
 0xbae   : > { %v6418_v53 = vpop.xlane.xlu2 %6417  ;;  %v6523_v39 = vmul.f32 %v10605_v55, %v15762_v7  ;;  %10610 = vrcp.f32 %v6178_v62  ;;  %v15877_v6 = vpop.f32.mrf.mxu0 }
 0xbaf   : > { %v6435_v33 = vsub.f32 %v15758_v2, %v6418_v53  ;;  %v6467_v54 = vmul.f32 1.442695, %v6436_v59 }
 0xbb0   : > { %v6536_v10 = vpack.c.bf16 %v6524_v5, %v6523_v39  ;;  %v15874_v27 = vpop.eup %10606 }
 0xbb1   : > { %v6465_v29 = vmul.f32 1.442695, %v6435_v33  ;;  %10612 = vpow2.f32 %v6467_v54  ;;  %6187 = vadd.xlane.f32.xlu1 %v15874_v27  ;;  %v10609_v25 = vpop.eup %10608 }
 0xbb2   : > { %6564 = vmatmul.bf16.gmra.mxu3 %v6536_v10  ;;  %v6217_v2 = vmul.f32 %v10609_v25, %v15751_v43 }
 0xbb3   : > { %10614 = vpow2.f32 %v6465_v29 }
 0xbb4   : > { %v10611_v63 = vpop.eup %10610  ;;  %v6112_v36 = vpop.xlane.xlu0 %6111 }
 0xbb5   : > { %v6486_v22 = vpop.xlane.xlu1 %6485  ;;  %v6129_v58 = vsub.f32 %v17185_v17, %v6112_v36  ;;  %v6218_v15 = vmul.f32 %v10611_v63, %v15774_v28  ;;  %8096 = vmatmul.bf16.gmra.mxu0 %v15441_v12 }
 0xbb6   : > { %v6488_v7 = vpop.xlane.xlu2 %6487  ;;  %10616 = vrcp.f32 %v6486_v22  ;;  %v15890_v47 = vpop.f32.mrf.mxu0 }
 0xbb7   : > { %v15883_v60 = vpop.eup %10612  ;;  %10618 = vrcp.f32 %v6488_v7  ;;  %v6159_v18 = vmul.f32 1.442695, %v6129_v58  ;;  %v6230_v3 = vpack.c.bf16 %v6218_v15, %v6217_v2  ;;  %v9755_v58 = vld [vmem:[#allocation13 + $0x3e0] sm:$0xf] }
 0xbb9   : > { %v15885_v11 = vpop.eup %10614  ;;  %10620 = vpow2.f32 %v6159_v18  ;;  %6258 = vmatmul.bf16.gmra.mxu1 %v6230_v3  ;;  %6499 = vadd.xlane.f32.xlu1 %v15883_v60  ;;  %v9499_v18 = vld [vmem:[#allocation13 + $0x1e0] sm:$0xf]  ;;  %v10029_v3 = vld [vmem:[#allocation13 + $0x1ec] sm:$0xf0] }
 0xbba   : > { %6497 = vadd.xlane.f32.xlu0 %v15885_v11 }
 0xbbc   : > { %v10617_v17 = vpop.eup %10616  ;;  %v6182_v43 = vpop.xlane.xlu0 %6181 }
 0xbbd   : > { %v10619_v51 = vpop.eup %10618  ;;  %10622 = vrcp.f32 %v6182_v43  ;;  %v6114_v48 = vpop.xlane.xlu1 %6113  ;;  %v6525_v12 = vmul.f32 %v10617_v17, %v15786_v46 }
 0xbbe   : > { %v6180_v28 = vpop.xlane.xlu2 %6179  ;;  %v6130_v55 = vsub.f32 %v17187_v49, %v6114_v48  ;;  %v6526_v16 = vmul.f32 %v10619_v51, %v15784_v0  ;;  %v15902_v0 = vpop.f32.mrf.mxu0 }
 0xbbf   : > { %10624 = vrcp.f32 %v6180_v28  ;;  %v15894_v5 = vpop.eup %10620 }
 0xbc0   : > { %v6161_v59 = vmul.f32 1.442695, %v6130_v55  ;;  %v6537_v62 = vpack.c.bf16 %v6526_v16, %v6525_v12  ;;  %6191 = vadd.xlane.f32.xlu2 %v15894_v5  ;;  %v9723_v12 = vld [vmem:[#allocation13 + $0x3a0] sm:$0xf]  ;;  %v10085_v55 = vld [vmem:[#allocation13 + $0x3ac] sm:$0xf0] }
 0xbc2   : > { %10626 = vpow2.f32 %v6161_v59  ;;  %6569 = vmatmul.bf16.gmra.mxu3 %v6537_v62  ;;  %v9724_v59 = vor.u32 %v10085_v55, %v9723_v12 }
 0xbc3   : > { %v10623_v53 = vpop.eup %10622 }
 0xbc4   : > { %v6220_v33 = vmul.f32 %v10623_v53, %v15795_v40 }
 0xbc5   : > { %v10625_v39 = vpop.eup %10624  ;;  %8101 = vmatmul.bf16.gmra.mxu0 %v15472_v57  ;;  %v6490_v40 = vpop.xlane.xlu1 %6489 }
 0xbc6   : > { %v6219_v46 = vmul.f32 %v10625_v39, %v15797_v26  ;;  %v15905_v10 = vpop.f32.mrf.mxu0  ;;  %10628 = vrcp.f32 %v6490_v40  ;;  %v9707_v40 = vld [vmem:[#allocation13 + $0x380] sm:$0xf] }
 0xbc7   : > { %17193 = vst [vmem:[#allocation56_spill] sm:$0xff] %v15905_v10 }
 0xbc8   : > { %v6231_v54 = vpack.c.bf16 %v6220_v33, %v6219_v46  ;;  %v15900_v49 = vpop.eup %10626  ;;  %v9483_v46 = vld [vmem:[#allocation13 + $0x1c0] sm:$0xf] }
 0xbc9   : > { %6193 = vadd.xlane.f32.xlu0 %v15900_v49 }
 0xbca   : > { %6263 = vmatmul.bf16.gmra.mxu1 %v6231_v54  ;;  %v10025_v54 = vld [vmem:[#allocation13 + $0x1cc] sm:$0xf0] }
 0xbcc   : > { %v10629_v26 = vpop.eup %10628 }
 0xbcd   : > { %v6527_v36 = vmul.f32 %v10629_v26, %v15804_v34  ;;  %v9739_v34 = vld [vmem:[#allocation13 + $0x3c0] sm:$0xf]  ;;  %v10081_v26 = vld [vmem:[#allocation13 + $0x38c] sm:$0xf0] }
 0xbce   : > { %v15908_v29 = vpop.f32.mrf.mxu0 }
 0xbcf   : > { %17194 = vst [vmem:[#allocation47_spill] sm:$0xff] %v15908_v29  ;;  %v9763_v29 = vld [vmem:[#allocation13 + $0x3e8] sm:$0xf] }
 0xbd5   : > { %8106 = vmatmul.bf16.gmra.mxu0 %v15505_v50  ;;  %v10093_v50 = vld [vmem:[#allocation13 + $0x3ec] sm:$0xf0] }
 0xbd6   : > { %v15910_v25 = vpop.f32.mrf.mxu0  ;;  %v9756_v2 = vor.u32 %v10093_v50, %v9755_v58 }
 0xbd7   : > { %17195 = vst [vmem:[#allocation46_spill] sm:$0xff] %v15910_v25 }
 0xbd8   : > { %7627 = vmatpush.bf16.msrb.mxu3 %v9756_v2 }
 0xbe5   : > { %8111 = vmatmul.bf16.gmra.mxu0 %v15524_v21  ;;  %v9500_v21 = vor.u32 %v10029_v3, %v9499_v18  ;;  %v9467_v18 = vld [vmem:[#allocation13 + $0x1a0] sm:$0xf]  ;;  %v10021_v3 = vld [vmem:[#allocation13 + $0x1ac] sm:$0xf0] }
 0xbe7   : > { %7529 = vmatpush.bf16.msra.mxu1 %v9500_v21 }
 0xbf2   : > { %v6492_v57 = vpop.xlane.xlu2 %6491 }
 0xbf3   : > { %10630 = vrcp.f32 %v6492_v57  ;;  %v9484_v57 = vor.u32 %v10025_v54, %v9483_v46  ;;  %v10065_v54 = vld [vmem:[#allocation13 + $0x30c] sm:$0xf0] }
 0xbf5   : > { %7530 = vmatpush.bf16.msra.mxu1 %v9484_v57 }
 0xbf9   : > { %v10631_v63 = vpop.eup %10630 }
 0xbfa   : > { %v6528_v22 = vmul.f32 %v10631_v63, %v15822_v14  ;;  %v10089_v14 = vld [vmem:[#allocation13 + $0x3cc] sm:$0xf0] }
 0xbfb   : > { %v9740_v48 = vor.u32 %v10089_v14, %v9739_v34  ;;  %v10069_v34 = vld [vmem:[#allocation13 + $0x32c] sm:$0xf0] }
 0xbfc   : > { %v6538_v7 = vpack.c.bf16 %v6528_v22, %v6527_v36  ;;  %v9708_v36 = vor.u32 %v10081_v26, %v9707_v40  ;;  %v9691_v22 = vld [vmem:[#allocation13 + $0x360] sm:$0xf] }
 0xbfd   : > { %7628 = vmatpush.bf16.msrb.mxu3 %v9740_v48 }
 0xbfe   : > { %6574 = vmatmul.bf16.gmra.mxu3 %v6538_v7  ;;  %v10077_v7 = vld [vmem:[#allocation13 + $0x36c] sm:$0xf0] }
 0xbff   : > { %v9692_v58 = vor.u32 %v10077_v7, %v9691_v22 }
 0xc01   : > { %7629 = vmatpush.bf16.msrb.mxu3 %v9724_v59 }
 0xc02   : > { %v6186_v17 = vpop.xlane.xlu1 %6185  ;;  %v6550_v40 = vpop.f32.mrf.mxu3 }
 0xc03   : > { %10632 = vrcp.f32 %v6186_v17  ;;  %v9468_v17 = vor.u32 %v10021_v3, %v9467_v18  ;;  %v9403_v3 = vld [vmem:[#allocation13 + $0x120] sm:$0xf] }
 0xc04   : > { %v6249_v15 = vpop.f32.mrf.mxu1 }
 0xc05   : > { %7630 = vmatpush.bf16.msrb.mxu3 %v9708_v36  ;;  %7531 = vmatpush.bf16.msra.mxu1 %v9468_v17  ;;  %v9435_v36 = vld [vmem:[#allocation13 + $0x160] sm:$0xf] }
 0xc09   : > { %v10633_v16 = vpop.eup %10632  ;;  %7631 = vmatpush.bf16.msrb.mxu3 %v9692_v58 }
 0xc0a   : > { %v6222_v39 = vmul.f32 %v10633_v16, %v15837_v52  ;;  %v9675_v52 = vld [vmem:[#allocation13 + $0x340] sm:$0xf] }
 0xc0b   : > { %v6494_v63 = vpop.xlane.xlu2 %6493 }
 0xc0c   : > { %v6184_v43 = vpop.xlane.xlu0 %6183  ;;  %v6251_v51 = vpop.f32.mrf.mxu1 }
 0xc0d   : > { %10634 = vrcp.f32 %v6184_v43  ;;  %v15915_v28 = vpack.c.bf16 %v6251_v51, %v6249_v15  ;;  %v9659_v51 = vld [vmem:[#allocation13 + $0x320] sm:$0xf] }
 0xc0e   : > { %10636 = vrcp.f32 %v6494_v63  ;;  %v9660_v14 = vor.u32 %v10069_v34, %v9659_v51 }
 0xc0f   : > { %7591 = vmatmul.bf16.gmra.mxu2 %v15915_v28 }
 0xc13   : > { %v10635_v62 = vpop.eup %10634 }
 0xc14   : > { %v6221_v53 = vmul.f32 %v10635_v62, %v15845_v20  ;;  %v10073_v20 = vld [vmem:[#allocation13 + $0x34c] sm:$0xf0]  ;;  %v10637_v43 = vpop.eup %10636  ;;  %v9451_v62 = vld [vmem:[#allocation13 + $0x180] sm:$0xf] }
 0xc15   : > { %v9676_v15 = vor.u32 %v10073_v20, %v9675_v52  ;;  %v6529_v55 = vmul.f32 %v10637_v43, %v15843_v42  ;;  %v10013_v42 = vld [vmem:[#allocation13 + $0x16c] sm:$0xf0]  ;;  %v6552_v43 = vpop.f32.mrf.mxu3 }
 0xc16   : > { %v6232_v33 = vpack.c.bf16 %v6222_v39, %v6221_v53  ;;  %v10017_v53 = vld [vmem:[#allocation13 + $0x18c] sm:$0xf0]  ;;  %v9643_v39 = vld [vmem:[#allocation13 + $0x300] sm:$0xf] }
 0xc17   : > { %7632 = vmatpush.bf16.msrb.mxu3 %v9676_v15  ;;  %v9452_v46 = vor.u32 %v10017_v53, %v9451_v62  ;;  %v9644_v26 = vor.u32 %v10065_v54, %v9643_v39  ;;  %v10009_v15 = vld [vmem:[#allocation13 + $0x14c] sm:$0xf0] }
 0xc18   : > { %6268 = vmatmul.bf16.gmra.mxu1 %v6232_v33 }
 0xc19   : > { %7532 = vmatpush.bf16.msra.mxu1 %v9452_v46 }
 0xc1b   : > { %7633 = vmatpush.bf16.msrb.mxu3 %v9660_v14 }
 0xc1c   : > { %v6496_v50 = vpop.xlane.xlu0 %6495 }
 0xc1d   : > { %10638 = vrcp.f32 %v6496_v50  ;;  %v6190_v21 = vpop.xlane.xlu2 %6189  ;;  %v6555_v62 = vpop.f32.mrf.mxu3 }
 0xc1e   : > { %10640 = vrcp.f32 %v6190_v21  ;;  %v10005_v21 = vld [vmem:[#allocation13 + $0x12c] sm:$0xf0] }
 0xc1f   : > { %v6254_v2 = vpop.f32.mrf.mxu1  ;;  %7634 = vmatpush.bf16.msrb.mxu3 %v9644_v26  ;;  %v9404_v17 = vor.u32 %v10005_v21, %v9403_v3  ;;  %v17200_v21 = vld [vmem:[#allocation53_spill] sm:$0xff] }
 0xc23   : > { %v10639_v48 = vpop.eup %10638 }
 0xc24   : > { %v6188_v12 = vpop.xlane.xlu1 %6187  ;;  %v6530_v16 = vmul.f32 %v10639_v48, %v15861_v61  ;;  %v10641_v63 = vpop.eup %10640  ;;  %v9436_v61 = vor.u32 %v10013_v42, %v9435_v36  ;;  %v9387_v48 = vld [vmem:[#allocation13 + $0x100] sm:$0xf]  ;;  %v15934_v42 = vpack.c.bf16 %v6552_v43, %v6550_v40 }
 0xc25   : > { %10642 = vrcp.f32 %v6188_v12  ;;  %v6224_v50 = vmul.f32 %v10641_v63, %v15863_v45  ;;  %v10001_v12 = vld [vmem:[#allocation13 + $0x10c] sm:$0xf0]  ;;  %v6557_v26 = vpop.f32.mrf.mxu3 }
 0xc26   : > { %v6539_v59 = vpack.c.bf16 %v6530_v16, %v6529_v55  ;;  %7533 = vmatpush.bf16.msra.mxu1 %v9436_v61  ;;  %v9388_v16 = vor.u32 %v10001_v12, %v9387_v48  ;;  %v9757_v12 = vld [vmem:[#allocation13 + $0x3f0] sm:$0xf0] }
 0xc27   : > { %v6256_v33 = vpop.f32.mrf.mxu1 }
 0xc28   : > { %v15922_v57 = vpack.c.bf16 %v6256_v33, %v6254_v2  ;;  %6579 = vmatmul.bf16.gmra.mxu3 %v6539_v59  ;;  %v9419_v2 = vld [vmem:[#allocation13 + $0x140] sm:$0xf] }
 0xc29   : > { %v9420_v18 = vor.u32 %v10009_v15, %v9419_v2  ;;  %v17199_v2 = vld [vmem:[#allocation69_spill] sm:$0xff] }
 0xc2a   : > { %7596 = vmatmul.bf16.gmra.mxu2 %v15922_v57 }
 0xc2b   : > { %v10643_v22 = vpop.eup %10642  ;;  %7534 = vmatpush.bf16.msra.mxu1 %v9420_v18 }
 0xc2c   : > { %v6223_v58 = vmul.f32 %v10643_v22, %v15874_v27  ;;  %v6500_v52 = vpop.xlane.xlu1 %6499 }
 0xc2d   : > { %v6498_v7 = vpop.xlane.xlu0 %6497 }
 0xc2e   : > { %10644 = vrcp.f32 %v6498_v7  ;;  %v6233_v20 = vpack.c.bf16 %v6224_v50, %v6223_v58  ;;  %v6560_v7 = vpop.f32.mrf.mxu3  ;;  %v17196_v58 = vld [vmem:[#allocation91_spill] sm:$0xff]  ;;  %v17197_v50 = vld [vmem:[#allocation78_spill] sm:$0xff] }
 0xc2f   : > { %10646 = vrcp.f32 %v6500_v52  ;;  %7535 = vmatpush.bf16.msra.mxu1 %v9404_v17  ;;  %v15942_v52 = vpack.c.bf16 %v17197_v50, %v17196_v58  ;;  %v17201_v17 = vld [vmem:[#allocation70_spill] sm:$0xff] }
 0xc30   : > { %6273 = vmatmul.bf16.gmra.mxu1 %v6233_v20  ;;  %v17198_v20 = vld [vmem:[#allocation86_spill] sm:$0xff]  ;;  %v15958_v43 = vpack.c.bf16 %v17201_v17, %v17200_v21 }
 0xc31   : > { %v15950_v15 = vpack.c.bf16 %v17199_v2, %v17198_v20  ;;  %v9741_v58 = vld [vmem:[#allocation13 + $0x3d0] sm:$0xf0]  ;;  %v17205_v20 = vld [vmem:[#allocation87_spill] sm:$0xff] }
 0xc32   : > { %v9485_v21 = vld [vmem:[#allocation13 + $0x1d0] sm:$0xf0] }
 0xc33   : > { %v6192_v59 = vpop.xlane.xlu2 %6191  ;;  %7536 = vmatpush.bf16.msra.mxu1 %v9388_v16  ;;  %v9501_v16 = vld [vmem:[#allocation13 + $0x1f0] sm:$0xf0] }
 0xc34   : > { %v10645_v51 = vpop.eup %10644  ;;  %10648 = vrcp.f32 %v6192_v59 }
 0xc35   : > { %v10647_v34 = vpop.eup %10646  ;;  %v6531_v27 = vmul.f32 %v10645_v51, %v15885_v11 }
 0xc36   : > { %v6532_v45 = vmul.f32 %v10647_v34, %v15883_v60  ;;  %v6259_v14 = vpop.f32.mrf.mxu1 }
 0xc38   : > { %v6540_v55 = vpack.c.bf16 %v6532_v45, %v6531_v27  ;;  %v10059_v27 = vld [vmem:[#allocation13 + $0x2e4] sm:$0xf]  ;;  %v9629_v45 = vld [vmem:[#allocation13 + $0x2f0] sm:$0xf0] }
 0xc39   : > { %v9632_v48 = vor.u32 %v10059_v27, %v9629_v45  ;;  %v10083_v27 = vld [vmem:[#allocation13 + $0x3a4] sm:$0xf]  ;;  %v9725_v45 = vld [vmem:[#allocation13 + $0x3b0] sm:$0xf0] }
 0xc3a   : > { %6584 = vmatmul.bf16.gmra.mxu3 %v6540_v55  ;;  %v10649_v46 = vpop.eup %10648  ;;  %v10027_v55 = vld [vmem:[#allocation13 + $0x1e4] sm:$0xf] }
 0xc3b   : > { %v6225_v11 = vmul.f32 %v10649_v46, %v15894_v5  ;;  %v15944_v5 = vpack.c.bf16 %v6557_v26, %v6555_v62  ;;  %7774 = vmatpush.bf16.msra.mxu2 %v9632_v48  ;;  %v17203_v46 = vld [vmem:[#allocation52_spill] sm:$0xff] }
 0xc3c   : > { %v6194_v53 = vpop.xlane.xlu0 %6193  ;;  %v10055_v26 = vld [vmem:[#allocation13 + $0x2c4] sm:$0xf] }
 0xc3d   : > { %10650 = vrcp.f32 %v6194_v53  ;;  %v9504_v53 = vor.u32 %v10027_v55, %v9501_v16  ;;  %v9469_v55 = vld [vmem:[#allocation13 + $0x1b0] sm:$0xf0]  ;;  %v10051_v16 = vld [vmem:[#allocation13 + $0x2a4] sm:$0xf] }
 0xc3e   : > { %v6261_v39 = vpop.f32.mrf.mxu1 }
 0xc3f   : > { %v15929_v33 = vpack.c.bf16 %v6261_v39, %v6259_v14  ;;  %v10091_v14 = vld [vmem:[#allocation13 + $0x3e4] sm:$0xf]  ;;  %7725 = vmatpush.bf16.msrb.mxu1 %v9504_v53 }
 0xc40   : > { %v9760_v62 = vor.u32 %v10091_v14, %v9757_v12  ;;  %v17202_v39 = vld [vmem:[#allocation80_spill] sm:$0xff]  ;;  %v9728_v12 = vor.u32 %v10083_v27, %v9725_v45  ;;  %v9677_v27 = vld [vmem:[#allocation13 + $0x350] sm:$0xf0] }
 0xc41   : > { %7601 = vmatmul.bf16.gmra.mxu2 %v15929_v33  ;;  %v10019_v14 = vld [vmem:[#allocation13 + $0x1a4] sm:$0xf] }
 0xc42   : > { %7823 = vmatpush.bf16.msra.mxu3 %v9760_v62  ;;  %v9472_v53 = vor.u32 %v10019_v14, %v9469_v55  ;;  %v10047_v55 = vld [vmem:[#allocation13 + $0x284] sm:$0xf] }
 0xc43   : > { %v10651_v60 = vpop.eup %10650 }
 0xc44   : > { %v6226_v54 = vmul.f32 %v10651_v60, %v15900_v49  ;;  %v6562_v49 = vpop.f32.mrf.mxu3  ;;  %v15966_v60 = vpack.c.bf16 %v17203_v46, %v17202_v39  ;;  %v10079_v46 = vld [vmem:[#allocation13 + $0x384] sm:$0xf] }
 0xc45   : > { %v15952_v18 = vpack.c.bf16 %v6562_v49, %v6560_v7  ;;  %v10087_v7 = vld [vmem:[#allocation13 + $0x3c4] sm:$0xf] }
 0xc46   : > { %v6234_v36 = vpack.c.bf16 %v6226_v54, %v6225_v11  ;;  %v9744_v49 = vor.u32 %v10087_v7, %v9741_v58  ;;  %v10075_v7 = vld [vmem:[#allocation13 + $0x364] sm:$0xf]  ;;  %v9693_v58 = vld [vmem:[#allocation13 + $0x370] sm:$0xf0] }
 0xc47   : > { %v6264_v63 = vpop.f32.mrf.mxu1 }
 0xc48   : > { %6278 = vmatmul.bf16.gmra.mxu1 %v6234_v36  ;;  %7824 = vmatpush.bf16.msra.mxu3 %v9744_v49  ;;  %v17206_v49 = vld [vmem:[#allocation54_spill] sm:$0xff] }
 0xc4a   : > { %7635 = vmatmul.bf16.vlgmr.msrb.gmra.mxu3 %v15934_v42 }
 0xc4c   : > { %v6565_v40 = vpop.f32.mrf.mxu3  ;;  %7825 = vmatpush.bf16.msra.mxu3 %v9728_v12  ;;  %v9421_v12 = vld [vmem:[#allocation13 + $0x150] sm:$0xf0] }
 0xc4f   : > { %v6266_v61 = vpop.f32.mrf.mxu1 }
 0xc50   : > { %v15937_v22 = vpack.c.bf16 %v6266_v61, %v6264_v63  ;;  %v9613_v63 = vld [vmem:[#allocation13 + $0x2d0] sm:$0xf0] }
 0xc51   : > { %v9616_v36 = vor.u32 %v10055_v26, %v9613_v63  ;;  %v10015_v26 = vld [vmem:[#allocation13 + $0x184] sm:$0xf] }
 0xc52   : > { %7606 = vmatmul.bf16.gmra.mxu2 %v15937_v22 }
 0xc53   : > { %7775 = vmatpush.bf16.msra.mxu2 %v9616_v36  ;;  %v9453_v36 = vld [vmem:[#allocation13 + $0x190] sm:$0xf0] }
 0xc54   : > { %v6567_v3 = vpop.f32.mrf.mxu3 }
 0xc55   : > { %v15960_v51 = vpack.c.bf16 %v6567_v3, %v6565_v40  ;;  %v17204_v40 = vld [vmem:[#allocation98_spill] sm:$0xff]  ;;  %v10023_v3 = vld [vmem:[#allocation13 + $0x1c4] sm:$0xf] }
 0xc56   : > { %v15974_v2 = vpack.c.bf16 %v17205_v20, %v17204_v40  ;;  %v10011_v40 = vld [vmem:[#allocation13 + $0x164] sm:$0xf]  ;;  %v9437_v20 = vld [vmem:[#allocation13 + $0x170] sm:$0xf0] }
 0xc58   : > { %7537 = vmatmul.bf16.vlgmr.msra.gmra.mxu1 %v15942_v52 }
 0xc5a   : > { %7640 = vmatmul.bf16.gmra.mxu3 %v15944_v5 }
 0xc5c   : > { %v6570_v34 = vpop.f32.mrf.mxu3 }
 0xc64   : > { %v6572_v59 = vpop.f32.mrf.mxu3 }
 0xc65   : > { %v15968_v11 = vpack.c.bf16 %v6572_v59, %v6570_v34  ;;  %v9488_v34 = vor.u32 %v10023_v3, %v9485_v21  ;;  %v9597_v59 = vld [vmem:[#allocation13 + $0x2b0] sm:$0xf0]  ;;  %v9440_v3 = vor.u32 %v10011_v40, %v9437_v20  ;;  %v10063_v20 = vld [vmem:[#allocation13 + $0x304] sm:$0xf] }
 0xc66   : > { %v9600_v39 = vor.u32 %v10051_v16, %v9597_v59  ;;  %v9581_v59 = vld [vmem:[#allocation13 + $0x290] sm:$0xf0] }
 0xc67   : > { %7726 = vmatpush.bf16.msrb.mxu1 %v9488_v34  ;;  %v10071_v34 = vld [vmem:[#allocation13 + $0x344] sm:$0xf] }
 0xc68   : > { %7542 = vmatmul.bf16.gmra.mxu1 %v15950_v15  ;;  %7776 = vmatpush.bf16.msra.mxu2 %v9600_v39  ;;  %v9680_v14 = vor.u32 %v10071_v34, %v9677_v27  ;;  %v9661_v39 = vld [vmem:[#allocation13 + $0x330] sm:$0xf0] }
 0xc6a   : > { %7645 = vmatmul.bf16.gmra.mxu3 %v15952_v18 }
 0xc6b   : > { %7727 = vmatpush.bf16.msrb.mxu1 %v9472_v53  ;;  %v10067_v53 = vld [vmem:[#allocation13 + $0x324] sm:$0xf] }
 0xc78   : > { %7547 = vmatmul.bf16.gmra.mxu1 %v15958_v43 }
 0xc7a   : > { %7650 = vmatmul.bf16.gmra.mxu3 %v15960_v51 }
 0xc81   : > { %v6575_v54 = vpop.f32.mrf.mxu3 }
 0xc88   : > { %7552 = vmatmul.bf16.gmra.mxu1 %v15966_v60 }
 0xc89   : > { %v6577_v61 = vpop.f32.mrf.mxu3 }
 0xc8a   : > { %7655 = vmatmul.bf16.gmra.mxu3 %v15968_v11  ;;  %v15976_v17 = vpack.c.bf16 %v6577_v61, %v6575_v54  ;;  %v9709_v54 = vld [vmem:[#allocation13 + $0x390] sm:$0xf0]  ;;  %v9456_v61 = vor.u32 %v10015_v26, %v9453_v36  ;;  %v10003_v26 = vld [vmem:[#allocation13 + $0x124] sm:$0xf] }
 0xc8b   : > { %v9712_v63 = vor.u32 %v10079_v46, %v9709_v54  ;;  %v9584_v46 = vor.u32 %v10047_v55, %v9581_v59  ;;  %v9664_v54 = vor.u32 %v10067_v53, %v9661_v39  ;;  %v10043_v36 = vld [vmem:[#allocation13 + $0x264] sm:$0xf]  ;;  %v9549_v53 = vld [vmem:[#allocation13 + $0x250] sm:$0xf0] }
 0xc8c   : > { %7728 = vmatpush.bf16.msrb.mxu1 %v9456_v61  ;;  %v9999_v55 = vld [vmem:[#allocation13 + $0x104] sm:$0xf] }
 0xc8d   : > { %7826 = vmatpush.bf16.msra.mxu3 %v9712_v63  ;;  %v9405_v63 = vld [vmem:[#allocation13 + $0x130] sm:$0xf0]  ;;  %7777 = vmatpush.bf16.msra.mxu2 %v9584_v46  ;;  %v10035_v39 = vld [vmem:[#allocation13 + $0x224] sm:$0xf] }
 0xc8e   : > { %v9408_v61 = vor.u32 %v10003_v26, %v9405_v63  ;;  %v9533_v46 = vld [vmem:[#allocation13 + $0x230] sm:$0xf0]  ;;  %v10031_v63 = vld [vmem:[#allocation13 + $0x204] sm:$0xf] }
 0xc90   : > { %7729 = vmatpush.bf16.msrb.mxu1 %v9440_v3  ;;  %v9645_v3 = vld [vmem:[#allocation13 + $0x310] sm:$0xf0] }
 0xc91   : > { %v9648_v27 = vor.u32 %v10063_v20, %v9645_v3  ;;  %v17208_v20 = vld [vmem:[#allocation63_spill] sm:$0xff] }
 0xc95   : > { %v6269_v50 = vpop.f32.mrf.mxu1 }
 0xc98   : > { %7557 = vmatmul.bf16.gmra.mxu1 %v15974_v2 }
 0xc9a   : > { %7660 = vmatmul.bf16.gmra.mxu3 %v15976_v17 }
 0xc9d   : > { %v6271_v48 = vpop.f32.mrf.mxu1 }
 0xc9e   : > { %v15980_v62 = vpack.c.bf16 %v6271_v48, %v6269_v50  ;;  %v9696_v50 = vor.u32 %v10075_v7, %v9693_v58  ;;  %v10007_v48 = vld [vmem:[#allocation13 + $0x144] sm:$0xf]  ;;  %v9565_v7 = vld [vmem:[#allocation13 + $0x270] sm:$0xf0] }
 0xc9f   : > { %v9424_v16 = vor.u32 %v10007_v48, %v9421_v12  ;;  %v9568_v58 = vor.u32 %v10043_v36, %v9565_v7  ;;  %v17207_v48 = vld [vmem:[#allocation62_spill] sm:$0xff] }
 0xca0   : > { %7611 = vmatmul.bf16.gmra.mxu2 %v15980_v62  ;;  %7827 = vmatpush.bf16.msra.mxu3 %v9696_v50  ;;  %v9517_v36 = vld [vmem:[#allocation13 + $0x210] sm:$0xf0] }
 0xca1   : > { %7730 = vmatpush.bf16.msrb.mxu1 %v9424_v16  ;;  %7778 = vmatpush.bf16.msra.mxu2 %v9568_v58  ;;  %v10039_v16 = vld [vmem:[#allocation13 + $0x244] sm:$0xf]  ;;  %v9520_v58 = vor.u32 %v10031_v63, %v9517_v36  ;;  %v17210_v63 = vld [vmem:[#allocation29_spill] sm:$0xff] }
 0xca4   : > { %7828 = vmatpush.bf16.msra.mxu3 %v9680_v14 }
 0xca5   : > { %7731 = vmatpush.bf16.msrb.mxu1 %v9408_v61 }
 0xca8   : > { %7562 = vmatmul.bf16.gmra.mxu1 %v17206_v49  ;;  %7829 = vmatpush.bf16.msra.mxu3 %v9664_v54  ;;  %v9552_v54 = vor.u32 %v10039_v16, %v9549_v53  ;;  %v17209_v16 = vld [vmem:[#allocation101_spill] sm:$0xff] }
 0xcaa   : > { %7779 = vmatpush.bf16.msra.mxu2 %v9552_v54 }
 0xcab   : > { %v6580_v21 = vpop.f32.mrf.mxu3 }
 0xcac   : > { %7830 = vmatpush.bf16.msra.mxu3 %v9648_v27 }
 0xcad   : > { %v6274_v45 = vpop.f32.mrf.mxu1 }
 0xcb3   : > { %v6582_v50 = vpop.f32.mrf.mxu3 }
 0xcb4   : > { %v15984_v40 = vpack.c.bf16 %v6582_v50, %v6580_v21  ;;  %v9389_v21 = vld [vmem:[#allocation13 + $0x110] sm:$0xf0]  ;;  %v7587_v50 = vpop.f32.mrf.mxu2 }
 0xcb5   : > { %v6276_v34 = vpop.f32.mrf.mxu1  ;;  %v9392_v59 = vor.u32 %v9999_v55, %v9389_v21 }
 0xcb6   : > { %v15986_v14 = vpack.c.bf16 %v6276_v34, %v6274_v45  ;;  %7665 = vmatmul.bf16.gmra.mxu3 %v15984_v40  ;;  %v9536_v45 = vor.u32 %v10035_v39, %v9533_v46  ;;  %v15998_v34 = vld [vmem:[%s16301_s6] sm:$0xf] }
 0xcb7   : > { %7732 = vmatpush.bf16.msrb.mxu1 %v9392_v59 }
 0xcb8   : > { %7567 = vmatmul.bf16.gmra.mxu1 %v17207_v48  ;;  %7616 = vmatmul.bf16.gmra.mxu2 %v15986_v14 }
 0xcb9   : > { %7780 = vmatpush.bf16.msra.mxu2 %v9536_v45 }
 0xcbc   : > { %v7589_v21 = vpop.f32.mrf.mxu2 }
 0xcbd   : > { %v6585_v12 = vpop.f32.mrf.mxu3  ;;  %7781 = vmatpush.bf16.msra.mxu2 %v9520_v58 }
 0xcc4   : > { %v7592_v45 = vpop.f32.mrf.mxu2 }
 0xcc5   : > { %v6587_v26 = vpop.f32.mrf.mxu3  ;;  %v6279_v7 = vpop.f32.mrf.mxu1 }
 0xcc6   : > { %v15991_v61 = vpack.c.bf16 %v6587_v26, %v6585_v12  ;;  %v16003_v12 = vperm.slane %v15998_v34, 0 }
 0xcc8   : > { %7670 = vmatmul.bf16.gmra.mxu3 %v15991_v61  ;;  %7572 = vmatmul.bf16.gmra.mxu1 %v17208_v20  ;;  %v7490_v59 = vadd.f32 %v17209_v16, %v16003_v12  ;;  %v7492_v36 = vadd.f32 %v17210_v63, %v16003_v12 }
 0xccd   : > { %v7636_v3 = vpop.f32.mrf.mxu3  ;;  %v6281_v27 = vpop.f32.mrf.mxu1 }
 0xcce   : > { %v16000_v55 = vpack.c.bf16 %v6281_v27, %v6279_v7 }
 0xcd0   : > { %7621 = vmatmul.bf16.gmra.mxu2 %v16000_v55 }
 0xcd5   : > { %v7638_v53 = vpop.f32.mrf.mxu3  ;;  %v7538_v39 = vpop.f32.mrf.mxu1 }
 0xcd6   : > { %v7539_v46 = vadd.f32 %v7538_v39, %v7490_v59  ;;  %v17211_v59 = vld [vmem:[#allocation75_spill] sm:$0xff]  ;;  %v7594_v39 = vpop.f32.mrf.mxu2 }
 0xcd8   : > { %7831 = vmatmul.bf16.vlgmr.msra.gmra.mxu3 %v15934_v42  ;;  %v7588_v54 = vadd.f32 %v7587_v50, %v7539_v46  ;;  %7733 = vmatmul.bf16.vlgmr.msrb.gmra.mxu1 %v15942_v52 }
 0xcda   : > { %v7637_v26 = vadd.f32 %v7636_v3, %v7588_v54  ;;  %v7495_v3 = vadd.f32 %v17211_v59, %v16003_v12 }
 0xcdc   : > { %8264 = vst [vmem:[%s16014_s11] sm:$0xff] %v7637_v26 }
 0xcdd   : > { %v7641_v7 = vpop.f32.mrf.mxu3  ;;  %v7540_v58 = vpop.f32.mrf.mxu1 }
 0xcde   : > { %v7541_v27 = vadd.f32 %v7540_v58, %v7492_v36 }
 0xce0   : > { %v7590_v16 = vadd.f32 %v7589_v21, %v7541_v27  ;;  %7782 = vmatmul.bf16.vlgmr.msra.gmra.mxu2 %v15859_v4  ;;  %v17212_v21 = vld [vmem:[#allocation58_spill] sm:$0xff]  ;;  %v7597_v27 = vpop.f32.mrf.mxu2 }
 0xce1   : > { %v7497_v58 = vadd.f32 %v17212_v21, %v16003_v12 }
 0xce2   : > { %v7639_v50 = vadd.f32 %v7638_v53, %v7590_v16 }
 0xce4   : > { %8268 = vst [vmem:[%s16014_s11 + $0x20] sm:$0xff] %v7639_v50 }
 0xce5   : > { %v7643_v46 = vpop.f32.mrf.mxu3  ;;  %v7543_v54 = vpop.f32.mrf.mxu1 }
 0xce6   : > { %v7544_v63 = vadd.f32 %v7543_v54, %v7495_v3  ;;  %v17213_v3 = vld [vmem:[#allocation60_spill] sm:$0xff] }
 0xce7   : > { %v7500_v54 = vadd.f32 %v17213_v3, %v16003_v12 }
 0xce8   : > { %7836 = vmatmul.bf16.gmra.mxu3 %v15944_v5  ;;  %v7593_v26 = vadd.f32 %v7592_v45, %v7544_v63  ;;  %7738 = vmatmul.bf16.gmra.mxu1 %v15950_v15 }
 0xcea   : > { %v7642_v36 = vadd.f32 %v7641_v7, %v7593_v26  ;;  %v7599_v7 = vpop.f32.mrf.mxu2 }
 0xcec   : > { %8272 = vst [vmem:[%s16014_s11 + $0x40] sm:$0xff] %v7642_v36 }
 0xced   : > { %v7646_v53 = vpop.f32.mrf.mxu3  ;;  %v7545_v16 = vpop.f32.mrf.mxu1 }
 0xcee   : > { %v7546_v59 = vadd.f32 %v7545_v16, %v7497_v58 }
 0xcf0   : > { %v7595_v50 = vadd.f32 %v7594_v39, %v7546_v59  ;;  %7787 = vmatmul.bf16.gmra.mxu2 %v15915_v28  ;;  %v17214_v39 = vld [vmem:[#allocation43_spill] sm:$0xff] }
 0xcf1   : > { %v7502_v58 = vadd.f32 %v17214_v39, %v16003_v12  ;;  %v10094_v39 = vld [vmem:[#allocation13 + $0x3f4] sm:$0xf0] }
 0xcf2   : > { %v7644_v25 = vadd.f32 %v7643_v46, %v7595_v50  ;;  %v7602_v16 = vpop.f32.mrf.mxu2  ;;  %v9764_v10 = vor.u32 %v10094_v39, %v9763_v29  ;;  %v10058_v39 = vld [vmem:[#allocation13 + $0x2d4] sm:$0xf0] }
 0xcf4   : > { %8276 = vst [vmem:[%s16014_s11 + $0x60] sm:$0xff] %v7644_v25  ;;  %8019 = vmatpush.bf16.msrb.mxu3 %v9764_v10  ;;  %v7510_v10 = vadd.f32 %v15620_v41, %v16003_v12 }
 0xcf5   : > { %v7648_v45 = vpop.f32.mrf.mxu3  ;;  %v7548_v63 = vpop.f32.mrf.mxu1 }
 0xcf6   : > { %v7549_v26 = vadd.f32 %v7548_v63, %v7500_v54  ;;  %v17215_v54 = vld [vmem:[#allocation76_spill] sm:$0xff] }
 0xcf7   : > { %v7505_v63 = vadd.f32 %v17215_v54, %v16003_v12  ;;  %v10030_v54 = vld [vmem:[#allocation13 + $0x1f4] sm:$0xf0] }
 0xcf8   : > { %7841 = vmatmul.bf16.gmra.mxu3 %v15952_v18  ;;  %v7598_v36 = vadd.f32 %v7597_v27, %v7549_v26  ;;  %7743 = vmatmul.bf16.gmra.mxu1 %v15958_v43  ;;  %v9635_v27 = vld [vmem:[#allocation13 + $0x2e8] sm:$0xf]  ;;  %v10062_v26 = vld [vmem:[#allocation13 + $0x2f4] sm:$0xf0] }
 0xcfa   : > { %v7647_v21 = vadd.f32 %v7646_v53, %v7598_v36  ;;  %v9636_v36 = vor.u32 %v10062_v26, %v9635_v27 }
 0xcfc   : > { %8280 = vst [vmem:[%s16014_s11 + $0x80] sm:$0xff] %v7647_v21  ;;  %7970 = vmatpush.bf16.msrb.mxu2 %v9636_v36 }
 0xcfd   : > { %v7550_v46 = vpop.f32.mrf.mxu1  ;;  %v7651_v50 = vpop.f32.mrf.mxu3 }
 0xcfe   : > { %v7551_v59 = vadd.f32 %v7550_v46, %v7502_v58 }
 0xd00   : > { %v7600_v25 = vadd.f32 %v7599_v7, %v7551_v59  ;;  %7792 = vmatmul.bf16.gmra.mxu2 %v15922_v57  ;;  %v7604_v7 = vpop.f32.mrf.mxu2  ;;  %v17216_v59 = vld [vmem:[#allocation82_spill] sm:$0xff] }
 0xd02   : > { %v7649_v3 = vadd.f32 %v7648_v45, %v7600_v25  ;;  %v7507_v25 = vadd.f32 %v17216_v59, %v16003_v12  ;;  %v10090_v59 = vld [vmem:[#allocation13 + $0x3d4] sm:$0xf0] }
 0xd04   : > { %8284 = vst [vmem:[%s16014_s11 + $0xa0] sm:$0xff] %v7649_v3  ;;  %v9507_v3 = vld [vmem:[#allocation13 + $0x1e8] sm:$0xf] }
 0xd05   : > { %v7553_v53 = vpop.f32.mrf.mxu1  ;;  %v7653_v45 = vpop.f32.mrf.mxu3 }
 0xd06   : > { %v7554_v21 = vadd.f32 %v7553_v53, %v7505_v63  ;;  %v9508_v63 = vor.u32 %v10030_v54, %v9507_v3  ;;  %v9491_v54 = vld [vmem:[#allocation13 + $0x1c8] sm:$0xf] }
 0xd08   : > { %7846 = vmatmul.bf16.gmra.mxu3 %v15960_v51  ;;  %v7603_v58 = vadd.f32 %v7602_v16, %v7554_v21  ;;  %7748 = vmatmul.bf16.gmra.mxu1 %v15966_v60  ;;  %v7607_v16 = vpop.f32.mrf.mxu2 }
 0xd09   : > { %7921 = vmatpush.bf16.msra.mxu1 %v9508_v63  ;;  %v7512_v63 = vadd.f32 %v15637_v44, %v16003_v12 }
 0xd0a   : > { %v7652_v46 = vadd.f32 %v7651_v50, %v7603_v58  ;;  %v9619_v50 = vld [vmem:[#allocation13 + $0x2c8] sm:$0xf] }
 0xd0b   : > { %v9620_v58 = vor.u32 %v10058_v39, %v9619_v50  ;;  %v9731_v39 = vld [vmem:[#allocation13 + $0x3a8] sm:$0xf] }
 0xd0c   : > { %8288 = vst [vmem:[%s16014_s11 + $0xc0] sm:$0xff] %v7652_v46  ;;  %v9747_v46 = vld [vmem:[#allocation13 + $0x3c8] sm:$0xf] }
 0xd0d   : > { %v7555_v27 = vpop.f32.mrf.mxu1  ;;  %v7656_v36 = vpop.f32.mrf.mxu3  ;;  %7971 = vmatpush.bf16.msrb.mxu2 %v9620_v58  ;;  %v9475_v58 = vld [vmem:[#allocation13 + $0x1a8] sm:$0xf] }
 0xd0e   : > { %v7556_v29 = vadd.f32 %v7555_v27, %v7507_v25  ;;  %v9748_v25 = vor.u32 %v10090_v59, %v9747_v46  ;;  %v10022_v46 = vld [vmem:[#allocation13 + $0x1b4] sm:$0xf0]  ;;  %v9603_v59 = vld [vmem:[#allocation13 + $0x2a8] sm:$0xf] }
 0xd10   : > { %v7605_v26 = vadd.f32 %v7604_v7, %v7556_v29  ;;  %7797 = vmatmul.bf16.gmra.mxu2 %v15929_v33  ;;  %v10026_v7 = vld [vmem:[#allocation13 + $0x1d4] sm:$0xf0]  ;;  %8020 = vmatpush.bf16.msrb.mxu3 %v9748_v25  ;;  %v7609_v29 = vpop.f32.mrf.mxu2 }
 0xd11   : > { %v10054_v25 = vld [vmem:[#allocation13 + $0x2b4] sm:$0xf0] }
 0xd12   : > { %v7654_v53 = vadd.f32 %v7653_v45, %v7605_v26  ;;  %v9492_v45 = vor.u32 %v10026_v7, %v9491_v54  ;;  %v9604_v44 = vor.u32 %v10054_v25, %v9603_v59  ;;  %v7515_v54 = vadd.f32 %v15651_v37, %v16003_v12  ;;  %v10078_v37 = vld [vmem:[#allocation13 + $0x374] sm:$0xf0]  ;;  %v9683_v25 = vld [vmem:[#allocation13 + $0x348] sm:$0xf] }
 0xd14   : > { %8292 = vst [vmem:[%s16014_s11 + $0xe0] sm:$0xff] %v7654_v53  ;;  %7922 = vmatpush.bf16.msra.mxu1 %v9492_v45  ;;  %7972 = vmatpush.bf16.msrb.mxu2 %v9604_v44  ;;  %v10074_v44 = vld [vmem:[#allocation13 + $0x354] sm:$0xf0] }
 0xd15   : > { %v7558_v21 = vpop.f32.mrf.mxu1  ;;  %v7658_v26 = vpop.f32.mrf.mxu3 }
 0xd16   : > { %v7559_v3 = vadd.f32 %v7558_v21, %v7510_v10  ;;  %v10086_v21 = vld [vmem:[#allocation13 + $0x3b4] sm:$0xf0] }
 0xd18   : > { %7851 = vmatmul.bf16.gmra.mxu3 %v15968_v11  ;;  %v7608_v27 = vadd.f32 %v7607_v16, %v7559_v3  ;;  %7753 = vmatmul.bf16.gmra.mxu1 %v15974_v2  ;;  %v9732_v16 = vor.u32 %v10086_v21, %v9731_v39  ;;  %v9699_v39 = vld [vmem:[#allocation13 + $0x368] sm:$0xf] }
 0xd19   : > { %v9700_v59 = vor.u32 %v10078_v37, %v9699_v39  ;;  %v9667_v39 = vld [vmem:[#allocation13 + $0x328] sm:$0xf]  ;;  %v10070_v37 = vld [vmem:[#allocation13 + $0x334] sm:$0xf0] }
 0xd1a   : > { %v7657_v41 = vadd.f32 %v7656_v36, %v7608_v27  ;;  %v9476_v36 = vor.u32 %v10022_v46, %v9475_v58  ;;  %8021 = vmatpush.bf16.msrb.mxu3 %v9732_v16  ;;  %v9443_v58 = vld [vmem:[#allocation13 + $0x168] sm:$0xf]  ;;  %v10014_v46 = vld [vmem:[#allocation13 + $0x174] sm:$0xf0] }
 0xd1c   : > { %8296 = vst [vmem:[%s16014_s11 + $0x100] sm:$0xff] %v7657_v41  ;;  %7923 = vmatpush.bf16.msra.mxu1 %v9476_v36  ;;  %v9444_v36 = vor.u32 %v10014_v46, %v9443_v58  ;;  %v10006_v58 = vld [vmem:[#allocation13 + $0x134] sm:$0xf0]  ;;  %v9571_v46 = vld [vmem:[#allocation13 + $0x268] sm:$0xf] }
 0xd1d   : > { %v7560_v53 = vpop.f32.mrf.mxu1  ;;  %v7661_v41 = vpop.f32.mrf.mxu3 }
 0xd1e   : > { %v7561_v10 = vadd.f32 %v7560_v53, %v7512_v63  ;;  %v9459_v53 = vld [vmem:[#allocation13 + $0x188] sm:$0xf] }
 0xd20   : > { %v7610_v50 = vadd.f32 %v7609_v29, %v7561_v10  ;;  %7802 = vmatmul.bf16.gmra.mxu2 %v15937_v22  ;;  %v9715_v29 = vld [vmem:[#allocation13 + $0x388] sm:$0xf] }
 0xd22   : > { %v7659_v3 = vadd.f32 %v7658_v26, %v7610_v50  ;;  %v10082_v26 = vld [vmem:[#allocation13 + $0x394] sm:$0xf0] }
 0xd23   : > { %v7612_v7 = vpop.f32.mrf.mxu2  ;;  %v9716_v10 = vor.u32 %v10082_v26, %v9715_v29  ;;  %v10018_v50 = vld [vmem:[#allocation13 + $0x194] sm:$0xf0]  ;;  %v9587_v29 = vld [vmem:[#allocation13 + $0x288] sm:$0xf] }
 0xd24   : > { %8300 = vst [vmem:[%s16014_s11 + $0x120] sm:$0xff] %v7659_v3  ;;  %v9460_v16 = vor.u32 %v10018_v50, %v9459_v53  ;;  %v7517_v3 = vadd.f32 %v15667_v9, %v16003_v12 }
 0xd25   : > { %v7563_v45 = vpop.f32.mrf.mxu1  ;;  %8022 = vmatpush.bf16.msrb.mxu3 %v9716_v10  ;;  %v7663_v50 = vpop.f32.mrf.mxu3 }
 0xd26   : > { %v7564_v27 = vadd.f32 %v7563_v45, %v7515_v54  ;;  %7924 = vmatpush.bf16.msra.mxu1 %v9460_v16  ;;  %v9427_v45 = vld [vmem:[#allocation13 + $0x148] sm:$0xf] }
 0xd27   : > { %v9411_v16 = vld [vmem:[#allocation13 + $0x128] sm:$0xf] }
 0xd28   : > { %7856 = vmatmul.bf16.gmra.mxu3 %v15976_v17  ;;  %v7613_v63 = vadd.f32 %v7612_v7, %v7564_v27  ;;  %7758 = vmatmul.bf16.gmra.mxu1 %v17206_v49  ;;  %v10010_v27 = vld [vmem:[#allocation13 + $0x154] sm:$0xf0] }
 0xd29   : > { %8023 = vmatpush.bf16.msrb.mxu3 %v9700_v59  ;;  %v9428_v9 = vor.u32 %v10010_v27, %v9427_v45  ;;  %v9668_v59 = vor.u32 %v10070_v37, %v9667_v39  ;;  %v10066_v45 = vld [vmem:[#allocation13 + $0x314] sm:$0xf0]  ;;  %v9395_v27 = vld [vmem:[#allocation13 + $0x108] sm:$0xf] }
 0xd2a   : > { %v7662_v21 = vadd.f32 %v7661_v41, %v7613_v63  ;;  %v9684_v41 = vor.u32 %v10074_v44, %v9683_v25  ;;  %v10050_v63 = vld [vmem:[#allocation13 + $0x294] sm:$0xf0]  ;;  %7925 = vmatpush.bf16.msra.mxu1 %v9444_v36  ;;  %v7520_v36 = vadd.f32 %v15671_v23, %v16003_v12  ;;  %v9539_v39 = vld [vmem:[#allocation13 + $0x228] sm:$0xf] }
 0xd2b   : > { %v7614_v26 = vpop.f32.mrf.mxu2  ;;  %v9588_v10 = vor.u32 %v10050_v63, %v9587_v29  ;;  %v9555_v63 = vld [vmem:[#allocation13 + $0x248] sm:$0xf]  ;;  %v10038_v37 = vld [vmem:[#allocation13 + $0x234] sm:$0xf0] }
 0xd2c   : > { %8304 = vst [vmem:[%s16014_s11 + $0x140] sm:$0xff] %v7662_v21 }
 0xd2d   : > { %v7565_v54 = vpop.f32.mrf.mxu1  ;;  %7973 = vmatpush.bf16.msrb.mxu2 %v9588_v10  ;;  %8024 = vmatpush.bf16.msrb.mxu3 %v9684_v41  ;;  %v10002_v41 = vld [vmem:[#allocation13 + $0x114] sm:$0xf0] }
 0xd2e   : > { %v7566_v7 = vadd.f32 %v7565_v54, %v7517_v3  ;;  %v10046_v3 = vld [vmem:[#allocation13 + $0x274] sm:$0xf0]  ;;  %7926 = vmatpush.bf16.msra.mxu1 %v9428_v9  ;;  %v9412_v54 = vor.u32 %v10006_v58, %v9411_v16  ;;  %v9396_v10 = vor.u32 %v10002_v41, %v9395_v27  ;;  %v9540_v58 = vor.u32 %v10038_v37, %v9539_v39 }
 0xd2f   : > { %v9572_v25 = vor.u32 %v10046_v3, %v9571_v46  ;;  %v7522_v3 = vadd.f32 %v15673_v13, %v16003_v12  ;;  %v7525_v41 = vadd.f32 %v15676_v30, %v16003_v12  ;;  %v7527_v37 = vadd.f32 %v15679_v31, %v16003_v12 }
 0xd30   : > { %v7615_v53 = vadd.f32 %v7614_v26, %v7566_v7  ;;  %7807 = vmatmul.bf16.gmra.mxu2 %v15980_v62  ;;  %v9651_v7 = vld [vmem:[#allocation13 + $0x308] sm:$0xf] }
 0xd31   : > { %7974 = vmatpush.bf16.msrb.mxu2 %v9572_v25  ;;  %8025 = vmatpush.bf16.msrb.mxu3 %v9668_v59  ;;  %v9652_v26 = vor.u32 %v10066_v45, %v9651_v7  ;;  %v9523_v59 = vld [vmem:[#allocation13 + $0x208] sm:$0xf]  ;;  %v10034_v25 = vld [vmem:[#allocation13 + $0x214] sm:$0xf0] }
 0xd32   : > { %v7664_v21 = vadd.f32 %v7663_v50, %v7615_v53  ;;  %7927 = vmatpush.bf16.msra.mxu1 %v9412_v54  ;;  %v10042_v53 = vld [vmem:[#allocation13 + $0x254] sm:$0xf0]  ;;  %v9524_v54 = vor.u32 %v10034_v25, %v9523_v59 }
 0xd33   : > { %v9556_v50 = vor.u32 %v10042_v53, %v9555_v63 }
 0xd34   : > { %8308 = vst [vmem:[%s16014_s11 + $0x160] sm:$0xff] %v7664_v21 }
 0xd35   : > { %v7568_v44 = vpop.f32.mrf.mxu1  ;;  %8026 = vmatpush.bf16.msrb.mxu3 %v9652_v26  ;;  %7975 = vmatpush.bf16.msrb.mxu2 %v9556_v50 }
 0xd36   : > { %v7569_v9 = vadd.f32 %v7568_v44, %v7520_v36  ;;  %7928 = vmatpush.bf16.msra.mxu1 %v9396_v10 }
 0xd38   : > { %7861 = vmatmul.bf16.gmra.mxu3 %v15984_v40  ;;  %7763 = vmatmul.bf16.gmra.mxu1 %v17207_v48 }
 0xd39   : > { %v7666_v29 = vpop.f32.mrf.mxu3  ;;  %7976 = vmatpush.bf16.msrb.mxu2 %v9540_v58 }
 0xd3b   : > { %v7617_v21 = vpop.f32.mrf.mxu2 }
 0xd3c   : > { %v7618_v23 = vadd.f32 %v7617_v21, %v7569_v9 }
 0xd3d   : > { %v7570_v16 = vpop.f32.mrf.mxu1  ;;  %7977 = vmatpush.bf16.msrb.mxu2 %v9524_v54 }
 0xd3e   : > { %v7667_v46 = vadd.f32 %v7666_v29, %v7618_v23  ;;  %v7571_v36 = vadd.f32 %v7570_v16, %v7522_v3  ;;  %v16084_v16 = vperm.slane %v15998_v34, 1 }
 0xd40   : > { %8312 = vst [vmem:[%s16014_s11 + $0x180] sm:$0xff] %v7667_v46  ;;  %7812 = vmatmul.bf16.gmra.mxu2 %v15986_v14  ;;  %v7686_v59 = vadd.f32 %v15689_v24, %v16084_v16 }
 0xd41   : > { %v7668_v44 = vpop.f32.mrf.mxu3 }
 0xd43   : > { %v7619_v7 = vpop.f32.mrf.mxu2 }
 0xd44   : > { %v7620_v45 = vadd.f32 %v7619_v7, %v7571_v36  ;;  %v7688_v7 = vadd.f32 %v15702_v38, %v16084_v16 }
 0xd45   : > { %v7573_v27 = vpop.f32.mrf.mxu1 }
 0xd46   : > { %v7669_v26 = vadd.f32 %v7668_v44, %v7620_v45  ;;  %v7574_v63 = vadd.f32 %v7573_v27, %v7525_v41  ;;  %v17217_v41 = vld [vmem:[#allocation21_spill] sm:$0xff] }
 0xd48   : > { %7866 = vmatmul.bf16.gmra.mxu3 %v15991_v61  ;;  %8316 = vst [vmem:[%s16014_s11 + $0x1a0] sm:$0xff] %v7669_v26  ;;  %7768 = vmatmul.bf16.gmra.mxu1 %v17208_v20 }
 0xd4b   : > { %v7671_v13 = vpop.f32.mrf.mxu3 }
 0xd4d   : > { %v7575_v29 = vpop.f32.mrf.mxu1 }
 0xd4e   : > { %v7576_v21 = vadd.f32 %v7575_v29, %v7527_v37  ;;  %v17218_v37 = vld [vmem:[#allocation28_spill] sm:$0xff] }
 0xd50   : > { %7817 = vmatmul.bf16.gmra.mxu2 %v16000_v55 }
 0xd53   : > { %v7673_v53 = vpop.f32.mrf.mxu3  ;;  %v7622_v9 = vpop.f32.mrf.mxu2 }
 0xd54   : > { %v7623_v10 = vadd.f32 %v7622_v9, %v7574_v63  ;;  %v7691_v63 = vadd.f32 %v17217_v41, %v16084_v16  ;;  %v10092_v41 = vld [vmem:[#allocation13 + $0x3ec] sm:$0xf] }
 0xd55   : > { %v7734_v50 = vpop.f32.mrf.mxu1 }
 0xd56   : > { %v7672_v39 = vadd.f32 %v7671_v13, %v7623_v10  ;;  %v7735_v31 = vadd.f32 %v7734_v50, %v7686_v59 }
 0xd58   : > { %8027 = vmatmul.bf16.vlgmr.msrb.gmra.mxu3 %v15934_v42  ;;  %8320 = vst [vmem:[%s16014_s11 + $0x1c0] sm:$0xff] %v7672_v39  ;;  %7929 = vmatmul.bf16.vlgmr.msra.gmra.mxu1 %v15942_v52 }
 0xd5b   : > { %v7832_v23 = vpop.f32.mrf.mxu3  ;;  %v7624_v30 = vpop.f32.mrf.mxu2 }
 0xd5c   : > { %v7625_v58 = vadd.f32 %v7624_v30, %v7576_v21  ;;  %v7693_v21 = vadd.f32 %v17218_v37, %v16084_v16 }
 0xd5d   : > { %v7736_v46 = vpop.f32.mrf.mxu1 }
 0xd5e   : > { %v7674_v3 = vadd.f32 %v7673_v53, %v7625_v58  ;;  %v7737_v45 = vadd.f32 %v7736_v46, %v7688_v7 }
 0xd60   : > { %8324 = vst [vmem:[%s16014_s11 + $0x1e0] sm:$0xff] %v7674_v3  ;;  %7978 = vmatmul.bf16.vlgmr.msrb.gmra.mxu2 %v15859_v4 }
 0xd63   : > { %v7834_v12 = vpop.f32.mrf.mxu3  ;;  %v7783_v25 = vpop.f32.mrf.mxu2 }
 0xd64   : > { %v7784_v44 = vadd.f32 %v7783_v25, %v7735_v31  ;;  %v17219_v31 = vld [vmem:[#allocation74_spill] sm:$0xff] }
 0xd65   : > { %v7739_v54 = vpop.f32.mrf.mxu1 }
 0xd66   : > { %v7833_v36 = vadd.f32 %v7832_v23, %v7784_v44  ;;  %v7740_v53 = vadd.f32 %v7739_v54, %v7691_v63  ;;  %v10060_v54 = vld [vmem:[#allocation13 + $0x2ec] sm:$0xf]  ;;  %v9765_v63 = vld [vmem:[#allocation13 + $0x3f8] sm:$0xf0] }
 0xd68   : > { %8032 = vmatmul.bf16.gmra.mxu3 %v15944_v5  ;;  %8265 = vst [vmem:[%s16014_s11 + $0x8] sm:$0xff] %v7833_v36  ;;  %7934 = vmatmul.bf16.gmra.mxu1 %v15950_v15  ;;  %v9637_v36 = vld [vmem:[#allocation13 + $0x2f8] sm:$0xf0] }
 0xd6b   : > { %v7837_v24 = vpop.f32.mrf.mxu3  ;;  %v7785_v27 = vpop.f32.mrf.mxu2 }
 0xd6c   : > { %v7786_v26 = vadd.f32 %v7785_v27, %v7737_v45  ;;  %v9640_v45 = vor.u32 %v10060_v54, %v9637_v36 }
 0xd6d   : > { %v7741_v13 = vpop.f32.mrf.mxu1 }
 0xd6e   : > { %v7835_v29 = vadd.f32 %v7834_v12, %v7786_v26  ;;  %v7742_v23 = vadd.f32 %v7741_v13, %v7693_v21  ;;  %v7696_v12 = vadd.f32 %v17219_v31, %v16084_v16  ;;  %8166 = vmatpush.bf16.msra.mxu2 %v9640_v45  ;;  %v17220_v13 = vld [vmem:[#allocation36_spill] sm:$0xff] }
 0xd70   : > { %8269 = vst [vmem:[%s16014_s11 + $0x28] sm:$0xff] %v7835_v29  ;;  %7983 = vmatmul.bf16.gmra.mxu2 %v15915_v28  ;;  %v7698_v29 = vadd.f32 %v17220_v13, %v16084_v16 }
 0xd73   : > { %v7839_v9 = vpop.f32.mrf.mxu3  ;;  %v7788_v38 = vpop.f32.mrf.mxu2 }
 0xd74   : > { %v7789_v10 = vadd.f32 %v7788_v38, %v7740_v53  ;;  %v9768_v53 = vor.u32 %v10092_v41, %v9765_v63  ;;  %v9509_v38 = vld [vmem:[#allocation13 + $0x1f8] sm:$0xf0] }
 0xd75   : > { %v7744_v50 = vpop.f32.mrf.mxu1  ;;  %v9493_v41 = vld [vmem:[#allocation13 + $0x1d8] sm:$0xf0] }
 0xd76   : > { %v7838_v39 = vadd.f32 %v7837_v24, %v7789_v10  ;;  %v7745_v25 = vadd.f32 %v7744_v50, %v7696_v12  ;;  %8215 = vmatpush.bf16.msra.mxu3 %v9768_v53  ;;  %v10056_v12 = vld [vmem:[#allocation13 + $0x2cc] sm:$0xf] }
 0xd78   : > { %8037 = vmatmul.bf16.gmra.mxu3 %v15952_v18  ;;  %8273 = vst [vmem:[%s16014_s11 + $0x48] sm:$0xff] %v7838_v39  ;;  %7939 = vmatmul.bf16.gmra.mxu1 %v15958_v43 }
 0xd7b   : > { %v7842_v30 = vpop.f32.mrf.mxu3  ;;  %v7790_v58 = vpop.f32.mrf.mxu2 }
 0xd7c   : > { %v7791_v46 = vadd.f32 %v7790_v58, %v7742_v23  ;;  %v17221_v58 = vld [vmem:[#allocation51_spill] sm:$0xff] }
 0xd7d   : > { %v7746_v3 = vpop.f32.mrf.mxu1 }
 0xd7e   : > { %v7840_v59 = vadd.f32 %v7839_v9, %v7791_v46  ;;  %v10028_v9 = vld [vmem:[#allocation13 + $0x1ec] sm:$0xf]  ;;  %v7747_v10 = vadd.f32 %v7746_v3, %v7698_v29  ;;  %v7701_v46 = vadd.f32 %v17221_v58, %v16084_v16  ;;  %v9733_v58 = vld [vmem:[#allocation13 + $0x3b8] sm:$0xf0] }
 0xd7f   : > { %v9512_v39 = vor.u32 %v10028_v9, %v9509_v38  ;;  %v10024_v29 = vld [vmem:[#allocation13 + $0x1cc] sm:$0xf] }
 0xd80   : > { %8277 = vst [vmem:[%s16014_s11 + $0x68] sm:$0xff] %v7840_v59  ;;  %7988 = vmatmul.bf16.gmra.mxu2 %v15922_v57  ;;  %v9496_v9 = vor.u32 %v10024_v29, %v9493_v41  ;;  %v9717_v29 = vld [vmem:[#allocation13 + $0x398] sm:$0xf0] }
 0xd81   : > { %8117 = vmatpush.bf16.msrb.mxu1 %v9512_v39 }
 0xd83   : > { %v7844_v44 = vpop.f32.mrf.mxu3  ;;  %v7793_v7 = vpop.f32.mrf.mxu2 }
 0xd84   : > { %v7794_v24 = vadd.f32 %v7793_v7, %v7745_v25  ;;  %v9621_v25 = vld [vmem:[#allocation13 + $0x2d8] sm:$0xf0] }
 0xd85   : > { %v7749_v27 = vpop.f32.mrf.mxu1  ;;  %v9624_v54 = vor.u32 %v10056_v12, %v9621_v25  ;;  %8118 = vmatpush.bf16.msrb.mxu1 %v9496_v9  ;;  %v9477_v25 = vld [vmem:[#allocation13 + $0x1b8] sm:$0xf0] }
 0xd86   : > { %v7843_v26 = vadd.f32 %v7842_v30, %v7794_v24  ;;  %v7750_v59 = vadd.f32 %v7749_v27, %v7701_v46  ;;  %v9749_v27 = vld [vmem:[#allocation13 + $0x3d8] sm:$0xf0] }
 0xd87   : > { %8167 = vmatpush.bf16.msra.mxu2 %v9624_v54  ;;  %v9461_v9 = vld [vmem:[#allocation13 + $0x198] sm:$0xf0] }
 0xd88   : > { %8042 = vmatmul.bf16.gmra.mxu3 %v15960_v51  ;;  %8281 = vst [vmem:[%s16014_s11 + $0x88] sm:$0xff] %v7843_v26  ;;  %7944 = vmatmul.bf16.gmra.mxu1 %v15966_v60  ;;  %v10088_v26 = vld [vmem:[#allocation13 + $0x3cc] sm:$0xf] }
 0xd89   : > { %v9752_v13 = vor.u32 %v10088_v26, %v9749_v27  ;;  %v17224_v27 = vld [vmem:[#allocation103_spill] sm:$0xff] }
 0xd8b   : > { %v7847_v50 = vpop.f32.mrf.mxu3  ;;  %v7795_v37 = vpop.f32.mrf.mxu2  ;;  %8216 = vmatpush.bf16.msra.mxu3 %v9752_v13  ;;  %v10080_v13 = vld [vmem:[#allocation13 + $0x38c] sm:$0xf] }
 0xd8c   : > { %v7796_v21 = vadd.f32 %v7795_v37, %v7747_v10  ;;  %v17223_v37 = vld [vmem:[#allocation71_spill] sm:$0xff]  ;;  %v9720_v41 = vor.u32 %v10080_v13, %v9717_v29 }
 0xd8d   : > { %v7751_v23 = vpop.f32.mrf.mxu1 }
 0xd8e   : > { %v7845_v30 = vadd.f32 %v7844_v44, %v7796_v21  ;;  %v17222_v44 = vld [vmem:[#allocation37_spill] sm:$0xff]  ;;  %v7706_v21 = vadd.f32 %v17223_v37, %v16084_v16 }
 0xd8f   : > { %v7703_v24 = vadd.f32 %v17222_v44, %v16084_v16 }
 0xd90   : > { %8285 = vst [vmem:[%s16014_s11 + $0xa8] sm:$0xff] %v7845_v30  ;;  %7993 = vmatmul.bf16.gmra.mxu2 %v15929_v33  ;;  %v10084_v30 = vld [vmem:[#allocation13 + $0x3ac] sm:$0xf] }
 0xd91   : > { %v7752_v63 = vadd.f32 %v7751_v23, %v7703_v24  ;;  %v9736_v46 = vor.u32 %v10084_v30, %v9733_v58  ;;  %v10020_v23 = vld [vmem:[#allocation13 + $0x1ac] sm:$0xf]  ;;  %v9445_v30 = vld [vmem:[#allocation13 + $0x178] sm:$0xf0] }
 0xd93   : > { %v7849_v31 = vpop.f32.mrf.mxu3  ;;  %v7798_v3 = vpop.f32.mrf.mxu2  ;;  %8217 = vmatpush.bf16.msra.mxu3 %v9736_v46 }
 0xd94   : > { %v7799_v36 = vadd.f32 %v7798_v3, %v7750_v59  ;;  %v10052_v3 = vld [vmem:[#allocation13 + $0x2ac] sm:$0xf] }
 0xd95   : > { %v7754_v7 = vpop.f32.mrf.mxu1 }
 0xd96   : > { %v7848_v45 = vadd.f32 %v7847_v50, %v7799_v36  ;;  %v7755_v59 = vadd.f32 %v7754_v7, %v7706_v21  ;;  %v9480_v36 = vor.u32 %v10020_v23, %v9477_v25  ;;  %v7708_v7 = vadd.f32 %v17224_v27, %v16084_v16  ;;  %v10012_v21 = vld [vmem:[#allocation13 + $0x16c] sm:$0xf] }
 0xd97   : > { %8218 = vmatpush.bf16.msra.mxu3 %v9720_v41  ;;  %v9448_v23 = vor.u32 %v10012_v21, %v9445_v30  ;;  %v10048_v27 = vld [vmem:[#allocation13 + $0x28c] sm:$0xf]  ;;  %v9589_v41 = vld [vmem:[#allocation13 + $0x298] sm:$0xf0] }
 0xd98   : > { %8047 = vmatmul.bf16.gmra.mxu3 %v15968_v11  ;;  %8289 = vst [vmem:[%s16014_s11 + $0xc8] sm:$0xff] %v7848_v45  ;;  %7949 = vmatmul.bf16.gmra.mxu1 %v15974_v2  ;;  %v9605_v45 = vld [vmem:[#allocation13 + $0x2b8] sm:$0xf0] }
 0xd99   : > { %v9608_v44 = vor.u32 %v10052_v3, %v9605_v45  ;;  %8119 = vmatpush.bf16.msrb.mxu1 %v9480_v36  ;;  %v9685_v45 = vld [vmem:[#allocation13 + $0x358] sm:$0xf0] }
 0xd9b   : > { %v7852_v53 = vpop.f32.mrf.mxu3  ;;  %v7800_v38 = vpop.f32.mrf.mxu2  ;;  %8168 = vmatpush.bf16.msra.mxu2 %v9608_v44  ;;  %v10008_v44 = vld [vmem:[#allocation13 + $0x14c] sm:$0xf] }
 0xd9c   : > { %v7801_v10 = vadd.f32 %v7800_v38, %v7752_v63  ;;  %v10016_v63 = vld [vmem:[#allocation13 + $0x18c] sm:$0xf] }
 0xd9d   : > { %v7756_v50 = vpop.f32.mrf.mxu1  ;;  %v10076_v38 = vld [vmem:[#allocation13 + $0x36c] sm:$0xf]  ;;  %v9464_v37 = vor.u32 %v10016_v63, %v9461_v9 }
 0xd9e   : > { %v7850_v39 = vadd.f32 %v7849_v31, %v7801_v10  ;;  %v7757_v10 = vadd.f32 %v7756_v50, %v7708_v7  ;;  %v10072_v50 = vld [vmem:[#allocation13 + $0x34c] sm:$0xf] }
 0xd9f   : > { %8120 = vmatpush.bf16.msrb.mxu1 %v9464_v37  ;;  %v10068_v63 = vld [vmem:[#allocation13 + $0x32c] sm:$0xf]  ;;  %v9413_v37 = vld [vmem:[#allocation13 + $0x138] sm:$0xf0] }
 0xda0   : > { %8293 = vst [vmem:[%s16014_s11 + $0xe8] sm:$0xff] %v7850_v39  ;;  %7998 = vmatmul.bf16.gmra.mxu2 %v15937_v22 }
 0xda3   : > { %v7854_v12 = vpop.f32.mrf.mxu3  ;;  %v7803_v54 = vpop.f32.mrf.mxu2  ;;  %8121 = vmatpush.bf16.msrb.mxu1 %v9448_v23 }
 0xda4   : > { %v7804_v31 = vadd.f32 %v7803_v54, %v7755_v59  ;;  %v17225_v54 = vld [vmem:[#allocation99_spill] sm:$0xff] }
 0xda5   : > { %v7759_v24 = vpop.f32.mrf.mxu1  ;;  %v7711_v36 = vadd.f32 %v17225_v54, %v16084_v16 }
 0xda6   : > { %v7853_v26 = vadd.f32 %v7852_v53, %v7804_v31  ;;  %v9701_v53 = vld [vmem:[#allocation13 + $0x378] sm:$0xf0]  ;;  %v9688_v31 = vor.u32 %v10072_v50, %v9685_v45 }
 0xda7   : > { %v9704_v46 = vor.u32 %v10076_v38, %v9701_v53  ;;  %v7760_v7 = vadd.f32 %v7759_v24, %v7711_v36  ;;  %v9592_v38 = vor.u32 %v10048_v27, %v9589_v41  ;;  %v10044_v53 = vld [vmem:[#allocation13 + $0x26c] sm:$0xf]  ;;  %v9653_v50 = vld [vmem:[#allocation13 + $0x318] sm:$0xf0] }
 0xda8   : > { %8052 = vmatmul.bf16.gmra.mxu3 %v15976_v17  ;;  %8297 = vst [vmem:[%s16014_s11 + $0x108] sm:$0xff] %v7853_v26  ;;  %7954 = vmatmul.bf16.gmra.mxu1 %v17206_v49  ;;  %v9429_v26 = vld [vmem:[#allocation13 + $0x158] sm:$0xf0]  ;;  %v10064_v36 = vld [vmem:[#allocation13 + $0x30c] sm:$0xf] }
 0xda9   : > { %8219 = vmatpush.bf16.msra.mxu3 %v9704_v46  ;;  %v9432_v29 = vor.u32 %v10008_v44, %v9429_v26  ;;  %8169 = vmatpush.bf16.msra.mxu2 %v9592_v38  ;;  %v9656_v45 = vor.u32 %v10064_v36, %v9653_v50  ;;  %v9397_v44 = vld [vmem:[#allocation13 + $0x118] sm:$0xf0]  ;;  %v10040_v26 = vld [vmem:[#allocation13 + $0x24c] sm:$0xf] }
 0xdaa   : > { %v10036_v41 = vld [vmem:[#allocation13 + $0x22c] sm:$0xf] }
 0xdab   : > { %v7857_v39 = vpop.f32.mrf.mxu3  ;;  %v7805_v58 = vpop.f32.mrf.mxu2  ;;  %8122 = vmatpush.bf16.msrb.mxu1 %v9432_v29  ;;  %v9557_v29 = vld [vmem:[#allocation13 + $0x258] sm:$0xf0] }
 0xdac   : > { %v7806_v59 = vadd.f32 %v7805_v58, %v7757_v10  ;;  %v10004_v10 = vld [vmem:[#allocation13 + $0x12c] sm:$0xf]  ;;  %v9573_v58 = vld [vmem:[#allocation13 + $0x278] sm:$0xf0] }
 0xdad   : > { %v7761_v25 = vpop.f32.mrf.mxu1  ;;  %8220 = vmatpush.bf16.msra.mxu3 %v9688_v31  ;;  %v9576_v24 = vor.u32 %v10044_v53, %v9573_v58  ;;  %v10000_v31 = vld [vmem:[#allocation13 + $0x10c] sm:$0xf] }
 0xdae   : > { %v7855_v3 = vadd.f32 %v7854_v12, %v7806_v59  ;;  %v9669_v12 = vld [vmem:[#allocation13 + $0x338] sm:$0xf0]  ;;  %v9416_v59 = vor.u32 %v10004_v10, %v9413_v37 }
 0xdaf   : > { %v9672_v30 = vor.u32 %v10068_v63, %v9669_v12  ;;  %8170 = vmatpush.bf16.msra.mxu2 %v9576_v24  ;;  %v9541_v63 = vld [vmem:[#allocation13 + $0x238] sm:$0xf0] }
 0xdb0   : > { %8301 = vst [vmem:[%s16014_s11 + $0x128] sm:$0xff] %v7855_v3  ;;  %8003 = vmatmul.bf16.gmra.mxu2 %v15980_v62  ;;  %v17226_v3 = vld [vmem:[#allocation85_spill] sm:$0xff]  ;;  %8123 = vmatpush.bf16.msrb.mxu1 %v9416_v59  ;;  %v9544_v37 = vor.u32 %v10036_v41, %v9541_v63  ;;  %v7723_v63 = vadd.f32 %v15840_v35, %v16084_v16 }
 0xdb1   : > { %v7713_v54 = vadd.f32 %v17226_v3, %v16084_v16  ;;  %8221 = vmatpush.bf16.msra.mxu3 %v9672_v30  ;;  %v9525_v30 = vld [vmem:[#allocation13 + $0x218] sm:$0xf0] }
 0xdb3   : > { %v7859_v13 = vpop.f32.mrf.mxu3  ;;  %v7808_v9 = vpop.f32.mrf.mxu2  ;;  %v7762_v27 = vadd.f32 %v7761_v25, %v7713_v54  ;;  %v10032_v25 = vld [vmem:[#allocation13 + $0x20c] sm:$0xf] }
 0xdb4   : > { %v7809_v21 = vadd.f32 %v7808_v9, %v7760_v7  ;;  %v9400_v7 = vor.u32 %v10000_v31, %v9397_v44  ;;  %v9560_v9 = vor.u32 %v10040_v26, %v9557_v29  ;;  %v9528_v58 = vor.u32 %v10032_v25, %v9525_v30 }
 0xdb5   : > { %v7764_v46 = vpop.f32.mrf.mxu1  ;;  %8222 = vmatpush.bf16.msra.mxu3 %v9656_v45  ;;  %v7721_v26 = vadd.f32 %v15831_v56, %v16084_v16 }
 0xdb6   : > { %v7858_v23 = vadd.f32 %v7857_v39, %v7809_v21  ;;  %8124 = vmatpush.bf16.msrb.mxu1 %v9400_v7  ;;  %8171 = vmatpush.bf16.msra.mxu2 %v9560_v9  ;;  %v7716_v21 = vadd.f32 %v15817_v19, %v16084_v16  ;;  %v7718_v19 = vadd.f32 %v15825_v32, %v16084_v16 }
 0xdb8   : > { %8057 = vmatmul.bf16.gmra.mxu3 %v15984_v40  ;;  %8305 = vst [vmem:[%s16014_s11 + $0x148] sm:$0xff] %v7858_v23  ;;  %7959 = vmatmul.bf16.gmra.mxu1 %v17207_v48  ;;  %v7765_v59 = vadd.f32 %v7764_v46, %v7716_v21 }
 0xdba   : > { %8172 = vmatpush.bf16.msra.mxu2 %v9544_v37 }
 0xdbb   : > { %v7862_v39 = vpop.f32.mrf.mxu3  ;;  %v7810_v12 = vpop.f32.mrf.mxu2 }
 0xdbc   : > { %v7811_v38 = vadd.f32 %v7810_v12, %v7762_v27 }
 0xdbd   : > { %v7766_v10 = vpop.f32.mrf.mxu1 }
 0xdbe   : > { %v7860_v53 = vadd.f32 %v7859_v13, %v7811_v38  ;;  %8173 = vmatpush.bf16.msra.mxu2 %v9528_v58  ;;  %v7767_v13 = vadd.f32 %v7766_v10, %v7718_v19  ;;  %v16159_v38 = vperm.slane %v15998_v34, 2 }
 0xdc0   : > { %8309 = vst [vmem:[%s16014_s11 + $0x168] sm:$0xff] %v7860_v53  ;;  %8008 = vmatmul.bf16.gmra.mxu2 %v15986_v14  ;;  %v7882_v21 = vadd.f32 %v15855_v1, %v16159_v38  ;;  %v7884_v34 = vadd.f32 %v15867_v8, %v16159_v38 }
 0xdc3   : > { %v7864_v24 = vpop.f32.mrf.mxu3  ;;  %v7813_v23 = vpop.f32.mrf.mxu2 }
 0xdc4   : > { %v7814_v3 = vadd.f32 %v7813_v23, %v7765_v59 }
 0xdc5   : > { %v7769_v54 = vpop.f32.mrf.mxu1 }
 0xdc6   : > { %v7863_v36 = vadd.f32 %v7862_v39, %v7814_v3  ;;  %v7770_v27 = vadd.f32 %v7769_v54, %v7721_v26  ;;  %v7901_v3 = vpop.f32.mrf.mxu0  ;;  %v7887_v54 = vadd.f32 %v15877_v6, %v16159_v38 }
 0xdc8   : > { %8062 = vmatmul.bf16.gmra.mxu3 %v15991_v61  ;;  %8313 = vst [vmem:[%s16014_s11 + $0x188] sm:$0xff] %v7863_v36  ;;  %7964 = vmatmul.bf16.gmra.mxu1 %v17208_v20 }
 0xdcb   : > { %v7867_v50 = vpop.f32.mrf.mxu3  ;;  %v7815_v45 = vpop.f32.mrf.mxu2 }
 0xdcc   : > { %v7816_v46 = vadd.f32 %v7815_v45, %v7767_v13 }
 0xdcd   : > { %v7771_v31 = vpop.f32.mrf.mxu1 }
 0xdce   : > { %v7865_v44 = vadd.f32 %v7864_v24, %v7816_v46  ;;  %v7772_v12 = vadd.f32 %v7771_v31, %v7723_v63  ;;  %v7903_v45 = vpop.f32.mrf.mxu0 }
 0xdd0   : > { %8317 = vst [vmem:[%s16014_s11 + $0x1a8] sm:$0xff] %v7865_v44  ;;  %8013 = vmatmul.bf16.gmra.mxu2 %v16000_v55 }
 0xdd3   : > { %v7869_v39 = vpop.f32.mrf.mxu3  ;;  %v7818_v7 = vpop.f32.mrf.mxu2 }
 0xdd4   : > { %v7819_v32 = vadd.f32 %v7818_v7, %v7770_v27  ;;  %v7892_v27 = vadd.f32 %v15902_v0, %v16159_v38 }
 0xdd5   : > { %v7930_v29 = vpop.f32.mrf.mxu1 }
 0xdd6   : > { %v7868_v41 = vadd.f32 %v7867_v50, %v7819_v32  ;;  %v7931_v35 = vadd.f32 %v7930_v29, %v7882_v21  ;;  %v7889_v50 = vadd.f32 %v15890_v47, %v16159_v38  ;;  %v7906_v47 = vpop.f32.mrf.mxu0 }
 0xdd8   : > { %8223 = vmatmul.bf16.vlgmr.msra.gmra.mxu3 %v15934_v42  ;;  %8321 = vst [vmem:[%s16014_s11 + $0x1c8] sm:$0xff] %v7868_v41  ;;  %8125 = vmatmul.bf16.vlgmr.msrb.gmra.mxu1 %v15942_v52  ;;  %v17227_v41 = vld [vmem:[#allocation56_spill] sm:$0xff] }
 0xdd9   : > { %v7894_v63 = vadd.f32 %v17227_v41, %v16159_v38 }
 0xddb   : > { %v8028_v56 = vpop.f32.mrf.mxu3  ;;  %v7820_v9 = vpop.f32.mrf.mxu2 }
 0xddc   : > { %v7821_v10 = vadd.f32 %v7820_v9, %v7772_v12 }
 0xddd   : > { %v7932_v37 = vpop.f32.mrf.mxu1 }
 0xdde   : > { %v7870_v53 = vadd.f32 %v7869_v39, %v7821_v10  ;;  %v7933_v58 = vadd.f32 %v7932_v37, %v7884_v34  ;;  %v7908_v9 = vpop.f32.mrf.mxu0 }
 0xde0   : > { %8325 = vst [vmem:[%s16014_s11 + $0x1e8] sm:$0xff] %v7870_v53  ;;  %8174 = vmatmul.bf16.vlgmr.msra.gmra.mxu2 %v15859_v4  ;;  %v17228_v53 = vld [vmem:[#allocation47_spill] sm:$0xff] }
 0xde1   : > { %v7897_v21 = vadd.f32 %v17228_v53, %v16159_v38 }
 0xde3   : > { %v8030_v42 = vpop.f32.mrf.mxu3  ;;  %v7979_v16 = vpop.f32.mrf.mxu2 }
 0xde4   : > { %v7980_v52 = vadd.f32 %v7979_v16, %v7931_v35 }
 0xde5   : > { %v7935_v25 = vpop.f32.mrf.mxu1 }
 0xde6   : > { %v8029_v30 = vadd.f32 %v8028_v56, %v7980_v52 }
 0xde8   : > { %8228 = vmatmul.bf16.gmra.mxu3 %v15944_v5  ;;  %8266 = vst [vmem:[%s16014_s11 + $0x10] sm:$0xff] %v8029_v30  ;;  %8130 = vmatmul.bf16.gmra.mxu1 %v15950_v15  ;;  %v7936_v5 = vadd.f32 %v7935_v25, %v7887_v54  ;;  %v7911_v25 = vpop.f32.mrf.mxu0  ;;  %v17229_v30 = vld [vmem:[#allocation46_spill] sm:$0xff] }
 0xde9   : > { %v7899_v34 = vadd.f32 %v17229_v30, %v16159_v38 }
 0xdeb   : > { %v8033_v1 = vpop.f32.mrf.mxu3  ;;  %v7981_v59 = vpop.f32.mrf.mxu2 }
 0xdec   : > { %v7982_v4 = vadd.f32 %v7981_v59, %v7933_v58 }
 0xded   : > { %v7937_v24 = vpop.f32.mrf.mxu1 }
 0xdee   : > { %v8031_v23 = vadd.f32 %v8030_v42, %v7982_v4  ;;  %v7938_v6 = vadd.f32 %v7937_v24, %v7889_v50 }
 0xdf0   : > { %8270 = vst [vmem:[%s16014_s11 + $0x30] sm:$0xff] %v8031_v23  ;;  %8179 = vmatmul.bf16.gmra.mxu2 %v15915_v28  ;;  %v7902_v23 = vadd.f32 %v7901_v3, %v16159_v38  ;;  %v7913_v54 = vpop.f32.mrf.mxu0 }
 0xdf3   : > { %v8035_v36 = vpop.f32.mrf.mxu3  ;;  %v7984_v8 = vpop.f32.mrf.mxu2 }
 0xdf4   : > { %v7985_v19 = vadd.f32 %v7984_v8, %v7936_v5 }
 0xdf5   : > { %v7940_v15 = vpop.f32.mrf.mxu1 }
 0xdf6   : > { %v8034_v13 = vadd.f32 %v8033_v1, %v7985_v19 }
 0xdf8   : > { %8233 = vmatmul.bf16.gmra.mxu3 %v15952_v18  ;;  %8274 = vst [vmem:[%s16014_s11 + $0x50] sm:$0xff] %v8034_v13  ;;  %8135 = vmatmul.bf16.gmra.mxu1 %v15958_v43  ;;  %v7941_v18 = vadd.f32 %v7940_v15, %v7892_v27  ;;  %v7904_v15 = vadd.f32 %v7903_v45, %v16159_v38  ;;  %v7916_v50 = vpop.f32.mrf.mxu0 }
 0xdfb   : > { %v8038_v46 = vpop.f32.mrf.mxu3  ;;  %v7986_v31 = vpop.f32.mrf.mxu2 }
 0xdfc   : > { %v7987_v28 = vadd.f32 %v7986_v31, %v7938_v6 }
 0xdfd   : > { %v7942_v44 = vpop.f32.mrf.mxu1 }
 0xdfe   : > { %v8036_v26 = vadd.f32 %v8035_v36, %v7987_v28  ;;  %v7943_v0 = vadd.f32 %v7942_v44, %v7894_v63  ;;  %v7907_v28 = vadd.f32 %v7906_v47, %v16159_v38  ;;  %v7912_v63 = vadd.f32 %v7911_v25, %v16159_v38 }
 0xe00   : > { %8278 = vst [vmem:[%s16014_s11 + $0x70] sm:$0xff] %v8036_v26  ;;  %8184 = vmatmul.bf16.gmra.mxu2 %v15922_v57  ;;  %v7918_v27 = vpop.f32.mrf.mxu0 }
 0xe03   : > { %v8040_v39 = vpop.f32.mrf.mxu3  ;;  %v7989_v7 = vpop.f32.mrf.mxu2 }
 0xe04   : > { %v7990_v43 = vadd.f32 %v7989_v7, %v7941_v18 }
 0xe05   : > { %v7945_v32 = vpop.f32.mrf.mxu1 }
 0xe06   : > { %v8039_v29 = vadd.f32 %v8038_v46, %v7990_v43 }
 0xe08   : > { %8238 = vmatmul.bf16.gmra.mxu3 %v15960_v51  ;;  %8282 = vst [vmem:[%s16014_s11 + $0x90] sm:$0xff] %v8039_v29  ;;  %8140 = vmatmul.bf16.gmra.mxu1 %v15966_v60  ;;  %v7946_v51 = vadd.f32 %v7945_v32, %v7897_v21  ;;  %v8077_v41 = vpop.f32.mrf.mxu0 }
 0xe0b   : > { %v8043_v12 = vpop.f32.mrf.mxu3  ;;  %v7991_v56 = vpop.f32.mrf.mxu2 }
 0xe0c   : > { %v7992_v57 = vadd.f32 %v7991_v56, %v7943_v0 }
 0xe0d   : > { %v7947_v10 = vpop.f32.mrf.mxu1 }
 0xe0e   : > { %v8041_v37 = vadd.f32 %v8040_v39, %v7992_v57  ;;  %v7948_v58 = vadd.f32 %v7947_v10, %v7899_v34  ;;  %v7909_v39 = vadd.f32 %v7908_v9, %v16159_v38  ;;  %v7914_v9 = vadd.f32 %v7913_v54, %v16159_v38 }
 0xe0f   : > { %v7919_v34 = vadd.f32 %v7918_v27, %v16159_v38 }
 0xe10   : > { %8286 = vst [vmem:[%s16014_s11 + $0xb0] sm:$0xff] %v8041_v37  ;;  %8189 = vmatmul.bf16.gmra.mxu2 %v15929_v33  ;;  %v8079_v10 = vpop.f32.mrf.mxu0 }
 0xe13   : > { %v8045_v35 = vpop.f32.mrf.mxu3  ;;  %v7994_v42 = vpop.f32.mrf.mxu2 }
 0xe14   : > { %v7995_v16 = vadd.f32 %v7994_v42, %v7946_v51  ;;  %v7917_v42 = vadd.f32 %v7916_v50, %v16159_v38 }
 0xe15   : > { %v7950_v60 = vpop.f32.mrf.mxu1 }
 0xe16   : > { %v8044_v52 = vadd.f32 %v8043_v12, %v7995_v16 }
 0xe18   : > { %8243 = vmatmul.bf16.gmra.mxu3 %v15968_v11  ;;  %8290 = vst [vmem:[%s16014_s11 + $0xd0] sm:$0xff] %v8044_v52  ;;  %8145 = vmatmul.bf16.gmra.mxu1 %v15974_v2  ;;  %v7951_v11 = vadd.f32 %v7950_v60, %v7902_v23  ;;  %v8082_v60 = vpop.f32.mrf.mxu0 }
 0xe1b   : > { %v8048_v1 = vpop.f32.mrf.mxu3  ;;  %v7996_v59 = vpop.f32.mrf.mxu2 }
 0xe1c   : > { %v7997_v33 = vadd.f32 %v7996_v59, %v7948_v58 }
 0xe1d   : > { %v7952_v4 = vpop.f32.mrf.mxu1 }
 0xe1e   : > { %v8046_v24 = vadd.f32 %v8045_v35, %v7997_v33  ;;  %v7953_v13 = vadd.f32 %v7952_v4, %v7904_v15  ;;  %v10652_v33 = vld [vmem:[%s16301_s6] sm:$0xf] }
 0xe20   : > { %8294 = vst [vmem:[%s16014_s11 + $0xf0] sm:$0xff] %v8046_v24  ;;  %8194 = vmatmul.bf16.gmra.mxu2 %v15937_v22  ;;  %v8084_v24 = vpop.f32.mrf.mxu0 }
 0xe23   : > { %v8050_v5 = vpop.f32.mrf.mxu3  ;;  %v7999_v36 = vpop.f32.mrf.mxu2 }
 0xe24   : > { %v8000_v8 = vadd.f32 %v7999_v36, %v7951_v11 }
 0xe25   : > { %v7955_v19 = vpop.f32.mrf.mxu1 }
 0xe26   : > { %v8049_v2 = vadd.f32 %v8048_v1, %v8000_v8  ;;  %v7956_v44 = vadd.f32 %v7955_v19, %v7907_v28 }
 0xe28   : > { %8248 = vmatmul.bf16.gmra.mxu3 %v15976_v17  ;;  %8298 = vst [vmem:[%s16014_s11 + $0x110] sm:$0xff] %v8049_v2  ;;  %8150 = vmatmul.bf16.gmra.mxu1 %v17206_v49  ;;  %v8087_v15 = vpop.f32.mrf.mxu0 }
 0xe2b   : > { %v8053_v3 = vpop.f32.mrf.mxu3  ;;  %v8001_v6 = vpop.f32.mrf.mxu2 }
 0xe2c   : > { %v8002_v22 = vadd.f32 %v8001_v6, %v7953_v13 }
 0xe2d   : > { %v7957_v46 = vpop.f32.mrf.mxu1 }
 0xe2e   : > { %v8051_v31 = vadd.f32 %v8050_v5, %v8002_v22  ;;  %v7958_v7 = vadd.f32 %v7957_v46, %v7909_v39 }
 0xe30   : > { %8302 = vst [vmem:[%s16014_s11 + $0x130] sm:$0xff] %v8051_v31  ;;  %8199 = vmatmul.bf16.gmra.mxu2 %v15980_v62 }
 0xe33   : > { %v8055_v17 = vpop.f32.mrf.mxu3  ;;  %v8004_v26 = vpop.f32.mrf.mxu2 }
 0xe34   : > { %v8005_v45 = vadd.f32 %v8004_v26, %v7956_v44  ;;  %v8089_v44 = vpop.f32.mrf.mxu0 }
 0xe35   : > { %v7960_v49 = vpop.f32.mrf.mxu1 }
 0xe36   : > { %v8054_v18 = vadd.f32 %v8053_v3, %v8005_v45  ;;  %v7961_v0 = vadd.f32 %v7960_v49, %v7912_v63 }
 0xe38   : > { %8253 = vmatmul.bf16.gmra.mxu3 %v15984_v40  ;;  %8306 = vst [vmem:[%s16014_s11 + $0x150] sm:$0xff] %v8054_v18  ;;  %8155 = vmatmul.bf16.gmra.mxu1 %v17207_v48 }
 0xe3b   : > { %v8058_v47 = vpop.f32.mrf.mxu3  ;;  %v8006_v43 = vpop.f32.mrf.mxu2 }
 0xe3c   : > { %v8007_v62 = vadd.f32 %v8006_v43, %v7958_v7  ;;  %v8092_v43 = vpop.f32.mrf.mxu0 }
 0xe3d   : > { %v7962_v32 = vpop.f32.mrf.mxu1 }
 0xe3e   : > { %v8056_v29 = vadd.f32 %v8055_v17, %v8007_v62  ;;  %v7963_v37 = vadd.f32 %v7962_v32, %v7914_v9 }
 0xe40   : > { %8310 = vst [vmem:[%s16014_s11 + $0x170] sm:$0xff] %v8056_v29  ;;  %8204 = vmatmul.bf16.gmra.mxu2 %v15986_v14 }
 0xe43   : > { %v8060_v40 = vpop.f32.mrf.mxu3  ;;  %v8009_v12 = vpop.f32.mrf.mxu2 }
 0xe44   : > { %v8010_v56 = vadd.f32 %v8009_v12, %v7961_v0 }
 0xe45   : > { %v7965_v57 = vpop.f32.mrf.mxu1 }
 0xe46   : > { %v8059_v48 = vadd.f32 %v8058_v47, %v8010_v56  ;;  %v7966_v16 = vadd.f32 %v7965_v57, %v7917_v42  ;;  %v8094_v57 = vpop.f32.mrf.mxu0 }
 0xe48   : > { %8258 = vmatmul.bf16.gmra.mxu3 %v15991_v61  ;;  %8314 = vst [vmem:[%s16014_s11 + $0x190] sm:$0xff] %v8059_v48  ;;  %8160 = vmatmul.bf16.gmra.mxu1 %v17208_v20 }
 0xe4b   : > { %v8063_v53 = vpop.f32.mrf.mxu3  ;;  %v8011_v21 = vpop.f32.mrf.mxu2 }
 0xe4c   : > { %v8012_v14 = vadd.f32 %v8011_v21, %v7963_v37 }
 0xe4d   : > { %v7967_v51 = vpop.f32.mrf.mxu1 }
 0xe4e   : > { %v8061_v35 = vadd.f32 %v8060_v40, %v8012_v14  ;;  %v7968_v58 = vadd.f32 %v7967_v51, %v7919_v34  ;;  %v8097_v42 = vpop.f32.mrf.mxu0 }
 0xe50   : > { %8318 = vst [vmem:[%s16014_s11 + $0x1b0] sm:$0xff] %v8061_v35  ;;  %8209 = vmatmul.bf16.gmra.mxu2 %v16000_v55  ;;  %v16226_v55 = vperm.slane %v10652_v33, 3 }
 0xe52   : > { %v8078_v11 = vadd.f32 %v8077_v41, %v16226_v55  ;;  %v8080_v13 = vadd.f32 %v8079_v10, %v16226_v55  ;;  %v8083_v28 = vadd.f32 %v8082_v60, %v16226_v55  ;;  %v8085_v39 = vadd.f32 %v8084_v24, %v16226_v55 }
 0xe53   : > { %v8065_v61 = vpop.f32.mrf.mxu3  ;;  %v8014_v52 = vpop.f32.mrf.mxu2  ;;  %v8088_v63 = vadd.f32 %v8087_v15, %v16226_v55  ;;  %v8090_v10 = vadd.f32 %v8089_v44, %v16226_v55  ;;  %v8095_v34 = vadd.f32 %v8094_v57, %v16226_v55 }
 0xe54   : > { %v8015_v25 = vadd.f32 %v8014_v52, %v7966_v16  ;;  %v8093_v16 = vadd.f32 %v8092_v43, %v16226_v55 }
 0xe55   : > { %v8126_v20 = vpop.f32.mrf.mxu1 }
 0xe56   : > { %v8064_v30 = vadd.f32 %v8063_v53, %v8015_v25  ;;  %v8127_v5 = vadd.f32 %v8126_v20, %v8078_v11 }
 0xe58   : > { %8322 = vst [vmem:[%s16014_s11 + $0x1d0] sm:$0xff] %v8064_v30 }
 0xe5b   : > { %v8224_v1 = vpop.f32.mrf.mxu3  ;;  %v8016_v59 = vpop.f32.mrf.mxu2 }
 0xe5c   : > { %v8017_v4 = vadd.f32 %v8016_v59, %v7968_v58  ;;  %v8099_v58 = vpop.f32.mrf.mxu0 }
 0xe5d   : > { %v8128_v23 = vpop.f32.mrf.mxu1  ;;  %v8100_v15 = vadd.f32 %v8099_v58, %v16226_v55 }
 0xe5e   : > { %v8066_v54 = vadd.f32 %v8065_v61, %v8017_v4  ;;  %v8129_v3 = vadd.f32 %v8128_v23, %v8080_v13 }
 0xe60   : > { %8326 = vst [vmem:[%s16014_s11 + $0x1f0] sm:$0xff] %v8066_v54  ;;  %v8098_v54 = vadd.f32 %v8097_v42, %v16226_v55 }
 0xe63   : > { %v8226_v38 = vpop.f32.mrf.mxu3  ;;  %v8175_v36 = vpop.f32.mrf.mxu2 }
 0xe64   : > { %v8176_v8 = vadd.f32 %v8175_v36, %v8127_v5 }
 0xe65   : > { %v8131_v19 = vpop.f32.mrf.mxu1 }
 0xe66   : > { %v8225_v2 = vadd.f32 %v8224_v1, %v8176_v8  ;;  %v8132_v17 = vadd.f32 %v8131_v19, %v8083_v28 }
 0xe68   : > { %8267 = vst [vmem:[%s16014_s11 + $0x18] sm:$0xff] %v8225_v2 }
 0xe6b   : > { %v8229_v50 = vpop.f32.mrf.mxu3  ;;  %v8177_v6 = vpop.f32.mrf.mxu2 }
 0xe6c   : > { %v8178_v22 = vadd.f32 %v8177_v6, %v8129_v3 }
 0xe6d   : > { %v8133_v46 = vpop.f32.mrf.mxu1 }
 0xe6e   : > { %v8227_v31 = vadd.f32 %v8226_v38, %v8178_v22  ;;  %v8134_v7 = vadd.f32 %v8133_v46, %v8085_v39  ;;  %v8102_v38 = vpop.f32.mrf.mxu0 }
 0xe6f   : > { %v8103_v28 = vadd.f32 %v8102_v38, %v16226_v55 }
 0xe70   : > { %8271 = vst [vmem:[%s16014_s11 + $0x38] sm:$0xff] %v8227_v31 }
 0xe73   : > { %v8231_v26 = vpop.f32.mrf.mxu3  ;;  %v8180_v45 = vpop.f32.mrf.mxu2 }
 0xe74   : > { %v8181_v27 = vadd.f32 %v8180_v45, %v8132_v17 }
 0xe75   : > { %v8136_v49 = vpop.f32.mrf.mxu1 }
 0xe76   : > { %v8230_v18 = vadd.f32 %v8229_v50, %v8181_v27  ;;  %v8137_v0 = vadd.f32 %v8136_v49, %v8088_v63  ;;  %v8104_v22 = vpop.f32.mrf.mxu0 }
 0xe78   : > { %8275 = vst [vmem:[%s16014_s11 + $0x58] sm:$0xff] %v8230_v18  ;;  %v8105_v18 = vadd.f32 %v8104_v22, %v16226_v55 }
 0xe7b   : > { %v8234_v47 = vpop.f32.mrf.mxu3  ;;  %v8182_v62 = vpop.f32.mrf.mxu2 }
 0xe7c   : > { %v8183_v32 = vadd.f32 %v8182_v62, %v8134_v7 }
 0xe7d   : > { %v8138_v29 = vpop.f32.mrf.mxu1 }
 0xe7e   : > { %v8232_v41 = vadd.f32 %v8231_v26, %v8183_v32  ;;  %v8139_v37 = vadd.f32 %v8138_v29, %v8090_v10  ;;  %v8107_v49 = vpop.f32.mrf.mxu0 }
 0xe7f   : > { %v8108_v29 = vadd.f32 %v8107_v49, %v16226_v55 }
 0xe80   : > { %8279 = vst [vmem:[%s16014_s11 + $0x78] sm:$0xff] %v8232_v41 }
 0xe83   : > { %v8236_v40 = vpop.f32.mrf.mxu3  ;;  %v8185_v12 = vpop.f32.mrf.mxu2 }
 0xe84   : > { %v8186_v56 = vadd.f32 %v8185_v12, %v8137_v0 }
 0xe85   : > { %v8141_v48 = vpop.f32.mrf.mxu1 }
 0xe86   : > { %v8235_v9 = vadd.f32 %v8234_v47, %v8186_v56  ;;  %v8142_v61 = vadd.f32 %v8141_v48, %v8093_v16  ;;  %v8109_v41 = vpop.f32.mrf.mxu0 }
 0xe87   : > { %v8110_v57 = vadd.f32 %v8109_v41, %v16226_v55 }
 0xe88   : > { %8283 = vst [vmem:[%s16014_s11 + $0x98] sm:$0xff] %v8235_v9 }
 0xe8b   : > { %v8239_v53 = vpop.f32.mrf.mxu3  ;;  %v8187_v21 = vpop.f32.mrf.mxu2 }
 0xe8c   : > { %v8188_v14 = vadd.f32 %v8187_v21, %v8139_v37 }
 0xe8d   : > { %v8143_v51 = vpop.f32.mrf.mxu1 }
 0xe8e   : > { %v8237_v35 = vadd.f32 %v8236_v40, %v8188_v14  ;;  %v8144_v1 = vadd.f32 %v8143_v51, %v8095_v34  ;;  %v8112_v10 = vpop.f32.mrf.mxu0 }
 0xe8f   : > { %v8113_v51 = vadd.f32 %v8112_v10, %v16226_v55 }
 0xe90   : > { %8287 = vst [vmem:[%s16014_s11 + $0xb8] sm:$0xff] %v8237_v35 }
 0xe93   : > { %v8241_v60 = vpop.f32.mrf.mxu3  ;;  %v8190_v52 = vpop.f32.mrf.mxu2 }
 0xe94   : > { %v8191_v25 = vadd.f32 %v8190_v52, %v8142_v61 }
 0xe95   : > { %v8146_v20 = vpop.f32.mrf.mxu1 }
 0xe96   : > { %v8240_v30 = vadd.f32 %v8239_v53, %v8191_v25  ;;  %v8147_v11 = vadd.f32 %v8146_v20, %v8098_v54 }
 0xe98   : > { %8291 = vst [vmem:[%s16014_s11 + $0xd8] sm:$0xff] %v8240_v30 }
 0xe9b   : > { %v8244_v59 = vpop.f32.mrf.mxu3  ;;  %v8192_v33 = vpop.f32.mrf.mxu2 }
 0xe9c   : > { %v8193_v4 = vadd.f32 %v8192_v33, %v8144_v1 }
 0xe9d   : > { %v8148_v24 = vpop.f32.mrf.mxu1 }
 0xe9e   : > { %v8242_v23 = vadd.f32 %v8241_v60, %v8193_v4  ;;  %v8149_v13 = vadd.f32 %v8148_v24, %v8100_v15  ;;  %v8114_v60 = vpop.f32.mrf.mxu0 }
 0xe9f   : > { %v8115_v20 = vadd.f32 %v8114_v60, %v16226_v55 }
 0xea0   : > { %8295 = vst [vmem:[%s16014_s11 + $0xf8] sm:$0xff] %v8242_v23 }
 0xea3   : > { %v8246_v5 = vpop.f32.mrf.mxu3  ;;  %v8195_v36 = vpop.f32.mrf.mxu2 }
 0xea4   : > { %v8196_v8 = vadd.f32 %v8195_v36, %v8147_v11 }
 0xea5   : > { %v8151_v19 = vpop.f32.mrf.mxu1 }
 0xea6   : > { %v8245_v2 = vadd.f32 %v8244_v59, %v8196_v8  ;;  %v8152_v44 = vadd.f32 %v8151_v19, %v8103_v28 }
 0xea8   : > { %8299 = vst [vmem:[%s16014_s11 + $0x118] sm:$0xff] %v8245_v2 }
 0xeab   : > { %v8249_v3 = vpop.f32.mrf.mxu3  ;;  %v8197_v50 = vpop.f32.mrf.mxu2 }
 0xeac   : > { %v8198_v6 = vadd.f32 %v8197_v50, %v8149_v13 }
 0xead   : > { %v8153_v31 = vpop.f32.mrf.mxu1 }
 0xeae   : > { %v8247_v46 = vadd.f32 %v8246_v5, %v8198_v6  ;;  %v8154_v7 = vadd.f32 %v8153_v31, %v8105_v18 }
 0xeb0   : > { %8303 = vst [vmem:[%s16014_s11 + $0x138] sm:$0xff] %v8247_v46 }
 0xeb3   : > { %v8200_v17 = vpop.f32.mrf.mxu2  ;;  %v8251_v45 = vpop.f32.mrf.mxu3 }
 0xeb4   : > { %v8201_v26 = vadd.f32 %v8200_v17, %v8152_v44 }
 0xeb5   : > { %v8156_v39 = vpop.f32.mrf.mxu1 }
 0xeb6   : > { %v8250_v27 = vadd.f32 %v8249_v3, %v8201_v26  ;;  %v8157_v63 = vadd.f32 %v8156_v39, %v8108_v29 }
 0xeb8   : > { %8307 = vst [vmem:[%s16014_s11 + $0x158] sm:$0xff] %v8250_v27 }
 0xebb   : > { %v8202_v47 = vpop.f32.mrf.mxu2  ;;  %v8254_v32 = vpop.f32.mrf.mxu3 }
 0xebc   : > { %v8203_v43 = vadd.f32 %v8202_v47, %v8154_v7 }
 0xebd   : > { %v8158_v0 = vpop.f32.mrf.mxu1 }
 0xebe   : > { %v8252_v62 = vadd.f32 %v8251_v45, %v8203_v43  ;;  %v8159_v9 = vadd.f32 %v8158_v0, %v8110_v57 }
 0xec0   : > { %8311 = vst [vmem:[%s16014_s11 + $0x178] sm:$0xff] %v8252_v62 }
 0xec3   : > { %v8205_v40 = vpop.f32.mrf.mxu2  ;;  %v8256_v48 = vpop.f32.mrf.mxu3 }
 0xec4   : > { %v8206_v12 = vadd.f32 %v8205_v40, %v8157_v63 }
 0xec5   : > { %v8161_v21 = vpop.f32.mrf.mxu1 }
 0xec6   : > { %v8255_v56 = vadd.f32 %v8254_v32, %v8206_v12  ;;  %v8162_v35 = vadd.f32 %v8161_v21, %v8113_v51 }
 0xec8   : > { %8315 = vst [vmem:[%s16014_s11 + $0x198] sm:$0xff] %v8255_v56 }
 0xecb   : > { %v8207_v37 = vpop.f32.mrf.mxu2  ;;  %v8259_v42 = vpop.f32.mrf.mxu3 }
 0xecc   : > { %v8208_v53 = vadd.f32 %v8207_v37, %v8159_v9 }
 0xecd   : > { %v8163_v25 = vpop.f32.mrf.mxu1 }
 0xece   : > { %v8257_v14 = vadd.f32 %v8256_v48, %v8208_v53  ;;  %v8164_v30 = vadd.f32 %v8163_v25, %v8115_v20 }
 0xed0   : > { %8319 = vst [vmem:[%s16014_s11 + $0x1b8] sm:$0xff] %v8257_v14 }
 0xed3   : > { %v8210_v16 = vpop.f32.mrf.mxu2  ;;  %v8261_v1 = vpop.f32.mrf.mxu3 }
 0xed4   : > { %v8211_v61 = vadd.f32 %v8210_v16, %v8162_v35 }
 0xed6   : > { %v8260_v52 = vadd.f32 %v8259_v42, %v8211_v61 }
 0xed8   : > { %8323 = vst [vmem:[%s16014_s11 + $0x1d8] sm:$0xff] %v8260_v52 }
 0xedb   : > { %v8212_v34 = vpop.f32.mrf.mxu2 }
 0xedc   : > { %v8213_v58 = vadd.f32 %v8212_v34, %v8164_v30 }
 0xede   : > { %v8262_v59 = vadd.f32 %v8261_v1, %v8213_v58 }
 0xee0   : > { %8327 = vst [vmem:[%s16014_s11 + $0x1f8] sm:$0xff] %v8262_v59 }
 0xee1   : > { %10845 = shalt.err (!%p10842_p9)
}
 0xee2   : > { %s10910_s0 = smov 512   ;;  %s10911_s11 = smov 32  }
 0xee3   : > { %10118 = dma.vmem_to_hbm [thread:$0]  (%p11042_p0), %s8342_s21, 8192, %s8344_s20, %s8329_s8, %s10910_s0, %s10910_s0, %s10911_s11  }
 0xee4 PF: > { %s8358_s16 = sand.u32 1, %s10884_s24   ;;  %p17230_p10 = scmp.ge.s32.totalorder %s10896_s27, 2 }
 0xee5   : > { %s8359_s12 = scalar_lea.sflag [#allocation5], %s8358_s16 }
 0xee6   : > { %p10141_p11 = pnand %p17230_p10, %p11048_p6 }
 0xee8   : > { %p10142_p12 = pneg %p10141_p11 }
 0xeea   : > { %10879 = dma.done.wait (%p10142_p12), %s8359_s12, 8192  }
 0xeeb   : > { %10881 = vsyncadd (%p10142_p12), %s8359_s12, 4294959104  ;;  %p23_p2 = scmp.ge.s32.totalorder %s11018_s23, 4   ;;  %s17231_s24 = smov %s10888_s25 }
 0xeec   : > { %s17232_s25 = smov %s10892_s26  ;;  %s17233_s26 = smov %s11030_s10 }
 0xeed   : > { %s17234_s27 = smov %s11018_s23  ;;  %25 = sbr.rel (!%p23_p2) target bundleno = 11 (0xb), region = 116 }
 0xef2   :  { %8365 = vsyncpa [#allocation4], 1 }
 0xef3   :  { %8367 = vsyncpa [#allocation4 + $0x1], 1 }
 0xef4   :  { %8368 = vsyncpa [#allocation9], 1 }
 0xef5   :  { %8369 = vsyncpa [#allocation12], 1 }
 0xef6   :  { %8370 = vsyncpa [#allocation5], 1 }
 0xef7   :  { %8372 = vsyncpa [#allocation5 + $0x1], 1 }
 0xef8   :  { %8373 = vsyncpa [#allocation6], 1 }
 0xef9   :  { %8375 = vsyncpa [#allocation6 + $0x1], 1 }

</bundles_post_ra>
